<compile_context>
chip_gen: v7x
topology: tpu7x:2x2x1
jax: 0.10.0
libtpu: 0.0.40
codegen_flags: <defaults>
</compile_context>

<pallas_src>
import functools
import math

import jax
import jax.numpy as jnp
from jax import lax
from jax.experimental import pallas as pl
from jax.experimental.pallas import tpu as pltpu

TWOPI = 2.0 * math.pi
TEMPERATURE = 10000.0
EPS = 1e-6


def _posenc_sine_kernel(inv_dim_ref, phase_ref, o_ref, *, H, W):
    """One homogeneous channel tile of the positional embedding.

    inv_dim_ref : (tc, 1, 1)  1 / dim_t for the channels in this tile
    phase_ref   : (tc, 1, 1)  0 for even channels (sin), pi/2 for odd (cos)
    o_ref       : (tc, H, W)  output tile; grid axis 0 == 0 -> pos_y half,
                                           grid axis 0 == 1 -> pos_x half.
    """
    tc = o_ref.shape[0]
    inv_dim_t = inv_dim_ref[...]          # (tc, 1, 1)
    phase = phase_ref[...]                # (tc, 1, 1)

    @pl.when(pl.program_id(0) == 0)
    def _y_half():
        # Row-only argument: sin over (tc, H, 1) — P*H transcendentals total.
        row = lax.broadcasted_iota(jnp.int32, (1, H, 1), 1).astype(jnp.float32) + 1.0
        y_embed = row * (TWOPI / (float(H) + EPS))           # (1, H, 1)
        vals = jnp.sin(y_embed * inv_dim_t + phase)          # (tc, H, 1)
        # Stride-0 broadcast along the lane (minor) axis — no extra compute.
        o_ref[...] = jnp.broadcast_to(vals, (tc, H, W)).astype(o_ref.dtype)

    @pl.when(pl.program_id(0) == 1)
    def _x_half():
        # Col-only argument: sin over (tc, 1, W) — P*W transcendentals total.
        col = lax.broadcasted_iota(jnp.int32, (1, 1, W), 2).astype(jnp.float32) + 1.0
        x_embed = col * (TWOPI / (float(W) + EPS))            # (1, 1, W)
        vals = jnp.sin(x_embed * inv_dim_t + phase)           # (tc, 1, W)
        # Stride-0 broadcast along the sublane (second-minor) axis.
        o_ref[...] = jnp.broadcast_to(vals, (tc, H, W)).astype(o_ref.dtype)


def _choose_channel_tile(P, HW, max_block_bytes=4 << 20):
    """Largest channel tile dividing P (half-width) whose (tc, H, W) f32
    output block fits the budget.  Blocks are double-buffered, so 2 x 4 MiB
    stays inside the v5e 16 MiB scoped-VMEM default (v6e/v7x: 32 MiB).  The
    leading (channel) dim of a 3-D block has no (8,128) constraint, and the
    y/x grid axis already guarantees >= 2 blocks for v7x's two TensorCores."""
    budget = max(1, max_block_bytes // max(1, HW * 4))
    best = 1
    for d in range(1, P + 1):
        if P % d == 0 and d <= budget:
            best = d
    return best


def position_embedding_sine_chw(H, W, num_pos_feats, *, out_dtype=jnp.float32):
    """Batch-invariant (C, H, W) positional embedding (torch cache entry)."""
    assert num_pos_feats % 2 == 0, "Expecting even model width"
    C = num_pos_feats
    P = C // 2
    tc = _choose_channel_tile(P, H * W)
    n_blocks = P // tc

    # Tiny channel-only tables (2*P floats), computed once by XLA.
    k = jnp.arange(P, dtype=jnp.float32)
    dim_t = TEMPERATURE ** (2.0 * jnp.floor(k / 2.0) / float(P))
    inv_dim_t = (1.0 / dim_t).reshape(P, 1, 1)                    # multiply, not divide
    phase = ((jnp.arange(P) % 2).astype(jnp.float32) * (math.pi / 2.0)).reshape(P, 1, 1)

    kernel = functools.partial(_posenc_sine_kernel, H=H, W=W)
    pos = pl.pallas_call(
        kernel,
        out_shape=jax.ShapeDtypeStruct((C, H, W), out_dtype),
        grid=(2, n_blocks),  # axis 0: y-half / x-half, axis 1: channel tiles
        in_specs=[
            pl.BlockSpec((tc, 1, 1), lambda g, i: (i, 0, 0)),
            pl.BlockSpec((tc, 1, 1), lambda g, i: (i, 0, 0)),
        ],
        out_specs=pl.BlockSpec((tc, H, W), lambda g, i: (g * n_blocks + i, 0, 0)),
        compiler_params=pltpu.CompilerParams(
            dimension_semantics=("parallel", "parallel")
        ),
    )(inv_dim_t, phase)
    return pos


def position_embedding_sine(x, num_pos_feats, *, out_dtype=jnp.float32):
    """Pallas equivalent of PositionEmbeddingSine(num_pos_feats).forward(x).

    Matches the torch module: returns (B, C, H, W).  The embedding itself is
    batch- and value-invariant, so it is computed exactly once; consumers that
    can fuse the `features + pos` add should call position_embedding_sine_chw
    and broadcast lazily to avoid materializing B copies in HBM.
    """
    B, _, H, W = x.shape
    pos = position_embedding_sine_chw(H, W, num_pos_feats, out_dtype=out_dtype)
    return jnp.broadcast_to(pos[None], (B, num_pos_feats, H, W))


def _reference(x, num_pos_feats):
    """Pure-JAX transcription of the PyTorch forward, for verification."""
    B, _, H, W = x.shape
    P = num_pos_feats // 2
    y_embed = jnp.broadcast_to(
        jnp.arange(1, H + 1, dtype=jnp.float32)[None, :, None], (B, H, W)
    )
    x_embed = jnp.broadcast_to(
        jnp.arange(1, W + 1, dtype=jnp.float32)[None, None, :], (B, H, W)
    )
    y_embed = y_embed / (y_embed[:, -1:, :] + EPS) * TWOPI
    x_embed = x_embed / (x_embed[:, :, -1:] + EPS) * TWOPI
    dim_t = jnp.arange(P, dtype=jnp.float32)
    dim_t = TEMPERATURE ** (2 * (dim_t // 2) / P)
    pos_x = x_embed[..., None] / dim_t
    pos_y = y_embed[..., None] / dim_t
    pos_x = jnp.stack(
        (jnp.sin(pos_x[..., 0::2]), jnp.cos(pos_x[..., 1::2])), axis=4
    ).reshape(B, H, W, -1)
    pos_y = jnp.stack(
        (jnp.sin(pos_y[..., 0::2]), jnp.cos(pos_y[..., 1::2])), axis=4
    ).reshape(B, H, W, -1)
    pos = jnp.concatenate((pos_y, pos_x), axis=3).transpose(0, 3, 1, 2)
    return pos


if __name__ == "__main__":
    key = jax.random.PRNGKey(0)
    # Only the shape of x matters for this module's forward (NCHW).
    x = jax.random.normal(key, (2, 4, 16, 16), dtype=jnp.float32)
    num_pos_feats = 32  # module width; output has 32 channels

    pos = position_embedding_sine(x, num_pos_feats)
    pos = jax.block_until_ready(pos)

    ref = _reference(x, num_pos_feats)
    assert pos.shape == (2, num_pos_feats, 16, 16)
    assert jnp.allclose(pos, ref, atol=1e-4, rtol=1e-4), (
        f"max abs diff = {jnp.max(jnp.abs(pos - ref))}"
    )
    print("KERNEL_OK")
</pallas_src>

<mosaic_0001>
module attributes {stable_mosaic.version = 11 : i64} {
  func.func @_posenc_sine_kernel(%arg0: i32, %arg1: i32, %arg2: memref<16x1x1xf32, #tpu.memory_space<vmem>>, %arg3: memref<16x1x1xf32, #tpu.memory_space<vmem>>, %arg4: memref<16x16x16xf32, #tpu.memory_space<vmem>>) attributes {dimension_semantics = [#tpu.dimension_semantics<parallel>, #tpu.dimension_semantics<parallel>], iteration_bounds = array<i64: 2, 1>, scalar_prefetch = 0 : i64, scratch_operands = 0 : i64, tpu.core_type = #tpu.core_type<tc>, window_params = [{transform_indices = @transform_0, window_bounds = array<i64: 16, 1, 1>}, {transform_indices = @transform_1, window_bounds = array<i64: 16, 1, 1>}, {transform_indices = @transform_2, window_bounds = array<i64: 16, 16, 16>}]} {
    %c0 = arith.constant 0 : index
    %c0_0 = arith.constant 0 : index
    %c0_1 = arith.constant 0 : index
    %0 = vector.load %arg2[%c0, %c0_0, %c0_1] : memref<16x1x1xf32, #tpu.memory_space<vmem>>, vector<16x1x1xf32>
    %c0_2 = arith.constant 0 : index
    %c0_3 = arith.constant 0 : index
    %c0_4 = arith.constant 0 : index
    %1 = vector.load %arg3[%c0_2, %c0_3, %c0_4] : memref<16x1x1xf32, #tpu.memory_space<vmem>>, vector<16x1x1xf32>
    %c0_i32 = arith.constant 0 : i32
    %2 = arith.cmpi eq, %arg0, %c0_i32 : i32
    %3 = arith.extui %2 : i1 to i32
    %c0_i32_5 = arith.constant 0 : i32
    %4 = arith.cmpi ne, %3, %c0_i32_5 : i32
    scf.if %4 {
      %8 = tpu.iota {dimensions = array<i32: 1>} : vector<1x16x1xi32>
      %9 = arith.sitofp %8 : vector<1x16x1xi32> to vector<1x16x1xf32>
      %cst = arith.constant 1.000000e+00 : f32
      %10 = vector.broadcast %cst : f32 to vector<1x16x1xf32>
      %11 = arith.addf %9, %10 : vector<1x16x1xf32>
      %cst_7 = arith.constant 0.392699063 : f32
      %12 = vector.broadcast %cst_7 : f32 to vector<1x16x1xf32>
      %13 = arith.mulf %11, %12 : vector<1x16x1xf32>
      %14 = vector.broadcast %13 : vector<1x16x1xf32> to vector<16x16x1xf32>
      %15 = vector.broadcast %0 : vector<16x1x1xf32> to vector<16x16x1xf32>
      %16 = arith.mulf %14, %15 : vector<16x16x1xf32>
      %17 = vector.broadcast %1 : vector<16x1x1xf32> to vector<16x16x1xf32>
      %18 = arith.addf %16, %17 : vector<16x16x1xf32>
      %19 = math.sin %18 : vector<16x16x1xf32>
      %20 = vector.shape_cast %19 : vector<16x16x1xf32> to vector<16x16x1xf32>
      %21 = vector.broadcast %20 : vector<16x16x1xf32> to vector<16x16x16xf32>
      %c0_8 = arith.constant 0 : index
      %c0_9 = arith.constant 0 : index
      %c0_10 = arith.constant 0 : index
      %22 = vector.load %arg4[%c0_8, %c0_9, %c0_10] : memref<16x16x16xf32, #tpu.memory_space<vmem>>, vector<16x16x16xf32>
      tpu.vector_store %arg4[%c0_8, %c0_9, %c0_10], %21 {strides = array<i32>} : memref<16x16x16xf32, #tpu.memory_space<vmem>>, vector<16x16x16xf32>,
    } else {
    }
    %c1_i32 = arith.constant 1 : i32
    %5 = arith.cmpi eq, %arg0, %c1_i32 : i32
    %6 = arith.extui %5 : i1 to i32
    %c0_i32_6 = arith.constant 0 : i32
    %7 = arith.cmpi ne, %6, %c0_i32_6 : i32
    scf.if %7 {
      %8 = tpu.iota {dimensions = array<i32: 2>} : vector<1x1x16xi32>
      %9 = arith.sitofp %8 : vector<1x1x16xi32> to vector<1x1x16xf32>
      %cst = arith.constant 1.000000e+00 : f32
      %10 = vector.broadcast %cst : f32 to vector<1x1x16xf32>
      %11 = arith.addf %9, %10 : vector<1x1x16xf32>
      %cst_7 = arith.constant 0.392699063 : f32
      %12 = vector.broadcast %cst_7 : f32 to vector<1x1x16xf32>
      %13 = arith.mulf %11, %12 : vector<1x1x16xf32>
      %14 = vector.broadcast %13 : vector<1x1x16xf32> to vector<16x1x16xf32>
      %15 = vector.broadcast %0 : vector<16x1x1xf32> to vector<16x1x16xf32>
      %16 = arith.mulf %14, %15 : vector<16x1x16xf32>
      %17 = vector.broadcast %1 : vector<16x1x1xf32> to vector<16x1x16xf32>
      %18 = arith.addf %16, %17 : vector<16x1x16xf32>
      %19 = math.sin %18 : vector<16x1x16xf32>
      %20 = vector.shape_cast %19 : vector<16x1x16xf32> to vector<16x1x16xf32>
      %21 = vector.broadcast %20 : vector<16x1x16xf32> to vector<16x16x16xf32>
      %c0_8 = arith.constant 0 : index
      %c0_9 = arith.constant 0 : index
      %c0_10 = arith.constant 0 : index
      %22 = vector.load %arg4[%c0_8, %c0_9, %c0_10] : memref<16x16x16xf32, #tpu.memory_space<vmem>>, vector<16x16x16xf32>
      tpu.vector_store %arg4[%c0_8, %c0_9, %c0_10], %21 {strides = array<i32>} : memref<16x16x16xf32, #tpu.memory_space<vmem>>, vector<16x16x16xf32>,
    } else {
    }
    return
  }
  func.func @transform_0(%arg0: i32, %arg1: i32) -> (i32, i32, i32) {
    %c0_i32 = arith.constant 0 : i32
    %c0_i32_0 = arith.constant 0 : i32
    %c0_i32_1 = arith.constant 0 : i32
    return %arg1, %c0_i32, %c0_i32_0 : i32, i32, i32
  }
  func.func @transform_1(%arg0: i32, %arg1: i32) -> (i32, i32, i32) {
    %c0_i32 = arith.constant 0 : i32
    %c0_i32_0 = arith.constant 0 : i32
    %c0_i32_1 = arith.constant 0 : i32
    return %arg1, %c0_i32, %c0_i32_0 : i32, i32, i32
  }
  func.func @transform_2(%arg0: i32, %arg1: i32) -> (i32, i32, i32) {
    %c1_i32 = arith.constant 1 : i32
    %0 = arith.muli %arg0, %c1_i32 : i32
    %1 = arith.addi %0, %arg1 : i32
    %c0_i32 = arith.constant 0 : i32
    %c0_i32_0 = arith.constant 0 : i32
    %c0_i32_1 = arith.constant 0 : i32
    return %1, %c0_i32, %c0_i32_0 : i32, i32, i32
  }
}

</mosaic_0001>

<bundles_post_ra>
// kernel: tpu_custom_call.1
= control target key start
LH: loop header
LB: loop body
LE: loop exit
PB: predicated region body
PF: predicated region fallthrough
CT: control target
= control target key end

     0   :  { %s6797_s9 = smov 0   ;;  %s6799_s10 = smov 0   ;;  %s11121_s0 = inlined_call_operand.vmem [shape: f32[16,1,1], index: 0, kind: input, shape index: {}]   ;;  %s11122_s1 = inlined_call_operand.vmem [shape: f32[16,1,1], index: 1, kind: input, shape index: {}]   ;;  %s11123_s2 = inlined_call_operand.vmem [shape: f32[32,16,16], index: 2, kind: output, shape index: {}]  }
   0x1   :  { %s6801_s11 = smov 0  }
   0x2 LB: > { %s24_s12 = sadd.s32 1, %s6762_s10  ;;  %p6117_p0 = scmp.ge.s32.totalorder %s6766_s11, 1  ;;  %s6766_s11 = sphi %s6801_s11, %s12_s11   ;;  %s6762_s10 = sphi %s6799_s10, %s11309_s10   ;;  %s6758_s9 = sphi %s6797_s9, %s11308_s9  }
   0x3   : > { %p26_p1 = scmp.ge.s32.totalorder %s24_s12, 2  ;;  %p136_p2 = scmp.lt.s32.totalorder %s6766_s11, 3 }
   0x5   : > { %s11311_s12 = smov (%p26_p1, %s24_s12), 0  ;;  %p137_p3 = pnand %p6117_p0, %p136_p2 }
   0x7   : > { %140 = sbr.rel (%p137_p3) target bundleno = 1627 (0x65b), region = 28 }
   0xe   : > { %s6118_s13 = sshll.u32 %s6758_s9, 4  ;;  %v6821_v0 = vld [vmem:[%s11121_s0] sm:$0x1]  ;;  %v6826_v1 = vld [vmem:[%s11121_s0 + $0x1] sm:$0x1]  ;;  %p6121_p5 = scmp.ne.s32.totalorder %s6758_s9, 0 }
   0xf   : > { %11149 = vst [vmem:[#allocation2_spill] sm:$0xff] %v6821_v0  ;;  %11150 = vst [vmem:[#allocation3_spill] sm:$0xff] %v6826_v1  ;;  %p175_p4 = scmp.lt.s32.totalorder %s6118_s13, 31  ;;  %v6831_v2 = vld [vmem:[%s11121_s0 + $0x2] sm:$0x1] }
  0x10   : > { %11151 = vst [vmem:[#allocation4_spill] sm:$0xff] %v6831_v2  ;;  %v6836_v3 = vld [vmem:[%s11121_s0 + $0x3] sm:$0x1]  ;;  %v6841_v4 = vld [vmem:[%s11121_s0 + $0x4] sm:$0x1] }
  0x11   : > { %11152 = vst [vmem:[#allocation5_spill] sm:$0xff] %v6836_v3  ;;  %v6846_v5 = vld [vmem:[%s11121_s0 + $0x5] sm:$0x1]  ;;  %v6851_v6 = vld [vmem:[%s11121_s0 + $0x6] sm:$0x1]  ;;  %s11313_s13 = smov (!%p175_p4, %s6118_s13), 31 }
  0x12   : > { %v6856_v7 = vld [vmem:[%s11121_s0 + $0x7] sm:$0x1]  ;;  %v6861_v8 = vld [vmem:[%s11121_s0 + $0x8] sm:$0x1]  ;;  %v6866_v9 = vld [vmem:[%s11121_s0 + $0x9] sm:$0x1] }
  0x13   : > { %11153 = vst [vmem:[#allocation6_spill] sm:$0xff] %v6866_v9  ;;  %v6871_v10 = vld [vmem:[%s11121_s0 + $0xa] sm:$0x1]  ;;  %v6876_v11 = vld [vmem:[%s11121_s0 + $0xb] sm:$0x1]  ;;  %s6317_s15 = sshll.u32 %s11313_s13, 4 }
  0x14   : > { %11154 = vst [vmem:[#allocation7_spill] sm:$0xff] %v6871_v10  ;;  %11155 = vst [vmem:[#allocation8_spill] sm:$0xff] %v6876_v11  ;;  %v6881_v12 = vld [vmem:[%s11121_s0 + $0xc] sm:$0x1]  ;;  %v6886_v13 = vld [vmem:[%s11121_s0 + $0xd] sm:$0x1]  ;;  %s6891_s22 = scalar_lea.vmem %s11123_s2, %s6317_s15 }
  0x15   : > { %11156 = vst [vmem:[#allocation9_spill] sm:$0xff] %v6881_v12  ;;  %11157 = vst [vmem:[#allocation10_spill] sm:$0xff] %v6886_v13  ;;  %v6896_v14 = vld [vmem:[%s11121_s0 + $0xe] sm:$0x1]  ;;  %v6901_v15 = vld [vmem:[%s11121_s0 + $0xf] sm:$0x1] }
  0x16   : > { %11158 = vst [vmem:[#allocation11_spill] sm:$0xff] %v6896_v14  ;;  %11159 = vst [vmem:[#allocation12_spill] sm:$0xff] %v6901_v15  ;;  %v6906_v16 = vld [vmem:[%s11122_s1] sm:$0x1]  ;;  %v6911_v17 = vld [vmem:[%s11122_s1 + $0x1] sm:$0x1] }
  0x17   : > { %11160 = vst [vmem:[#allocation13_spill] sm:$0xff] %v6906_v16  ;;  %11161 = vst [vmem:[#allocation14_spill] sm:$0xff] %v6911_v17  ;;  %v6916_v18 = vld [vmem:[%s11122_s1 + $0x2] sm:$0x1]  ;;  %v6921_v19 = vld [vmem:[%s11122_s1 + $0x3] sm:$0x1] }
  0x18   : > { %11162 = vst [vmem:[#allocation15_spill] sm:$0xff] %v6916_v18  ;;  %11163 = vst [vmem:[#allocation16_spill] sm:$0xff] %v6921_v19  ;;  %v6926_v20 = vld [vmem:[%s11122_s1 + $0x4] sm:$0x1]  ;;  %v6931_v21 = vld [vmem:[%s11122_s1 + $0x5] sm:$0x1] }
  0x19   : > { %v6936_v22 = vld [vmem:[%s11122_s1 + $0x6] sm:$0x1]  ;;  %v6941_v23 = vld [vmem:[%s11122_s1 + $0x7] sm:$0x1]  ;;  %v6946_v24 = vld [vmem:[%s11122_s1 + $0x8] sm:$0x1] }
  0x1a   : > { %v6951_v25 = vld [vmem:[%s11122_s1 + $0x9] sm:$0x1]  ;;  %v6956_v26 = vld [vmem:[%s11122_s1 + $0xa] sm:$0x1]  ;;  %v6961_v27 = vld [vmem:[%s11122_s1 + $0xb] sm:$0x1] }
  0x1b   : > { %11164 = vst [vmem:[#allocation17_spill] sm:$0xff] %v6951_v25  ;;  %11165 = vst [vmem:[#allocation18_spill] sm:$0xff] %v6956_v26  ;;  %v6966_v28 = vld [vmem:[%s11122_s1 + $0xc] sm:$0x1]  ;;  %v6971_v29 = vld [vmem:[%s11122_s1 + $0xd] sm:$0x1] }
  0x1c   : > { %11166 = vst [vmem:[#allocation19_spill] sm:$0xff] %v6961_v27  ;;  %11167 = vst [vmem:[#allocation20_spill] sm:$0xff] %v6966_v28  ;;  %v6976_v30 = vld [vmem:[%s11122_s1 + $0xe] sm:$0x1]  ;;  %v6981_v31 = vld [vmem:[%s11122_s1 + $0xf] sm:$0x1] }
  0x1d   : > { %11168 = vst [vmem:[#allocation21_spill] sm:$0xff] %v6971_v29  ;;  %11169 = vst [vmem:[#allocation22_spill] sm:$0xff] %v6976_v30  ;;  %217 = sbr.rel (%p6121_p5) target bundleno = 1023 (0x3ff), region = 32 }
  0x1e   : > { %11170 = vst [vmem:[#allocation23_spill] sm:$0xff] %v6981_v31 }
  0x24   : > { %v218_v32 = vlaneseq  ;;  %v6768_v33 = vmov 0   ;;  %v11173_v29 = vmov 2475754826  }
  0x25   : > { %6549 = vset.pattern.permute.xlu1 %v6768_v33  ;;  %6548 = vset.pattern.permute.xlu0 %v6768_v33 }
  0x26   : > { %v219_v34 = vshrl.u32 %v218_v32, 7 }
  0x28   : > { %v221_v35 = vcvt.s32.f32 %v219_v34  ;;  %v6984_v36 = vsub.s32 0, %v219_v34  ;;  %v220_v37 = vadd.s32 8, %v219_v34 }
  0x2a   : > { %v223_v38 = vadd.f32 1.0, %v221_v35  ;;  %v250_v39 = vrot.slane %v6826_v1, %v6984_v36  ;;  %v6990_v40 = vrot.slane %v6821_v0, %v6984_v36  ;;  %v6994_v41 = vrot.slane %v6831_v2, %v6984_v36 }
  0x2b   : > { %v222_v42 = vcvt.s32.f32 %v220_v37  ;;  %v378_v44 = vrot.slane %v6911_v17, %v6984_v36  ;;  %v7002_v45 = vrot.slane %v6906_v16, %v6984_v36  ;;  %v7006_v46 = vrot.slane %v6916_v18, %v6984_v36 }
  0x2c   : > { %11171 = vst [vmem:[#allocation24_spill] sm:$0xff] %v6990_v40  ;;  %v6996_v43 = vmul.f32 0.39269906, %v223_v38  ;;  %v11143_v0 = vmov 1326507024  }
  0x2d   : > { %11172 = vst [vmem:[#allocation25_spill] sm:$0xff] %v7002_v45  ;;  %v224_v50 = vadd.f32 1.0, %v222_v42 }
  0x2e   : > { %v325_v47 = vmul.f32 %v250_v39, %v6996_v43  ;;  %v323_v48 = vmul.f32 %v6990_v40, %v6996_v43  ;;  %v327_v49 = vmul.f32 %v6994_v41, %v6996_v43 }
  0x2f   : > { %v7025_v58 = vmul.f32 0.39269906, %v224_v50 }
  0x30   : > { %v7013_v51 = vadd.f32 %v378_v44, %v325_v47  ;;  %v7016_v52 = vadd.f32 %v7002_v45, %v323_v48  ;;  %v7019_v53 = vadd.f32 %v7006_v46, %v327_v49 }
  0x31   : > { %v326_v35 = vmul.f32 %v250_v39, %v7025_v58 }
  0x32   : > { %v11125_v54 = vand.u32 2147483647, %v7013_v51  ;;  %v694_v55 = vand.u32 2139095040, %v7013_v51  ;;  %v11124_v56 = vand.u32 2147483647, %v7016_v52  ;;  %v486_v57 = vand.u32 2139095040, %v7016_v52 }
  0x33   : > { %v902_v63 = vand.u32 2139095040, %v7019_v53  ;;  %v11126_v48 = vand.u32 2147483647, %v7019_v53  ;;  %vm693_vm13 = vcmp.lt.s32.totalorder %v7013_v51, 0  ;;  %vm485_vm14 = vcmp.lt.s32.totalorder %v7016_v52, 0 }
  0x34   : > { %v695_v59 = vshrl.u32 %v694_v55, 23  ;;  %v698_v60 = vand.u32 8388607, %v11125_v54  ;;  %v487_v61 = vshrl.u32 %v486_v57, 23  ;;  %v490_v62 = vand.u32 8388607, %v11124_v56 }
  0x35   : > { %v903_v34 = vshrl.u32 %v902_v63, 23  ;;  %v7034_v55 = vadd.f32 %v378_v44, %v326_v35  ;;  %v7042_v39 = vand.u32 8388607, %v11126_v48  ;;  %v11135_v44 = vmov 2475754826  }
  0x36   : > { %v6130_v32 = vadd.s32 4294967169, %v695_v59  ;;  %v6122_v33 = vadd.s32 4294967169, %v487_v61  ;;  %v699_v37 = vor.u32 8388608, %v698_v60  ;;  %v491_v42 = vor.u32 8388608, %v490_v62 }
  0x37   : > { %v6138_v49 = vadd.s32 4294967169, %v903_v34  ;;  %v11137_v35 = vmov 2131351028  }
  0x38   : > { %v701_v38 = vadd.s32 1, %v6130_v32  ;;  %v493_v47 = vadd.s32 1, %v6122_v33  ;;  %v7036_v54 = vshll.u32 %v699_v37, 8  ;;  %v7038_v63 = vshll.u32 %v491_v42, 8 }
  0x39   : > { %v7044_v60 = vadd.s32 1, %v6138_v49  ;;  %v11145_v32 = vmov 683565275  }
  0x3a   : > { %vm702_vm0 = vcmp.gt.s32.totalorder %v701_v38, 0  ;;  %vm494_vm1 = vcmp.gt.s32.totalorder %v493_v47, 0 }
  0x3b   : > { %v703_v50 = vsel %vm702_vm0, %v701_v38, 0  ;;  %v495_v59 = vsel %vm494_vm1, %v493_v47, 0  ;;  %v11139_v38 = vmov 2102212464   ;;  %v11141_v47 = vmov 920167782  }
  0x3c   : > { %v704_v57 = vshrl.u32 %v703_v50, 5  ;;  %v705_v56 = vand.u32 31, %v703_v50  ;;  %v497_v61 = vand.u32 31, %v495_v59  ;;  %v7051_v48 = vshrl.u32 %v495_v59, 5 }
  0x3d   : > { %vm910_vm6 = vcmp.gt.s32.totalorder %v7044_v60, 0 }
  0x3e   : > { %v706_v62 = vsub.s32 32, %v705_v56  ;;  %v708_v33 = vshll.u32 %v11145_v32, %v705_v56  ;;  %v711_v34 = vshll.u32 %v11135_v44, %v705_v56  ;;  %v714_v37 = vshll.u32 %v11137_v35, %v705_v56 }
  0x3f   : > { %v717_v42 = vshll.u32 %v11139_v38, %v705_v56  ;;  %v720_v50 = vshll.u32 %v11141_v47, %v705_v56  ;;  %vm723_vm2 = vcmp.lt.s32.totalorder %v704_v57, 1  ;;  %vm724_vm3 = vcmp.lt.s32.totalorder %v704_v57, 2 }
  0x40   : > { %v707_v49 = vshrl.u32 %v11145_v32, %v706_v62  ;;  %v709_v18 = vshrl.u32 %v11135_v44, %v706_v62  ;;  %v712_v16 = vshrl.u32 %v11137_v35, %v706_v62  ;;  %v715_v17 = vshrl.u32 %v11139_v38, %v706_v62 }
  0x41   : > { %v718_v1 = vshrl.u32 %v11141_v47, %v706_v62  ;;  %v721_v2 = vshrl.u32 %v11143_v0, %v706_v62  ;;  %vm726_vm4 = vcmp.lt.s32.totalorder %v704_v57, 4  ;;  %v498_v59 = vsub.s32 32, %v497_v61 }
  0x42   : > { %v710_v31 = vor.u32 %v709_v18, %v708_v33  ;;  %v713_v56 = vor.u32 %v712_v16, %v711_v34  ;;  %v716_v15 = vor.u32 %v715_v17, %v714_v37  ;;  %vm725_vm5 = vcmp.lt.s32.totalorder %v704_v57, 3 }
  0x43   : > { %v719_v45 = vor.u32 %v718_v1, %v717_v42  ;;  %v722_v40 = vor.u32 %v721_v2, %v720_v50  ;;  %v500_v44 = vshll.u32 %v11145_v32, %v497_v61  ;;  %v503_v18 = vshll.u32 %v11173_v29, %v497_v61 }
  0x44   : > { %v727_v35 = vsel %vm723_vm2, %v707_v49, %v710_v31  ;;  %v728_v30 = vsel %vm726_vm4, %v716_v15, 2102212464  ;;  %v731_v38 = vsel %vm723_vm2, %v710_v31, %v713_v56  ;;  %v735_v47 = vsel %vm723_vm2, %v713_v56, %v716_v15 }
  0x45   : > { %v729_v14 = vsel %vm725_vm5, %v713_v56, %v728_v30  ;;  %v732_v62 = vsel %vm726_vm4, %v719_v45, 920167782  ;;  %v736_v0 = vsel %vm726_vm4, %v722_v40, 1326507024  ;;  %v499_v2 = vshrl.u32 %v11145_v32, %v498_v59 }
  0x46   : > { %v733_v16 = vsel %vm725_vm5, %v716_v15, %v732_v62  ;;  %v737_v1 = vsel %vm725_vm5, %v719_v45, %v736_v0  ;;  %v501_v17 = vshrl.u32 %v11173_v29, %v498_v59  ;;  %v730_v33 = vsel %vm724_vm3, %v727_v35, %v729_v14 }
  0x47   : > { %v734_v34 = vsel %vm724_vm3, %v731_v38, %v733_v16  ;;  %v738_v31 = vsel %vm724_vm3, %v735_v47, %v737_v1  ;;  %v11174_v37 = vmov 2131351028   ;;  %v11175_v14 = vmov 2102212464  }
  0x48   : > { %v504_v30 = vshrl.u32 %v11174_v37, %v498_v59  ;;  %v7072_v40 = vmul.u32.u64.low %v7036_v54, %v738_v31  ;;  %v7073_v42 = vmul.u32.u64.high %v7036_v54, %v738_v31, %v7072_v40  ;;  %v502_v0 = vor.u32 %v501_v17, %v500_v44 }
  0x49   : > { %v7076_v50 = vmul.u32.u64.low %v7036_v54, %v734_v34  ;;  %v7077_v15 = vmul.u32.u64.high %v7036_v54, %v734_v34, %v7076_v50  ;;  %v506_v49 = vshll.u32 %v11174_v37, %v497_v61  ;;  %v507_v35 = vshrl.u32 %v11175_v14, %v498_v59 }
  0x4a   : > { %v505_v45 = vor.u32 %v504_v30, %v503_v18  ;;  %v509_v57 = vshll.u32 %v11175_v14, %v497_v61  ;;  %v11176_v38 = vmov 920167782   ;;  %v11177_v62 = vmov 1326507024  }
  0x4b   : > { %v510_v47 = vshrl.u32 %v11176_v38, %v498_v59  ;;  %v512_v56 = vshll.u32 %v11176_v38, %v497_v61  ;;  %v513_v16 = vshrl.u32 %v11177_v62, %v498_v59  ;;  %v746_v1 = vmul.u32 %v7036_v54, %v730_v33 }
  0x4c   : > { %v508_v31 = vor.u32 %v507_v35, %v506_v49  ;;  %vm515_vm7 = vcmp.lt.s32.totalorder %v7051_v48, 1  ;;  %vm516_vm8 = vcmp.lt.s32.totalorder %v7051_v48, 2  ;;  %vm748_vm9 = vc.u32 %v7073_v42, %v7076_v50 }
  0x4d   : > { %v749_v44 = vadd.s32 1, %v7077_v15  ;;  %v511_v18 = vor.u32 %v510_v47, %v509_v57  ;;  %vm517_vm10 = vcmp.lt.s32.totalorder %v7051_v48, 3  ;;  %v514_v17 = vor.u32 %v513_v16, %v512_v56 }
  0x4e   : > { %vm518_vm11 = vcmp.lt.s32.totalorder %v7051_v48, 4  ;;  %v519_v61 = vsel %vm515_vm7, %v499_v2, %v502_v0  ;;  %v523_v59 = vsel %vm515_vm7, %v502_v0, %v505_v45  ;;  %v527_v30 = vsel %vm515_vm7, %v505_v45, %v508_v31 }
  0x4f   : > { %v750_v54 = vsel %vm748_vm9, %v749_v44, %v7077_v15  ;;  %v520_v33 = vsel %vm518_vm11, %v508_v31, 2102212464  ;;  %v524_v34 = vsel %vm518_vm11, %v511_v18, 920167782  ;;  %v528_v32 = vsel %vm518_vm11, %v514_v17, 1326507024 }
  0x50   : > { %v751_v40 = vadd.s32 %v750_v54, %v746_v1  ;;  %v521_v49 = vsel %vm517_vm10, %v505_v45, %v520_v33  ;;  %v525_v35 = vsel %vm517_vm10, %v508_v31, %v524_v34  ;;  %v529_v47 = vsel %vm517_vm10, %v511_v18, %v528_v32 }
  0x51   : > { %v522_v13 = vsel %vm516_vm8, %v519_v61, %v521_v49  ;;  %v526_v57 = vsel %vm516_vm8, %v523_v59, %v525_v35  ;;  %v911_v2 = vsel %vm910_vm6, %v7044_v60, 0  ;;  %v530_v15 = vsel %vm516_vm8, %v527_v30, %v529_v47 }
  0x52   : > { %v752_v0 = vadd.s32 536870912, %v751_v40  ;;  %v7105_v56 = vmul.u32.u64.low %v7038_v63, %v526_v57  ;;  %v7106_v45 = vmul.u32.u64.high %v7038_v63, %v526_v57, %v7105_v56  ;;  %v7115_v32 = vrot.slane %v6836_v3, %v6984_v36 }
  0x53   : > { %v7110_v16 = vmul.u32.u64.low %v7038_v63, %v530_v15  ;;  %v7111_v1 = vmul.u32.u64.high %v7038_v63, %v530_v15, %v7110_v16  ;;  %v907_v60 = vor.u32 8388608, %v7042_v39  ;;  %v913_v44 = vand.u32 31, %v911_v2 }
  0x54   : > { %v753_v31 = vshrl.u32 %v752_v0, 30  ;;  %v798_v48 = vand.u32 2139095040, %v7034_v55  ;;  %v538_v18 = vmul.u32 %v7038_v63, %v522_v13  ;;  %v541_v61 = vadd.s32 1, %v7106_v45 }
  0x55   : > { %v914_v59 = vsub.s32 32, %v913_v44  ;;  %vm540_vm12 = vc.u32 %v7111_v1, %v7105_v56  ;;  %v7123_v54 = vshrl.u32 %v911_v2, 5  ;;  %v7127_v33 = vmul.f32 %v7115_v32, %v6996_v43 }
  0x56   : > { %v754_v17 = vshll.u32 %v753_v31, 30  ;;  %v7131_v39 = vrot.slane %v6921_v19, %v6984_v36  ;;  %v542_v63 = vsel %vm540_vm12, %v541_v61, %v7106_v45  ;;  %v7137_v34 = vshll.u32 %v907_v60, 8 }
  0x57   : > { %v799_v30 = vshrl.u32 %v798_v48, 23  ;;  %v543_v49 = vadd.s32 %v542_v63, %v538_v18  ;;  %v11178_v35 = vmov 683565275   ;;  %v917_v47 = vshrl.u32 %v11173_v29, %v914_v59 }
  0x58   : > { %v7134_v13 = vsub.s32 %v751_v40, %v754_v17  ;;  %v916_v57 = vshll.u32 %v11178_v35, %v913_v44  ;;  %v919_v2 = vshll.u32 %v11173_v29, %v913_v44  ;;  %v920_v15 = vshrl.u32 %v11174_v37, %v914_v59 }
  0x59   : > { %v922_v40 = vshll.u32 %v11174_v37, %v913_v44  ;;  %v923_v45 = vshrl.u32 %v11175_v14, %v914_v59  ;;  %v747_v16 = vadd.s32 %v7076_v50, %v7073_v42  ;;  %v544_v60 = vadd.s32 536870912, %v543_v49 }
  0x5a   : > { %v757_v0 = vsub.s32 0, %v7134_v13  ;;  %v925_v48 = vshll.u32 %v11175_v14, %v913_v44  ;;  %vm931_vm15 = vcmp.lt.s32.totalorder %v7123_v54, 1  ;;  %v777_v17 = vsub.s32 4, %v753_v31 }
  0x5b   : > { %v926_v61 = vshrl.u32 %v11176_v38, %v914_v59  ;;  %vm934_vm0 = vcmp.lt.s32.totalorder %v7123_v54, 4  ;;  %v545_v63 = vshrl.u32 %v544_v60, 30  ;;  %v915_v19 = vshrl.u32 %v11178_v35, %v914_v59 }
  0x5c   : > { %v6131_v18 = vmin.u32 %v757_v0, %v7134_v13  ;;  %v928_v3 = vshll.u32 %v11176_v38, %v913_v44  ;;  %v929_v28 = vshrl.u32 %v11177_v62, %v914_v59  ;;  %v11179_v42 = vand.u32 2147483647, %v7013_v51 }
  0x5d   : > { %v918_v0 = vor.u32 %v917_v47, %v916_v57  ;;  %v921_v27 = vor.u32 %v920_v15, %v919_v2  ;;  %v924_v11 = vor.u32 %v923_v45, %v922_v40  ;;  %v546_v26 = vshll.u32 %v545_v63, 30 }
  0x5e   : > { %vm7159_vm1 = vcmp.le.f32.partialorder %v11179_v42, 0.7853982  ;;  %v759_v12 = vclz %v6131_v18  ;;  %v569_v10 = vsub.s32 4, %v545_v63  ;;  %v927_v25 = vor.u32 %v926_v61, %v925_v48 }
  0x5f   : > { %vm932_vm2 = vcmp.lt.s32.totalorder %v7123_v54, 2  ;;  %v930_v9 = vor.u32 %v929_v28, %v928_v3  ;;  %vm933_vm3 = vcmp.lt.s32.totalorder %v7123_v54, 3  ;;  %v936_v44 = vsel %vm934_vm0, %v924_v11, 2102212464 }
  0x60   : > { %v6132_v60 = vadd.s32 4294967294, %v759_v12  ;;  %v778_v59 = vsel %vm693_vm13, %v777_v17, %v753_v31  ;;  %v7169_v42 = vsub.s32 %v543_v49, %v546_v26  ;;  %v935_v57 = vsel %vm931_vm15, %v915_v19, %v918_v0 }
  0x61   : > { %v940_v47 = vsel %vm934_vm0, %v927_v25, 920167782  ;;  %v570_v3 = vsel %vm485_vm14, %v569_v10, %v545_v63  ;;  %v939_v12 = vsel %vm931_vm15, %v918_v0, %v921_v27  ;;  %v943_v28 = vsel %vm931_vm15, %v921_v27, %v924_v11 }
  0x62   : > { %vm6133_vm4 = vcmp.lt.s32.totalorder %v6132_v60, 0  ;;  %v549_v26 = vsub.s32 0, %v7169_v42  ;;  %v937_v31 = vsel %vm933_vm3, %v921_v27, %v936_v44  ;;  %v941_v19 = vsel %vm933_vm3, %v924_v11, %v940_v47 }
  0x63   : > { %v762_v2 = vsel %vm6133_vm4, 0, %v6132_v60  ;;  %v944_v10 = vsel %vm934_vm0, %v930_v9, 1326507024  ;;  %v11182_v45 = vand.u32 2147483647, %v7016_v52  ;;  %v6134_v17 = vadd.s32 4294967169, %v799_v30 }
  0x64   : > { %v763_v49 = vsub.s32 32, %v762_v2  ;;  %v764_v15 = vshll.u32 %v7134_v13, %v762_v2  ;;  %v767_v40 = vsub.s32 4294967266, %v762_v2  ;;  %v6123_v18 = vmin.u32 %v549_v26, %v7169_v42 }
  0x65   : > { %vm7191_vm5 = vcmp.le.f32.partialorder %v11182_v45, 0.7853982  ;;  %v945_v27 = vsel %vm933_vm3, %v927_v25, %v944_v10  ;;  %v942_v13 = vsel %vm932_vm2, %v939_v12, %v941_v19  ;;  %v780_v63 = vsel %vm7159_vm1, 0, %v778_v59 }
  0x66   : > { %v765_v11 = vshrl.u32 %v747_v16, %v763_v49  ;;  %v768_v61 = vadd.s32 127, %v767_v40  ;;  %v946_v9 = vsel %vm932_vm2, %v943_v28, %v945_v27  ;;  %v551_v0 = vclz %v6123_v18 }
  0x67   : > { %v572_v60 = vsel %vm7191_vm5, 0, %v570_v3  ;;  %v938_v44 = vsel %vm932_vm2, %v935_v57, %v937_v31  ;;  %v7209_v16 = vmul.u32.u64.low %v7137_v34, %v946_v9  ;;  %v7210_v47 = vmul.u32.u64.high %v7137_v34, %v946_v9, %v7209_v16 }
  0x68   : > { %v766_v25 = vor.u32 %v765_v11, %v764_v15  ;;  %v769_v30 = vshll.u32 %v768_v61, 23  ;;  %v6124_v12 = vadd.s32 4294967294, %v551_v0  ;;  %v805_v59 = vadd.s32 1, %v6134_v17 }
  0x69   : > { %v7213_v2 = vmul.u32.u64.low %v7137_v34, %v942_v13  ;;  %v7214_v28 = vmul.u32.u64.high %v7137_v34, %v942_v13, %v7213_v2  ;;  %v539_v3 = vadd.s32 %v7105_v56, %v7111_v1  ;;  %v795_v54 = vand.u32 2147483647, %v7034_v55 }
  0x6a   : > { %v770_v26 = vor.u32 4788187, %v769_v30  ;;  %v773_v19 = vcvt.s32.f32 %v766_v25  ;;  %v784_v57 = vadd.s32 3, %v780_v63  ;;  %vm6125_vm6 = vcmp.lt.s32.totalorder %v6124_v12, 0 }
  0x6b   : > { %v576_v31 = vadd.s32 3, %v572_v60  ;;  %vm806_vm7 = vcmp.gt.s32.totalorder %v805_v59, 0  ;;  %v554_v15 = vsel %vm6125_vm6, 0, %v6124_v12  ;;  %v954_v40 = vmul.u32 %v7137_v34, %v938_v44 }
  0x6c   : > { %v771_v49 = vand.u32 2147483647, %v770_v26  ;;  %vm956_vm8 = vc.u32 %v7210_v47, %v7213_v2  ;;  %v555_v10 = vsub.s32 32, %v554_v15  ;;  %v556_v45 = vshll.u32 %v7169_v42, %v554_v15 }
  0x6d   : > { %v559_v18 = vsub.s32 4294967266, %v554_v15  ;;  %v957_v27 = vadd.s32 1, %v7214_v28  ;;  %v802_v1 = vand.u32 8388607, %v795_v54  ;;  %v807_v17 = vsel %vm806_vm7, %v805_v59, 0 }
  0x6e   : > { %v774_v56 = vmul.f32 %v773_v19, %v771_v49  ;;  %v7229_v11 = vrot.slane %v6841_v4, %v6984_v36  ;;  %v557_v61 = vshrl.u32 %v539_v3, %v555_v10  ;;  %v7234_v9 = vrot.slane %v6926_v20, %v6984_v36 }
  0x6f   : > { %v560_v34 = vadd.s32 127, %v559_v18  ;;  %v958_v13 = vsel %vm956_vm8, %v957_v27, %v7214_v28  ;;  %v809_v0 = vand.u32 31, %v807_v17  ;;  %v7238_v60 = vadd.f32 %v7131_v39, %v7127_v33 }
  0x70   : > { %v775_v42 = vxor.u32 2147483648, %v774_v56  ;;  %v959_v63 = vadd.s32 %v958_v13, %v954_v40  ;;  %v7240_v44 = vand.u32 3, %v784_v57  ;;  %v558_v25 = vor.u32 %v557_v61, %v556_v45 }
  0x71   : > { %v561_v30 = vshll.u32 %v560_v34, 23  ;;  %v7242_v16 = vand.u32 3, %v576_v31  ;;  %v803_v59 = vor.u32 8388608, %v802_v1  ;;  %v810_v26 = vsub.s32 32, %v809_v0 }
  0x72   : > { %v776_v12 = vsel %vm693_vm13, %v775_v42, %v774_v56  ;;  %v960_v28 = vadd.s32 536870912, %v959_v63  ;;  %v565_v49 = vcvt.s32.f32 %v558_v25  ;;  %v7249_v33 = vshrl.u32 %v807_v17, 5 }
  0x73   : > { %v779_v19 = vsel %vm7159_vm1, %v7013_v51, %v776_v12  ;;  %v562_v3 = vor.u32 4788187, %v561_v30  ;;  %v812_v31 = vshll.u32 %v11178_v35, %v809_v0  ;;  %v813_v15 = vshrl.u32 %v11173_v29, %v810_v26 }
  0x74   : > { %6550 = vcosq.f32 %v779_v19  ;;  %v7251_v57 = vshrl.u32 %v960_v28, 30  ;;  %v815_v10 = vshll.u32 %v11173_v29, %v809_v0  ;;  %v816_v45 = vshrl.u32 %v11174_v37, %v810_v26 }
  0x75   : > { %6552 = vsinq.f32 %v779_v19  ;;  %v563_v40 = vand.u32 2147483647, %v562_v3  ;;  %vm790_vm9 = vcmp.eq.s32.totalorder %v7240_v44, 2  ;;  %v818_v18 = vshll.u32 %v11174_v37, %v809_v0 }
  0x76   : > { %v962_v50 = vshll.u32 %v7251_v57, 30  ;;  %v819_v27 = vshrl.u32 %v11175_v14, %v810_v26  ;;  %v7261_v56 = vshll.u32 %v803_v59, 8  ;;  %vm787_vm10 = vcmp.eq.s32.totalorder %v7240_v44, 0 }
  0x77   : > { %v566_v1 = vmul.f32 %v565_v49, %v563_v40  ;;  %v821_v17 = vshll.u32 %v11175_v14, %v809_v0  ;;  %v822_v61 = vshrl.u32 %v11176_v38, %v810_v26  ;;  %v1110_v34 = vand.u32 2139095040, %v7238_v60 }
  0x78   : > { %vm786_vm11 = vcmp.lt.s32.totalorder %v7240_v44, 2  ;;  %v7268_v13 = vsub.s32 %v959_v63, %v962_v50  ;;  %v814_v42 = vor.u32 %v813_v15, %v812_v31  ;;  %v824_v25 = vshll.u32 %v11176_v38, %v809_v0 }
  0x79   : > { %vm827_vm12 = vcmp.lt.s32.totalorder %v7249_v33, 1  ;;  %vm783_vm13 = vweird.f32 %v7013_v51  ;;  %v567_v30 = vxor.u32 2147483648, %v566_v1  ;;  %v817_v12 = vor.u32 %v816_v45, %v815_v10 }
  0x7a   : > { %v823_v28 = vor.u32 %v822_v61, %v821_v17  ;;  %v825_v59 = vshrl.u32 %v11177_v62, %v810_v26  ;;  %v965_v19 = vsub.s32 0, %v7268_v13  ;;  %v811_v3 = vshrl.u32 %v11178_v35, %v810_v26 }
  0x7b   : > { %v820_v49 = vor.u32 %v819_v27, %v818_v18  ;;  %vm830_vm15 = vcmp.lt.s32.totalorder %v7249_v33, 4  ;;  %v568_v63 = vsel %vm485_vm14, %v567_v30, %v566_v1  ;;  %v955_v0 = vadd.s32 %v7213_v2, %v7210_v47 }
  0x7c   : > { %vm829_vm0 = vcmp.lt.s32.totalorder %v7249_v33, 3  ;;  %v1111_v31 = vshrl.u32 %v1110_v34, 23  ;;  %v571_v15 = vsel %vm7191_vm5, %v7016_v52, %v568_v63  ;;  %v6139_v40 = vmin.u32 %v965_v19, %v7268_v13 }
  0x7d   : > { %v826_v10 = vor.u32 %v825_v59, %v824_v25  ;;  %v832_v26 = vsel %vm830_vm15, %v820_v49, 2102212464  ;;  %6554 = vcosq.f32 %v571_v15  ;;  %vm901_vm1 = vcmp.lt.s32.totalorder %v7019_v53, 0 }
  0x7e   : > { %vm828_vm14 = vcmp.lt.s32.totalorder %v7249_v33, 2  ;;  %v835_v47 = vsel %vm827_vm12, %v814_v42, %v817_v12  ;;  %v836_v2 = vsel %vm830_vm15, %v823_v28, 920167782  ;;  %v6551_v45 = vpop.eup %6550  ;;  %6556 = vsinq.f32 %v571_v15 }
  0x7f   : > { %v967_v48 = vclz %v6139_v40  ;;  %v985_v50 = vsub.s32 4, %v7251_v57  ;;  %v831_v18 = vsel %vm827_vm12, %v811_v3, %v814_v42  ;;  %v6553_v27 = vpop.eup %6552  ;;  %v791_v1 = vxor.u32 2147483648, %v6551_v45 }
  0x80   : > { %v833_v17 = vsel %vm829_vm0, %v817_v12, %v832_v26  ;;  %v837_v61 = vsel %vm829_vm0, %v820_v49, %v836_v2  ;;  %v839_v34 = vsel %vm827_vm12, %v817_v12, %v820_v49  ;;  %v788_v25 = vxor.u32 2147483648, %v6553_v27 }
  0x81   : > { %v11185_v30 = vand.u32 2147483647, %v7019_v53  ;;  %v6140_v19 = vadd.s32 4294967294, %v967_v48  ;;  %v838_v42 = vsel %vm828_vm14, %v835_v47, %v837_v61  ;;  %v840_v3 = vsel %vm830_vm15, %v826_v10, 1326507024 }
  0x82   : > { %v792_v63 = vsel %vm790_vm9, %v791_v1, %v6553_v27  ;;  %v841_v12 = vsel %vm829_vm0, %v823_v28, %v840_v3  ;;  %v7318_v49 = vmul.u32.u64.low %v7261_v56, %v838_v42  ;;  %v7319_v15 = vmul.u32.u64.high %v7261_v56, %v838_v42, %v7318_v49 }
  0x83   : > { %vm7305_vm2 = vcmp.le.f32.partialorder %v11185_v30, 0.7853982  ;;  %v789_v40 = vsel %vm787_vm10, %v6551_v45, %v788_v25  ;;  %vm575_vm3 = vweird.f32 %v7016_v52  ;;  %vm6141_vm4 = vcmp.lt.s32.totalorder %v6140_v19, 0 }
  0x84   : > { %v834_v10 = vsel %vm828_vm14, %v831_v18, %v833_v17  ;;  %v842_v26 = vsel %vm828_vm14, %v839_v34, %v841_v12  ;;  %v793_v28 = vsel %vm786_vm11, %v789_v40, %v792_v63  ;;  %v970_v47 = vsel %vm6141_vm4, 0, %v6140_v19 }
  0x85   : > { %v7332_v2 = vmul.u32.u64.low %v7261_v56, %v842_v26  ;;  %v7333_v48 = vmul.u32.u64.high %v7261_v56, %v842_v26, %v7332_v2  ;;  %v794_v45 = vsel %vm783_vm13, nan, %v793_v28  ;;  %v971_v27 = vsub.s32 32, %v970_v47 }
  0x86   : > { %v972_v1 = vshll.u32 %v7268_v13, %v970_v47  ;;  %v975_v61 = vsub.s32 4294967266, %v970_v47  ;;  %3823 = vperm.xlu1 %6549, %v794_v45   ;;  %vm578_vm5 = vcmp.lt.s32.totalorder %v7242_v16, 2  ;;  %v850_v33 = vmul.u32 %v7261_v56, %v834_v10 }
  0x87   : > { %v853_v44 = vadd.s32 1, %v7319_v15  ;;  %v6146_v18 = vadd.s32 4294967169, %v1111_v31  ;;  %vm579_vm6 = vcmp.eq.s32.totalorder %v7242_v16, 0  ;;  %v973_v17 = vshrl.u32 %v955_v0, %v971_v27  ;;  %v6555_v25 = vpop.eup %6554 }
  0x88   : > { %v976_v34 = vadd.s32 127, %v975_v61  ;;  %v986_v51 = vsel %vm901_vm1, %v985_v50, %v7251_v57  ;;  %vm582_vm7 = vcmp.eq.s32.totalorder %v7242_v16, 2  ;;  %vm852_vm8 = vc.u32 %v7333_v48, %v7318_v49  ;;  %v6557_v30 = vpop.eup %6556 }
  0x89   : > { %v1107_v13 = vand.u32 2147483647, %v7238_v60  ;;  %v1117_v56 = vadd.s32 1, %v6146_v18  ;;  %v583_v19 = vxor.u32 2147483648, %v6555_v25  ;;  %v974_v31 = vor.u32 %v973_v17, %v972_v1 }
  0x8a   : > { %v977_v42 = vshll.u32 %v976_v34, 23  ;;  %v854_v0 = vsel %vm852_vm8, %v853_v44, %v7319_v15  ;;  %v580_v3 = vxor.u32 2147483648, %v6557_v30  ;;  %v988_v63 = vsel %vm7305_vm2, 0, %v986_v51 }
  0x8b   : > { %v855_v57 = vadd.s32 %v854_v0, %v850_v33  ;;  %vm1118_vm9 = vcmp.gt.s32.totalorder %v1117_v56, 0  ;;  %v584_v50 = vsel %vm582_vm7, %v583_v19, %v6557_v30  ;;  %v981_v40 = vcvt.s32.f32 %v974_v31 }
  0x8c   : > { %v978_v12 = vor.u32 4788187, %v977_v42  ;;  %v1119_v10 = vsel %vm1118_vm9, %v1117_v56, 0  ;;  %v581_v26 = vsel %vm579_vm6, %v6555_v25, %v580_v3  ;;  %v7356_v2 = vmul.f32 %v7229_v11, %v6996_v43 }
  0x8d   : > { %v856_v28 = vadd.s32 536870912, %v855_v57  ;;  %v1121_v47 = vand.u32 31, %v1119_v10  ;;  %v585_v15 = vsel %vm578_vm5, %v581_v26, %v584_v50  ;;  %v992_v27 = vadd.s32 3, %v988_v63 }
  0x8e   : > { %v979_v45 = vand.u32 2147483647, %v978_v12  ;;  %v328_v1 = vmul.f32 %v6994_v41, %v7025_v58  ;;  %v586_v61 = vsel %vm575_vm3, nan, %v585_v15  ;;  %v1114_v44 = vand.u32 8388607, %v1107_v13 }
  0x8f   : > { %v857_v33 = vshrl.u32 %v856_v28, 30  ;;  %v1122_v18 = vsub.s32 32, %v1121_v47  ;;  %3813 = vperm.xlu0 %6548, %v586_v61   ;;  %v1120_v34 = vshrl.u32 %v1119_v10, 5  ;;  %v1124_v51 = vshll.u32 %v11178_v35, %v1121_v47 }
  0x90   : > { %v982_v17 = vmul.f32 %v981_v40, %v979_v45  ;;  %v1127_v16 = vshll.u32 %v11173_v29, %v1121_v47  ;;  %v1130_v41 = vshll.u32 %v11174_v37, %v1121_v47  ;;  %v1133_v52 = vshll.u32 %v11175_v14, %v1121_v47 }
  0x91   : > { %v858_v25 = vshll.u32 %v857_v33, 30  ;;  %v1125_v56 = vshrl.u32 %v11173_v29, %v1122_v18  ;;  %v1128_v19 = vshrl.u32 %v11174_v37, %v1122_v18  ;;  %v1131_v31 = vshrl.u32 %v11175_v14, %v1122_v18 }
  0x92   : > { %v983_v30 = vxor.u32 2147483648, %v982_v17  ;;  %v1134_v42 = vshrl.u32 %v11176_v38, %v1122_v18  ;;  %v7374_v0 = vand.u32 3, %v992_v27  ;;  %vm797_vm10 = vcmp.lt.s32.totalorder %v7034_v55, 0 }
  0x93   : > { %v7377_v3 = vsub.s32 %v855_v57, %v858_v25  ;;  %v1115_v63 = vor.u32 8388608, %v1114_v44  ;;  %v1123_v12 = vshrl.u32 %v11178_v35, %v1122_v18  ;;  %v1126_v40 = vor.u32 %v1125_v56, %v1124_v51 }
  0x94   : > { %v984_v50 = vsel %vm901_vm1, %v983_v30, %v982_v17  ;;  %v1136_v10 = vshll.u32 %v11176_v38, %v1121_v47  ;;  %v1129_v15 = vor.u32 %v1128_v19, %v1127_v16  ;;  %v1132_v45 = vor.u32 %v1131_v31, %v1130_v41 }
  0x95   : > { %v987_v26 = vsel %vm7305_vm2, %v7019_v53, %v984_v50  ;;  %v861_v28 = vsub.s32 0, %v7377_v3  ;;  %v1135_v57 = vor.u32 %v1134_v42, %v1133_v52  ;;  %v1137_v27 = vshrl.u32 %v11177_v62, %v1122_v18 }
  0x96   : > { %6558 = vcosq.f32 %v987_v26  ;;  %vm1139_vm11 = vcmp.lt.s32.totalorder %v1120_v34, 1  ;;  %vm7390_vm12 = vcmp.le.f32.partialorder %v795_v54, 0.7853982  ;;  %v1155_v59 = vshll.u32 %v1115_v63, 8 }
  0x97   : > { %6560 = vsinq.f32 %v987_v26  ;;  %v6135_v47 = vmin.u32 %v861_v28, %v7377_v3  ;;  %v7396_v44 = vadd.f32 %v7006_v46, %v328_v1  ;;  %v881_v17 = vsub.s32 4, %v857_v33 }
  0x98   : > { %v1138_v51 = vor.u32 %v1137_v27, %v1136_v10  ;;  %vm1141_vm13 = vcmp.lt.s32.totalorder %v1120_v34, 3  ;;  %vm1142_vm15 = vcmp.lt.s32.totalorder %v1120_v34, 4  ;;  %vm1140_vm0 = vcmp.lt.s32.totalorder %v1120_v34, 2 }
  0x99   : > { %v863_v16 = vclz %v6135_v47  ;;  %v1143_v18 = vsel %vm1139_vm11, %v1123_v12, %v1126_v40  ;;  %v1147_v25 = vsel %vm1139_vm11, %v1126_v40, %v1129_v15  ;;  %vm994_vm1 = vcmp.lt.s32.totalorder %v7374_v0, 2 }
  0x9a   : > { %v1144_v54 = vsel %vm1142_vm15, %v1132_v45, 2102212464  ;;  %v1148_v56 = vsel %vm1142_vm15, %v1135_v57, 920167782  ;;  %v1151_v41 = vsel %vm1139_vm11, %v1129_v15, %v1132_v45  ;;  %v1152_v52 = vsel %vm1142_vm15, %v1138_v51, 1326507024 }
  0x9b   : > { %v6136_v30 = vadd.s32 4294967294, %v863_v16  ;;  %v1145_v46 = vsel %vm1141_vm13, %v1129_v15, %v1144_v54  ;;  %v1149_v1 = vsel %vm1141_vm13, %v1132_v45, %v1148_v56  ;;  %v1153_v19 = vsel %vm1141_vm13, %v1135_v57, %v1152_v52 }
  0x9c   : > { %v851_v31 = vadd.s32 %v7318_v49, %v7333_v48  ;;  %v882_v42 = vsel %vm797_vm10, %v881_v17, %v857_v33  ;;  %v1150_v63 = vsel %vm1140_vm0, %v1147_v25, %v1149_v1  ;;  %v1154_v50 = vsel %vm1140_vm0, %v1151_v41, %v1153_v19 }
  0x9d   : > { %vm6137_vm14 = vcmp.lt.s32.totalorder %v6136_v30, 0  ;;  %v1146_v12 = vsel %vm1140_vm0, %v1143_v18, %v1145_v46  ;;  %v7409_v40 = vmul.u32.u64.low %v1155_v59, %v1154_v50  ;;  %v7410_v10 = vmul.u32.u64.high %v1155_v59, %v1154_v50, %v7409_v40 }
  0x9e   : > { %v866_v26 = vsel %vm6137_vm14, 0, %v6136_v30  ;;  %v7412_v28 = vmul.u32.u64.low %v1155_v59, %v1150_v63  ;;  %v7413_v15 = vmul.u32.u64.high %v1155_v59, %v1150_v63, %v7412_v28  ;;  %v1006_v49 = vand.u32 2139095040, %v7396_v44 }
  0x9f   : > { %vm995_vm2 = vcmp.eq.s32.totalorder %v7374_v0, 0  ;;  %v867_v48 = vsub.s32 32, %v866_v26  ;;  %v868_v33 = vshll.u32 %v7377_v3, %v866_v26  ;;  %v871_v45 = vsub.s32 4294967266, %v866_v26 }
  0xa0   : > { %v6559_v57 = vpop.eup %6558  ;;  %vm998_vm3 = vcmp.eq.s32.totalorder %v7374_v0, 2  ;;  %v884_v34 = vsel %vm7390_vm12, 0, %v882_v42  ;;  %v1003_v27 = vand.u32 2147483647, %v7396_v44  ;;  %v1007_v47 = vshrl.u32 %v1006_v49, 23 }
  0xa1   : > { %v6561_v17 = vpop.eup %6560  ;;  %v999_v51 = vxor.u32 2147483648, %v6559_v57  ;;  %v869_v16 = vshrl.u32 %v851_v31, %v867_v48  ;;  %v872_v18 = vadd.s32 127, %v871_v45  ;;  %v1162_v25 = vmul.u32 %v1155_v59, %v1146_v12 }
  0xa2   : > { %v996_v54 = vxor.u32 2147483648, %v6561_v17  ;;  %vm1164_vm4 = vc.u32 %v7410_v10, %v7412_v28  ;;  %v1165_v3 = vadd.s32 1, %v7413_v15  ;;  %v6142_v56 = vadd.s32 4294967169, %v1007_v47 }
  0xa3   : > { %vm991_vm5 = vweird.f32 %v7019_v53  ;;  %v1000_v41 = vsel %vm998_vm3, %v999_v51, %v6561_v17  ;;  %v870_v52 = vor.u32 %v869_v16, %v868_v33  ;;  %v873_v30 = vshll.u32 %v872_v18, 23 }
  0xa4   : > { %v997_v46 = vsel %vm995_vm2, %v6559_v57, %v996_v54  ;;  %v888_v1 = vadd.s32 3, %v884_v34  ;;  %v1166_v19 = vsel %vm1164_vm4, %v1165_v3, %v7413_v15  ;;  %v1013_v31 = vadd.s32 1, %v6142_v56 }
  0xa5   : > { %v1001_v59 = vsel %vm994_vm1, %v997_v46, %v1000_v41  ;;  %v874_v42 = vor.u32 4788187, %v873_v30  ;;  %v877_v63 = vcvt.s32.f32 %v870_v52  ;;  %v1167_v50 = vadd.s32 %v1166_v19, %v1162_v25 }
  0xa6   : > { %v1002_v12 = vsel %vm991_vm5, nan, %v1001_v59  ;;  %v1010_v53 = vand.u32 8388607, %v1003_v27  ;;  %vm1014_vm6 = vcmp.gt.s32.totalorder %v1013_v31, 0  ;;  %v7436_v40 = vadd.f32 %v7234_v9, %v7356_v2 }
  0xa7   : > { %3833 = vperm.xlu0 %6548, %v1002_v12   ;;  %v875_v26 = vand.u32 2147483647, %v874_v42  ;;  %v1168_v49 = vadd.s32 536870912, %v1167_v50  ;;  %v1015_v15 = vsel %vm1014_vm6, %v1013_v31, 0  ;;  %v7438_v0 = vand.u32 3, %v888_v1 }
  0xa8   : > { %v1017_v48 = vand.u32 31, %v1015_v15  ;;  %v1315_v57 = vand.u32 2147483647, %v7436_v40  ;;  %v1011_v34 = vor.u32 8388608, %v1010_v53  ;;  %v1318_v51 = vand.u32 2139095040, %v7436_v40 }
  0xa9   : > { %v878_v33 = vmul.f32 %v877_v63, %v875_v26  ;;  %v7440_v45 = vshrl.u32 %v1168_v49, 30  ;;  %v1016_v46 = vshrl.u32 %v1015_v15, 5  ;;  %vm894_vm7 = vcmp.eq.s32.totalorder %v7438_v0, 2 }
  0xaa   : > { %v1018_v47 = vsub.s32 32, %v1017_v48  ;;  %v1020_v17 = vshll.u32 %v11178_v35, %v1017_v48  ;;  %v1023_v18 = vshll.u32 %v11173_v29, %v1017_v48  ;;  %v1026_v25 = vshll.u32 %v11174_v37, %v1017_v48 }
  0xab   : > { %v879_v2 = vxor.u32 2147483648, %v878_v33  ;;  %v1170_v16 = vshll.u32 %v7440_v45, 30  ;;  %v1029_v41 = vshll.u32 %v11175_v14, %v1017_v48  ;;  %v1319_v42 = vshrl.u32 %v1318_v51, 23 }
  0xac   : > { %v1021_v54 = vshrl.u32 %v11173_v29, %v1018_v47  ;;  %v1024_v3 = vshrl.u32 %v11174_v37, %v1018_v47  ;;  %v1027_v56 = vshrl.u32 %v11175_v14, %v1018_v47  ;;  %v1030_v1 = vshrl.u32 %v11176_v38, %v1018_v47 }
  0xad   : > { %v880_v52 = vsel %vm797_vm10, %v879_v2, %v878_v33  ;;  %v7454_v30 = vsub.s32 %v1167_v50, %v1170_v16  ;;  %v1019_v31 = vshrl.u32 %v11178_v35, %v1018_v47  ;;  %v1032_v50 = vshll.u32 %v11176_v38, %v1017_v48 }
  0xae   : > { %v883_v19 = vsel %vm7390_vm12, %v7034_v55, %v880_v52  ;;  %v1022_v59 = vor.u32 %v1021_v54, %v1020_v17  ;;  %v1025_v12 = vor.u32 %v1024_v3, %v1023_v18  ;;  %v1028_v53 = vor.u32 %v1027_v56, %v1026_v25 }
  0xaf   : > { %6562 = vcosq.f32 %v883_v19  ;;  %v1173_v63 = vsub.s32 0, %v7454_v30  ;;  %v1031_v26 = vor.u32 %v1030_v1, %v1029_v41  ;;  %v1033_v49 = vshrl.u32 %v11177_v62, %v1018_v47 }
  0xb0   : > { %6564 = vsinq.f32 %v883_v19  ;;  %v1163_v61 = vadd.s32 %v7412_v28, %v7410_v10  ;;  %vm1035_vm8 = vcmp.lt.s32.totalorder %v1016_v46, 1  ;;  %v1051_v33 = vshll.u32 %v1011_v34, 8 }
  0xb1   : > { %v6147_v15 = vmin.u32 %v1173_v63, %v7454_v30  ;;  %v1034_v17 = vor.u32 %v1033_v49, %v1032_v50  ;;  %vm1037_vm9 = vcmp.lt.s32.totalorder %v1016_v46, 3  ;;  %vm1038_vm10 = vcmp.lt.s32.totalorder %v1016_v46, 4 }
  0xb2   : > { %v6154_v51 = vadd.s32 4294967169, %v1319_v42  ;;  %vm890_vm11 = vcmp.lt.s32.totalorder %v7438_v0, 2  ;;  %vm1109_vm12 = vcmp.lt.s32.totalorder %v7238_v60, 0  ;;  %vm1036_vm13 = vcmp.lt.s32.totalorder %v1016_v46, 2 }
  0xb3   : > { %v1175_v48 = vclz %v6147_v15  ;;  %v1039_v47 = vsel %vm1035_vm8, %v1019_v31, %v1022_v59  ;;  %v7473_v2 = vand.u32 8388607, %v1315_v57  ;;  %vm887_vm15 = vweird.f32 %v7034_v55 }
  0xb4   : > { %v1040_v10 = vsel %vm1038_vm10, %v1028_v53, 2102212464  ;;  %v1043_v28 = vsel %vm1035_vm8, %v1022_v59, %v1025_v12  ;;  %v1044_v34 = vsel %vm1038_vm10, %v1031_v26, 920167782  ;;  %v1047_v16 = vsel %vm1035_vm8, %v1025_v12, %v1028_v53 }
  0xb5   : > { %v6148_v18 = vadd.s32 4294967294, %v1175_v48  ;;  %v1041_v25 = vsel %vm1037_vm9, %v1025_v12, %v1040_v10  ;;  %v1045_v54 = vsel %vm1037_vm9, %v1028_v53, %v1044_v34  ;;  %v1048_v3 = vsel %vm1038_vm10, %v1034_v17, 1326507024 }
  0xb6   : > { %vm7485_vm0 = vcmp.le.f32.partialorder %v1107_v13, 0.7853982  ;;  %v1042_v41 = vsel %vm1036_vm13, %v1039_v47, %v1041_v25  ;;  %v1046_v52 = vsel %vm1036_vm13, %v1043_v28, %v1045_v54  ;;  %v1049_v1 = vsel %vm1037_vm9, %v1031_v26, %v1048_v3 }
  0xb7   : > { %v1325_v19 = vadd.s32 1, %v6154_v51  ;;  %vm6149_vm1 = vcmp.lt.s32.totalorder %v6148_v18, 0  ;;  %v1050_v31 = vsel %vm1036_vm13, %v1047_v16, %v1049_v1  ;;  %v1193_v13 = vsub.s32 4, %v7440_v45 }
  0xb8   : > { %v7493_v59 = vmul.u32.u64.low %v1051_v33, %v1046_v52  ;;  %v7494_v42 = vmul.u32.u64.high %v1051_v33, %v1046_v52, %v7493_v59  ;;  %v1178_v63 = vsel %vm6149_vm1, 0, %v6148_v18  ;;  %vm891_vm2 = vcmp.eq.s32.totalorder %v7438_v0, 0 }
  0xb9   : > { %v7498_v12 = vmul.u32.u64.low %v1051_v33, %v1050_v31  ;;  %v7499_v53 = vmul.u32.u64.high %v1051_v33, %v1050_v31, %v7498_v12  ;;  %v6563_v50 = vpop.eup %6562  ;;  %v1179_v49 = vsub.s32 32, %v1178_v63  ;;  %v1180_v15 = vshll.u32 %v7454_v30, %v1178_v63 }
  0xba   : > { %v1183_v17 = vsub.s32 4294967266, %v1178_v63  ;;  %vm1326_vm14 = vcmp.gt.s32.totalorder %v1325_v19, 0  ;;  %v6565_v26 = vpop.eup %6564  ;;  %v895_v46 = vxor.u32 2147483648, %v6563_v50  ;;  %v1058_v51 = vmul.u32 %v1051_v33, %v1042_v41 }
  0xbb   : > { %v1327_v48 = vsel %vm1326_vm14, %v1325_v19, 0  ;;  %v892_v47 = vxor.u32 2147483648, %v6565_v26  ;;  %v1181_v10 = vshrl.u32 %v1163_v61, %v1179_v49  ;;  %v1061_v34 = vadd.s32 1, %v7494_v42 }
  0xbc   : > { %v1184_v28 = vadd.s32 127, %v1183_v17  ;;  %v896_v16 = vsel %vm894_vm7, %v895_v46, %v6565_v26  ;;  %v1194_v30 = vsel %vm1109_vm12, %v1193_v13, %v7440_v45  ;;  %vm1060_vm3 = vc.u32 %v7499_v53, %v7493_v59 }
  0xbd   : > { %v1323_v18 = vor.u32 8388608, %v7473_v2  ;;  %v893_v25 = vsel %vm891_vm2, %v6563_v50, %v892_v47  ;;  %v1182_v33 = vor.u32 %v1181_v10, %v1180_v15  ;;  %v1062_v61 = vsel %vm1060_vm3, %v1061_v34, %v7494_v42 }
  0xbe   : > { %v1185_v54 = vshll.u32 %v1184_v28, 23  ;;  %v897_v3 = vsel %vm890_vm11, %v893_v25, %v896_v16  ;;  %v1063_v41 = vadd.s32 %v1062_v61, %v1058_v51  ;;  %v1329_v52 = vand.u32 31, %v1327_v48 }
  0xbf   : > { %v330_v1 = vmul.f32 %v7115_v32, %v7025_v58  ;;  %v898_v45 = vsel %vm887_vm15, nan, %v897_v3  ;;  %v1189_v31 = vcvt.s32.f32 %v1182_v33  ;;  %v1196_v2 = vsel %vm7485_vm0, 0, %v1194_v30 }
  0xc0   : > { %v1186_v19 = vor.u32 4788187, %v1185_v54  ;;  %3828 = vperm.xlu1 %6549, %v898_v45   ;;  %v1064_v63 = vadd.s32 536870912, %v1063_v41  ;;  %v1328_v13 = vshrl.u32 %v1327_v48, 5  ;;  %v1330_v42 = vsub.s32 32, %v1329_v52 }
  0xc1   : > { %v1332_v0 = vshll.u32 %v11178_v35, %v1329_v52  ;;  %v1335_v50 = vshll.u32 %v11173_v29, %v1329_v52  ;;  %v1338_v49 = vshll.u32 %v11174_v37, %v1329_v52  ;;  %v1341_v32 = vshll.u32 %v11175_v14, %v1329_v52 }
  0xc2   : > { %v1187_v12 = vand.u32 2147483647, %v1186_v19  ;;  %v1065_v55 = vshrl.u32 %v1064_v63, 30  ;;  %v1333_v15 = vshrl.u32 %v11173_v29, %v1330_v42  ;;  %v1336_v17 = vshrl.u32 %v11174_v37, %v1330_v42 }
  0xc3   : > { %v1344_v26 = vshll.u32 %v11176_v38, %v1329_v52  ;;  %v1339_v51 = vshrl.u32 %v11175_v14, %v1330_v42  ;;  %v1342_v48 = vshrl.u32 %v11176_v38, %v1330_v42  ;;  %v1345_v47 = vshrl.u32 %v11177_v62, %v1330_v42 }
  0xc4   : > { %v1190_v46 = vmul.f32 %v1189_v31, %v1187_v12  ;;  %v1200_v10 = vadd.s32 3, %v1196_v2  ;;  %v1066_v28 = vshll.u32 %v1065_v55, 30  ;;  %vm1347_vm4 = vcmp.lt.s32.totalorder %v1328_v13, 1 }
  0xc5   : > { %v7531_v34 = vshll.u32 %v1323_v18, 8  ;;  %v1334_v30 = vor.u32 %v1333_v15, %v1332_v0  ;;  %v1337_v25 = vor.u32 %v1336_v17, %v1335_v50  ;;  %v1343_v33 = vor.u32 %v1342_v48, %v1341_v32 }
  0xc6   : > { %v1191_v16 = vxor.u32 2147483648, %v1190_v46  ;;  %v7533_v54 = vsub.s32 %v1063_v41, %v1066_v28  ;;  %v1331_v61 = vshrl.u32 %v11178_v35, %v1330_v42  ;;  %v1340_v3 = vor.u32 %v1339_v51, %v1338_v49 }
  0xc7   : > { %vm1350_vm5 = vcmp.lt.s32.totalorder %v1328_v13, 4  ;;  %v1346_v45 = vor.u32 %v1345_v47, %v1344_v26  ;;  %vm1349_vm6 = vcmp.lt.s32.totalorder %v1328_v13, 3  ;;  %v7539_v19 = vadd.f32 %v7131_v39, %v330_v1 }
  0xc8   : > { %v1192_v52 = vsel %vm1109_vm12, %v1191_v16, %v1190_v46  ;;  %v1069_v31 = vsub.s32 0, %v7533_v54  ;;  %vm1348_vm7 = vcmp.lt.s32.totalorder %v1328_v13, 2  ;;  %v1352_v41 = vsel %vm1350_vm5, %v1340_v3, 2102212464 }
  0xc9   : > { %v1195_v18 = vsel %vm7485_vm0, %v7238_v60, %v1192_v52  ;;  %v1089_v2 = vsub.s32 4, %v1065_v55  ;;  %v1355_v63 = vsel %vm1347_vm4, %v1334_v30, %v1337_v25  ;;  %v1356_v42 = vsel %vm1350_vm5, %v1343_v33, 920167782 }
  0xca   : > { %6566 = vcosq.f32 %v1195_v18  ;;  %v6143_v0 = vmin.u32 %v1069_v31, %v7533_v54  ;;  %v1351_v39 = vsel %vm1347_vm4, %v1331_v61, %v1334_v30  ;;  %v1357_v1 = vsel %vm1349_vm6, %v1340_v3, %v1356_v42 }
  0xcb   : > { %6568 = vsinq.f32 %v1195_v18  ;;  %v1353_v56 = vsel %vm1349_vm6, %v1337_v25, %v1352_v41  ;;  %v1358_v12 = vsel %vm1348_vm7, %v1355_v63, %v1357_v1  ;;  %v1359_v50 = vsel %vm1347_vm4, %v1337_v25, %v1340_v3 }
  0xcc   : > { %v1360_v49 = vsel %vm1350_vm5, %v1346_v45, 1326507024  ;;  %vm1005_vm8 = vcmp.lt.s32.totalorder %v7396_v44, 0  ;;  %v1071_v32 = vclz %v6143_v0  ;;  %vm1199_vm9 = vweird.f32 %v7238_v60 }
  0xcd   : > { %v1090_v15 = vsel %vm1005_vm8, %v1089_v2, %v1065_v55  ;;  %v1361_v17 = vsel %vm1349_vm6, %v1343_v33, %v1360_v49  ;;  %v7560_v26 = vmul.u32.u64.low %v7531_v34, %v1358_v12  ;;  %v7561_v46 = vmul.u32.u64.high %v7531_v34, %v1358_v12, %v7560_v26 }
  0xce   : > { %v6144_v51 = vadd.s32 4294967294, %v1071_v32  ;;  %v1354_v48 = vsel %vm1348_vm7, %v1351_v39, %v1353_v56  ;;  %v1362_v47 = vsel %vm1348_vm7, %v1359_v50, %v1361_v17  ;;  %v1214_v28 = vand.u32 2139095040, %v7539_v19 }
  0xcf   : > { %v1201_v16 = vand.u32 3, %v1200_v10  ;;  %vm7569_vm10 = vcmp.le.f32.partialorder %v1003_v27, 0.7853982  ;;  %v7574_v30 = vmul.u32.u64.low %v7531_v34, %v1362_v47  ;;  %v7575_v25 = vmul.u32.u64.high %v7531_v34, %v1362_v47, %v7574_v30 }
  0xd0   : > { %v1059_v33 = vadd.s32 %v7493_v59, %v7499_v53  ;;  %vm6145_vm11 = vcmp.lt.s32.totalorder %v6144_v51, 0  ;;  %v1092_v13 = vsel %vm7569_vm10, 0, %v1090_v15  ;;  %v1215_v61 = vshrl.u32 %v1214_v28, 23 }
  0xd1   : > { %v1074_v3 = vsel %vm6145_vm11, 0, %v6144_v51  ;;  %v1370_v10 = vmul.u32 %v7531_v34, %v1354_v48  ;;  %v1373_v27 = vadd.s32 1, %v7561_v46  ;;  %v1211_v52 = vand.u32 2147483647, %v7539_v19 }
  0xd2   : > { %v1075_v45 = vsub.s32 32, %v1074_v3  ;;  %v1076_v18 = vshll.u32 %v7533_v54, %v1074_v3  ;;  %v1079_v31 = vsub.s32 4294967266, %v1074_v3  ;;  %v6150_v41 = vadd.s32 4294967169, %v1215_v61 }
  0xd3   : > { %vm1202_vm12 = vcmp.lt.s32.totalorder %v1201_v16, 2  ;;  %vm1203_vm13 = vcmp.eq.s32.totalorder %v1201_v16, 0  ;;  %vm1206_vm15 = vcmp.eq.s32.totalorder %v1201_v16, 2  ;;  %vm1372_vm0 = vc.u32 %v7575_v25, %v7560_v26 }
  0xd4   : > { %v6567_v2 = vpop.eup %6566  ;;  %v1077_v63 = vshrl.u32 %v1059_v33, %v1075_v45  ;;  %v1080_v42 = vadd.s32 127, %v1079_v31  ;;  %v1374_v34 = vsel %vm1372_vm0, %v1373_v27, %v7561_v46  ;;  %v1096_v39 = vadd.s32 3, %v1092_v13 }
  0xd5   : > { %v6569_v59 = vpop.eup %6568  ;;  %v1207_v53 = vxor.u32 2147483648, %v6567_v2  ;;  %v1375_v1 = vadd.s32 %v1374_v34, %v1370_v10  ;;  %v1221_v56 = vadd.s32 1, %v6150_v41  ;;  %v1218_v49 = vand.u32 8388607, %v1211_v52 }
  0xd6   : > { %v1204_v0 = vxor.u32 2147483648, %v6569_v59  ;;  %v1078_v54 = vor.u32 %v1077_v63, %v1076_v18  ;;  %v1081_v50 = vshll.u32 %v1080_v42, 23  ;;  %v7592_v17 = vrot.slane %v6846_v5, %v6984_v36 }
  0xd7   : > { %v1208_v12 = vsel %vm1206_vm15, %v1207_v53, %v6569_v59  ;;  %v1376_v15 = vadd.s32 536870912, %v1375_v1  ;;  %vm1222_vm1 = vcmp.gt.s32.totalorder %v1221_v56, 0  ;;  %v7597_v61 = vand.u32 3, %v1096_v39 }
  0xd8   : > { %v1205_v32 = vsel %vm1203_vm13, %v6567_v2, %v1204_v0  ;;  %v1082_v51 = vor.u32 4788187, %v1081_v50  ;;  %v1085_v48 = vcvt.s32.f32 %v1078_v54  ;;  %v1223_v47 = vsel %vm1222_vm1, %v1221_v56, 0 }
  0xd9   : > { %v1209_v46 = vsel %vm1202_vm12, %v1205_v32, %v1208_v12  ;;  %v1377_v30 = vshrl.u32 %v1376_v15, 30  ;;  %v1225_v33 = vand.u32 31, %v1223_v47  ;;  %v1219_v3 = vor.u32 8388608, %v1218_v49 }
  0xda   : > { %v1210_v28 = vsel %vm1199_vm9, nan, %v1209_v46  ;;  %v1083_v13 = vand.u32 2147483647, %v1082_v51  ;;  %v333_v45 = vmul.f32 %v7592_v17, %v6996_v43  ;;  %v7603_v16 = vrot.slane %v6931_v21, %v6984_v36 }
  0xdb   : > { %3843 = vperm.xlu0 %6548, %v1210_v28   ;;  %v1378_v10 = vshll.u32 %v1377_v30, 30  ;;  %v1226_v27 = vsub.s32 32, %v1225_v33  ;;  %v1371_v60 = vadd.s32 %v7560_v26, %v7575_v25  ;;  %v1224_v31 = vshrl.u32 %v1223_v47, 5 }
  0xdc   : > { %v1086_v18 = vmul.f32 %v1085_v48, %v1083_v13  ;;  %v1228_v41 = vshll.u32 %v11178_v35, %v1225_v33  ;;  %v1231_v53 = vshll.u32 %v11173_v29, %v1225_v33  ;;  %v1234_v63 = vshll.u32 %v11174_v37, %v1225_v33 }
  0xdd   : > { %v7607_v2 = vsub.s32 %v1375_v1, %v1378_v10  ;;  %v1229_v59 = vshrl.u32 %v11173_v29, %v1226_v27  ;;  %vm1317_vm14 = vcmp.lt.s32.totalorder %v7436_v40, 0  ;;  %v1232_v34 = vshrl.u32 %v11174_v37, %v1226_v27 }
  0xde   : > { %v1087_v42 = vxor.u32 2147483648, %v1086_v18  ;;  %v1235_v0 = vshrl.u32 %v11175_v14, %v1226_v27  ;;  %v1237_v26 = vshll.u32 %v11175_v14, %v1225_v33  ;;  %v1238_v39 = vshrl.u32 %v11176_v38, %v1226_v27 }
  0xdf   : > { %v1381_v25 = vsub.s32 0, %v7607_v2  ;;  %v7618_v1 = vshll.u32 %v1219_v3, 8  ;;  %v7621_v56 = vadd.f32 %v7603_v16, %v333_v45  ;;  %v1227_v54 = vshrl.u32 %v11178_v35, %v1226_v27 }
  0xe0   : > { %v1088_v12 = vsel %vm1005_vm8, %v1087_v42, %v1086_v18  ;;  %v1230_v50 = vor.u32 %v1229_v59, %v1228_v41  ;;  %v1240_v49 = vshll.u32 %v11176_v38, %v1225_v33  ;;  %v1233_v46 = vor.u32 %v1232_v34, %v1231_v53 }
  0xe1   : > { %v1091_v32 = vsel %vm7569_vm10, %v7396_v44, %v1088_v12  ;;  %v6155_v15 = vmin.u32 %v1381_v25, %v7607_v2  ;;  %v1236_v51 = vor.u32 %v1235_v0, %v1234_v63  ;;  %v1239_v48 = vor.u32 %v1238_v39, %v1237_v26 }
  0xe2   : > { %6570 = vcosq.f32 %v1091_v32  ;;  %v1241_v47 = vshrl.u32 %v11177_v62, %v1226_v27  ;;  %vm1243_vm2 = vcmp.lt.s32.totalorder %v1224_v31, 1  ;;  %v1401_v13 = vsub.s32 4, %v1377_v30 }
  0xe3   : > { %6572 = vsinq.f32 %v1091_v32  ;;  %v1383_v28 = vclz %v6155_v15  ;;  %v1526_v3 = vand.u32 2139095040, %v7621_v56  ;;  %vm1244_vm3 = vcmp.lt.s32.totalorder %v1224_v31, 2 }
  0xe4   : > { %v1242_v10 = vor.u32 %v1241_v47, %v1240_v49  ;;  %vm1245_vm4 = vcmp.lt.s32.totalorder %v1224_v31, 3  ;;  %vm1246_vm5 = vcmp.lt.s32.totalorder %v1224_v31, 4  ;;  %v1247_v33 = vsel %vm1243_vm2, %v1227_v54, %v1230_v50 }
  0xe5   : > { %v6156_v55 = vadd.s32 4294967294, %v1383_v28  ;;  %v1248_v45 = vsel %vm1246_vm5, %v1236_v51, 2102212464  ;;  %v1251_v18 = vsel %vm1243_vm2, %v1230_v50, %v1233_v46  ;;  %v1252_v59 = vsel %vm1246_vm5, %v1239_v48, 920167782 }
  0xe6   : > { %v1249_v41 = vsel %vm1245_vm4, %v1233_v46, %v1248_v45  ;;  %v1255_v53 = vsel %vm1243_vm2, %v1233_v46, %v1236_v51  ;;  %v1256_v63 = vsel %vm1246_vm5, %v1242_v10, 1326507024  ;;  %vm1095_vm6 = vweird.f32 %v7396_v44 }
  0xe7   : > { %vm6157_vm7 = vcmp.lt.s32.totalorder %v6156_v55, 0  ;;  %v1402_v27 = vsel %vm1317_vm14, %v1401_v13, %v1377_v30  ;;  %v1253_v42 = vsel %vm1245_vm4, %v1236_v51, %v1252_v59  ;;  %v1257_v34 = vsel %vm1245_vm4, %v1239_v48, %v1256_v63 }
  0xe8   : > { %v1386_v0 = vsel %vm6157_vm7, 0, %v6156_v55  ;;  %v1250_v26 = vsel %vm1244_vm3, %v1247_v33, %v1249_v41  ;;  %v1254_v25 = vsel %vm1244_vm3, %v1251_v18, %v1253_v42  ;;  %v1258_v39 = vsel %vm1244_vm3, %v1255_v53, %v1257_v34 }
  0xe9   : > { %v1387_v12 = vsub.s32 32, %v1386_v0  ;;  %v1388_v54 = vshll.u32 %v7607_v2, %v1386_v0  ;;  %v1391_v50 = vsub.s32 4294967266, %v1386_v0  ;;  %v1527_v49 = vshrl.u32 %v1526_v3, 23 }
  0xea   : > { %v7641_v32 = vmul.u32.u64.low %v7618_v1, %v1258_v39  ;;  %v7642_v15 = vmul.u32.u64.high %v7618_v1, %v1258_v39, %v7641_v32  ;;  %v7645_v30 = vmul.u32.u64.low %v7618_v1, %v1254_v25  ;;  %v7646_v46 = vmul.u32.u64.high %v7618_v1, %v1254_v25, %v7645_v30 }
  0xeb   : > { %vm7651_vm8 = vcmp.le.f32.partialorder %v1315_v57, 0.7853982  ;;  %v1389_v31 = vshrl.u32 %v1371_v60, %v1387_v12  ;;  %v1392_v48 = vadd.s32 127, %v1391_v50  ;;  %v6162_v2 = vadd.s32 4294967169, %v1527_v49 }
  0xec   : > { %v6571_v47 = vpop.eup %6570  ;;  %vm1098_vm9 = vcmp.lt.s32.totalorder %v7597_v61, 2  ;;  %vm1099_vm10 = vcmp.eq.s32.totalorder %v7597_v61, 0  ;;  %vm1102_vm11 = vcmp.eq.s32.totalorder %v7597_v61, 2  ;;  %v1404_v28 = vsel %vm7651_vm8, 0, %v1402_v27 }
  0xed   : > { %v6573_v13 = vpop.eup %6572  ;;  %v1103_v3 = vxor.u32 2147483648, %v6571_v47  ;;  %v1390_v10 = vor.u32 %v1389_v31, %v1388_v54  ;;  %v1393_v57 = vshll.u32 %v1392_v48, 23  ;;  %v1266_v55 = vmul.u32 %v7618_v1, %v1250_v26 }
  0xee   : > { %v1100_v33 = vxor.u32 2147483648, %v6573_v13  ;;  %vm1268_vm12 = vc.u32 %v7642_v15, %v7645_v30  ;;  %v1269_v60 = vadd.s32 1, %v7646_v46  ;;  %v1523_v45 = vand.u32 2147483647, %v7621_v56 }
  0xef   : > { %v1104_v18 = vsel %vm1102_vm11, %v1103_v3, %v6573_v13  ;;  %v1394_v41 = vor.u32 4788187, %v1393_v57  ;;  %v1397_v59 = vcvt.s32.f32 %v1390_v10  ;;  %v1533_v53 = vadd.s32 1, %v6162_v2 }
  0xf0   : > { %v1101_v63 = vsel %vm1099_vm10, %v6571_v47, %v1100_v33  ;;  %v1408_v27 = vadd.s32 3, %v1404_v28  ;;  %v1270_v42 = vsel %vm1268_vm12, %v1269_v60, %v7646_v46  ;;  %v1530_v25 = vand.u32 8388607, %v1523_v45 }
  0xf1   : > { %v1105_v1 = vsel %vm1098_vm9, %v1101_v63, %v1104_v18  ;;  %v1395_v34 = vand.u32 2147483647, %v1394_v41  ;;  %v1271_v0 = vadd.s32 %v1270_v42, %v1266_v55  ;;  %vm1534_vm13 = vcmp.gt.s32.totalorder %v1533_v53, 0 }
  0xf2   : > { %v1106_v26 = vsel %vm1095_vm6, nan, %v1105_v1  ;;  %v1535_v39 = vsel %vm1534_vm13, %v1533_v53, 0  ;;  %v332_v49 = vmul.f32 %v7229_v11, %v7025_v58  ;;  %v7676_v61 = vand.u32 3, %v1408_v27 }
  0xf3   : > { %3838 = vperm.xlu1 %6549, %v1106_v26   ;;  %v1398_v12 = vmul.f32 %v1397_v59, %v1395_v34  ;;  %v1272_v54 = vadd.s32 536870912, %v1271_v0  ;;  %v1537_v50 = vand.u32 31, %v1535_v39  ;;  %v1531_v48 = vor.u32 8388608, %v1530_v25 }
  0xf4   : > { %v1536_v44 = vshrl.u32 %v1535_v39, 5  ;;  %vm1414_vm15 = vcmp.eq.s32.totalorder %v7676_v61, 2  ;;  %v7701_v42 = vadd.f32 %v7234_v9, %v332_v49  ;;  %vm1411_vm0 = vcmp.eq.s32.totalorder %v7676_v61, 0 }
  0xf5   : > { %v1399_v32 = vxor.u32 2147483648, %v1398_v12  ;;  %v7678_v46 = vshrl.u32 %v1272_v54, 30  ;;  %v1538_v31 = vsub.s32 32, %v1537_v50  ;;  %v1540_v2 = vshll.u32 %v11178_v35, %v1537_v50 }
  0xf6   : > { %v1543_v47 = vshll.u32 %v11173_v29, %v1537_v50  ;;  %v1546_v3 = vshll.u32 %v11174_v37, %v1537_v50  ;;  %v1549_v11 = vshll.u32 %v11175_v14, %v1537_v50  ;;  %v1552_v53 = vshll.u32 %v11176_v38, %v1537_v50 }
  0xf7   : > { %v1400_v28 = vsel %vm1317_vm14, %v1399_v32, %v1398_v12  ;;  %v1274_v13 = vshll.u32 %v7678_v46, 30  ;;  %v1541_v57 = vshrl.u32 %v11173_v29, %v1538_v31  ;;  %v1544_v55 = vshrl.u32 %v11174_v37, %v1538_v31 }
  0xf8   : > { %v1403_v10 = vsel %vm7651_vm8, %v7436_v40, %v1400_v28  ;;  %v1547_v33 = vshrl.u32 %v11175_v14, %v1538_v31  ;;  %v1550_v18 = vshrl.u32 %v11176_v38, %v1538_v31  ;;  %v1539_v63 = vshrl.u32 %v11178_v35, %v1538_v31 }
  0xf9   : > { %6574 = vcosq.f32 %v1403_v10  ;;  %v7693_v60 = vsub.s32 %v1271_v0, %v1274_v13  ;;  %v1542_v41 = vor.u32 %v1541_v57, %v1540_v2  ;;  %v1545_v59 = vor.u32 %v1544_v55, %v1543_v47 }
  0xfa   : > { %6576 = vsinq.f32 %v1403_v10  ;;  %v1551_v27 = vor.u32 %v1550_v18, %v1549_v11  ;;  %v1548_v1 = vor.u32 %v1547_v33, %v1546_v3  ;;  %v1553_v34 = vshrl.u32 %v11177_v62, %v1538_v31 }
  0xfb   : > { %v1277_v51 = vsub.s32 0, %v7693_v60  ;;  %vm1555_vm1 = vcmp.lt.s32.totalorder %v1536_v44, 1  ;;  %v1571_v0 = vshll.u32 %v1531_v48, 8  ;;  %vm1410_vm14 = vcmp.lt.s32.totalorder %v7676_v61, 2 }
  0xfc   : > { %vm1556_vm2 = vcmp.lt.s32.totalorder %v1536_v44, 2  ;;  %vm1557_vm3 = vcmp.lt.s32.totalorder %v1536_v44, 3  ;;  %vm1558_vm4 = vcmp.lt.s32.totalorder %v1536_v44, 4  ;;  %vm1407_vm5 = vweird.f32 %v7436_v40 }
  0xfd   : > { %v6151_v26 = vmin.u32 %v1277_v51, %v7693_v60  ;;  %vm1213_vm6 = vcmp.lt.s32.totalorder %v7539_v19, 0  ;;  %v1554_v9 = vor.u32 %v1553_v34, %v1552_v53  ;;  %v1560_v25 = vsel %vm1558_vm4, %v1548_v1, 2102212464 }
  0xfe   : > { %v1563_v39 = vsel %vm1555_vm1, %v1542_v41, %v1545_v59  ;;  %v1564_v12 = vsel %vm1558_vm4, %v1551_v27, 920167782  ;;  %v1267_v54 = vadd.s32 %v7645_v30, %v7642_v15  ;;  %v1559_v49 = vsel %vm1555_vm1, %v1539_v63, %v1542_v41 }
  0xff   : > { %v1279_v50 = vclz %v6151_v26  ;;  %v1422_v32 = vand.u32 2139095040, %v7701_v42  ;;  %v1561_v31 = vsel %vm1557_vm3, %v1545_v59, %v1560_v25  ;;  %v1565_v48 = vsel %vm1557_vm3, %v1548_v1, %v1564_v12 }
 0x100   : > { %v1567_v2 = vsel %vm1555_vm1, %v1545_v59, %v1548_v1  ;;  %v1568_v47 = vsel %vm1558_vm4, %v1554_v9, 1326507024  ;;  %vm7719_vm7 = vcmp.le.f32.partialorder %v1211_v52, 0.7853982  ;;  %v1297_v15 = vsub.s32 4, %v7678_v46 }
 0x101   : > { %v6152_v13 = vadd.s32 4294967294, %v1279_v50  ;;  %v1566_v30 = vsel %vm1556_vm2, %v1563_v39, %v1565_v48  ;;  %v1569_v3 = vsel %vm1557_vm3, %v1551_v27, %v1568_v47  ;;  %v1562_v11 = vsel %vm1556_vm2, %v1559_v49, %v1561_v31 }
 0x102   : > { %v1570_v10 = vsel %vm1556_vm2, %v1567_v2, %v1569_v3  ;;  %v7728_v57 = vmul.u32.u64.low %v1571_v0, %v1566_v30  ;;  %v7729_v55 = vmul.u32.u64.high %v1571_v0, %v1566_v30, %v7728_v57  ;;  %v1423_v41 = vshrl.u32 %v1422_v32, 23 }
 0x103   : > { %v6575_v33 = vpop.eup %6574  ;;  %vm6153_vm8 = vcmp.lt.s32.totalorder %v6152_v13, 0  ;;  %v7732_v52 = vmul.u32.u64.low %v1571_v0, %v1570_v10  ;;  %v7733_v18 = vmul.u32.u64.high %v1571_v0, %v1570_v10, %v7732_v52  ;;  %v7737_v63 = vrot.slane %v6851_v6, %v6984_v36 }
 0x104   : > { %v6577_v59 = vpop.eup %6576  ;;  %v1415_v53 = vxor.u32 2147483648, %v6575_v33  ;;  %v1282_v51 = vsel %vm6153_vm8, 0, %v6152_v13  ;;  %v7741_v44 = vrot.slane %v6936_v22, %v6984_v36  ;;  %v1578_v25 = vmul.u32 %v1571_v0, %v1562_v11 }
 0x105   : > { %v1412_v27 = vxor.u32 2147483648, %v6577_v59  ;;  %v1283_v1 = vsub.s32 32, %v1282_v51  ;;  %v1284_v34 = vshll.u32 %v7693_v60, %v1282_v51  ;;  %v1287_v26 = vsub.s32 4294967266, %v1282_v51 }
 0x106   : > { %v1416_v9 = vsel %vm1414_vm15, %v1415_v53, %v6577_v59  ;;  %v1581_v39 = vadd.s32 1, %v7729_v55  ;;  %v6158_v12 = vadd.s32 4294967169, %v1423_v41  ;;  %v1298_v31 = vsel %vm1213_vm6, %v1297_v15, %v7678_v46 }
 0x107   : > { %v1413_v50 = vsel %vm1411_vm0, %v6575_v33, %v1412_v27  ;;  %v1285_v49 = vshrl.u32 %v1267_v54, %v1283_v1  ;;  %v1288_v32 = vadd.s32 127, %v1287_v26  ;;  %vm1580_vm9 = vc.u32 %v7733_v18, %v7728_v57 }
 0x108   : > { %v1417_v60 = vsel %vm1410_vm14, %v1413_v50, %v1416_v9  ;;  %v1419_v0 = vand.u32 2147483647, %v7701_v42  ;;  %v1429_v48 = vadd.s32 1, %v6158_v12  ;;  %v1582_v54 = vsel %vm1580_vm9, %v1581_v39, %v7729_v55 }
 0x109   : > { %v1418_v2 = vsel %vm1407_vm5, nan, %v1417_v60  ;;  %v1286_v47 = vor.u32 %v1285_v49, %v1284_v34  ;;  %v1289_v13 = vshll.u32 %v1288_v32, 23  ;;  %v1300_v46 = vsel %vm7719_vm7, 0, %v1298_v31 }
 0x10a   : > { %3853 = vperm.xlu0 %6548, %v1418_v2   ;;  %v1583_v15 = vadd.s32 %v1582_v54, %v1578_v25  ;;  %vm1430_vm10 = vcmp.gt.s32.totalorder %v1429_v48, 0  ;;  %v335_v61 = vmul.f32 %v7737_v63, %v6996_v43  ;;  %v1304_v52 = vadd.s32 3, %v1300_v46 }
 0x10b   : > { %v1290_v30 = vor.u32 4788187, %v1289_v13  ;;  %v1293_v3 = vcvt.s32.f32 %v1286_v47  ;;  %v1431_v11 = vsel %vm1430_vm10, %v1429_v48, 0  ;;  %v1426_v41 = vand.u32 8388607, %v1419_v0 }
 0x10c   : > { %v1584_v10 = vadd.s32 536870912, %v1583_v15  ;;  %v1433_v33 = vand.u32 31, %v1431_v11  ;;  %v7768_v59 = vshrl.u32 %v1431_v11, 5  ;;  %v7771_v51 = vadd.f32 %v7741_v44, %v335_v61 }
 0x10d   : > { %v1291_v40 = vand.u32 2147483647, %v1290_v30  ;;  %v7783_v60 = vand.u32 3, %v1304_v52  ;;  %v1427_v2 = vor.u32 8388608, %v1426_v41  ;;  %vm1525_vm12 = vcmp.lt.s32.totalorder %v7621_v56, 0 }
 0x10e   : > { %v7766_v55 = vshrl.u32 %v1584_v10, 30  ;;  %v1434_v53 = vsub.s32 32, %v1433_v33  ;;  %v1436_v1 = vshll.u32 %v11178_v35, %v1433_v33  ;;  %v1439_v34 = vshll.u32 %v11173_v29, %v1433_v33 }
 0x10f   : > { %v1294_v27 = vmul.f32 %v1293_v3, %v1291_v40  ;;  %v1442_v26 = vshll.u32 %v11174_v37, %v1433_v33  ;;  %v1445_v39 = vshll.u32 %v11175_v14, %v1433_v33  ;;  %v1448_v12 = vshll.u32 %v11176_v38, %v1433_v33 }
 0x110   : > { %v1586_v9 = vshll.u32 %v7766_v55, 30  ;;  %v1437_v25 = vshrl.u32 %v11173_v29, %v1434_v53  ;;  %v1440_v49 = vshrl.u32 %v11174_v37, %v1434_v53  ;;  %v1443_v32 = vshrl.u32 %v11175_v14, %v1434_v53 }
 0x111   : > { %v1295_v50 = vxor.u32 2147483648, %v1294_v27  ;;  %v1446_v31 = vshrl.u32 %v11176_v38, %v1434_v53  ;;  %v1449_v47 = vshrl.u32 %v11177_v62, %v1434_v53  ;;  %v1435_v54 = vshrl.u32 %v11178_v35, %v1434_v53 }
 0x112   : > { %v7785_v48 = vsub.s32 %v1583_v15, %v1586_v9  ;;  %v1438_v46 = vor.u32 %v1437_v25, %v1436_v1  ;;  %v1734_v61 = vand.u32 2139095040, %v7771_v51  ;;  %v1441_v11 = vor.u32 %v1440_v49, %v1439_v34 }
 0x113   : > { %v1296_v13 = vsel %vm1213_vm6, %v1295_v50, %v1294_v27  ;;  %v1444_v15 = vor.u32 %v1443_v32, %v1442_v26  ;;  %v1447_v10 = vor.u32 %v1446_v31, %v1445_v39  ;;  %v1450_v33 = vor.u32 %v1449_v47, %v1448_v12 }
 0x114   : > { %v1299_v30 = vsel %vm7719_vm7, %v7539_v19, %v1296_v13  ;;  %v1589_v3 = vsub.s32 0, %v7785_v48  ;;  %vm1451_vm11 = vcmp.lt.s32.totalorder %v7768_v59, 1  ;;  %v1467_v52 = vshll.u32 %v1427_v2, 8 }
 0x115   : > { %6578 = vcosq.f32 %v1299_v30  ;;  %vm1453_vm13 = vcmp.lt.s32.totalorder %v7768_v59, 3  ;;  %vm1454_vm15 = vcmp.lt.s32.totalorder %v7768_v59, 4  ;;  %v1731_v28 = vand.u32 2147483647, %v7771_v51 }
 0x116   : > { %6580 = vsinq.f32 %v1299_v30  ;;  %v6163_v40 = vmin.u32 %v1589_v3, %v7785_v48  ;;  %v1735_v41 = vshrl.u32 %v1734_v61, 23  ;;  %vm1452_vm0 = vcmp.lt.s32.totalorder %v7768_v59, 2 }
 0x117   : > { %v1459_v27 = vsel %vm1451_vm11, %v1438_v46, %v1441_v11  ;;  %v1463_v1 = vsel %vm1451_vm11, %v1441_v11, %v1444_v15  ;;  %vm1306_vm1 = vcmp.lt.s32.totalorder %v7783_v60, 2  ;;  %v1455_v34 = vsel %vm1451_vm11, %v1435_v54, %v1438_v46 }
 0x118   : > { %v1591_v53 = vclz %v6163_v40  ;;  %v1456_v26 = vsel %vm1454_vm15, %v1444_v15, 2102212464  ;;  %v1460_v9 = vsel %vm1454_vm15, %v1447_v10, 920167782  ;;  %v1464_v25 = vsel %vm1454_vm15, %v1450_v33, 1326507024 }
 0x119   : > { %vm1303_vm14 = vweird.f32 %v7539_v19  ;;  %v1457_v12 = vsel %vm1453_vm13, %v1441_v11, %v1456_v26  ;;  %v1461_v50 = vsel %vm1453_vm13, %v1444_v15, %v1460_v9  ;;  %v1465_v49 = vsel %vm1453_vm13, %v1447_v10, %v1464_v25 }
 0x11a   : > { %v6164_v39 = vadd.s32 4294967294, %v1591_v53  ;;  %v1609_v32 = vsub.s32 4, %v7766_v55  ;;  %v1462_v31 = vsel %vm1452_vm0, %v1459_v27, %v1461_v50  ;;  %v1466_v2 = vsel %vm1452_vm0, %v1463_v1, %v1465_v49 }
 0x11b   : > { %v6170_v47 = vadd.s32 4294967169, %v1735_v41  ;;  %vm7818_vm2 = vcmp.le.f32.partialorder %v1523_v45, 0.7853982  ;;  %v1579_v54 = vadd.s32 %v7728_v57, %v7733_v18  ;;  %v1458_v3 = vsel %vm1452_vm0, %v1455_v34, %v1457_v12 }
 0x11c   : > { %vm6165_vm3 = vcmp.lt.s32.totalorder %v6164_v39, 0  ;;  %v7824_v46 = vmul.u32.u64.low %v1467_v52, %v1466_v2  ;;  %v7825_v61 = vmul.u32.u64.high %v1467_v52, %v1466_v2, %v7824_v46  ;;  %vm1307_vm4 = vcmp.eq.s32.totalorder %v7783_v60, 0 }
 0x11d   : > { %v1594_v30 = vsel %vm6165_vm3, 0, %v6164_v39  ;;  %v7829_v11 = vmul.u32.u64.low %v1467_v52, %v1462_v31  ;;  %v7830_v15 = vmul.u32.u64.high %v1467_v52, %v1462_v31, %v7829_v11  ;;  %v1741_v40 = vadd.s32 1, %v6170_v47 }
 0x11e   : > { %v1595_v10 = vsub.s32 32, %v1594_v30  ;;  %v1596_v45 = vshll.u32 %v7785_v48, %v1594_v30  ;;  %v1599_v33 = vsub.s32 4294967266, %v1594_v30  ;;  %vm1310_vm5 = vcmp.eq.s32.totalorder %v7783_v60, 2 }
 0x11f   : > { %v6579_v41 = vpop.eup %6578  ;;  %v1610_v57 = vsel %vm1525_vm12, %v1609_v32, %v7766_v55  ;;  %v1738_v18 = vand.u32 8388607, %v1731_v28  ;;  %v1474_v34 = vmul.u32 %v1467_v52, %v1458_v3  ;;  %vm1476_vm6 = vc.u32 %v7825_v61, %v7829_v11 }
 0x120   : > { %v6581_v59 = vpop.eup %6580  ;;  %v1311_v53 = vxor.u32 2147483648, %v6579_v41  ;;  %v1597_v27 = vshrl.u32 %v1579_v54, %v1595_v10  ;;  %v1600_v1 = vadd.s32 127, %v1599_v33  ;;  %v1477_v26 = vadd.s32 1, %v7830_v15 }
 0x121   : > { %v1308_v48 = vxor.u32 2147483648, %v6581_v59  ;;  %vm1742_vm7 = vcmp.gt.s32.totalorder %v1741_v40, 0  ;;  %v334_v52 = vmul.f32 %v7592_v17, %v7025_v58  ;;  %v1612_v46 = vsel %vm7818_vm2, 0, %v1610_v57 }
 0x122   : > { %v1312_v9 = vsel %vm1310_vm5, %v1311_v53, %v6581_v59  ;;  %v1598_v25 = vor.u32 %v1597_v27, %v1596_v45  ;;  %v1601_v39 = vshll.u32 %v1600_v1, 23  ;;  %v1743_v12 = vsel %vm1742_vm7, %v1741_v40, 0 }
 0x123   : > { %v1309_v55 = vsel %vm1307_vm4, %v6579_v41, %v1308_v48  ;;  %v1478_v50 = vsel %vm1476_vm6, %v1477_v26, %v7830_v15  ;;  %v1745_v49 = vand.u32 31, %v1743_v12  ;;  %v1744_v59 = vshrl.u32 %v1743_v12, 5 }
 0x124   : > { %v1313_v32 = vsel %vm1306_vm1, %v1309_v55, %v1312_v9  ;;  %v1602_v31 = vor.u32 4788187, %v1601_v39  ;;  %v1605_v2 = vcvt.s32.f32 %v1598_v25  ;;  %v1479_v47 = vadd.s32 %v1478_v50, %v1474_v34 }
 0x125   : > { %v1314_v54 = vsel %vm1303_vm14, nan, %v1313_v32  ;;  %v1746_v30 = vsub.s32 32, %v1745_v49  ;;  %v1748_v3 = vshll.u32 %v11178_v35, %v1745_v49  ;;  %v1751_v17 = vshll.u32 %v11173_v29, %v1745_v49 }
 0x126   : > { %3848 = vperm.xlu1 %6549, %v1314_v54   ;;  %v1603_v15 = vand.u32 2147483647, %v1602_v31  ;;  %v1480_v10 = vadd.s32 536870912, %v1479_v47  ;;  %v1754_v60 = vshll.u32 %v11174_v37, %v1745_v49  ;;  %v1757_v40 = vshll.u32 %v11175_v14, %v1745_v49 }
 0x127   : > { %v1749_v45 = vshrl.u32 %v11173_v29, %v1746_v30  ;;  %v1752_v33 = vshrl.u32 %v11174_v37, %v1746_v30  ;;  %v1755_v19 = vshrl.u32 %v11175_v14, %v1746_v30  ;;  %v1758_v53 = vshrl.u32 %v11176_v38, %v1746_v30 }
 0x128   : > { %v1606_v41 = vmul.f32 %v1605_v2, %v1603_v15  ;;  %v1481_v57 = vshrl.u32 %v1480_v10, 30  ;;  %v1616_v27 = vadd.s32 3, %v1612_v46  ;;  %v1739_v1 = vor.u32 8388608, %v1738_v18 }
 0x129   : > { %v1760_v34 = vshll.u32 %v11176_v38, %v1745_v49  ;;  %v1761_v48 = vshrl.u32 %v11177_v62, %v1746_v30  ;;  %v1747_v25 = vshrl.u32 %v11178_v35, %v1746_v30  ;;  %v7867_v39 = vadd.f32 %v7603_v16, %v334_v52 }
 0x12a   : > { %v1607_v26 = vxor.u32 2147483648, %v1606_v41  ;;  %v1482_v9 = vshll.u32 %v1481_v57, 30  ;;  %v1750_v55 = vor.u32 %v1749_v45, %v1748_v3  ;;  %v1753_v50 = vor.u32 %v1752_v33, %v1751_v17 }
 0x12b   : > { %v1756_v32 = vor.u32 %v1755_v19, %v1754_v60  ;;  %v1759_v31 = vor.u32 %v1758_v53, %v1757_v40  ;;  %vm1763_vm8 = vcmp.lt.s32.totalorder %v1744_v59, 1  ;;  %vm1766_vm9 = vcmp.lt.s32.totalorder %v1744_v59, 4 }
 0x12c   : > { %v1608_v12 = vsel %vm1525_vm12, %v1607_v26, %v1606_v41  ;;  %v7871_v2 = vsub.s32 %v1479_v47, %v1482_v9  ;;  %v1762_v49 = vor.u32 %v1761_v48, %v1760_v34  ;;  %vm1765_vm10 = vcmp.lt.s32.totalorder %v1744_v59, 3 }
 0x12d   : > { %v1611_v18 = vsel %vm7818_vm2, %v7621_v56, %v1608_v12  ;;  %v1779_v54 = vshll.u32 %v1739_v1, 8  ;;  %vm1764_vm11 = vcmp.lt.s32.totalorder %v1744_v59, 2  ;;  %v1768_v52 = vsel %vm1766_vm9, %v1756_v32, 2102212464 }
 0x12e   : > { %6582 = vcosq.f32 %v1611_v18  ;;  %v1485_v16 = vsub.s32 0, %v7871_v2  ;;  %v1771_v46 = vsel %vm1763_vm8, %v1750_v55, %v1753_v50  ;;  %v1772_v47 = vsel %vm1766_vm9, %v1759_v31, 920167782 }
 0x12f   : > { %6584 = vsinq.f32 %v1611_v18  ;;  %v1630_v30 = vand.u32 2139095040, %v7867_v39  ;;  %v1617_v3 = vand.u32 3, %v1616_v27  ;;  %v1767_v15 = vsel %vm1763_vm8, %v1747_v25, %v1750_v55 }
 0x130   : > { %v6159_v13 = vmin.u32 %v1485_v16, %v7871_v2  ;;  %v1773_v10 = vsel %vm1765_vm10, %v1756_v32, %v1772_v47  ;;  %v1769_v17 = vsel %vm1765_vm10, %v1753_v50, %v1768_v52  ;;  %v1775_v45 = vsel %vm1763_vm8, %v1753_v50, %v1756_v32 }
 0x131   : > { %v1774_v60 = vsel %vm1764_vm11, %v1771_v46, %v1773_v10  ;;  %v1776_v33 = vsel %vm1766_vm9, %v1762_v49, 1326507024  ;;  %vm7890_vm12 = vcmp.le.f32.partialorder %v1419_v0, 0.7853982  ;;  %vm1421_vm13 = vcmp.lt.s32.totalorder %v7701_v42, 0 }
 0x132   : > { %v1487_v40 = vclz %v6159_v13  ;;  %v1505_v41 = vsub.s32 4, %v1481_v57  ;;  %vm1615_vm15 = vweird.f32 %v7621_v56  ;;  %v1777_v53 = vsel %vm1765_vm10, %v1759_v31, %v1776_v33 }
 0x133   : > { %v7897_v27 = vmul.u32.u64.low %v1779_v54, %v1774_v60  ;;  %v7898_v1 = vmul.u32.u64.high %v1779_v54, %v1774_v60, %v7897_v27  ;;  %v1631_v34 = vshrl.u32 %v1630_v30, 23  ;;  %vm1618_vm0 = vcmp.lt.s32.totalorder %v1617_v3, 2 }
 0x134   : > { %v6160_v48 = vadd.s32 4294967294, %v1487_v40  ;;  %v1770_v0 = vsel %vm1764_vm11, %v1767_v15, %v1769_v17  ;;  %v1778_v26 = vsel %vm1764_vm11, %v1775_v45, %v1777_v53  ;;  %vm1619_vm1 = vcmp.eq.s32.totalorder %v1617_v3, 0 }
 0x135   : > { %v7903_v9 = vmul.u32.u64.low %v1779_v54, %v1778_v26  ;;  %v7904_v25 = vmul.u32.u64.high %v1779_v54, %v1778_v26, %v7903_v9  ;;  %v6166_v55 = vadd.s32 4294967169, %v1631_v34  ;;  %v1475_v50 = vadd.s32 %v7829_v11, %v7825_v61 }
 0x136   : > { %vm6161_vm14 = vcmp.lt.s32.totalorder %v6160_v48, 0  ;;  %v1506_v32 = vsel %vm1421_vm13, %v1505_v41, %v1481_v57  ;;  %v1627_v31 = vand.u32 2147483647, %v7867_v39  ;;  %v1786_v18 = vmul.u32 %v1779_v54, %v1770_v0 }
 0x137   : > { %v1490_v12 = vsel %vm6161_vm14, 0, %v6160_v48  ;;  %v1789_v49 = vadd.s32 1, %v7898_v1  ;;  %v1637_v59 = vadd.s32 1, %v6166_v55  ;;  %vm1622_vm2 = vcmp.eq.s32.totalorder %v1617_v3, 2 }
 0x138   : > { %v6583_v16 = vpop.eup %6582  ;;  %v1491_v52 = vsub.s32 32, %v1490_v12  ;;  %v1492_v46 = vshll.u32 %v7871_v2, %v1490_v12  ;;  %v1495_v47 = vsub.s32 4294967266, %v1490_v12  ;;  %v1508_v61 = vsel %vm7890_vm12, 0, %v1506_v32 }
 0x139   : > { %v6585_v30 = vpop.eup %6584  ;;  %v1623_v13 = vxor.u32 2147483648, %v6583_v16  ;;  %vm1788_vm3 = vc.u32 %v7904_v25, %v7897_v27  ;;  %vm1638_vm4 = vcmp.gt.s32.totalorder %v1637_v59, 0  ;;  %v1634_v2 = vand.u32 8388607, %v1627_v31 }
 0x13a   : > { %v1620_v11 = vxor.u32 2147483648, %v6585_v30  ;;  %v1493_v57 = vshrl.u32 %v1475_v50, %v1491_v52  ;;  %v1496_v54 = vadd.s32 127, %v1495_v47  ;;  %v1790_v15 = vsel %vm1788_vm3, %v1789_v49, %v7898_v1 }
 0x13b   : > { %v1624_v10 = vsel %vm1622_vm2, %v1623_v13, %v6585_v30  ;;  %v1791_v17 = vadd.s32 %v1790_v15, %v1786_v18  ;;  %v1639_v60 = vsel %vm1638_vm4, %v1637_v59, 0  ;;  %v1512_v53 = vadd.s32 3, %v1508_v61 }
 0x13c   : > { %v1621_v45 = vsel %vm1619_vm1, %v6583_v16, %v1620_v11  ;;  %v1494_v33 = vor.u32 %v1493_v57, %v1492_v46  ;;  %v1497_v40 = vshll.u32 %v1496_v54, 23  ;;  %v1641_v48 = vand.u32 31, %v1639_v60 }
 0x13d   : > { %v1625_v41 = vsel %vm1618_vm0, %v1621_v45, %v1624_v10  ;;  %v1792_v34 = vadd.s32 536870912, %v1791_v17  ;;  %v7926_v9 = vrot.slane %v6856_v7, %v6984_v36  ;;  %v1635_v50 = vor.u32 8388608, %v1634_v2 }
 0x13e   : > { %v1626_v0 = vsel %vm1615_vm15, nan, %v1625_v41  ;;  %v1498_v26 = vor.u32 4788187, %v1497_v40  ;;  %v1501_v1 = vcvt.s32.f32 %v1494_v33  ;;  %v1640_v32 = vshrl.u32 %v1639_v60, 5 }
 0x13f   : > { %3863 = vperm.xlu0 %6548, %v1626_v0   ;;  %v7928_v55 = vshrl.u32 %v1792_v34, 30  ;;  %v1642_v12 = vsub.s32 32, %v1641_v48  ;;  %v1644_v18 = vshll.u32 %v11178_v35, %v1641_v48  ;;  %v1647_v49 = vshll.u32 %v11173_v29, %v1641_v48 }
 0x140   : > { %v1499_v3 = vand.u32 2147483647, %v1498_v26  ;;  %v1650_v56 = vshll.u32 %v11174_v37, %v1641_v48  ;;  %v1653_v52 = vshll.u32 %v11175_v14, %v1641_v48  ;;  %v1656_v46 = vshll.u32 %v11176_v38, %v1641_v48 }
 0x141   : > { %v1794_v59 = vshll.u32 %v7928_v55, 30  ;;  %v1645_v16 = vshrl.u32 %v11173_v29, %v1642_v12  ;;  %v1648_v30 = vshrl.u32 %v11174_v37, %v1642_v12  ;;  %v1651_v13 = vshrl.u32 %v11175_v14, %v1642_v12 }
 0x142   : > { %v1502_v47 = vmul.f32 %v1501_v1, %v1499_v3  ;;  %v1654_v61 = vshrl.u32 %v11176_v38, %v1642_v12  ;;  %v1657_v57 = vshrl.u32 %v11177_v62, %v1642_v12  ;;  %v337_v54 = vmul.f32 %v7926_v9, %v6996_v43 }
 0x143   : > { %v7940_v11 = vsub.s32 %v1791_v17, %v1794_v59  ;;  %v7947_v15 = vrot.slane %v6941_v23, %v6984_v36  ;;  %v1646_v2 = vor.u32 %v1645_v16, %v1644_v18  ;;  %v1649_v60 = vor.u32 %v1648_v30, %v1647_v49 }
 0x144   : > { %v1503_v10 = vxor.u32 2147483648, %v1502_v47  ;;  %v7949_v45 = vshll.u32 %v1635_v50, 8  ;;  %v1643_v40 = vshrl.u32 %v11178_v35, %v1642_v12  ;;  %v1655_v17 = vor.u32 %v1654_v61, %v1653_v52 }
 0x145   : > { %v1797_v33 = vsub.s32 0, %v7940_v11  ;;  %vm1659_vm5 = vcmp.lt.s32.totalorder %v1640_v32, 1  ;;  %v1652_v34 = vor.u32 %v1651_v13, %v1650_v56  ;;  %v1658_v48 = vor.u32 %v1657_v57, %v1656_v46 }
 0x146   : > { %v1504_v41 = vsel %vm1421_vm13, %v1503_v10, %v1502_v47  ;;  %vm1662_vm6 = vcmp.lt.s32.totalorder %v1640_v32, 4  ;;  %vm1660_vm7 = vcmp.lt.s32.totalorder %v1640_v32, 2  ;;  %vm1661_vm8 = vcmp.lt.s32.totalorder %v1640_v32, 3 }
 0x147   : > { %v1507_v0 = vsel %vm7890_vm12, %v7701_v42, %v1504_v41  ;;  %v6171_v26 = vmin.u32 %v1797_v33, %v7940_v11  ;;  %v1664_v1 = vsel %vm1662_vm6, %v1652_v34, 2102212464  ;;  %v1667_v50 = vsel %vm1659_vm5, %v1646_v2, %v1649_v60 }
 0x148   : > { %6586 = vcosq.f32 %v1507_v0  ;;  %v1668_v12 = vsel %vm1662_vm6, %v1655_v17, 920167782  ;;  %vm7964_vm9 = vcmp.le.f32.partialorder %v1731_v28, 0.7853982  ;;  %vm1733_vm10 = vcmp.lt.s32.totalorder %v7771_v51, 0 }
 0x149   : > { %6588 = vsinq.f32 %v1507_v0  ;;  %v1799_v19 = vclz %v6171_v26  ;;  %v7970_v18 = vadd.f32 %v7947_v15, %v337_v54  ;;  %v1663_v49 = vsel %vm1659_vm5, %v1643_v40, %v1646_v2 }
 0x14a   : > { %v1665_v56 = vsel %vm1661_vm8, %v1649_v60, %v1664_v1  ;;  %v1669_v59 = vsel %vm1661_vm8, %v1652_v34, %v1668_v12  ;;  %v1671_v16 = vsel %vm1659_vm5, %v1649_v60, %v1652_v34  ;;  %v1817_v28 = vsub.s32 4, %v7928_v55 }
 0x14b   : > { %v6172_v52 = vadd.s32 4294967294, %v1799_v19  ;;  %v1670_v46 = vsel %vm1660_vm7, %v1667_v50, %v1669_v59  ;;  %v1672_v47 = vsel %vm1662_vm6, %v1658_v48, 1326507024  ;;  %v1513_v30 = vand.u32 3, %v1512_v53 }
 0x14c   : > { %v1673_v13 = vsel %vm1661_vm8, %v1655_v17, %v1672_v47  ;;  %v7981_v61 = vmul.u32.u64.low %v7949_v45, %v1670_v46  ;;  %v7982_v57 = vmul.u32.u64.high %v7949_v45, %v1670_v46, %v7981_v61  ;;  %vm1511_vm11 = vweird.f32 %v7701_v42 }
 0x14d   : > { %v1787_v54 = vadd.s32 %v7897_v27, %v7904_v25  ;;  %vm6173_vm12 = vcmp.lt.s32.totalorder %v6172_v52, 0  ;;  %v1666_v10 = vsel %vm1660_vm7, %v1663_v49, %v1665_v56  ;;  %v1674_v2 = vsel %vm1660_vm7, %v1671_v16, %v1673_v13 }
 0x14e   : > { %v1802_v60 = vsel %vm6173_vm12, 0, %v6172_v52  ;;  %v7990_v33 = vmul.u32.u64.low %v7949_v45, %v1674_v2  ;;  %v7991_v53 = vmul.u32.u64.high %v7949_v45, %v1674_v2, %v7990_v33  ;;  %v1942_v40 = vand.u32 2139095040, %v7970_v18 }
 0x14f   : > { %v1803_v17 = vsub.s32 32, %v1802_v60  ;;  %v1804_v41 = vshll.u32 %v7940_v11, %v1802_v60  ;;  %v1807_v34 = vsub.s32 4294967266, %v1802_v60  ;;  %v1818_v27 = vsel %vm1733_vm10, %v1817_v28, %v7928_v55 }
 0x150   : > { %vm1514_vm13 = vcmp.lt.s32.totalorder %v1513_v30, 2  ;;  %v1682_v25 = vmul.u32 %v7949_v45, %v1666_v10  ;;  %v1685_v32 = vadd.s32 1, %v7982_v57  ;;  %v1943_v48 = vshrl.u32 %v1942_v40, 23 }
 0x151   : > { %vm1515_vm15 = vcmp.eq.s32.totalorder %v1513_v30, 0  ;;  %vm1518_vm0 = vcmp.eq.s32.totalorder %v1513_v30, 2  ;;  %v1805_v0 = vshrl.u32 %v1787_v54, %v1803_v17  ;;  %v1808_v26 = vadd.s32 127, %v1807_v34 }
 0x152   : > { %v6587_v1 = vpop.eup %6586  ;;  %v1820_v50 = vsel %vm7964_vm9, 0, %v1818_v27  ;;  %vm1684_vm1 = vc.u32 %v7991_v53, %v7981_v61  ;;  %v1939_v11 = vand.u32 2147483647, %v7970_v18  ;;  %v6178_v12 = vadd.s32 4294967169, %v1943_v48 }
 0x153   : > { %v6589_v55 = vpop.eup %6588  ;;  %v1519_v19 = vxor.u32 2147483648, %v6587_v1  ;;  %v1806_v49 = vor.u32 %v1805_v0, %v1804_v41  ;;  %v1809_v45 = vshll.u32 %v1808_v26, 23  ;;  %v1686_v56 = vsel %vm1684_vm1, %v1685_v32, %v7982_v57 }
 0x154   : > { %v1516_v59 = vxor.u32 2147483648, %v6589_v55  ;;  %v1687_v16 = vadd.s32 %v1686_v56, %v1682_v25  ;;  %v1949_v52 = vadd.s32 1, %v6178_v12  ;;  %v336_v28 = vmul.f32 %v7737_v63, %v7025_v58 }
 0x155   : > { %v1520_v46 = vsel %vm1518_vm0, %v1519_v19, %v6589_v55  ;;  %v1810_v47 = vor.u32 4788187, %v1809_v45  ;;  %v1813_v13 = vcvt.s32.f32 %v1806_v49  ;;  %v1824_v54 = vadd.s32 3, %v1820_v50 }
 0x156   : > { %v1517_v10 = vsel %vm1515_vm15, %v6587_v1, %v1516_v59  ;;  %v1688_v2 = vadd.s32 536870912, %v1687_v16  ;;  %v1946_v60 = vand.u32 8388607, %v1939_v11  ;;  %vm1950_vm14 = vcmp.gt.s32.totalorder %v1949_v52, 0 }
 0x157   : > { %v1521_v57 = vsel %vm1514_vm13, %v1517_v10, %v1520_v46  ;;  %v1811_v33 = vand.u32 2147483647, %v1810_v47  ;;  %v1951_v40 = vsel %vm1950_vm14, %v1949_v52, 0  ;;  %v8014_v27 = vand.u32 3, %v1824_v54 }
 0x158   : > { %v1522_v17 = vsel %vm1511_vm11, nan, %v1521_v57  ;;  %v1689_v63 = vshrl.u32 %v1688_v2, 30  ;;  %v1953_v41 = vand.u32 31, %v1951_v40  ;;  %v1947_v32 = vor.u32 8388608, %v1946_v60 }
 0x159   : > { %3858 = vperm.xlu1 %6549, %v1522_v17   ;;  %v1814_v34 = vmul.f32 %v1813_v13, %v1811_v33  ;;  %v8017_v0 = vadd.f32 %v7741_v44, %v336_v28  ;;  %v8020_v30 = vadd.s32 %v7981_v61, %v7991_v53  ;;  %v1952_v1 = vshrl.u32 %v1951_v40, 5 }
 0x15a   : > { %v1690_v25 = vshll.u32 %v1689_v63, 30  ;;  %v1954_v48 = vsub.s32 32, %v1953_v41  ;;  %v1956_v42 = vshll.u32 %v11178_v35, %v1953_v41  ;;  %v1959_v55 = vshll.u32 %v11173_v29, %v1953_v41 }
 0x15b   : > { %v1815_v26 = vxor.u32 2147483648, %v1814_v34  ;;  %v1962_v19 = vshll.u32 %v11174_v37, %v1953_v41  ;;  %vm1629_vm2 = vcmp.lt.s32.totalorder %v7867_v39, 0  ;;  %v1965_v53 = vshll.u32 %v11175_v14, %v1953_v41 }
 0x15c   : > { %v8023_v50 = vsub.s32 %v1687_v16, %v1690_v25  ;;  %v1957_v12 = vshrl.u32 %v11173_v29, %v1954_v48  ;;  %v1960_v44 = vshrl.u32 %v11174_v37, %v1954_v48  ;;  %v1963_v61 = vshrl.u32 %v11175_v14, %v1954_v48 }
 0x15d   : > { %v1816_v49 = vsel %vm1733_vm10, %v1815_v26, %v1814_v34  ;;  %v8038_v59 = vshll.u32 %v1947_v32, 8  ;;  %v1838_v16 = vand.u32 2139095040, %v8017_v0  ;;  %v1955_v52 = vshrl.u32 %v11178_v35, %v1954_v48 }
 0x15e   : > { %v1819_v45 = vsel %vm7964_vm9, %v7771_v51, %v1816_v49  ;;  %v1693_v56 = vsub.s32 0, %v8023_v50  ;;  %v1958_v28 = vor.u32 %v1957_v12, %v1956_v42  ;;  %v1966_v46 = vshrl.u32 %v11176_v38, %v1954_v48 }
 0x15f   : > { %6590 = vcosq.f32 %v1819_v45  ;;  %v1961_v13 = vor.u32 %v1960_v44, %v1959_v55  ;;  %v1968_v54 = vshll.u32 %v11176_v38, %v1953_v41  ;;  %vm1830_vm3 = vcmp.eq.s32.totalorder %v8014_v27, 2 }
 0x160   : > { %6592 = vsinq.f32 %v1819_v45  ;;  %v6167_v47 = vmin.u32 %v1693_v56, %v8023_v50  ;;  %vm8048_vm4 = vcmp.le.f32.partialorder %v1627_v31, 0.7853982  ;;  %v1964_v10 = vor.u32 %v1963_v61, %v1962_v19 }
 0x161   : > { %v1967_v2 = vor.u32 %v1966_v46, %v1965_v53  ;;  %v1969_v60 = vshrl.u32 %v11177_v62, %v1954_v48  ;;  %vm1971_vm5 = vcmp.lt.s32.totalorder %v1952_v1, 1  ;;  %vm1827_vm6 = vcmp.eq.s32.totalorder %v8014_v27, 0 }
 0x162   : > { %v1695_v57 = vclz %v6167_v47  ;;  %v1713_v33 = vsub.s32 4, %v1689_v63  ;;  %vm1972_vm7 = vcmp.lt.s32.totalorder %v1952_v1, 2  ;;  %v1839_v40 = vshrl.u32 %v1838_v16, 23 }
 0x163   : > { %vm1826_vm8 = vcmp.lt.s32.totalorder %v8014_v27, 2  ;;  %v1970_v17 = vor.u32 %v1969_v60, %v1968_v54  ;;  %vm1973_vm9 = vcmp.lt.s32.totalorder %v1952_v1, 3  ;;  %vm1974_vm10 = vcmp.lt.s32.totalorder %v1952_v1, 4 }
 0x164   : > { %v1975_v31 = vsel %vm1971_vm5, %v1955_v52, %v1958_v28  ;;  %vm1823_vm11 = vweird.f32 %v7771_v51  ;;  %v6168_v41 = vadd.s32 4294967294, %v1695_v57  ;;  %v1976_v34 = vsel %vm1974_vm10, %v1964_v10, 2102212464 }
 0x165   : > { %v1979_v25 = vsel %vm1971_vm5, %v1958_v28, %v1961_v13  ;;  %v1980_v32 = vsel %vm1974_vm10, %v1967_v2, 920167782  ;;  %v1977_v48 = vsel %vm1973_vm9, %v1961_v13, %v1976_v34  ;;  %v1983_v42 = vsel %vm1971_vm5, %v1961_v13, %v1964_v10 }
 0x166   : > { %v1981_v26 = vsel %vm1973_vm9, %v1964_v10, %v1980_v32  ;;  %v1984_v12 = vsel %vm1974_vm10, %v1970_v17, 1326507024  ;;  %vm6169_vm12 = vcmp.lt.s32.totalorder %v6168_v41, 0  ;;  %v1714_v55 = vsel %vm1629_vm2, %v1713_v33, %v1689_v63 }
 0x167   : > { %v1982_v19 = vsel %vm1972_vm7, %v1979_v25, %v1981_v26  ;;  %v1985_v49 = vsel %vm1973_vm9, %v1967_v2, %v1984_v12  ;;  %v1698_v44 = vsel %vm6169_vm12, 0, %v6168_v41  ;;  %v1978_v28 = vsel %vm1972_vm7, %v1975_v31, %v1977_v48 }
 0x168   : > { %v1986_v61 = vsel %vm1972_vm7, %v1983_v42, %v1985_v49  ;;  %v8064_v53 = vmul.u32.u64.low %v8038_v59, %v1982_v19  ;;  %v8065_v45 = vmul.u32.u64.high %v8038_v59, %v1982_v19, %v8064_v53  ;;  %v1699_v56 = vsub.s32 32, %v1698_v44 }
 0x169   : > { %v1700_v16 = vshll.u32 %v8023_v50, %v1698_v44  ;;  %v1703_v52 = vsub.s32 4294967266, %v1698_v44  ;;  %v6591_v46 = vpop.eup %6590  ;;  %v8071_v63 = vmul.u32.u64.low %v8038_v59, %v1986_v61  ;;  %v8072_v47 = vmul.u32.u64.high %v8038_v59, %v1986_v61, %v8071_v63 }
 0x16a   : > { %v6174_v13 = vadd.s32 4294967169, %v1839_v40  ;;  %v8076_v54 = vrot.slane %v6861_v8, %v6984_v36  ;;  %v6593_v10 = vpop.eup %6592  ;;  %v1831_v2 = vxor.u32 2147483648, %v6591_v46  ;;  %v1701_v60 = vshrl.u32 %v8020_v30, %v1699_v56 }
 0x16b   : > { %v1704_v57 = vadd.s32 127, %v1703_v52  ;;  %v1716_v50 = vsel %vm8048_vm4, 0, %v1714_v55  ;;  %v1828_v1 = vxor.u32 2147483648, %v6593_v10  ;;  %v1994_v33 = vmul.u32 %v8038_v59, %v1978_v28 }
 0x16c   : > { %v1997_v17 = vadd.s32 1, %v8065_v45  ;;  %v1845_v31 = vadd.s32 1, %v6174_v13  ;;  %v1832_v40 = vsel %vm1830_vm3, %v1831_v2, %v6593_v10  ;;  %v1702_v41 = vor.u32 %v1701_v60, %v1700_v16 }
 0x16d   : > { %v1705_v34 = vshll.u32 %v1704_v57, 23  ;;  %v1835_v25 = vand.u32 2147483647, %v8017_v0  ;;  %v1829_v30 = vsel %vm1827_vm6, %v6591_v46, %v1828_v1  ;;  %v1720_v32 = vadd.s32 3, %v1716_v50 }
 0x16e   : > { %vm1996_vm13 = vc.u32 %v8072_v47, %v8064_v53  ;;  %vm1846_vm15 = vcmp.gt.s32.totalorder %v1845_v31, 0  ;;  %v1833_v59 = vsel %vm1826_vm8, %v1829_v30, %v1832_v40  ;;  %v1709_v26 = vcvt.s32.f32 %v1702_v41 }
 0x16f   : > { %v1706_v48 = vor.u32 4788187, %v1705_v34  ;;  %v1998_v42 = vsel %vm1996_vm13, %v1997_v17, %v8065_v45  ;;  %v1834_v12 = vsel %vm1823_vm11, nan, %v1833_v59  ;;  %v1847_v19 = vsel %vm1846_vm15, %v1845_v31, 0 }
 0x170   : > { %v1999_v55 = vadd.s32 %v1998_v42, %v1994_v33  ;;  %3873 = vperm.xlu0 %6548, %v1834_v12   ;;  %v1849_v44 = vand.u32 31, %v1847_v19  ;;  %v8095_v61 = vand.u32 3, %v1720_v32  ;;  %v1842_v16 = vand.u32 8388607, %v1835_v25 }
 0x171   : > { %v1707_v49 = vand.u32 2147483647, %v1706_v48  ;;  %v339_v27 = vmul.f32 %v8076_v54, %v6996_v43  ;;  %v8104_v51 = vrot.slane %v6946_v24, %v6984_v36  ;;  %v1848_v33 = vshrl.u32 %v1847_v19, 5 }
 0x172   : > { %v2000_v56 = vadd.s32 536870912, %v1999_v55  ;;  %v1850_v28 = vsub.s32 32, %v1849_v44  ;;  %v1852_v45 = vshll.u32 %v11178_v35, %v1849_v44  ;;  %v1855_v63 = vshll.u32 %v11173_v29, %v1849_v44 }
 0x173   : > { %v1710_v52 = vmul.f32 %v1709_v26, %v1707_v49  ;;  %v1858_v13 = vshll.u32 %v11174_v37, %v1849_v44  ;;  %v1861_v10 = vshll.u32 %v11175_v14, %v1849_v44  ;;  %v1864_v50 = vshll.u32 %v11176_v38, %v1849_v44 }
 0x174   : > { %v2001_v46 = vshrl.u32 %v2000_v56, 30  ;;  %v1853_v60 = vshrl.u32 %v11173_v29, %v1850_v28  ;;  %v1856_v57 = vshrl.u32 %v11174_v37, %v1850_v28  ;;  %v1859_v17 = vshrl.u32 %v11175_v14, %v1850_v28 }
 0x175   : > { %v1711_v2 = vxor.u32 2147483648, %v1710_v52  ;;  %v1862_v31 = vshrl.u32 %v11176_v38, %v1850_v28  ;;  %v1843_v41 = vor.u32 8388608, %v1842_v16  ;;  %v1851_v34 = vshrl.u32 %v11178_v35, %v1850_v28 }
 0x176   : > { %v2002_v1 = vshll.u32 %v2001_v46, 30  ;;  %v1865_v30 = vshrl.u32 %v11177_v62, %v1850_v28  ;;  %v1854_v48 = vor.u32 %v1853_v60, %v1852_v45  ;;  %v1857_v26 = vor.u32 %v1856_v57, %v1855_v63 }
 0x177   : > { %v1712_v40 = vsel %vm1629_vm2, %v1711_v2, %v1710_v52  ;;  %v1860_v42 = vor.u32 %v1859_v17, %v1858_v13  ;;  %v1863_v12 = vor.u32 %v1862_v31, %v1861_v10  ;;  %vm1867_vm0 = vcmp.lt.s32.totalorder %v1848_v33, 1 }
 0x178   : > { %v1715_v32 = vsel %vm8048_vm4, %v7867_v39, %v1712_v40  ;;  %v8121_v59 = vsub.s32 %v1999_v55, %v2002_v1  ;;  %v1866_v19 = vor.u32 %v1865_v30, %v1864_v50  ;;  %v8125_v44 = vadd.f32 %v8104_v51, %v339_v27 }
 0x179   : > { %6594 = vcosq.f32 %v1715_v32  ;;  %vm1868_vm1 = vcmp.lt.s32.totalorder %v1848_v33, 2  ;;  %vm1869_vm14 = vcmp.lt.s32.totalorder %v1848_v33, 3  ;;  %vm1870_vm2 = vcmp.lt.s32.totalorder %v1848_v33, 4 }
 0x17a   : > { %6596 = vsinq.f32 %v1715_v32  ;;  %v2005_v49 = vsub.s32 0, %v8121_v59  ;;  %v1883_v3 = vshll.u32 %v1843_v41, 8  ;;  %v1871_v56 = vsel %vm1867_vm0, %v1851_v34, %v1854_v48 }
 0x17b   : > { %v1872_v16 = vsel %vm1870_vm2, %v1860_v42, 2102212464  ;;  %v1875_v52 = vsel %vm1867_vm0, %v1854_v48, %v1857_v26  ;;  %v1876_v45 = vsel %vm1870_vm2, %v1863_v12, 920167782  ;;  %v1879_v63 = vsel %vm1867_vm0, %v1857_v26, %v1860_v42 }
 0x17c   : > { %v6179_v55 = vmin.u32 %v2005_v49, %v8121_v59  ;;  %v1873_v28 = vsel %vm1869_vm14, %v1857_v26, %v1872_v16  ;;  %v1880_v13 = vsel %vm1870_vm2, %v1866_v19, 1326507024  ;;  %vm1719_vm3 = vweird.f32 %v7867_v39 }
 0x17d   : > { %vm8132_vm4 = vcmp.le.f32.partialorder %v1939_v11, 0.7853982  ;;  %v2025_v2 = vsub.s32 4, %v2001_v46  ;;  %v2150_v60 = vand.u32 2139095040, %v8125_v44  ;;  %vm1722_vm5 = vcmp.lt.s32.totalorder %v8095_v61, 2 }
 0x17e   : > { %v2007_v10 = vclz %v6179_v55  ;;  %vm1941_vm6 = vcmp.lt.s32.totalorder %v7970_v18, 0  ;;  %v1877_v57 = vsel %vm1869_vm14, %v1860_v42, %v1876_v45  ;;  %v1881_v50 = vsel %vm1869_vm14, %v1863_v12, %v1880_v13 }
 0x17f   : > { %v1874_v17 = vsel %vm1868_vm1, %v1871_v56, %v1873_v28  ;;  %v1878_v11 = vsel %vm1868_vm1, %v1875_v52, %v1877_v57  ;;  %v1882_v31 = vsel %vm1868_vm1, %v1879_v63, %v1881_v50  ;;  %v1995_v32 = vadd.s32 %v8064_v53, %v8072_v47 }
 0x180   : > { %v6180_v1 = vadd.s32 4294967294, %v2007_v10  ;;  %v8144_v40 = vmul.u32.u64.low %v1883_v3, %v1882_v31  ;;  %v8145_v41 = vmul.u32.u64.high %v1883_v3, %v1882_v31, %v8144_v40  ;;  %v2026_v48 = vsel %vm1941_vm6, %v2025_v2, %v2001_v46 }
 0x181   : > { %v8147_v34 = vmul.u32.u64.low %v1883_v3, %v1878_v11  ;;  %v8148_v30 = vmul.u32.u64.high %v1883_v3, %v1878_v11, %v8147_v34  ;;  %v2151_v26 = vshrl.u32 %v2150_v60, 23  ;;  %vm1723_vm8 = vcmp.eq.s32.totalorder %v8095_v61, 0 }
 0x182   : > { %vm6181_vm7 = vcmp.lt.s32.totalorder %v6180_v1, 0  ;;  %vm1726_vm9 = vcmp.eq.s32.totalorder %v8095_v61, 2  ;;  %v1890_v12 = vmul.u32 %v1883_v3, %v1874_v17  ;;  %v2028_v53 = vsel %vm8132_vm4, 0, %v2026_v48 }
 0x183   : > { %v6595_v42 = vpop.eup %6594  ;;  %v2010_v33 = vsel %vm6181_vm7, 0, %v6180_v1  ;;  %vm1892_vm10 = vc.u32 %v8145_v41, %v8147_v34  ;;  %v1893_v47 = vadd.s32 1, %v8148_v30  ;;  %v6186_v63 = vadd.s32 4294967169, %v2151_v26 }
 0x184   : > { %v6597_v19 = vpop.eup %6596  ;;  %v1727_v49 = vxor.u32 2147483648, %v6595_v42  ;;  %v2011_v55 = vsub.s32 32, %v2010_v33  ;;  %v2012_v56 = vshll.u32 %v8121_v59, %v2010_v33  ;;  %v2015_v16 = vsub.s32 4294967266, %v2010_v33 }
 0x185   : > { %v1724_v52 = vxor.u32 2147483648, %v6597_v19  ;;  %v1894_v13 = vsel %vm1892_vm10, %v1893_v47, %v8148_v30  ;;  %v2147_v59 = vand.u32 2147483647, %v8125_v44  ;;  %v2032_v1 = vadd.s32 3, %v2028_v53 }
 0x186   : > { %v1728_v46 = vsel %vm1726_vm9, %v1727_v49, %v6597_v19  ;;  %v2013_v28 = vshrl.u32 %v1995_v32, %v2011_v55  ;;  %v2016_v45 = vadd.s32 127, %v2015_v16  ;;  %v1895_v57 = vadd.s32 %v1894_v13, %v1890_v12 }
 0x187   : > { %v1725_v3 = vsel %vm1723_vm8, %v6595_v42, %v1724_v52  ;;  %v2157_v17 = vadd.s32 1, %v6186_v63  ;;  %v338_v11 = vmul.f32 %v7926_v9, %v7025_v58  ;;  %v2154_v32 = vand.u32 8388607, %v2147_v59  ;;  %v11208_v9 = vld [vmem:[#allocation6_spill] sm:$0xff] }
 0x188   : > { %v1729_v10 = vsel %vm1722_vm5, %v1725_v3, %v1728_v46  ;;  %v2014_v2 = vor.u32 %v2013_v28, %v2012_v56  ;;  %v2017_v60 = vshll.u32 %v2016_v45, 23  ;;  %v1896_v30 = vadd.s32 536870912, %v1895_v57  ;;  %v11209_v56 = vld [vmem:[#allocation17_spill] sm:$0xff] }
 0x189   : > { %v1730_v50 = vsel %vm1719_vm3, nan, %v1729_v10  ;;  %vm2158_vm11 = vcmp.gt.s32.totalorder %v2157_v17, 0  ;;  %v8175_v42 = vand.u32 3, %v2032_v1  ;;  %v8178_v33 = vadd.f32 %v7947_v15, %v338_v11 }
 0x18a   : > { %3868 = vperm.xlu1 %6549, %v1730_v50   ;;  %v2018_v31 = vor.u32 4788187, %v2017_v60  ;;  %v2021_v40 = vcvt.s32.f32 %v2014_v2  ;;  %v8173_v48 = vshrl.u32 %v1896_v30, 30  ;;  %v2159_v26 = vsel %vm2158_vm11, %v2157_v17, 0 }
 0x18b   : > { %v2161_v39 = vand.u32 31, %v2159_v26  ;;  %v8182_v12 = vrot.slane %v11208_v9, %v6984_v36  ;;  %v8185_v49 = vadd.s32 %v8147_v34, %v8145_v41  ;;  %v8190_v16 = vrot.slane %v11209_v56, %v6984_v36 }
 0x18c   : > { %v2019_v61 = vand.u32 2147483647, %v2018_v31  ;;  %v1898_v55 = vshll.u32 %v8173_v48, 30  ;;  %v2155_v52 = vor.u32 8388608, %v2154_v32  ;;  %v2043_v15 = vand.u32 2147483647, %v8178_v33 }
 0x18d   : > { %v2162_v53 = vsub.s32 32, %v2161_v39  ;;  %v2164_v47 = vshll.u32 %v11178_v35, %v2161_v39  ;;  %v2167_v45 = vshll.u32 %v11173_v29, %v2161_v39  ;;  %v2170_v41 = vshll.u32 %v11174_v37, %v2161_v39 }
 0x18e   : > { %v2022_v19 = vmul.f32 %v2021_v40, %v2019_v61  ;;  %v8194_v28 = vsub.s32 %v1895_v57, %v1898_v55  ;;  %v2173_v3 = vshll.u32 %v11175_v14, %v2161_v39  ;;  %v2046_v13 = vand.u32 2139095040, %v8178_v33 }
 0x18f   : > { %v2165_v34 = vshrl.u32 %v11173_v29, %v2162_v53  ;;  %v2168_v63 = vshrl.u32 %v11174_v37, %v2162_v53  ;;  %v2160_v60 = vshrl.u32 %v2159_v26, 5  ;;  %v2171_v57 = vshrl.u32 %v11175_v14, %v2162_v53 }
 0x190   : > { %v2023_v46 = vxor.u32 2147483648, %v2022_v19  ;;  %v1901_v2 = vsub.s32 0, %v8194_v28  ;;  %v2163_v1 = vshrl.u32 %v11178_v35, %v2162_v53  ;;  %v2174_v11 = vshrl.u32 %v11176_v38, %v2162_v53 }
 0x191   : > { %v2166_v17 = vor.u32 %v2165_v34, %v2164_v47  ;;  %v2169_v40 = vor.u32 %v2168_v63, %v2167_v45  ;;  %v2172_v30 = vor.u32 %v2171_v57, %v2170_v41  ;;  %v2176_v61 = vshll.u32 %v11176_v38, %v2161_v39 }
 0x192   : > { %v2024_v10 = vsel %vm1941_vm6, %v2023_v46, %v2022_v19  ;;  %v6175_v31 = vmin.u32 %v1901_v2, %v8194_v28  ;;  %v2175_v32 = vor.u32 %v2174_v11, %v2173_v3  ;;  %v2177_v26 = vshrl.u32 %v11177_v62, %v2162_v53 }
 0x193   : > { %v2027_v50 = vsel %vm8132_vm4, %v7970_v18, %v2024_v10  ;;  %vm1837_vm12 = vcmp.lt.s32.totalorder %v8017_v0, 0  ;;  %v8215_v9 = vshll.u32 %v2155_v52, 8  ;;  %v2047_v19 = vshrl.u32 %v2046_v13, 23 }
 0x194   : > { %6598 = vcosq.f32 %v2027_v50  ;;  %v1903_v27 = vclz %v6175_v31  ;;  %v341_v55 = vmul.f32 %v8182_v12, %v6996_v43  ;;  %vm2035_vm13 = vcmp.eq.s32.totalorder %v8175_v42, 0 }
 0x195   : > { %6600 = vsinq.f32 %v2027_v50  ;;  %v2178_v56 = vor.u32 %v2177_v26, %v2176_v61  ;;  %vm2179_vm15 = vcmp.lt.s32.totalorder %v2160_v60, 1  ;;  %vm2180_vm0 = vcmp.lt.s32.totalorder %v2160_v60, 2 }
 0x196   : > { %vm2181_vm1 = vcmp.lt.s32.totalorder %v2160_v60, 3  ;;  %vm2034_vm14 = vcmp.lt.s32.totalorder %v8175_v42, 2  ;;  %v6176_v39 = vadd.s32 4294967294, %v1903_v27  ;;  %vm2182_vm2 = vcmp.lt.s32.totalorder %v2160_v60, 4 }
 0x197   : > { %v2183_v53 = vsel %vm2179_vm15, %v2163_v1, %v2166_v17  ;;  %v2187_v47 = vsel %vm2179_vm15, %v2166_v17, %v2169_v40  ;;  %vm2031_vm3 = vweird.f32 %v7970_v18  ;;  %v2184_v52 = vsel %vm2182_vm2, %v2172_v30, 2102212464 }
 0x198   : > { %v2188_v46 = vsel %vm2182_vm2, %v2175_v32, 920167782  ;;  %v2191_v45 = vsel %vm2179_vm15, %v2169_v40, %v2172_v30  ;;  %v2192_v41 = vsel %vm2182_vm2, %v2178_v56, 1326507024  ;;  %vm8224_vm4 = vcmp.le.f32.partialorder %v1835_v25, 0.7853982 }
 0x199   : > { %vm6177_vm5 = vcmp.lt.s32.totalorder %v6176_v39, 0  ;;  %v2185_v63 = vsel %vm2181_vm1, %v2169_v40, %v2184_v52  ;;  %v2189_v3 = vsel %vm2181_vm1, %v2172_v30, %v2188_v46  ;;  %v2193_v13 = vsel %vm2181_vm1, %v2175_v32, %v2192_v41 }
 0x19a   : > { %v1906_v10 = vsel %vm6177_vm5, 0, %v6176_v39  ;;  %v1921_v2 = vsub.s32 4, %v8173_v48  ;;  %v2190_v57 = vsel %vm2180_vm0, %v2187_v47, %v2189_v3  ;;  %v2194_v50 = vsel %vm2180_vm0, %v2191_v45, %v2193_v13 }
 0x19b   : > { %v1907_v1 = vsub.s32 32, %v1906_v10  ;;  %v1908_v17 = vshll.u32 %v8194_v28, %v1906_v10  ;;  %v1911_v11 = vsub.s32 4294967266, %v1906_v10  ;;  %v2186_v25 = vsel %vm2180_vm0, %v2183_v53, %v2185_v63 }
 0x19c   : > { %v8234_v31 = vmul.u32.u64.low %v8215_v9, %v2194_v50  ;;  %v8235_v61 = vmul.u32.u64.high %v8215_v9, %v2194_v50, %v8234_v31  ;;  %v8238_v40 = vmul.u32.u64.low %v8215_v9, %v2190_v57  ;;  %v8239_v30 = vmul.u32.u64.high %v8215_v9, %v2190_v57, %v8238_v40 }
 0x19d   : > { %vm2038_vm6 = vcmp.eq.s32.totalorder %v8175_v42, 2  ;;  %v1909_v26 = vshrl.u32 %v8185_v49, %v1907_v1  ;;  %v1912_v27 = vadd.s32 127, %v1911_v11  ;;  %v6182_v56 = vadd.s32 4294967169, %v2047_v19 }
 0x19e   : > { %v6599_v32 = vpop.eup %6598  ;;  %v1922_v60 = vsel %vm1837_vm12, %v1921_v2, %v8173_v48  ;;  %v2202_v53 = vmul.u32 %v8215_v9, %v2186_v25  ;;  %v2050_v47 = vand.u32 8388607, %v2043_v15  ;;  %vm2204_vm7 = vc.u32 %v8235_v61, %v8238_v40 }
 0x19f   : > { %v6601_v28 = vpop.eup %6600  ;;  %v2039_v39 = vxor.u32 2147483648, %v6599_v32  ;;  %v1910_v46 = vor.u32 %v1909_v26, %v1908_v17  ;;  %v1913_v45 = vshll.u32 %v1912_v27, 23  ;;  %v2053_v41 = vadd.s32 1, %v6182_v56 }
 0x1a0   : > { %v2036_v52 = vxor.u32 2147483648, %v6601_v28  ;;  %v2205_v49 = vadd.s32 1, %v8239_v30  ;;  %v8254_v19 = vadd.f32 %v8190_v16, %v341_v55  ;;  %v1924_v10 = vsel %vm8224_vm4, 0, %v1922_v60 }
 0x1a1   : > { %v2040_v63 = vsel %vm2038_vm6, %v2039_v39, %v6601_v28  ;;  %v1914_v9 = vor.u32 4788187, %v1913_v45  ;;  %v1917_v3 = vcvt.s32.f32 %v1910_v46  ;;  %vm2054_vm8 = vcmp.gt.s32.totalorder %v2053_v41, 0 }
 0x1a2   : > { %v2037_v48 = vsel %vm2035_vm13, %v6599_v32, %v2036_v52  ;;  %v2206_v2 = vsel %vm2204_vm7, %v2205_v49, %v8239_v30  ;;  %v2055_v57 = vsel %vm2054_vm8, %v2053_v41, 0  ;;  %v1928_v31 = vadd.s32 3, %v1924_v10 }
 0x1a3   : > { %v2041_v13 = vsel %vm2034_vm14, %v2037_v48, %v2040_v63  ;;  %v1915_v55 = vand.u32 2147483647, %v1914_v9  ;;  %v2207_v1 = vadd.s32 %v2206_v2, %v2202_v53  ;;  %v2056_v17 = vshrl.u32 %v2055_v57, 5 }
 0x1a4   : > { %v2042_v50 = vsel %vm2031_vm3, nan, %v2041_v13  ;;  %v2057_v11 = vand.u32 31, %v2055_v57  ;;  %v2051_v26 = vor.u32 8388608, %v2050_v47  ;;  %v2358_v30 = vand.u32 2139095040, %v8254_v19 }
 0x1a5   : > { %3883 = vperm.xlu0 %6548, %v2042_v50   ;;  %v1918_v25 = vmul.f32 %v1917_v3, %v1915_v55  ;;  %v2208_v32 = vadd.s32 536870912, %v2207_v1  ;;  %vm2075_vm9 = vcmp.lt.s32.totalorder %v2056_v17, 1  ;;  %v1929_v57 = vand.u32 3, %v1928_v31 }
 0x1a6   : > { %v2058_v42 = vsub.s32 32, %v2057_v11  ;;  %v2060_v27 = vshll.u32 %v11178_v35, %v2057_v11  ;;  %v2063_v56 = vshll.u32 %v11173_v29, %v2057_v11  ;;  %v2066_v18 = vshll.u32 %v11174_v37, %v2057_v11 }
 0x1a7   : > { %v1919_v28 = vxor.u32 2147483648, %v1918_v25  ;;  %v8268_v39 = vshrl.u32 %v2208_v32, 30  ;;  %v2069_v60 = vshll.u32 %v11175_v14, %v2057_v11  ;;  %v2072_v63 = vshll.u32 %v11176_v38, %v2057_v11 }
 0x1a8   : > { %v2061_v53 = vshrl.u32 %v11173_v29, %v2058_v42  ;;  %v2064_v52 = vshrl.u32 %v11174_v37, %v2058_v42  ;;  %v2067_v47 = vshrl.u32 %v11175_v14, %v2058_v42  ;;  %v2070_v41 = vshrl.u32 %v11176_v38, %v2058_v42 }
 0x1a9   : > { %v1920_v46 = vsel %vm1837_vm12, %v1919_v28, %v1918_v25  ;;  %v2210_v45 = vshll.u32 %v8268_v39, 30  ;;  %v2059_v48 = vshrl.u32 %v11178_v35, %v2058_v42  ;;  %v2073_v50 = vshrl.u32 %v11177_v62, %v2058_v42 }
 0x1aa   : > { %v1923_v49 = vsel %vm8224_vm4, %v8017_v0, %v1920_v46  ;;  %v2062_v9 = vor.u32 %v2061_v53, %v2060_v27  ;;  %v2065_v3 = vor.u32 %v2064_v52, %v2063_v56  ;;  %v2068_v10 = vor.u32 %v2067_v47, %v2066_v18 }
 0x1ab   : > { %6602 = vcosq.f32 %v1923_v49  ;;  %v8284_v13 = vsub.s32 %v2207_v1, %v2210_v45  ;;  %v2071_v2 = vor.u32 %v2070_v41, %v2069_v60  ;;  %vm2077_vm10 = vcmp.lt.s32.totalorder %v2056_v17, 3 }
 0x1ac   : > { %6604 = vsinq.f32 %v1923_v49  ;;  %vm2076_vm11 = vcmp.lt.s32.totalorder %v2056_v17, 2  ;;  %vm2078_vm12 = vcmp.lt.s32.totalorder %v2056_v17, 4  ;;  %v2091_v34 = vshll.u32 %v2051_v26, 8 }
 0x1ad   : > { %v2213_v55 = vsub.s32 0, %v8284_v13  ;;  %v2074_v11 = vor.u32 %v2073_v50, %v2072_v63  ;;  %v2080_v25 = vsel %vm2078_vm12, %v2068_v10, 2102212464  ;;  %v2083_v32 = vsel %vm2075_vm9, %v2062_v9, %v2065_v3 }
 0x1ae   : > { %v2084_v27 = vsel %vm2078_vm12, %v2071_v2, 920167782  ;;  %v2079_v56 = vsel %vm2075_vm9, %v2059_v48, %v2062_v9  ;;  %v2359_v31 = vshrl.u32 %v2358_v30, 23  ;;  %v2081_v42 = vsel %vm2077_vm10, %v2065_v3, %v2080_v25 }
 0x1af   : > { %v6187_v1 = vmin.u32 %v2213_v55, %v8284_v13  ;;  %v2085_v28 = vsel %vm2077_vm10, %v2068_v10, %v2084_v27  ;;  %v2087_v60 = vsel %vm2075_vm9, %v2065_v3, %v2068_v10  ;;  %v2088_v53 = vsel %vm2078_vm12, %v2074_v11, 1326507024 }
 0x1b0   : > { %v2086_v18 = vsel %vm2076_vm11, %v2083_v32, %v2085_v28  ;;  %vm1927_vm13 = vweird.f32 %v8017_v0  ;;  %vm1930_vm15 = vcmp.lt.s32.totalorder %v1929_v57, 2  ;;  %vm2149_vm0 = vcmp.lt.s32.totalorder %v8125_v44, 0 }
 0x1b1   : > { %v2215_v26 = vclz %v6187_v1  ;;  %vm1931_vm1 = vcmp.eq.s32.totalorder %v1929_v57, 0  ;;  %v2089_v52 = vsel %vm2077_vm10, %v2071_v2, %v2088_v53  ;;  %v2082_v45 = vsel %vm2076_vm11, %v2079_v56, %v2081_v42 }
 0x1b2   : > { %v8298_v47 = vmul.u32.u64.low %v2091_v34, %v2086_v18  ;;  %v8299_v46 = vmul.u32.u64.high %v2091_v34, %v2086_v18, %v8298_v47  ;;  %v2090_v41 = vsel %vm2076_vm11, %v2087_v60, %v2089_v52  ;;  %v6194_v63 = vadd.s32 4294967169, %v2359_v31 }
 0x1b3   : > { %v6188_v30 = vadd.s32 4294967294, %v2215_v26  ;;  %vm1934_vm14 = vcmp.eq.s32.totalorder %v1929_v57, 2  ;;  %v8304_v49 = vmul.u32.u64.low %v2091_v34, %v2090_v41  ;;  %v8305_v48 = vmul.u32.u64.high %v2091_v34, %v2090_v41, %v8304_v49 }
 0x1b4   : > { %v2355_v9 = vand.u32 2147483647, %v8254_v19  ;;  %v2203_v10 = vadd.s32 %v8238_v40, %v8235_v61  ;;  %v2233_v2 = vsub.s32 4, %v8268_v39  ;;  %v2365_v50 = vadd.s32 1, %v6194_v63 }
 0x1b5   : > { %v6603_v3 = vpop.eup %6602  ;;  %vm6189_vm2 = vcmp.lt.s32.totalorder %v6188_v30, 0  ;;  %v2098_v17 = vmul.u32 %v2091_v34, %v2082_v45  ;;  %v2101_v32 = vadd.s32 1, %v8299_v46  ;;  %vm2100_vm3 = vc.u32 %v8305_v48, %v8298_v47 }
 0x1b6   : > { %v6605_v55 = vpop.eup %6604  ;;  %v1935_v11 = vxor.u32 2147483648, %v6603_v3  ;;  %v2218_v25 = vsel %vm6189_vm2, 0, %v6188_v30  ;;  %v2362_v61 = vand.u32 8388607, %v2355_v9  ;;  %vm2366_vm4 = vcmp.gt.s32.totalorder %v2365_v50, 0 }
 0x1b7   : > { %v1932_v27 = vxor.u32 2147483648, %v6605_v55  ;;  %v2219_v1 = vsub.s32 32, %v2218_v25  ;;  %v2220_v56 = vshll.u32 %v8284_v13, %v2218_v25  ;;  %v2223_v28 = vsub.s32 4294967266, %v2218_v25 }
 0x1b8   : > { %v1936_v31 = vsel %vm1934_vm14, %v1935_v11, %v6605_v55  ;;  %v2102_v18 = vsel %vm2100_vm3, %v2101_v32, %v8299_v46  ;;  %v2234_v13 = vsel %vm2149_vm0, %v2233_v2, %v8268_v39  ;;  %v2367_v26 = vsel %vm2366_vm4, %v2365_v50, 0 }
 0x1b9   : > { %v1933_v40 = vsel %vm1931_vm1, %v6603_v3, %v1932_v27  ;;  %v2221_v42 = vshrl.u32 %v2203_v10, %v2219_v1  ;;  %v2224_v34 = vadd.s32 127, %v2223_v28  ;;  %v2103_v53 = vadd.s32 %v2102_v18, %v2098_v17 }
 0x1ba   : > { %v1937_v60 = vsel %vm1930_vm15, %v1933_v40, %v1936_v31  ;;  %vm8328_vm5 = vcmp.le.f32.partialorder %v2147_v59, 0.7853982  ;;  %v2369_v46 = vand.u32 31, %v2367_v26  ;;  %v2363_v3 = vor.u32 8388608, %v2362_v61 }
 0x1bb   : > { %v1938_v52 = vsel %vm1927_vm13, nan, %v1937_v60  ;;  %v2222_v30 = vor.u32 %v2221_v42, %v2220_v56  ;;  %v2225_v45 = vshll.u32 %v2224_v34, 23  ;;  %v2104_v57 = vadd.s32 536870912, %v2103_v53 }
 0x1bc   : > { %3878 = vperm.xlu1 %6549, %v1938_v52   ;;  %v2236_v39 = vsel %vm8328_vm5, 0, %v2234_v13  ;;  %v2368_v0 = vshrl.u32 %v2367_v26, 5  ;;  %v2370_v2 = vsub.s32 32, %v2369_v46  ;;  %v340_v50 = vmul.f32 %v8076_v54, %v7025_v58 }
 0x1bd   : > { %v2226_v63 = vor.u32 4788187, %v2225_v45  ;;  %v2229_v49 = vcvt.s32.f32 %v2222_v30  ;;  %v8334_v10 = vshrl.u32 %v2104_v57, 30  ;;  %v2372_v59 = vshll.u32 %v11178_v35, %v2369_v46 }
 0x1be   : > { %v2375_v11 = vshll.u32 %v11173_v29, %v2369_v46  ;;  %v2378_v25 = vshll.u32 %v11174_v37, %v2369_v46  ;;  %v2373_v32 = vshrl.u32 %v11173_v29, %v2370_v2  ;;  %v2381_v27 = vshll.u32 %v11175_v14, %v2369_v46 }
 0x1bf   : > { %v2227_v55 = vand.u32 2147483647, %v2226_v63  ;;  %v2106_v17 = vshll.u32 %v8334_v10, 30  ;;  %v2384_v1 = vshll.u32 %v11176_v38, %v2369_v46  ;;  %v2376_v28 = vshrl.u32 %v11174_v37, %v2370_v2 }
 0x1c0   : > { %v2379_v54 = vshrl.u32 %v11175_v14, %v2370_v2  ;;  %v2382_v31 = vshrl.u32 %v11176_v38, %v2370_v2  ;;  %v2240_v61 = vadd.s32 3, %v2236_v39  ;;  %v2385_v42 = vshrl.u32 %v11177_v62, %v2370_v2 }
 0x1c1   : > { %v2230_v56 = vmul.f32 %v2229_v49, %v2227_v55  ;;  %v8348_v40 = vsub.s32 %v2103_v53, %v2106_v17  ;;  %v8351_v34 = vshll.u32 %v2363_v3, 8  ;;  %v2374_v60 = vor.u32 %v2373_v32, %v2372_v59 }
 0x1c2   : > { %v2377_v13 = vor.u32 %v2376_v28, %v2375_v11  ;;  %v8354_v26 = vadd.f32 %v8104_v51, %v340_v50  ;;  %v2380_v30 = vor.u32 %v2379_v54, %v2378_v25  ;;  %v2383_v45 = vor.u32 %v2382_v31, %v2381_v27 }
 0x1c3   : > { %v2231_v18 = vxor.u32 2147483648, %v2230_v56  ;;  %v2109_v52 = vsub.s32 0, %v8348_v40  ;;  %vm2387_vm6 = vcmp.lt.s32.totalorder %v2368_v0, 1  ;;  %v2371_v53 = vshrl.u32 %v11178_v35, %v2370_v2 }
 0x1c4   : > { %v2386_v46 = vor.u32 %v2385_v42, %v2384_v1  ;;  %vm2390_vm7 = vcmp.lt.s32.totalorder %v2368_v0, 4  ;;  %vm2389_vm8 = vcmp.lt.s32.totalorder %v2368_v0, 3  ;;  %vm2388_vm9 = vcmp.lt.s32.totalorder %v2368_v0, 2 }
 0x1c5   : > { %v2232_v57 = vsel %vm2149_vm0, %v2231_v18, %v2230_v56  ;;  %v6183_v49 = vmin.u32 %v2109_v52, %v8348_v40  ;;  %v2392_v51 = vsel %vm2390_vm7, %v2380_v30, 2102212464  ;;  %v2395_v39 = vsel %vm2387_vm6, %v2374_v60, %v2377_v13 }
 0x1c6   : > { %v2235_v63 = vsel %vm8328_vm5, %v8125_v44, %v2232_v57  ;;  %v2396_v3 = vsel %vm2390_vm7, %v2383_v45, 920167782  ;;  %v2241_v50 = vand.u32 3, %v2240_v61  ;;  %vm8369_vm10 = vcmp.le.f32.partialorder %v2043_v15, 0.7853982 }
 0x1c7   : > { %6606 = vcosq.f32 %v2235_v63  ;;  %vm2045_vm11 = vcmp.lt.s32.totalorder %v8178_v33, 0  ;;  %v2111_v41 = vclz %v6183_v49  ;;  %v2391_v55 = vsel %vm2387_vm6, %v2371_v53, %v2374_v60 }
 0x1c8   : > { %6608 = vsinq.f32 %v2235_v63  ;;  %v2393_v59 = vsel %vm2389_vm8, %v2377_v13, %v2392_v51  ;;  %v2397_v11 = vsel %vm2389_vm8, %v2380_v30, %v2396_v3  ;;  %v2399_v25 = vsel %vm2387_vm6, %v2377_v13, %v2380_v30 }
 0x1c9   : > { %v6184_v17 = vadd.s32 4294967294, %v2111_v41  ;;  %v2129_v32 = vsub.s32 4, %v8334_v10  ;;  %v2398_v27 = vsel %vm2388_vm9, %v2395_v39, %v2397_v11  ;;  %v2400_v15 = vsel %vm2390_vm7, %v2386_v46, 1326507024 }
 0x1ca   : > { %v2401_v1 = vsel %vm2389_vm8, %v2383_v45, %v2400_v15  ;;  %v8383_v56 = vmul.u32.u64.low %v8351_v34, %v2398_v27  ;;  %v8384_v28 = vmul.u32.u64.high %v8351_v34, %v2398_v27, %v8383_v56  ;;  %v2254_v54 = vand.u32 2139095040, %v8354_v26 }
 0x1cb   : > { %vm2239_vm12 = vweird.f32 %v8125_v44  ;;  %v2099_v31 = vadd.s32 %v8298_v47, %v8305_v48  ;;  %vm6185_vm13 = vcmp.lt.s32.totalorder %v6184_v17, 0  ;;  %v2394_v61 = vsel %vm2388_vm9, %v2391_v55, %v2393_v59 }
 0x1cc   : > { %v2402_v42 = vsel %vm2388_vm9, %v2399_v25, %v2401_v1  ;;  %v2114_v18 = vsel %vm6185_vm13, 0, %v6184_v17  ;;  %v2255_v52 = vshrl.u32 %v2254_v54, 23  ;;  %v2130_v53 = vsel %vm2045_vm11, %v2129_v32, %v8334_v10 }
 0x1cd   : > { %v8394_v60 = vmul.u32.u64.low %v8351_v34, %v2402_v42  ;;  %v8395_v13 = vmul.u32.u64.high %v8351_v34, %v2402_v42, %v8394_v60  ;;  %v2115_v30 = vsub.s32 32, %v2114_v18  ;;  %v2116_v45 = vshll.u32 %v8348_v40, %v2114_v18 }
 0x1ce   : > { %v2119_v57 = vsub.s32 4294967266, %v2114_v18  ;;  %v2410_v47 = vmul.u32 %v8351_v34, %v2394_v61  ;;  %v2413_v48 = vadd.s32 1, %v8384_v28  ;;  %v2251_v0 = vand.u32 2147483647, %v8354_v26  ;;  %v11216_v61 = vld [vmem:[#allocation7_spill] sm:$0xff] }
 0x1cf   : > { %v6190_v46 = vadd.s32 4294967169, %v2255_v52  ;;  %vm2242_vm15 = vcmp.lt.s32.totalorder %v2241_v50, 2  ;;  %vm2243_vm0 = vcmp.eq.s32.totalorder %v2241_v50, 0  ;;  %v2117_v63 = vshrl.u32 %v2099_v31, %v2115_v30  ;;  %v11217_v52 = vld [vmem:[#allocation18_spill] sm:$0xff] }
 0x1d0   : > { %v2120_v49 = vadd.s32 127, %v2119_v57  ;;  %vm2246_vm1 = vcmp.eq.s32.totalorder %v2241_v50, 2  ;;  %v2132_v40 = vsel %vm8369_vm10, 0, %v2130_v53  ;;  %vm2412_vm14 = vc.u32 %v8395_v13, %v8383_v56 }
 0x1d1   : > { %v6607_v51 = vpop.eup %6606  ;;  %v2261_v10 = vadd.s32 1, %v6190_v46  ;;  %v2118_v3 = vor.u32 %v2117_v63, %v2116_v45  ;;  %v2414_v55 = vsel %vm2412_vm14, %v2413_v48, %v8384_v28  ;;  %v2258_v25 = vand.u32 8388607, %v2251_v0 }
 0x1d2   : > { %v6609_v39 = vpop.eup %6608  ;;  %v2247_v34 = vxor.u32 2147483648, %v6607_v51  ;;  %v2121_v41 = vshll.u32 %v2120_v49, 23  ;;  %v2415_v11 = vadd.s32 %v2414_v55, %v2410_v47  ;;  %v8414_v42 = vrot.slane %v11216_v61, %v6984_v36 }
 0x1d3   : > { %v2244_v59 = vxor.u32 2147483648, %v6609_v39  ;;  %vm2262_vm2 = vcmp.gt.s32.totalorder %v2261_v10, 0  ;;  %v2125_v27 = vcvt.s32.f32 %v2118_v3  ;;  %v2136_v60 = vadd.s32 3, %v2132_v40 }
 0x1d4   : > { %v2248_v17 = vsel %vm2246_vm1, %v2247_v34, %v6609_v39  ;;  %v2122_v32 = vor.u32 4788187, %v2121_v41  ;;  %v2263_v15 = vsel %vm2262_vm2, %v2261_v10, 0  ;;  %v2416_v54 = vadd.s32 536870912, %v2415_v11 }
 0x1d5   : > { %v2245_v1 = vsel %vm2243_vm0, %v6607_v51, %v2244_v59  ;;  %v2265_v31 = vand.u32 31, %v2263_v15  ;;  %v8419_v30 = vrot.slane %v11217_v52, %v6984_v36  ;;  %v2259_v53 = vor.u32 8388608, %v2258_v25 }
 0x1d6   : > { %v2249_v28 = vsel %vm2242_vm15, %v2245_v1, %v2248_v17  ;;  %v2123_v18 = vand.u32 2147483647, %v2122_v32  ;;  %v2417_v57 = vshrl.u32 %v2416_v54, 30  ;;  %v2264_v46 = vshrl.u32 %v2263_v15, 5 }
 0x1d7   : > { %v2250_v45 = vsel %vm2239_vm12, nan, %v2249_v28  ;;  %v2266_v47 = vsub.s32 32, %v2265_v31  ;;  %v2268_v63 = vshll.u32 %v11178_v35, %v2265_v31  ;;  %v2271_v50 = vshll.u32 %v11173_v29, %v2265_v31 }
 0x1d8   : > { %3893 = vperm.xlu0 %6548, %v2250_v45   ;;  %v2126_v48 = vmul.f32 %v2125_v27, %v2123_v18  ;;  %v2418_v49 = vshll.u32 %v2417_v57, 30  ;;  %v2274_v40 = vshll.u32 %v11174_v37, %v2265_v31  ;;  %v2277_v10 = vshll.u32 %v11175_v14, %v2265_v31 }
 0x1d9   : > { %v2269_v51 = vshrl.u32 %v11173_v29, %v2266_v47  ;;  %v2272_v44 = vshrl.u32 %v11174_v37, %v2266_v47  ;;  %v2275_v34 = vshrl.u32 %v11175_v14, %v2266_v47  ;;  %v2278_v3 = vshrl.u32 %v11176_v38, %v2266_v47 }
 0x1da   : > { %v2127_v39 = vxor.u32 2147483648, %v2126_v48  ;;  %v8431_v41 = vand.u32 3, %v2136_v60  ;;  %vm2357_vm3 = vcmp.lt.s32.totalorder %v8254_v19, 0  ;;  %v8434_v55 = vsub.s32 %v2415_v11, %v2418_v49 }
 0x1db   : > { %v8436_v59 = vshll.u32 %v2259_v53, 8  ;;  %v343_v25 = vmul.f32 %v8414_v42, %v6996_v43  ;;  %v2267_v32 = vshrl.u32 %v11178_v35, %v2266_v47  ;;  %v2270_v27 = vor.u32 %v2269_v51, %v2268_v63 }
 0x1dc   : > { %v2128_v17 = vsel %vm2045_vm11, %v2127_v39, %v2126_v48  ;;  %v2280_v15 = vshll.u32 %v11176_v38, %v2265_v31  ;;  %v2421_v11 = vsub.s32 0, %v8434_v55  ;;  %v2273_v54 = vor.u32 %v2272_v44, %v2271_v50 }
 0x1dd   : > { %v2131_v1 = vsel %vm8369_vm10, %v8178_v33, %v2128_v17  ;;  %v2276_v61 = vor.u32 %v2275_v34, %v2274_v40  ;;  %v2279_v28 = vor.u32 %v2278_v3, %v2277_v10  ;;  %v2281_v18 = vshrl.u32 %v11177_v62, %v2266_v47 }
 0x1de   : > { %6610 = vcosq.f32 %v2131_v1  ;;  %vm2283_vm4 = vcmp.lt.s32.totalorder %v2264_v46, 1  ;;  %vm8451_vm5 = vcmp.le.f32.partialorder %v2355_v9, 0.7853982  ;;  %v2411_v2 = vadd.s32 %v8383_v56, %v8395_v13 }
 0x1df   : > { %6612 = vsinq.f32 %v2131_v1  ;;  %v6195_v31 = vmin.u32 %v2421_v11, %v8434_v55  ;;  %v8459_v52 = vadd.f32 %v8419_v30, %v343_v25  ;;  %v2441_v45 = vsub.s32 4, %v2417_v57 }
 0x1e0   : > { %v2282_v53 = vor.u32 %v2281_v18, %v2280_v15  ;;  %vm2285_vm6 = vcmp.lt.s32.totalorder %v2264_v46, 3  ;;  %vm2286_vm7 = vcmp.lt.s32.totalorder %v2264_v46, 4  ;;  %vm2284_vm8 = vcmp.lt.s32.totalorder %v2264_v46, 2 }
 0x1e1   : > { %v2423_v47 = vclz %v6195_v31  ;;  %v2287_v48 = vsel %vm2283_vm4, %v2267_v32, %v2270_v27  ;;  %v2291_v9 = vsel %vm2283_vm4, %v2270_v27, %v2273_v54  ;;  %v2288_v63 = vsel %vm2286_vm7, %v2276_v61, 2102212464 }
 0x1e2   : > { %v2292_v50 = vsel %vm2286_vm7, %v2279_v28, 920167782  ;;  %v2295_v49 = vsel %vm2283_vm4, %v2273_v54, %v2276_v61  ;;  %v2296_v56 = vsel %vm2286_vm7, %v2282_v53, 1326507024  ;;  %vm2135_vm9 = vweird.f32 %v8178_v33  ;;  %v11220_v33 = vld [vmem:[#allocation8_spill] sm:$0xff] }
 0x1e3   : > { %v6196_v13 = vadd.s32 4294967294, %v2423_v47  ;;  %v2289_v51 = vsel %vm2285_vm6, %v2273_v54, %v2288_v63  ;;  %v2293_v40 = vsel %vm2285_vm6, %v2276_v61, %v2292_v50  ;;  %v2297_v10 = vsel %vm2285_vm6, %v2279_v28, %v2296_v56 }
 0x1e4   : > { %v2442_v39 = vsel %vm2357_vm3, %v2441_v45, %v2417_v57  ;;  %v2294_v44 = vsel %vm2284_vm8, %v2291_v9, %v2293_v40  ;;  %v2298_v34 = vsel %vm2284_vm8, %v2295_v49, %v2297_v10  ;;  %v2566_v3 = vand.u32 2139095040, %v8459_v52 }
 0x1e5   : > { %vm6197_vm10 = vcmp.lt.s32.totalorder %v6196_v13, 0  ;;  %v2290_v25 = vsel %vm2284_vm8, %v2287_v48, %v2289_v51  ;;  %v8472_v17 = vmul.u32.u64.low %v8436_v59, %v2298_v34  ;;  %v8473_v32 = vmul.u32.u64.high %v8436_v59, %v2298_v34, %v8472_v17 }
 0x1e6   : > { %v2426_v27 = vsel %vm6197_vm10, 0, %v6196_v13  ;;  %v8476_v15 = vmul.u32.u64.low %v8436_v59, %v2294_v44  ;;  %v8477_v1 = vmul.u32.u64.high %v8436_v59, %v2294_v44, %v8476_v15  ;;  %v2567_v57 = vshrl.u32 %v2566_v3, 23 }
 0x1e7   : > { %vm2138_vm11 = vcmp.lt.s32.totalorder %v8431_v41, 2  ;;  %v2427_v11 = vsub.s32 32, %v2426_v27  ;;  %v2428_v54 = vshll.u32 %v8434_v55, %v2426_v27  ;;  %v2431_v61 = vsub.s32 4294967266, %v2426_v27 }
 0x1e8   : > { %v6611_v28 = vpop.eup %6610  ;;  %vm2139_vm12 = vcmp.eq.s32.totalorder %v8431_v41, 0  ;;  %vm2142_vm13 = vcmp.eq.s32.totalorder %v8431_v41, 2  ;;  %v2444_v46 = vsel %vm8451_vm5, 0, %v2442_v39  ;;  %v6202_v18 = vadd.s32 4294967169, %v2567_v57 }
 0x1e9   : > { %v6613_v31 = vpop.eup %6612  ;;  %v2143_v45 = vxor.u32 2147483648, %v6611_v28  ;;  %v2429_v53 = vshrl.u32 %v2411_v2, %v2427_v11  ;;  %v2432_v47 = vadd.s32 127, %v2431_v61  ;;  %v2306_v48 = vmul.u32 %v8436_v59, %v2290_v25 }
 0x1ea   : > { %v2140_v9 = vxor.u32 2147483648, %v6613_v31  ;;  %vm2308_vm15 = vc.u32 %v8473_v32, %v8476_v15  ;;  %v2309_v55 = vadd.s32 1, %v8477_v1  ;;  %v2563_v63 = vand.u32 2147483647, %v8459_v52 }
 0x1eb   : > { %v2144_v50 = vsel %vm2142_vm13, %v2143_v45, %v6613_v31  ;;  %v2430_v49 = vor.u32 %v2429_v53, %v2428_v54  ;;  %v2433_v56 = vshll.u32 %v2432_v47, 23  ;;  %v2573_v13 = vadd.s32 1, %v6202_v18 }
 0x1ec   : > { %v2141_v51 = vsel %vm2139_vm12, %v6611_v28, %v2140_v9  ;;  %v2448_v40 = vadd.s32 3, %v2444_v46  ;;  %v2310_v2 = vsel %vm2308_vm15, %v2309_v55, %v8477_v1  ;;  %v2570_v3 = vand.u32 8388607, %v2563_v63 }
 0x1ed   : > { %v2145_v59 = vsel %vm2138_vm11, %v2141_v51, %v2144_v50  ;;  %v2434_v10 = vor.u32 4788187, %v2433_v56  ;;  %v2437_v39 = vcvt.s32.f32 %v2430_v49  ;;  %v2311_v44 = vadd.s32 %v2310_v2, %v2306_v48 }
 0x1ee   : > { %v2146_v34 = vsel %vm2135_vm9, nan, %v2145_v59  ;;  %vm2574_vm0 = vcmp.gt.s32.totalorder %v2573_v13, 0  ;;  %v342_v25 = vmul.f32 %v8182_v12, %v7025_v58  ;;  %v8502_v11 = vand.u32 3, %v2448_v40 }
 0x1ef   : > { %3888 = vperm.xlu1 %6549, %v2146_v34   ;;  %v2435_v17 = vand.u32 2147483647, %v2434_v10  ;;  %v2312_v27 = vadd.s32 536870912, %v2311_v44  ;;  %v2575_v1 = vsel %vm2574_vm0, %v2573_v13, 0  ;;  %v8508_v61 = vrot.slane %v11220_v33, %v6984_v36 }
 0x1f0   : > { %v2577_v57 = vand.u32 31, %v2575_v1  ;;  %v2571_v28 = vor.u32 8388608, %v2570_v3  ;;  %v8512_v12 = vadd.f32 %v8190_v16, %v342_v25  ;;  %v2576_v56 = vshrl.u32 %v2575_v1, 5 }
 0x1f1   : > { %v2438_v41 = vmul.f32 %v2437_v39, %v2435_v17  ;;  %v8504_v54 = vshrl.u32 %v2312_v27, 30  ;;  %vm2253_vm1 = vcmp.lt.s32.totalorder %v8354_v26, 0  ;;  %v2307_v60 = vadd.s32 %v8476_v15, %v8473_v32 }
 0x1f2   : > { %v2578_v46 = vsub.s32 32, %v2577_v57  ;;  %v2580_v18 = vshll.u32 %v11178_v35, %v2577_v57  ;;  %v2583_v53 = vshll.u32 %v11173_v29, %v2577_v57  ;;  %v2586_v47 = vshll.u32 %v11174_v37, %v2577_v57 }
 0x1f3   : > { %v2439_v31 = vxor.u32 2147483648, %v2438_v41  ;;  %v2314_v45 = vshll.u32 %v8504_v54, 30  ;;  %v2589_v50 = vshll.u32 %v11175_v14, %v2577_v57  ;;  %v2462_v59 = vand.u32 2139095040, %v8512_v12 }
 0x1f4   : > { %v2581_v48 = vshrl.u32 %v11173_v29, %v2578_v46  ;;  %v2584_v9 = vshrl.u32 %v11174_v37, %v2578_v46  ;;  %v2587_v55 = vshrl.u32 %v11175_v14, %v2578_v46  ;;  %v2590_v13 = vshrl.u32 %v11176_v38, %v2578_v46 }
 0x1f5   : > { %v2440_v49 = vsel %vm2357_vm3, %v2439_v31, %v2438_v41  ;;  %v8523_v16 = vsub.s32 %v2311_v44, %v2314_v45  ;;  %v2579_v40 = vshrl.u32 %v11178_v35, %v2578_v46  ;;  %v2592_v3 = vshll.u32 %v11176_v38, %v2577_v57 }
 0x1f6   : > { %v2443_v51 = vsel %vm8451_vm5, %v8254_v19, %v2440_v49  ;;  %v2582_v2 = vor.u32 %v2581_v48, %v2580_v18  ;;  %v2585_v39 = vor.u32 %v2584_v9, %v2583_v53  ;;  %v2588_v34 = vor.u32 %v2587_v55, %v2586_v47 }
 0x1f7   : > { %6614 = vcosq.f32 %v2443_v51  ;;  %v2317_v10 = vsub.s32 0, %v8523_v16  ;;  %v2591_v44 = vor.u32 %v2590_v13, %v2589_v50  ;;  %v2593_v25 = vshrl.u32 %v11177_v62, %v2578_v46 }
 0x1f8   : > { %6616 = vsinq.f32 %v2443_v51  ;;  %vm2595_vm14 = vcmp.lt.s32.totalorder %v2576_v56, 1  ;;  %v2611_v27 = vshll.u32 %v2571_v28, 8  ;;  %vm2451_vm2 = vcmp.eq.s32.totalorder %v8502_v11, 0 }
 0x1f9   : > { %v6191_v17 = vmin.u32 %v2317_v10, %v8523_v16  ;;  %v2594_v1 = vor.u32 %v2593_v25, %v2592_v3  ;;  %vm2597_vm3 = vcmp.lt.s32.totalorder %v2576_v56, 3  ;;  %vm2598_vm4 = vcmp.lt.s32.totalorder %v2576_v56, 4 }
 0x1fa   : > { %v2463_v41 = vshrl.u32 %v2462_v59, 23  ;;  %vm2450_vm5 = vcmp.lt.s32.totalorder %v8502_v11, 2  ;;  %v2337_v33 = vsub.s32 4, %v8504_v54  ;;  %vm2596_vm6 = vcmp.lt.s32.totalorder %v2576_v56, 2 }
 0x1fb   : > { %v2319_v57 = vclz %v6191_v17  ;;  %v2599_v46 = vsel %vm2595_vm14, %v2579_v40, %v2582_v2  ;;  %vm2447_vm7 = vweird.f32 %v8254_v19  ;;  %v2600_v32 = vsel %vm2598_vm4, %v2588_v34, 2102212464 }
 0x1fc   : > { %v2603_v15 = vsel %vm2595_vm14, %v2582_v2, %v2585_v39  ;;  %v2604_v28 = vsel %vm2598_vm4, %v2591_v44, 920167782  ;;  %v2607_v18 = vsel %vm2595_vm14, %v2585_v39, %v2588_v34  ;;  %vm8549_vm8 = vcmp.le.f32.partialorder %v2251_v0, 0.7853982 }
 0x1fd   : > { %v6192_v45 = vadd.s32 4294967294, %v2319_v57  ;;  %v2601_v53 = vsel %vm2597_vm3, %v2585_v39, %v2600_v32  ;;  %v2605_v47 = vsel %vm2597_vm3, %v2588_v34, %v2604_v28  ;;  %v2608_v48 = vsel %vm2598_vm4, %v2594_v1, 1326507024 }
 0x1fe   : > { %v2602_v9 = vsel %vm2596_vm6, %v2599_v46, %v2601_v53  ;;  %v2606_v55 = vsel %vm2596_vm6, %v2603_v15, %v2605_v47  ;;  %v2609_v50 = vsel %vm2597_vm3, %v2591_v44, %v2608_v48  ;;  %v6198_v49 = vadd.s32 4294967169, %v2463_v41 }
 0x1ff   : > { %vm6193_vm9 = vcmp.lt.s32.totalorder %v6192_v45, 0  ;;  %v2610_v0 = vsel %vm2596_vm6, %v2607_v18, %v2609_v50  ;;  %v8560_v13 = vmul.u32.u64.low %v2611_v27, %v2606_v55  ;;  %v8561_v51 = vmul.u32.u64.high %v2611_v27, %v2606_v55, %v8560_v13 }
 0x200   : > { %v2322_v40 = vsel %vm6193_vm9, 0, %v6192_v45  ;;  %v8564_v2 = vmul.u32.u64.low %v2611_v27, %v2610_v0  ;;  %v8565_v59 = vmul.u32.u64.high %v2611_v27, %v2610_v0, %v8564_v2  ;;  %v2459_v10 = vand.u32 2147483647, %v8512_v12 }
 0x201   : > { %v6615_v39 = vpop.eup %6614  ;;  %vm2454_vm10 = vcmp.eq.s32.totalorder %v8502_v11, 2  ;;  %v2323_v34 = vsub.s32 32, %v2322_v40  ;;  %v2324_v44 = vshll.u32 %v8523_v16, %v2322_v40  ;;  %v2327_v3 = vsub.s32 4294967266, %v2322_v40  ;;  %v11223_v11 = vld [vmem:[#allocation19_spill] sm:$0xff] }
 0x202   : > { %v6617_v25 = vpop.eup %6616  ;;  %v2455_v56 = vxor.u32 2147483648, %v6615_v39  ;;  %v2338_v17 = vsel %vm2253_vm1, %v2337_v33, %v8504_v54  ;;  %v2618_v1 = vmul.u32 %v2611_v27, %v2602_v9  ;;  %v2469_v41 = vadd.s32 1, %v6198_v49 }
 0x203   : > { %v2452_v57 = vxor.u32 2147483648, %v6617_v25  ;;  %v2325_v46 = vshrl.u32 %v2307_v60, %v2323_v34  ;;  %v2328_v32 = vadd.s32 127, %v2327_v3  ;;  %v2621_v15 = vadd.s32 1, %v8561_v51 }
 0x204   : > { %v2456_v28 = vsel %vm2454_vm10, %v2455_v56, %v6617_v25  ;;  %vm2620_vm11 = vc.u32 %v8565_v59, %v8560_v13  ;;  %v2466_v16 = vand.u32 8388607, %v2459_v10  ;;  %vm2470_vm12 = vcmp.gt.s32.totalorder %v2469_v41, 0 }
 0x205   : > { %v2453_v18 = vsel %vm2451_vm2, %v6615_v39, %v2452_v57  ;;  %v2326_v45 = vor.u32 %v2325_v46, %v2324_v44  ;;  %v2329_v54 = vshll.u32 %v2328_v32, 23  ;;  %v2622_v27 = vsel %vm2620_vm11, %v2621_v15, %v8561_v51 }
 0x206   : > { %v2457_v60 = vsel %vm2450_vm5, %v2453_v18, %v2456_v28  ;;  %v2340_v33 = vsel %vm8549_vm8, 0, %v2338_v17  ;;  %v2623_v53 = vadd.s32 %v2622_v27, %v2618_v1  ;;  %v2471_v47 = vsel %vm2470_vm12, %v2469_v41, 0 }
 0x207   : > { %v2458_v48 = vsel %vm2447_vm7, nan, %v2457_v60  ;;  %v2330_v9 = vor.u32 4788187, %v2329_v54  ;;  %v2333_v55 = vcvt.s32.f32 %v2326_v45  ;;  %v2473_v49 = vand.u32 31, %v2471_v47 }
 0x208   : > { %3903 = vperm.xlu0 %6548, %v2458_v48   ;;  %v2624_v50 = vadd.s32 536870912, %v2623_v53  ;;  %v2344_v40 = vadd.s32 3, %v2340_v33  ;;  %v345_v51 = vmul.f32 %v8508_v61, %v6996_v43  ;;  %v8591_v2 = vrot.slane %v11223_v11, %v6984_v36 }
 0x209   : > { %v2331_v0 = vand.u32 2147483647, %v2330_v9  ;;  %v2467_v34 = vor.u32 8388608, %v2466_v16  ;;  %v2472_v44 = vshrl.u32 %v2471_v47, 5  ;;  %v2474_v3 = vsub.s32 32, %v2473_v49 }
 0x20a   : > { %v2625_v39 = vshrl.u32 %v2624_v50, 30  ;;  %v2476_v25 = vshll.u32 %v11178_v35, %v2473_v49  ;;  %v2479_v56 = vshll.u32 %v11173_v29, %v2473_v49  ;;  %v2482_v17 = vshll.u32 %v11174_v37, %v2473_v49 }
 0x20b   : > { %v2334_v19 = vmul.f32 %v2333_v55, %v2331_v0  ;;  %v2477_v41 = vshrl.u32 %v11173_v29, %v2474_v3  ;;  %v2485_v57 = vshll.u32 %v11175_v14, %v2473_v49  ;;  %v2488_v46 = vshll.u32 %v11176_v38, %v2473_v49 }
 0x20c   : > { %v2626_v1 = vshll.u32 %v2625_v39, 30  ;;  %vm2565_vm13 = vcmp.lt.s32.totalorder %v8459_v52, 0  ;;  %v2480_v15 = vshrl.u32 %v11174_v37, %v2474_v3  ;;  %v2483_v28 = vshrl.u32 %v11175_v14, %v2474_v3 }
 0x20d   : > { %v2335_v32 = vxor.u32 2147483648, %v2334_v19  ;;  %v2486_v16 = vshrl.u32 %v11176_v38, %v2474_v3  ;;  %v2489_v45 = vshrl.u32 %v11177_v62, %v2474_v3  ;;  %vm2491_vm15 = vcmp.lt.s32.totalorder %v2472_v44, 1 }
 0x20e   : > { %v8603_v18 = vsub.s32 %v2623_v53, %v2626_v1  ;;  %v8607_v54 = vadd.f32 %v8591_v2, %v345_v51  ;;  %v2478_v60 = vor.u32 %v2477_v41, %v2476_v25  ;;  %v2481_v33 = vor.u32 %v2480_v15, %v2479_v56 }
 0x20f   : > { %v2336_v27 = vsel %vm2253_vm1, %v2335_v32, %v2334_v19  ;;  %vm2493_vm0 = vcmp.lt.s32.totalorder %v2472_v44, 3  ;;  %v2484_v53 = vor.u32 %v2483_v28, %v2482_v17  ;;  %v2487_v9 = vor.u32 %v2486_v16, %v2485_v57 }
 0x210   : > { %v2339_v47 = vsel %vm8549_vm8, %v8354_v26, %v2336_v27  ;;  %v2629_v48 = vsub.s32 0, %v8603_v18  ;;  %vm8617_vm14 = vcmp.le.f32.partialorder %v2563_v63, 0.7853982  ;;  %v2475_v50 = vshrl.u32 %v11178_v35, %v2474_v3 }
 0x211   : > { %6618 = vcosq.f32 %v2339_v47  ;;  %v2490_v49 = vor.u32 %v2489_v45, %v2488_v46  ;;  %vm2494_vm1 = vcmp.lt.s32.totalorder %v2472_v44, 4  ;;  %v2649_v31 = vsub.s32 4, %v2625_v39 }
 0x212   : > { %6620 = vsinq.f32 %v2339_v47  ;;  %v6203_v0 = vmin.u32 %v2629_v48, %v8603_v18  ;;  %v2496_v51 = vsel %vm2494_vm1, %v2484_v53, 2102212464  ;;  %vm2492_vm2 = vcmp.lt.s32.totalorder %v2472_v44, 2 }
 0x213   : > { %v2499_v11 = vsel %vm2491_vm15, %v2478_v60, %v2481_v33  ;;  %v2500_v19 = vsel %vm2494_vm1, %v2487_v9, 920167782  ;;  %v2507_v25 = vshll.u32 %v2467_v34, 8  ;;  %v2345_v63 = vand.u32 3, %v2344_v40 }
 0x214   : > { %v2619_v56 = vadd.s32 %v8560_v13, %v8565_v59  ;;  %v2631_v17 = vclz %v6203_v0  ;;  %v2503_v3 = vsel %vm2491_vm15, %v2481_v33, %v2484_v53  ;;  %v2495_v1 = vsel %vm2491_vm15, %v2475_v50, %v2478_v60 }
 0x215   : > { %v2497_v41 = vsel %vm2493_vm0, %v2481_v33, %v2496_v51  ;;  %v2501_v57 = vsel %vm2493_vm0, %v2484_v53, %v2500_v19  ;;  %v2504_v46 = vsel %vm2494_vm1, %v2490_v49, 1326507024  ;;  %vm2343_vm3 = vweird.f32 %v8354_v26 }
 0x216   : > { %v6204_v32 = vadd.s32 4294967294, %v2631_v17  ;;  %v2650_v40 = vsel %vm2565_vm13, %v2649_v31, %v2625_v39  ;;  %v2502_v34 = vsel %vm2492_vm2, %v2499_v11, %v2501_v57  ;;  %v2505_v13 = vsel %vm2493_vm0, %v2487_v9, %v2504_v46 }
 0x217   : > { %v2506_v59 = vsel %vm2492_vm2, %v2503_v3, %v2505_v13  ;;  %v8639_v15 = vmul.u32.u64.low %v2507_v25, %v2502_v34  ;;  %v8640_v28 = vmul.u32.u64.high %v2507_v25, %v2502_v34, %v8639_v15  ;;  %v2774_v16 = vand.u32 2139095040, %v8607_v54 }
 0x218   : > { %vm6205_vm4 = vcmp.lt.s32.totalorder %v6204_v32, 0  ;;  %v2498_v45 = vsel %vm2492_vm2, %v2495_v1, %v2497_v41  ;;  %v8645_v27 = vmul.u32.u64.low %v2507_v25, %v2506_v59  ;;  %v8646_v60 = vmul.u32.u64.high %v2507_v25, %v2506_v59, %v8645_v27 }
 0x219   : > { %vm2346_vm5 = vcmp.lt.s32.totalorder %v2345_v63, 2  ;;  %vm2347_vm6 = vcmp.eq.s32.totalorder %v2345_v63, 0  ;;  %v2634_v39 = vsel %vm6205_vm4, 0, %v6204_v32  ;;  %v2775_v33 = vshrl.u32 %v2774_v16, 23 }
 0x21a   : > { %v2635_v47 = vsub.s32 32, %v2634_v39  ;;  %v2636_v48 = vshll.u32 %v8603_v18, %v2634_v39  ;;  %v2639_v53 = vsub.s32 4294967266, %v2634_v39  ;;  %v2652_v9 = vsel %vm8617_vm14, 0, %v2650_v40 }
 0x21b   : > { %v6619_v50 = vpop.eup %6618  ;;  %vm2350_vm7 = vcmp.eq.s32.totalorder %v2345_v63, 2  ;;  %v2514_v49 = vmul.u32 %v2507_v25, %v2498_v45  ;;  %v2517_v44 = vadd.s32 1, %v8640_v28  ;;  %v6210_v0 = vadd.s32 4294967169, %v2775_v33 }
 0x21c   : > { %v6621_v31 = vpop.eup %6620  ;;  %v2351_v51 = vxor.u32 2147483648, %v6619_v50  ;;  %v2637_v11 = vshrl.u32 %v2619_v56, %v2635_v47  ;;  %v2640_v19 = vadd.s32 127, %v2639_v53  ;;  %v2771_v17 = vand.u32 2147483647, %v8607_v54 }
 0x21d   : > { %v2348_v3 = vxor.u32 2147483648, %v6621_v31  ;;  %v2656_v1 = vadd.s32 3, %v2652_v9  ;;  %vm2516_vm8 = vc.u32 %v8646_v60, %v8639_v15  ;;  %v2781_v18 = vadd.s32 1, %v6210_v0 }
 0x21e   : > { %v2352_v41 = vsel %vm2350_vm7, %v2351_v51, %v6621_v31  ;;  %v2638_v57 = vor.u32 %v2637_v11, %v2636_v48  ;;  %v2641_v46 = vshll.u32 %v2640_v19, 23  ;;  %v2518_v25 = vsel %vm2516_vm8, %v2517_v44, %v8640_v28 }
 0x21f   : > { %v2349_v32 = vsel %vm2347_vm6, %v6619_v50, %v2348_v3  ;;  %v2519_v40 = vadd.s32 %v2518_v25, %v2514_v49  ;;  %vm2782_vm9 = vcmp.gt.s32.totalorder %v2781_v18, 0  ;;  %v344_v56 = vmul.f32 %v8414_v42, %v7025_v58 }
 0x220   : > { %v2353_v34 = vsel %vm2346_vm5, %v2349_v32, %v2352_v41  ;;  %v2642_v13 = vor.u32 4788187, %v2641_v46  ;;  %v2645_v59 = vcvt.s32.f32 %v2638_v57  ;;  %v2783_v16 = vsel %vm2782_vm9, %v2781_v18, 0 }
 0x221   : > { %v2354_v45 = vsel %vm2343_vm3, nan, %v2353_v34  ;;  %v2520_v27 = vadd.s32 536870912, %v2519_v40  ;;  %v2785_v39 = vand.u32 31, %v2783_v16  ;;  %v8662_v28 = vand.u32 3, %v2656_v1 }
 0x222   : > { %3898 = vperm.xlu1 %6549, %v2354_v45   ;;  %v2643_v33 = vand.u32 2147483647, %v2642_v13  ;;  %v2778_v47 = vand.u32 8388607, %v2771_v17  ;;  %vm2461_vm10 = vcmp.lt.s32.totalorder %v8512_v12, 0  ;;  %v2784_v63 = vshrl.u32 %v2783_v16, 5 }
 0x223   : > { %v2521_v42 = vshrl.u32 %v2520_v27, 30  ;;  %v2786_v48 = vsub.s32 32, %v2785_v39  ;;  %v8668_v53 = vadd.f32 %v8419_v30, %v344_v56  ;;  %v2788_v26 = vshll.u32 %v11178_v35, %v2785_v39 }
 0x224   : > { %v2646_v9 = vmul.f32 %v2645_v59, %v2643_v33  ;;  %v2791_v50 = vshll.u32 %v11173_v29, %v2785_v39  ;;  %v2794_v49 = vshll.u32 %v11174_v37, %v2785_v39  ;;  %v2797_v31 = vshll.u32 %v11175_v14, %v2785_v39 }
 0x225   : > { %v2522_v44 = vshll.u32 %v2521_v42, 30  ;;  %v2789_v0 = vshrl.u32 %v11173_v29, %v2786_v48  ;;  %v2800_v51 = vshll.u32 %v11176_v38, %v2785_v39  ;;  %v2792_v19 = vshrl.u32 %v11174_v37, %v2786_v48 }
 0x226   : > { %v2647_v11 = vxor.u32 2147483648, %v2646_v9  ;;  %v2795_v30 = vshrl.u32 %v11175_v14, %v2786_v48  ;;  %v2798_v3 = vshrl.u32 %v11176_v38, %v2786_v48  ;;  %vm8681_vm11 = vcmp.le.f32.partialorder %v2459_v10, 0.7853982 }
 0x227   : > { %v8685_v18 = vsub.s32 %v2519_v40, %v2522_v44  ;;  %v2779_v41 = vor.u32 8388608, %v2778_v47  ;;  %v2801_v57 = vshrl.u32 %v11177_v62, %v2786_v48  ;;  %v2667_v46 = vand.u32 2147483647, %v8668_v53 }
 0x228   : > { %v2648_v25 = vsel %vm2565_vm13, %v2647_v11, %v2646_v9  ;;  %v2545_v32 = vsub.s32 4, %v2521_v42  ;;  %v2787_v56 = vshrl.u32 %v11178_v35, %v2786_v48  ;;  %v2790_v34 = vor.u32 %v2789_v0, %v2788_v26 }
 0x229   : > { %v2651_v10 = vsel %vm8617_vm14, %v8459_v52, %v2648_v25  ;;  %v2525_v13 = vsub.s32 0, %v8685_v18  ;;  %v2793_v40 = vor.u32 %v2792_v19, %v2791_v50  ;;  %v2796_v59 = vor.u32 %v2795_v30, %v2794_v49 }
 0x22a   : > { %6622 = vcosq.f32 %v2651_v10  ;;  %v2799_v16 = vor.u32 %v2798_v3, %v2797_v31  ;;  %v2802_v45 = vor.u32 %v2801_v57, %v2800_v51  ;;  %vm2803_vm12 = vcmp.lt.s32.totalorder %v2784_v63, 1 }
 0x22b   : > { %6624 = vsinq.f32 %v2651_v10  ;;  %v2515_v27 = vadd.s32 %v8639_v15, %v8646_v60  ;;  %v6199_v39 = vmin.u32 %v2525_v13, %v8685_v18  ;;  %v2819_v33 = vshll.u32 %v2779_v41, 8 }
 0x22c   : > { %v2546_v47 = vsel %vm2461_vm10, %v2545_v32, %v2521_v42  ;;  %vm2805_vm13 = vcmp.lt.s32.totalorder %v2784_v63, 3  ;;  %vm2806_vm15 = vcmp.lt.s32.totalorder %v2784_v63, 4  ;;  %v2670_v55 = vand.u32 2139095040, %v8668_v53 }
 0x22d   : > { %v2527_v48 = vclz %v6199_v39  ;;  %vm2804_vm0 = vcmp.lt.s32.totalorder %v2784_v63, 2  ;;  %v2811_v9 = vsel %vm2803_vm12, %v2790_v34, %v2793_v40  ;;  %v2815_v26 = vsel %vm2803_vm12, %v2793_v40, %v2796_v59 }
 0x22e   : > { %vm2658_vm14 = vcmp.lt.s32.totalorder %v8662_v28, 2  ;;  %v2807_v50 = vsel %vm2803_vm12, %v2787_v56, %v2790_v34  ;;  %v2808_v49 = vsel %vm2806_vm15, %v2796_v59, 2102212464  ;;  %v2812_v44 = vsel %vm2806_vm15, %v2799_v16, 920167782 }
 0x22f   : > { %v2816_v15 = vsel %vm2806_vm15, %v2802_v45, 1326507024  ;;  %vm2655_vm1 = vweird.f32 %v8459_v52  ;;  %v6200_v60 = vadd.s32 4294967294, %v2527_v48  ;;  %v2809_v0 = vsel %vm2805_vm13, %v2793_v40, %v2808_v49 }
 0x230   : > { %v2813_v42 = vsel %vm2805_vm13, %v2796_v59, %v2812_v44  ;;  %v2817_v31 = vsel %vm2805_vm13, %v2799_v16, %v2816_v15  ;;  %v2548_v51 = vsel %vm8681_vm11, 0, %v2546_v47  ;;  %v2671_v30 = vshrl.u32 %v2670_v55, 23 }
 0x231   : > { %v2814_v11 = vsel %vm2804_vm0, %v2811_v9, %v2813_v42  ;;  %v2818_v19 = vsel %vm2804_vm0, %v2815_v26, %v2817_v31  ;;  %vm6201_vm2 = vcmp.lt.s32.totalorder %v6200_v60, 0  ;;  %v2810_v3 = vsel %vm2804_vm0, %v2807_v50, %v2809_v0 }
 0x232   : > { %v8712_v41 = vmul.u32.u64.low %v2819_v33, %v2818_v19  ;;  %v8713_v57 = vmul.u32.u64.high %v2819_v33, %v2818_v19, %v8712_v41  ;;  %v2530_v25 = vsel %vm6201_vm2, 0, %v6200_v60  ;;  %v6206_v34 = vadd.s32 4294967169, %v2671_v30 }
 0x233   : > { %v8715_v32 = vmul.u32.u64.low %v2819_v33, %v2814_v11  ;;  %v8716_v56 = vmul.u32.u64.high %v2819_v33, %v2814_v11, %v8715_v32  ;;  %vm2659_vm3 = vcmp.eq.s32.totalorder %v8662_v28, 0  ;;  %v2531_v10 = vsub.s32 32, %v2530_v25  ;;  %v11228_v41 = vld [vmem:[#allocation9_spill] sm:$0xff] }
 0x234   : > { %v2532_v13 = vshll.u32 %v8685_v18, %v2530_v25  ;;  %v2535_v40 = vsub.s32 4294967266, %v2530_v25  ;;  %v6623_v59 = vpop.eup %6622  ;;  %vm2662_vm4 = vcmp.eq.s32.totalorder %v8662_v28, 2  ;;  %v2552_v63 = vadd.s32 3, %v2548_v51 }
 0x235   : > { %v8724_v16 = vand.u32 8388607, %v2667_v46  ;;  %v2677_v45 = vadd.s32 1, %v6206_v34  ;;  %v6625_v39 = vpop.eup %6624  ;;  %v2663_v47 = vxor.u32 2147483648, %v6623_v59  ;;  %v2533_v55 = vshrl.u32 %v2515_v27, %v2531_v10 }
 0x236   : > { %v2536_v48 = vadd.s32 127, %v2535_v40  ;;  %v2826_v9 = vmul.u32 %v2819_v33, %v2810_v3  ;;  %v2660_v26 = vxor.u32 2147483648, %v6625_v39  ;;  %vm2828_vm5 = vc.u32 %v8713_v57, %v8715_v32 }
 0x237   : > { %v2829_v18 = vadd.s32 1, %v8716_v56  ;;  %vm2678_vm6 = vcmp.gt.s32.totalorder %v2677_v45, 0  ;;  %v2664_v50 = vsel %vm2662_vm4, %v2663_v47, %v6625_v39  ;;  %v2534_v49 = vor.u32 %v2533_v55, %v2532_v13 }
 0x238   : > { %v2537_v44 = vshll.u32 %v2536_v48, 23  ;;  %v2679_v15 = vsel %vm2678_vm6, %v2677_v45, 0  ;;  %v2661_v60 = vsel %vm2659_vm3, %v6623_v59, %v2660_v26  ;;  %v8731_v0 = vand.u32 3, %v2552_v63 }
 0x239   : > { %v2830_v27 = vsel %vm2828_vm5, %v2829_v18, %v8716_v56  ;;  %v2681_v42 = vand.u32 31, %v2679_v15  ;;  %v2665_v33 = vsel %vm2658_vm14, %v2661_v60, %v2664_v50  ;;  %v2541_v51 = vcvt.s32.f32 %v2534_v49 }
 0x23a   : > { %v2538_v31 = vor.u32 4788187, %v2537_v44  ;;  %v2831_v11 = vadd.s32 %v2830_v27, %v2826_v9  ;;  %v2666_v19 = vsel %vm2655_vm1, nan, %v2665_v33  ;;  %v8741_v25 = vrot.slane %v11228_v41, %v6984_v36  ;;  %v11229_v44 = vld [vmem:[#allocation20_spill] sm:$0xff] }
 0x23b   : > { %v2682_v30 = vsub.s32 32, %v2681_v42  ;;  %v2684_v3 = vshll.u32 %v11178_v35, %v2681_v42  ;;  %3913 = vperm.xlu0 %6548, %v2666_v19   ;;  %v2687_v10 = vshll.u32 %v11173_v29, %v2681_v42  ;;  %v2690_v28 = vshll.u32 %v11174_v37, %v2681_v42 }
 0x23c   : > { %v2539_v34 = vand.u32 2147483647, %v2538_v31  ;;  %v2832_v56 = vadd.s32 536870912, %v2831_v11  ;;  %v2693_v59 = vshll.u32 %v11175_v14, %v2681_v42  ;;  %v2680_v39 = vshrl.u32 %v2679_v15, 5 }
 0x23d   : > { %v2685_v13 = vshrl.u32 %v11173_v29, %v2682_v30  ;;  %v2688_v40 = vshrl.u32 %v11174_v37, %v2682_v30  ;;  %v2691_v52 = vshrl.u32 %v11175_v14, %v2682_v30  ;;  %v2694_v47 = vshrl.u32 %v11176_v38, %v2682_v30 }
 0x23e   : > { %v2542_v63 = vmul.f32 %v2541_v51, %v2539_v34  ;;  %v2833_v45 = vshrl.u32 %v2832_v56, 30  ;;  %v2675_v55 = vor.u32 8388608, %v8724_v16  ;;  %v2696_v48 = vshll.u32 %v11176_v38, %v2681_v42 }
 0x23f   : > { %v2697_v9 = vshrl.u32 %v11177_v62, %v2682_v30  ;;  %v347_v26 = vmul.f32 %v8741_v25, %v6996_v43  ;;  %v2683_v49 = vshrl.u32 %v11178_v35, %v2682_v30  ;;  %v8758_v60 = vrot.slane %v11229_v44, %v6984_v36 }
 0x240   : > { %v2543_v18 = vxor.u32 2147483648, %v2542_v63  ;;  %v2834_v50 = vshll.u32 %v2833_v45, 30  ;;  %v2686_v15 = vor.u32 %v2685_v13, %v2684_v3  ;;  %v2689_v27 = vor.u32 %v2688_v40, %v2687_v10 }
 0x241   : > { %v2692_v33 = vor.u32 %v2691_v52, %v2690_v28  ;;  %v2695_v31 = vor.u32 %v2694_v47, %v2693_v59  ;;  %vm2699_vm7 = vcmp.lt.s32.totalorder %v2680_v39, 1  ;;  %vm2702_vm8 = vcmp.lt.s32.totalorder %v2680_v39, 4 }
 0x242   : > { %v2544_v16 = vsel %vm2461_vm10, %v2543_v18, %v2542_v63  ;;  %v8762_v42 = vsub.s32 %v2831_v11, %v2834_v50  ;;  %v2698_v19 = vor.u32 %v2697_v9, %v2696_v48  ;;  %vm2701_vm9 = vcmp.lt.s32.totalorder %v2680_v39, 3 }
 0x243   : > { %v2547_v51 = vsel %vm8681_vm11, %v8512_v12, %v2544_v16  ;;  %v2704_v30 = vsel %vm2702_vm8, %v2692_v33, 2102212464  ;;  %v2857_v41 = vsub.s32 4, %v2833_v45  ;;  %vm2700_vm12 = vcmp.lt.s32.totalorder %v2680_v39, 2 }
 0x244   : > { %6626 = vcosq.f32 %v2547_v51  ;;  %v2837_v3 = vsub.s32 0, %v8762_v42  ;;  %v2703_v34 = vsel %vm2699_vm7, %v2683_v49, %v2686_v15  ;;  %v2707_v11 = vsel %vm2699_vm7, %v2686_v15, %v2689_v27 }
 0x245   : > { %6628 = vsinq.f32 %v2547_v51  ;;  %v2708_v56 = vsel %vm2702_vm8, %v2695_v31, 920167782  ;;  %v2705_v1 = vsel %vm2701_vm9, %v2689_v27, %v2704_v30  ;;  %v2711_v13 = vsel %vm2699_vm7, %v2689_v27, %v2692_v33 }
 0x246   : > { %v6211_v10 = vmin.u32 %v2837_v3, %v8762_v42  ;;  %v2709_v28 = vsel %vm2701_vm9, %v2692_v33, %v2708_v56  ;;  %v2712_v52 = vsel %vm2702_vm8, %v2698_v19, 1326507024  ;;  %v2715_v59 = vshll.u32 %v2675_v55, 8 }
 0x247   : > { %v2710_v40 = vsel %vm2700_vm12, %v2707_v11, %v2709_v28  ;;  %v8779_v63 = vadd.f32 %v8758_v60, %v347_v26  ;;  %vm8783_vm10 = vcmp.le.f32.partialorder %v2771_v17, 0.7853982  ;;  %vm2773_vm11 = vcmp.lt.s32.totalorder %v8607_v54, 0 }
 0x248   : > { %v2839_v48 = vclz %v6211_v10  ;;  %vm2551_vm13 = vweird.f32 %v8512_v12  ;;  %vm2554_vm15 = vcmp.lt.s32.totalorder %v8731_v0, 2  ;;  %v2713_v9 = vsel %vm2701_vm9, %v2695_v31, %v2712_v52 }
 0x249   : > { %v8791_v18 = vmul.u32.u64.low %v2715_v59, %v2710_v40  ;;  %v8792_v55 = vmul.u32.u64.high %v2715_v59, %v2710_v40, %v8791_v18  ;;  %v2858_v50 = vsel %vm2773_vm11, %v2857_v41, %v2833_v45  ;;  %v2706_v17 = vsel %vm2700_vm12, %v2703_v34, %v2705_v1 }
 0x24a   : > { %v6212_v26 = vadd.s32 4294967294, %v2839_v48  ;;  %v2714_v49 = vsel %vm2700_vm12, %v2711_v13, %v2713_v9  ;;  %v2979_v27 = vand.u32 2147483647, %v8779_v63  ;;  %v2982_v33 = vand.u32 2139095040, %v8779_v63 }
 0x24b   : > { %v8798_v44 = vmul.u32.u64.low %v2715_v59, %v2714_v49  ;;  %v8799_v15 = vmul.u32.u64.high %v2715_v59, %v2714_v49, %v8798_v44  ;;  %vm2555_vm0 = vcmp.eq.s32.totalorder %v8731_v0, 0  ;;  %vm2558_vm14 = vcmp.eq.s32.totalorder %v8731_v0, 2 }
 0x24c   : > { %v2827_v31 = vadd.s32 %v8715_v32, %v8713_v57  ;;  %vm6213_vm1 = vcmp.lt.s32.totalorder %v6212_v26, 0  ;;  %v2722_v16 = vmul.u32 %v2715_v59, %v2706_v17  ;;  %v2725_v39 = vadd.s32 1, %v8792_v55 }
 0x24d   : > { %v2842_v45 = vsel %vm6213_vm1, 0, %v6212_v26  ;;  %v2983_v51 = vshrl.u32 %v2982_v33, 23  ;;  %v2860_v34 = vsel %vm8783_vm10, 0, %v2858_v50  ;;  %vm2724_vm2 = vc.u32 %v8799_v15, %v8791_v18 }
 0x24e   : > { %v6627_v19 = vpop.eup %6626  ;;  %v2843_v30 = vsub.s32 32, %v2842_v45  ;;  %v2844_v3 = vshll.u32 %v8762_v42, %v2842_v45  ;;  %v2847_v41 = vsub.s32 4294967266, %v2842_v45  ;;  %v2986_v57 = vand.u32 8388607, %v2979_v27 }
 0x24f   : > { %v6629_v11 = vpop.eup %6628  ;;  %v2559_v56 = vxor.u32 2147483648, %v6627_v19  ;;  %v6218_v10 = vadd.s32 4294967169, %v2983_v51  ;;  %v2726_v13 = vsel %vm2724_vm2, %v2725_v39, %v8792_v55  ;;  %v346_v59 = vmul.f32 %v8508_v61, %v7025_v58 }
 0x250   : > { %v2556_v32 = vxor.u32 2147483648, %v6629_v11  ;;  %v2845_v1 = vshrl.u32 %v2827_v31, %v2843_v30  ;;  %v2848_v28 = vadd.s32 127, %v2847_v41  ;;  %v2727_v40 = vadd.s32 %v2726_v13, %v2722_v16 }
 0x251   : > { %v2560_v42 = vsel %vm2558_vm14, %v2559_v56, %v6629_v11  ;;  %v2989_v52 = vadd.s32 1, %v6218_v10  ;;  %v2864_v50 = vadd.s32 3, %v2860_v34  ;;  %v2987_v44 = vor.u32 8388608, %v2986_v57 }
 0x252   : > { %v2557_v48 = vsel %vm2555_vm0, %v6627_v19, %v2556_v32  ;;  %v2846_v9 = vor.u32 %v2845_v1, %v2844_v3  ;;  %v2849_v26 = vshll.u32 %v2848_v28, 23  ;;  %v2728_v49 = vadd.s32 536870912, %v2727_v40 }
 0x253   : > { %v2561_v17 = vsel %vm2554_vm15, %v2557_v48, %v2560_v42  ;;  %vm2990_vm3 = vcmp.gt.s32.totalorder %v2989_v52, 0  ;;  %v8825_v51 = vand.u32 3, %v2864_v50  ;;  %vm2669_vm4 = vcmp.lt.s32.totalorder %v8668_v53, 0 }
 0x254   : > { %v2562_v55 = vsel %vm2551_vm13, nan, %v2561_v17  ;;  %v2850_v33 = vor.u32 4788187, %v2849_v26  ;;  %v2853_v31 = vcvt.s32.f32 %v2846_v9  ;;  %v2991_v45 = vsel %vm2990_vm3, %v2989_v52, 0 }
 0x255   : > { %3908 = vperm.xlu1 %6549, %v2562_v55   ;;  %v2729_v61 = vshrl.u32 %v2728_v49, 30  ;;  %v2993_v16 = vand.u32 31, %v2991_v45  ;;  %v8829_v0 = vadd.s32 %v8791_v18, %v8799_v15  ;;  %v8832_v3 = vadd.f32 %v8591_v2, %v346_v59 }
 0x256   : > { %v2851_v39 = vand.u32 2147483647, %v2850_v33  ;;  %v2992_v41 = vshrl.u32 %v2991_v45, 5  ;;  %v8835_v11 = vshll.u32 %v2987_v44, 8  ;;  %vm8844_vm5 = vcmp.le.f32.partialorder %v2667_v46, 0.7853982 }
 0x257   : > { %v2730_v19 = vshll.u32 %v2729_v61, 30  ;;  %v2994_v30 = vsub.s32 32, %v2993_v16  ;;  %v2996_v34 = vshll.u32 %v11178_v35, %v2993_v16  ;;  %v2999_v57 = vshll.u32 %v11173_v29, %v2993_v16 }
 0x258   : > { %v2854_v12 = vmul.f32 %v2853_v31, %v2851_v39  ;;  %v3002_v18 = vshll.u32 %v11174_v37, %v2993_v16  ;;  %v3005_v28 = vshll.u32 %v11175_v14, %v2993_v16  ;;  %v2753_v42 = vsub.s32 4, %v2729_v61 }
 0x259   : > { %v8837_v56 = vsub.s32 %v2727_v40, %v2730_v19  ;;  %v2997_v10 = vshrl.u32 %v11173_v29, %v2994_v30  ;;  %v3000_v32 = vshrl.u32 %v11174_v37, %v2994_v30  ;;  %v3003_v1 = vshrl.u32 %v11175_v14, %v2994_v30 }
 0x25a   : > { %v2855_v15 = vxor.u32 2147483648, %v2854_v12  ;;  %v3006_v40 = vshrl.u32 %v11176_v38, %v2994_v30  ;;  %v2875_v52 = vand.u32 2147483647, %v8832_v3  ;;  %v2995_v46 = vshrl.u32 %v11178_v35, %v2994_v30 }
 0x25b   : > { %v2733_v13 = vsub.s32 0, %v8837_v56  ;;  %v2998_v48 = vor.u32 %v2997_v10, %v2996_v34  ;;  %v3008_v9 = vshll.u32 %v11176_v38, %v2993_v16  ;;  %v3001_v17 = vor.u32 %v3000_v32, %v2999_v57 }
 0x25c   : > { %v2856_v59 = vsel %vm2773_vm11, %v2855_v15, %v2854_v12  ;;  %v3004_v49 = vor.u32 %v3003_v1, %v3002_v18  ;;  %v3007_v44 = vor.u32 %v3006_v40, %v3005_v28  ;;  %v3009_v55 = vshrl.u32 %v11177_v62, %v2994_v30 }
 0x25d   : > { %v2859_v26 = vsel %vm8783_vm10, %v8607_v54, %v2856_v59  ;;  %v6207_v50 = vmin.u32 %v2733_v13, %v8837_v56  ;;  %vm3011_vm6 = vcmp.lt.s32.totalorder %v2992_v41, 1  ;;  %v2754_v31 = vsel %vm2669_vm4, %v2753_v42, %v2729_v61 }
 0x25e   : > { %6630 = vcosq.f32 %v2859_v26  ;;  %v2878_v45 = vand.u32 2139095040, %v8832_v3  ;;  %v3010_v16 = vor.u32 %v3009_v55, %v3008_v9  ;;  %vm3012_vm7 = vcmp.lt.s32.totalorder %v2992_v41, 2 }
 0x25f   : > { %6632 = vsinq.f32 %v2859_v26  ;;  %v2735_v33 = vclz %v6207_v50  ;;  %vm3013_vm8 = vcmp.lt.s32.totalorder %v2992_v41, 3  ;;  %vm3014_vm9 = vcmp.lt.s32.totalorder %v2992_v41, 4 }
 0x260   : > { %vm2867_vm12 = vcmp.eq.s32.totalorder %v8825_v51, 0  ;;  %v3015_v39 = vsel %vm3011_vm6, %v2995_v46, %v2998_v48  ;;  %v3016_v19 = vsel %vm3014_vm9, %v3004_v49, 2102212464  ;;  %v3019_v30 = vsel %vm3011_vm6, %v2998_v48, %v3001_v17 }
 0x261   : > { %v6208_v47 = vadd.s32 4294967294, %v2735_v33  ;;  %vm2866_vm10 = vcmp.lt.s32.totalorder %v8825_v51, 2  ;;  %v3017_v12 = vsel %vm3013_vm8, %v3001_v17, %v3016_v19  ;;  %v3020_v34 = vsel %vm3014_vm9, %v3007_v44, 920167782 }
 0x262   : > { %v3023_v61 = vsel %vm3011_vm6, %v3001_v17, %v3004_v49  ;;  %v3024_v10 = vsel %vm3014_vm9, %v3010_v16, 1326507024  ;;  %vm2863_vm11 = vweird.f32 %v8607_v54  ;;  %v2756_v57 = vsel %vm8844_vm5, 0, %v2754_v31  ;;  %v11234_v31 = vld [vmem:[#allocation10_spill] sm:$0xff]  ;;  %v11235_v54 = vld [vmem:[#allocation21_spill] sm:$0xff] }
 0x263   : > { %vm6209_vm13 = vcmp.lt.s32.totalorder %v6208_v47, 0  ;;  %v3021_v18 = vsel %vm3013_vm8, %v3004_v49, %v3020_v34  ;;  %v3025_v15 = vsel %vm3013_vm8, %v3007_v44, %v3024_v10  ;;  %v3018_v1 = vsel %vm3012_vm7, %v3015_v39, %v3017_v12 }
 0x264   : > { %v2738_v32 = vsel %vm6209_vm13, 0, %v6208_v47  ;;  %v3022_v28 = vsel %vm3012_vm7, %v3019_v30, %v3021_v18  ;;  %v3026_v13 = vsel %vm3012_vm7, %v3023_v61, %v3025_v15  ;;  %v2879_v46 = vshrl.u32 %v2878_v45, 23 }
 0x265   : > { %v2739_v42 = vsub.s32 32, %v2738_v32  ;;  %v2740_v40 = vshll.u32 %v8837_v56, %v2738_v32  ;;  %v2743_v59 = vsub.s32 4294967266, %v2738_v32  ;;  %vm2870_vm15 = vcmp.eq.s32.totalorder %v8825_v51, 2 }
 0x266   : > { %v8882_v48 = vmul.u32.u64.low %v8835_v11, %v3026_v13  ;;  %v8883_v9 = vmul.u32.u64.high %v8835_v11, %v3026_v13, %v8882_v48  ;;  %v8886_v26 = vmul.u32.u64.low %v8835_v11, %v3022_v28  ;;  %v8887_v50 = vmul.u32.u64.high %v8835_v11, %v3022_v28, %v8886_v26 }
 0x267   : > { %v2741_v17 = vshrl.u32 %v8829_v0, %v2739_v42  ;;  %v2744_v41 = vadd.s32 127, %v2743_v59  ;;  %v6214_v49 = vadd.s32 4294967169, %v2879_v46  ;;  %v2760_v55 = vadd.s32 3, %v2756_v57 }
 0x268   : > { %v6631_v44 = vpop.eup %6630  ;;  %v3034_v56 = vmul.u32 %v8835_v11, %v3018_v1  ;;  %v2882_v33 = vand.u32 8388607, %v2875_v52  ;;  %v8897_v45 = vrot.slane %v11234_v31, %v6984_v36  ;;  %vm3036_vm0 = vc.u32 %v8883_v9, %v8886_v26 }
 0x269   : > { %v6633_v16 = vpop.eup %6632  ;;  %v2871_v47 = vxor.u32 2147483648, %v6631_v44  ;;  %v2742_v39 = vor.u32 %v2741_v17, %v2740_v40  ;;  %v2745_v19 = vshll.u32 %v2744_v41, 23  ;;  %v2885_v30 = vadd.s32 1, %v6214_v49 }
 0x26a   : > { %v2868_v12 = vxor.u32 2147483648, %v6633_v16  ;;  %v3037_v0 = vadd.s32 1, %v8887_v50  ;;  %v348_v11 = vmul.f32 %v8741_v25, %v7025_v58  ;;  %v8911_v28 = vand.u32 3, %v2760_v55 }
 0x26b   : > { %v2872_v34 = vsel %vm2870_vm15, %v2871_v47, %v6633_v16  ;;  %v2746_v61 = vor.u32 4788187, %v2745_v19  ;;  %v2749_v10 = vcvt.s32.f32 %v2742_v39  ;;  %vm2886_vm14 = vcmp.gt.s32.totalorder %v2885_v30, 0 }
 0x26c   : > { %v2869_v57 = vsel %vm2867_vm12, %v6631_v44, %v2868_v12  ;;  %v3038_v18 = vsel %vm3036_vm0, %v3037_v0, %v8887_v50  ;;  %v2887_v15 = vsel %vm2886_vm14, %v2885_v30, 0  ;;  %v8918_v59 = vadd.f32 %v8758_v60, %v348_v11 }
 0x26d   : > { %v2873_v32 = vsel %vm2866_vm10, %v2869_v57, %v2872_v34  ;;  %v2747_v1 = vand.u32 2147483647, %v2746_v61  ;;  %v3039_v13 = vadd.s32 %v3038_v18, %v3034_v56  ;;  %v8915_v42 = vshrl.u32 %v2887_v15, 5 }
 0x26e   : > { %v2874_v25 = vsel %vm2863_vm11, nan, %v2873_v32  ;;  %v2889_v40 = vand.u32 31, %v2887_v15  ;;  %v2883_v50 = vor.u32 8388608, %v2882_v33  ;;  %v349_v51 = vmul.f32 %v8897_v45, %v6996_v43 }
 0x26f   : > { %3923 = vperm.xlu0 %6548, %v2874_v25   ;;  %v2750_v46 = vmul.f32 %v2749_v10, %v2747_v1  ;;  %v3040_v48 = vadd.s32 536870912, %v3039_v13  ;;  %v8926_v44 = vrot.slane %v11235_v54, %v6984_v36  ;;  %vm2981_vm1 = vcmp.lt.s32.totalorder %v8779_v63, 0 }
 0x270   : > { %v2890_v17 = vsub.s32 32, %v2889_v40  ;;  %v2892_v41 = vshll.u32 %v11178_v35, %v2889_v40  ;;  %v2895_v49 = vshll.u32 %v11173_v29, %v2889_v40  ;;  %v2898_v60 = vshll.u32 %v11174_v37, %v2889_v40 }
 0x271   : > { %v2751_v55 = vxor.u32 2147483648, %v2750_v46  ;;  %v3041_v56 = vshrl.u32 %v3040_v48, 30  ;;  %v2901_v31 = vshll.u32 %v11175_v14, %v2889_v40  ;;  %vm2907_vm2 = vcmp.lt.s32.totalorder %v8915_v42, 1 }
 0x272   : > { %v2893_v33 = vshrl.u32 %v11173_v29, %v2890_v17  ;;  %v2896_v16 = vshrl.u32 %v11174_v37, %v2890_v17  ;;  %v2899_v47 = vshrl.u32 %v11175_v14, %v2890_v17  ;;  %v2902_v30 = vshrl.u32 %v11176_v38, %v2890_v17 }
 0x273   : > { %v2752_v39 = vsel %vm2669_vm4, %v2751_v55, %v2750_v46  ;;  %v3042_v19 = vshll.u32 %v3041_v56, 30  ;;  %v2904_v12 = vshll.u32 %v11176_v38, %v2889_v40  ;;  %v2891_v11 = vshrl.u32 %v11178_v35, %v2890_v17 }
 0x274   : > { %v2755_v0 = vsel %vm8844_vm5, %v8668_v53, %v2752_v39  ;;  %v2894_v34 = vor.u32 %v2893_v33, %v2892_v41  ;;  %v2897_v61 = vor.u32 %v2896_v16, %v2895_v49  ;;  %v2900_v57 = vor.u32 %v2899_v47, %v2898_v60 }
 0x275   : > { %6634 = vcosq.f32 %v2755_v0  ;;  %v8943_v10 = vsub.s32 %v3039_v13, %v3042_v19  ;;  %v2903_v18 = vor.u32 %v2902_v30, %v2901_v31  ;;  %v2905_v15 = vshrl.u32 %v11177_v62, %v2890_v17 }
 0x276   : > { %6636 = vsinq.f32 %v2755_v0  ;;  %vm2909_vm3 = vcmp.lt.s32.totalorder %v8915_v42, 3  ;;  %v2923_v32 = vshll.u32 %v2883_v50, 8  ;;  %v3065_v25 = vsub.s32 4, %v3041_v56 }
 0x277   : > { %v3045_v1 = vsub.s32 0, %v8943_v10  ;;  %vm2908_vm4 = vcmp.lt.s32.totalorder %v8915_v42, 2  ;;  %vm2910_vm5 = vcmp.lt.s32.totalorder %v8915_v42, 4  ;;  %v2906_v2 = vor.u32 %v2905_v15, %v2904_v12 }
 0x278   : > { %v2912_v40 = vsel %vm2910_vm5, %v2900_v57, 2102212464  ;;  %v2915_v13 = vsel %vm2907_vm2, %v2894_v34, %v2897_v61  ;;  %v2916_v46 = vsel %vm2910_vm5, %v2903_v18, 920167782  ;;  %v2911_v17 = vsel %vm2907_vm2, %v2891_v11, %v2894_v34 }
 0x279   : > { %v6219_v48 = vmin.u32 %v3045_v1, %v8943_v10  ;;  %v2913_v50 = vsel %vm2909_vm3, %v2897_v61, %v2912_v40  ;;  %v2917_v41 = vsel %vm2909_vm3, %v2900_v57, %v2916_v46  ;;  %v2919_v54 = vsel %vm2907_vm2, %v2897_v61, %v2900_v57 }
 0x27a   : > { %v2918_v49 = vsel %vm2908_vm4, %v2915_v13, %v2917_v41  ;;  %v2920_v55 = vsel %vm2910_vm5, %v2906_v2, 1326507024  ;;  %v8964_v60 = vadd.f32 %v8926_v44, %v349_v51  ;;  %vm2759_vm6 = vweird.f32 %v8668_v53 }
 0x27b   : > { %vm8969_vm7 = vcmp.le.f32.partialorder %v2979_v27, 0.7853982  ;;  %v3047_v33 = vclz %v6219_v48  ;;  %v3066_v16 = vsel %vm2981_vm1, %v3065_v25, %v3041_v56  ;;  %v2914_v47 = vsel %vm2908_vm4, %v2911_v17, %v2913_v50 }
 0x27c   : > { %v2921_v39 = vsel %vm2909_vm3, %v2903_v18, %v2920_v55  ;;  %v8979_v51 = vmul.u32.u64.low %v2923_v32, %v2918_v49  ;;  %v8980_v19 = vmul.u32.u64.high %v2923_v32, %v2918_v49, %v8979_v51  ;;  %vm2762_vm8 = vcmp.lt.s32.totalorder %v8911_v28, 2 }
 0x27d   : > { %vm2763_vm9 = vcmp.eq.s32.totalorder %v8911_v28, 0  ;;  %v6220_v27 = vadd.s32 4294967294, %v3047_v33  ;;  %v2922_v30 = vsel %vm2908_vm4, %v2919_v54, %v2921_v39  ;;  %vm2766_vm12 = vcmp.eq.s32.totalorder %v8911_v28, 2 }
 0x27e   : > { %v8987_v56 = vmul.u32.u64.low %v2923_v32, %v2922_v30  ;;  %v8988_v12 = vmul.u32.u64.high %v2923_v32, %v2922_v30, %v8987_v56  ;;  %v3190_v0 = vand.u32 2139095040, %v8964_v60  ;;  %v3035_v34 = vadd.s32 %v8886_v26, %v8883_v9 }
 0x27f   : > { %v6635_v11 = vpop.eup %6634  ;;  %vm6221_vm10 = vcmp.lt.s32.totalorder %v6220_v27, 0  ;;  %v3068_v61 = vsel %vm8969_vm7, 0, %v3066_v16  ;;  %v2930_v57 = vmul.u32 %v2923_v32, %v2914_v47  ;;  %v2933_v1 = vadd.s32 1, %v8980_v19 }
 0x280   : > { %v6637_v18 = vpop.eup %6636  ;;  %v2767_v15 = vxor.u32 2147483648, %v6635_v11  ;;  %v3050_v42 = vsel %vm6221_vm10, 0, %v6220_v27  ;;  %v3191_v25 = vshrl.u32 %v3190_v0, 23  ;;  %vm2932_vm11 = vc.u32 %v8988_v12, %v8979_v51 }
 0x281   : > { %v2764_v2 = vxor.u32 2147483648, %v6637_v18  ;;  %v3051_v40 = vsub.s32 32, %v3050_v42  ;;  %v3052_v13 = vshll.u32 %v8943_v10, %v3050_v42  ;;  %v3055_v46 = vsub.s32 4294967266, %v3050_v42 }
 0x282   : > { %v2768_v48 = vsel %vm2766_vm12, %v2767_v15, %v6637_v18  ;;  %v3187_v9 = vand.u32 2147483647, %v8964_v60  ;;  %v6226_v26 = vadd.s32 4294967169, %v3191_v25  ;;  %v2934_v41 = vsel %vm2932_vm11, %v2933_v1, %v8980_v19 }
 0x283   : > { %v2765_v32 = vsel %vm2763_vm9, %v6635_v11, %v2764_v2  ;;  %v3053_v17 = vshrl.u32 %v3035_v34, %v3051_v40  ;;  %v3056_v50 = vadd.s32 127, %v3055_v46  ;;  %v2935_v10 = vadd.s32 %v2934_v41, %v2930_v57  ;;  %v11238_v34 = vld [vmem:[#allocation11_spill] sm:$0xff] }
 0x284   : > { %v2769_v49 = vsel %vm2762_vm8, %v2765_v32, %v2768_v48  ;;  %v3197_v54 = vadd.s32 1, %v6226_v26  ;;  %v3072_v47 = vadd.s32 3, %v3068_v61  ;;  %v3194_v56 = vand.u32 8388607, %v3187_v9 }
 0x285   : > { %v2770_v55 = vsel %vm2759_vm6, nan, %v2769_v49  ;;  %v3054_v33 = vor.u32 %v3053_v17, %v3052_v13  ;;  %v3057_v16 = vshll.u32 %v3056_v50, 23  ;;  %v2936_v39 = vadd.s32 536870912, %v2935_v10 }
 0x286   : > { %3918 = vperm.xlu1 %6549, %v2770_v55   ;;  %vm3198_vm13 = vcmp.gt.s32.totalorder %v3197_v54, 0  ;;  %v9014_v53 = vrot.slane %v11238_v34, %v6984_v36  ;;  %v9016_v57 = vand.u32 3, %v3072_v47  ;;  %v9019_v61 = vadd.s32 %v8979_v51, %v8988_v12 }
 0x287   : > { %v3058_v27 = vor.u32 4788187, %v3057_v16  ;;  %v3061_v30 = vcvt.s32.f32 %v3054_v33  ;;  %v3199_v19 = vsel %vm3198_vm13, %v3197_v54, 0  ;;  %v9010_v0 = vshrl.u32 %v2936_v39, 30 }
 0x288   : > { %v3201_v28 = vand.u32 31, %v3199_v19  ;;  %v3195_v1 = vor.u32 8388608, %v3194_v56  ;;  %v3200_v25 = vshrl.u32 %v3199_v19, 5  ;;  %v3083_v41 = vand.u32 2147483647, %v8918_v59 }
 0x289   : > { %v3059_v11 = vand.u32 2147483647, %v3058_v27  ;;  %v2938_v18 = vshll.u32 %v9010_v0, 30  ;;  %v3086_v49 = vand.u32 2139095040, %v8918_v59  ;;  %vm2877_vm2 = vcmp.lt.s32.totalorder %v8832_v3, 0 }
 0x28a   : > { %v3202_v15 = vsub.s32 32, %v3201_v28  ;;  %v3204_v2 = vshll.u32 %v11178_v35, %v3201_v28  ;;  %v3207_v46 = vshll.u32 %v11173_v29, %v3201_v28  ;;  %v3210_v48 = vshll.u32 %v11174_v37, %v3201_v28 }
 0x28b   : > { %v3062_v42 = vmul.f32 %v3061_v30, %v3059_v11  ;;  %v9023_v40 = vsub.s32 %v2935_v10, %v2938_v18  ;;  %v3213_v32 = vshll.u32 %v11175_v14, %v3201_v28  ;;  %v3216_v33 = vshll.u32 %v11176_v38, %v3201_v28 }
 0x28c   : > { %v3205_v13 = vshrl.u32 %v11173_v29, %v3202_v15  ;;  %v3208_v51 = vshrl.u32 %v11174_v37, %v3202_v15  ;;  %v3211_v12 = vshrl.u32 %v11175_v14, %v3202_v15  ;;  %v3214_v50 = vshrl.u32 %v11176_v38, %v3202_v15 }
 0x28d   : > { %v3063_v26 = vxor.u32 2147483648, %v3062_v42  ;;  %v2941_v17 = vsub.s32 0, %v9023_v40  ;;  %v3203_v54 = vshrl.u32 %v11178_v35, %v3202_v15  ;;  %v3217_v56 = vshrl.u32 %v11177_v62, %v3202_v15 }
 0x28e   : > { %v3206_v55 = vor.u32 %v3205_v13, %v3204_v2  ;;  %v3209_v39 = vor.u32 %v3208_v51, %v3207_v46  ;;  %v3212_v27 = vor.u32 %v3211_v12, %v3210_v48  ;;  %v3215_v30 = vor.u32 %v3214_v50, %v3213_v32 }
 0x28f   : > { %v3064_v10 = vsel %vm2981_vm1, %v3063_v26, %v3062_v42  ;;  %v6215_v47 = vmin.u32 %v2941_v17, %v9023_v40  ;;  %vm3219_vm15 = vcmp.lt.s32.totalorder %v3200_v25, 1  ;;  %v9044_v11 = vshll.u32 %v3195_v1, 8 }
 0x290   : > { %v3067_v16 = vsel %vm8969_vm7, %v8779_v63, %v3064_v10  ;;  %v3087_v34 = vshrl.u32 %v3086_v49, 23  ;;  %v3218_v18 = vor.u32 %v3217_v56, %v3216_v33  ;;  %vm3220_vm0 = vcmp.lt.s32.totalorder %v3200_v25, 2 }
 0x291   : > { %6638 = vcosq.f32 %v3067_v16  ;;  %v2943_v19 = vclz %v6215_v47  ;;  %vm3221_vm14 = vcmp.lt.s32.totalorder %v3200_v25, 3  ;;  %vm3222_vm1 = vcmp.lt.s32.totalorder %v3200_v25, 4 }
 0x292   : > { %6640 = vsinq.f32 %v3067_v16  ;;  %v3223_v28 = vsel %vm3219_vm15, %v3203_v54, %v3206_v55  ;;  %v3224_v42 = vsel %vm3222_vm1, %v3212_v27, 2102212464  ;;  %v3227_v2 = vsel %vm3219_vm15, %v3206_v55, %v3209_v39 }
 0x293   : > { %v6216_v31 = vadd.s32 4294967294, %v2943_v19  ;;  %v3225_v13 = vsel %vm3221_vm14, %v3209_v39, %v3224_v42  ;;  %v3228_v15 = vsel %vm3222_vm1, %v3215_v30, 920167782  ;;  %v3231_v46 = vsel %vm3219_vm15, %v3209_v39, %v3212_v27 }
 0x294   : > { %v3232_v48 = vsel %vm3222_vm1, %v3218_v18, 1326507024  ;;  %vm3071_vm3 = vweird.f32 %v8779_v63  ;;  %v2961_v1 = vsub.s32 4, %v9010_v0  ;;  %v3229_v26 = vsel %vm3221_vm14, %v3212_v27, %v3228_v15 }
 0x295   : > { %vm6217_vm4 = vcmp.lt.s32.totalorder %v6216_v31, 0  ;;  %v3233_v51 = vsel %vm3221_vm14, %v3215_v30, %v3232_v48  ;;  %vm9054_vm5 = vcmp.le.f32.partialorder %v2875_v52, 0.7853982  ;;  %v3226_v17 = vsel %vm3220_vm0, %v3223_v28, %v3225_v13 }
 0x296   : > { %v2946_v32 = vsel %vm6217_vm4, 0, %v6216_v31  ;;  %v3230_v50 = vsel %vm3220_vm0, %v3227_v2, %v3229_v26  ;;  %v3234_v49 = vsel %vm3220_vm0, %v3231_v46, %v3233_v51  ;;  %v6222_v33 = vadd.s32 4294967169, %v3087_v34 }
 0x297   : > { %v2947_v10 = vsub.s32 32, %v2946_v32  ;;  %v2948_v54 = vshll.u32 %v9023_v40, %v2946_v32  ;;  %v2951_v55 = vsub.s32 4294967266, %v2946_v32  ;;  %vm3074_vm6 = vcmp.lt.s32.totalorder %v9016_v57, 2 }
 0x298   : > { %v9063_v16 = vmul.u32.u64.low %v9044_v11, %v3234_v49  ;;  %v9064_v47 = vmul.u32.u64.high %v9044_v11, %v3234_v49, %v9063_v16  ;;  %v9067_v52 = vmul.u32.u64.low %v9044_v11, %v3230_v50  ;;  %v9068_v39 = vmul.u32.u64.high %v9044_v11, %v3230_v50, %v9067_v52 }
 0x299   : > { %v2949_v27 = vshrl.u32 %v9019_v61, %v2947_v10  ;;  %v2952_v25 = vadd.s32 127, %v2951_v55  ;;  %v3093_v30 = vadd.s32 1, %v6222_v33  ;;  %vm3075_vm7 = vcmp.eq.s32.totalorder %v9016_v57, 0 }
 0x29a   : > { %vm3078_vm8 = vcmp.eq.s32.totalorder %v9016_v57, 2  ;;  %v3242_v40 = vmul.u32 %v9044_v11, %v3226_v17  ;;  %v9078_v19 = vand.u32 8388607, %v3083_v41  ;;  %v2962_v61 = vsel %vm2877_vm2, %v2961_v1, %v9010_v0 }
 0x29b   : > { %v6639_v56 = vpop.eup %6638  ;;  %v2950_v31 = vor.u32 %v2949_v27, %v2948_v54  ;;  %v2953_v28 = vshll.u32 %v2952_v25, 23  ;;  %vm3094_vm9 = vcmp.gt.s32.totalorder %v3093_v30, 0  ;;  %vm3244_vm12 = vc.u32 %v9064_v47, %v9067_v52 }
 0x29c   : > { %v6641_v34 = vpop.eup %6640  ;;  %v3079_v18 = vxor.u32 2147483648, %v6639_v56  ;;  %v3245_v2 = vadd.s32 1, %v9068_v39  ;;  %v3095_v46 = vsel %vm3094_vm9, %v3093_v30, 0  ;;  %v351_v32 = vmul.f32 %v9014_v53, %v6996_v43 }
 0x29d   : > { %v3076_v42 = vxor.u32 2147483648, %v6641_v34  ;;  %v2954_v13 = vor.u32 4788187, %v2953_v28  ;;  %v2957_v15 = vcvt.s32.f32 %v2950_v31  ;;  %v3097_v51 = vand.u32 31, %v3095_v46 }
 0x29e   : > { %v3080_v11 = vsel %vm3078_vm8, %v3079_v18, %v6641_v34  ;;  %v3246_v26 = vsel %vm3244_vm12, %v3245_v2, %v9068_v39  ;;  %v2964_v17 = vsel %vm9054_vm5, 0, %v2962_v61  ;;  %v3096_v10 = vshrl.u32 %v3095_v46, 5 }
 0x29f   : > { %v3077_v48 = vsel %vm3075_vm7, %v6639_v56, %v3076_v42  ;;  %v2955_v1 = vand.u32 2147483647, %v2954_v13  ;;  %v3247_v50 = vadd.s32 %v3246_v26, %v3242_v40  ;;  %v3098_v54 = vsub.s32 32, %v3097_v51 }
 0x2a0   : > { %v3081_v0 = vsel %vm3074_vm6, %v3077_v48, %v3080_v11  ;;  %v3100_v55 = vshll.u32 %v11178_v35, %v3097_v51  ;;  %v3103_v39 = vshll.u32 %v11173_v29, %v3097_v51  ;;  %v3106_v57 = vshll.u32 %v11174_v37, %v3097_v51 }
 0x2a1   : > { %v3082_v49 = vsel %vm3071_vm3, nan, %v3081_v0  ;;  %v2958_v33 = vmul.f32 %v2957_v15, %v2955_v1  ;;  %v3248_v16 = vadd.s32 536870912, %v3247_v50  ;;  %v3101_v27 = vshrl.u32 %v11173_v29, %v3098_v54  ;;  %v11241_v0 = vld [vmem:[#allocation22_spill] sm:$0xff] }
 0x2a2   : > { %3933 = vperm.xlu0 %6548, %v3082_v49   ;;  %v3104_v25 = vshrl.u32 %v11174_v37, %v3098_v54  ;;  %v3107_v30 = vshrl.u32 %v11175_v14, %v3098_v54  ;;  %v3109_v63 = vshll.u32 %v11175_v14, %v3097_v51  ;;  %v3110_v34 = vshrl.u32 %v11176_v38, %v3098_v54 }
 0x2a3   : > { %v2959_v56 = vxor.u32 2147483648, %v2958_v33  ;;  %v3249_v40 = vshrl.u32 %v3248_v16, 30  ;;  %v3112_v18 = vshll.u32 %v11176_v38, %v3097_v51  ;;  %v2968_v31 = vadd.s32 3, %v2964_v17 }
 0x2a4   : > { %vm3189_vm10 = vcmp.lt.s32.totalorder %v8964_v60, 0  ;;  %v3091_v28 = vor.u32 8388608, %v9078_v19  ;;  %v3099_v42 = vshrl.u32 %v11178_v35, %v3098_v54  ;;  %v3113_v61 = vshrl.u32 %v11177_v62, %v3098_v54 }
 0x2a5   : > { %v2960_v2 = vsel %vm2877_vm2, %v2959_v56, %v2958_v33  ;;  %v3250_v11 = vshll.u32 %v3249_v40, 30  ;;  %v3102_v13 = vor.u32 %v3101_v27, %v3100_v55  ;;  %v3105_v15 = vor.u32 %v3104_v25, %v3103_v39 }
 0x2a6   : > { %v2963_v46 = vsel %vm9054_vm5, %v8832_v3, %v2960_v2  ;;  %v3111_v48 = vor.u32 %v3110_v34, %v3109_v63  ;;  %v3114_v26 = vor.u32 %v3113_v61, %v3112_v18  ;;  %vm3115_vm11 = vcmp.lt.s32.totalorder %v3096_v10, 1 }
 0x2a7   : > { %6642 = vcosq.f32 %v2963_v46  ;;  %v9115_v51 = vsub.s32 %v3247_v50, %v3250_v11  ;;  %v3108_v19 = vor.u32 %v3107_v30, %v3106_v57  ;;  %v9119_v1 = vrot.slane %v11241_v0, %v6984_v36 }
 0x2a8   : > { %6644 = vsinq.f32 %v2963_v46  ;;  %v3273_v17 = vsub.s32 4, %v3249_v40  ;;  %vm3117_vm13 = vcmp.lt.s32.totalorder %v3096_v10, 3  ;;  %vm3118_vm15 = vcmp.lt.s32.totalorder %v3096_v10, 4 }
 0x2a9   : > { %v3253_v49 = vsub.s32 0, %v9115_v51  ;;  %vm3116_vm0 = vcmp.lt.s32.totalorder %v3096_v10, 2  ;;  %v3120_v12 = vsel %vm3118_vm15, %v3108_v19, 2102212464  ;;  %v3123_v54 = vsel %vm3115_vm11, %v3102_v13, %v3105_v15 }
 0x2aa   : > { %v3119_v55 = vsel %vm3115_vm11, %v3099_v42, %v3102_v13  ;;  %v3124_v33 = vsel %vm3118_vm15, %v3111_v48, 920167782  ;;  %v3128_v50 = vsel %vm3118_vm15, %v3114_v26, 1326507024  ;;  %v3131_v16 = vshll.u32 %v3091_v28, 8 }
 0x2ab   : > { %v6227_v39 = vmin.u32 %v3253_v49, %v9115_v51  ;;  %v3121_v57 = vsel %vm3117_vm13, %v3105_v15, %v3120_v12  ;;  %v3125_v27 = vsel %vm3117_vm13, %v3108_v19, %v3124_v33  ;;  %v3127_v25 = vsel %vm3115_vm11, %v3105_v15, %v3108_v19 }
 0x2ac   : > { %v2969_v30 = vand.u32 3, %v2968_v31  ;;  %v3126_v63 = vsel %vm3116_vm0, %v3123_v54, %v3125_v27  ;;  %v3129_v56 = vsel %vm3117_vm13, %v3111_v48, %v3128_v50  ;;  %v9131_v34 = vadd.f32 %v9119_v1, %v351_v32 }
 0x2ad   : > { %vm2967_vm14 = vweird.f32 %v8832_v3  ;;  %v3255_v18 = vclz %v6227_v39  ;;  %v3274_v28 = vsel %vm3189_vm10, %v3273_v17, %v3249_v40  ;;  %v3122_v42 = vsel %vm3116_vm0, %v3119_v55, %v3121_v57 }
 0x2ae   : > { %v3130_v61 = vsel %vm3116_vm0, %v3127_v25, %v3129_v56  ;;  %v9138_v2 = vmul.u32.u64.low %v3131_v16, %v3126_v63  ;;  %v9139_v11 = vmul.u32.u64.high %v3131_v16, %v3126_v63, %v9138_v2  ;;  %vm9143_vm1 = vcmp.le.f32.partialorder %v3187_v9, 0.7853982 }
 0x2af   : > { %v6228_v32 = vadd.s32 4294967294, %v3255_v18  ;;  %v9147_v13 = vmul.u32.u64.low %v3131_v16, %v3130_v61  ;;  %v9148_v15 = vmul.u32.u64.high %v3131_v16, %v3130_v61, %v9147_v13  ;;  %vm2970_vm2 = vcmp.lt.s32.totalorder %v2969_v30, 2 }
 0x2b0   : > { %vm2971_vm3 = vcmp.eq.s32.totalorder %v2969_v30, 0  ;;  %vm2974_vm4 = vcmp.eq.s32.totalorder %v2969_v30, 2  ;;  %v3398_v40 = vand.u32 2139095040, %v9131_v34  ;;  %v3243_v46 = vadd.s32 %v9067_v52, %v9064_v47 }
 0x2b1   : > { %v6643_v10 = vpop.eup %6642  ;;  %vm6229_vm5 = vcmp.lt.s32.totalorder %v6228_v32, 0  ;;  %v3276_v9 = vsel %vm9143_vm1, 0, %v3274_v28  ;;  %v3138_v48 = vmul.u32 %v3131_v16, %v3122_v42  ;;  %v3141_v17 = vadd.s32 1, %v9139_v11 }
 0x2b2   : > { %v6645_v26 = vpop.eup %6644  ;;  %v2975_v19 = vxor.u32 2147483648, %v6643_v10  ;;  %v3258_v0 = vsel %vm6229_vm5, 0, %v6228_v32  ;;  %v3399_v49 = vshrl.u32 %v3398_v40, 23  ;;  %vm3140_vm6 = vc.u32 %v9148_v15, %v9138_v2 }
 0x2b3   : > { %v2972_v12 = vxor.u32 2147483648, %v6645_v26  ;;  %v3259_v54 = vsub.s32 32, %v3258_v0  ;;  %v3260_v55 = vshll.u32 %v9115_v51, %v3258_v0  ;;  %v3263_v33 = vsub.s32 4294967266, %v3258_v0 }
 0x2b4   : > { %v2976_v50 = vsel %vm2974_vm4, %v2975_v19, %v6645_v26  ;;  %v3395_v47 = vand.u32 2147483647, %v9131_v34  ;;  %v6234_v52 = vadd.s32 4294967169, %v3399_v49  ;;  %v3142_v27 = vsel %vm3140_vm6, %v3141_v17, %v9139_v11 }
 0x2b5   : > { %v2973_v16 = vsel %vm2971_vm3, %v6643_v10, %v2972_v12  ;;  %v3261_v39 = vshrl.u32 %v3243_v46, %v3259_v54  ;;  %v3264_v57 = vadd.s32 127, %v3263_v33  ;;  %v3143_v63 = vadd.s32 %v3142_v27, %v3138_v48 }
 0x2b6   : > { %v2977_v25 = vsel %vm2970_vm2, %v2973_v16, %v2976_v50  ;;  %v3405_v56 = vadd.s32 1, %v6234_v52  ;;  %v3280_v42 = vadd.s32 3, %v3276_v9  ;;  %v3402_v32 = vand.u32 8388607, %v3395_v47 }
 0x2b7   : > { %v2978_v51 = vsel %vm2967_vm14, nan, %v2977_v25  ;;  %v3262_v18 = vor.u32 %v3261_v39, %v3260_v55  ;;  %v3265_v28 = vshll.u32 %v3264_v57, 23  ;;  %v3144_v61 = vadd.s32 536870912, %v3143_v63 }
 0x2b8   : > { %3928 = vperm.xlu1 %6549, %v2978_v51   ;;  %vm3406_vm7 = vcmp.gt.s32.totalorder %v3405_v56, 0  ;;  %v350_v13 = vmul.f32 %v8897_v45, %v7025_v58  ;;  %v9169_v3 = vand.u32 3, %v3280_v42  ;;  %v9173_v9 = vmul.f32 %v9014_v53, %v7025_v58 }
 0x2b9   : > { %v3266_v11 = vor.u32 4788187, %v3265_v28  ;;  %v3269_v30 = vcvt.s32.f32 %v3262_v18  ;;  %v3407_v40 = vsel %vm3406_vm7, %v3405_v56, 0  ;;  %v3145_v10 = vshrl.u32 %v3144_v61, 30 }
 0x2ba   : > { %v3409_v46 = vand.u32 31, %v3407_v40  ;;  %v3403_v19 = vor.u32 8388608, %v3402_v32  ;;  %v9176_v17 = vadd.f32 %v8926_v44, %v350_v13  ;;  %v3139_v45 = vadd.s32 %v9138_v2, %v9148_v15 }
 0x2bb   : > { %v3267_v48 = vand.u32 2147483647, %v3266_v11  ;;  %v3146_v26 = vshll.u32 %v3145_v10, 30  ;;  %v3408_v12 = vshrl.u32 %v3407_v40, 5  ;;  %vm3085_vm8 = vcmp.lt.s32.totalorder %v8918_v59, 0 }
 0x2bc   : > { %v3410_v0 = vsub.s32 32, %v3409_v46  ;;  %v3412_v54 = vshll.u32 %v11178_v35, %v3409_v46  ;;  %v3415_v50 = vshll.u32 %v11173_v29, %v3409_v46  ;;  %v3418_v53 = vshll.u32 %v11174_v37, %v3409_v46 }
 0x2bd   : > { %v3270_v49 = vmul.f32 %v3269_v30, %v3267_v48  ;;  %v9180_v55 = vsub.s32 %v3143_v63, %v3146_v26  ;;  %v3421_v2 = vshll.u32 %v11175_v14, %v3409_v46  ;;  %v9191_v57 = vshll.u32 %v3403_v19, 8 }
 0x2be   : > { %v3413_v33 = vshrl.u32 %v11173_v29, %v3410_v0  ;;  %v3416_v44 = vshrl.u32 %v11174_v37, %v3410_v0  ;;  %v3419_v16 = vshrl.u32 %v11175_v14, %v3410_v0  ;;  %v3422_v39 = vshrl.u32 %v11176_v38, %v3410_v0 }
 0x2bf   : > { %v3271_v52 = vxor.u32 2147483648, %v3270_v49  ;;  %v3149_v15 = vsub.s32 0, %v9180_v55  ;;  %v3291_v27 = vand.u32 2147483647, %v9176_v17  ;;  %v3411_v63 = vshrl.u32 %v11178_v35, %v3410_v0 }
 0x2c0   : > { %v3414_v56 = vor.u32 %v3413_v33, %v3412_v54  ;;  %v3424_v51 = vshll.u32 %v11176_v38, %v3409_v46  ;;  %v3417_v42 = vor.u32 %v3416_v44, %v3415_v50  ;;  %v3420_v61 = vor.u32 %v3419_v16, %v3418_v53 }
 0x2c1   : > { %v3272_v25 = vsel %vm3189_vm10, %v3271_v52, %v3270_v49  ;;  %v6223_v28 = vmin.u32 %v3149_v15, %v9180_v55  ;;  %vm9204_vm9 = vcmp.le.f32.partialorder %v3083_v41, 0.7853982  ;;  %v3423_v13 = vor.u32 %v3422_v39, %v3421_v2 }
 0x2c2   : > { %v3275_v18 = vsel %vm9143_vm1, %v8964_v60, %v3272_v25  ;;  %v3425_v11 = vshrl.u32 %v11177_v62, %v3410_v0  ;;  %vm3427_vm12 = vcmp.lt.s32.totalorder %v3408_v12, 1  ;;  %v3169_v40 = vsub.s32 4, %v3145_v10 }
 0x2c3   : > { %6646 = vcosq.f32 %v3275_v18  ;;  %v3151_v30 = vclz %v6223_v28  ;;  %v3294_v31 = vand.u32 2139095040, %v9176_v17  ;;  %vm3428_vm10 = vcmp.lt.s32.totalorder %v3408_v12, 2 }
 0x2c4   : > { %6648 = vsinq.f32 %v3275_v18  ;;  %v3426_v46 = vor.u32 %v3425_v11, %v3424_v51  ;;  %vm3429_vm11 = vcmp.lt.s32.totalorder %v3408_v12, 3  ;;  %vm3430_vm13 = vcmp.lt.s32.totalorder %v3408_v12, 4 }
 0x2c5   : > { %v6224_v48 = vadd.s32 4294967294, %v3151_v30  ;;  %v3431_v26 = vsel %vm3427_vm12, %v3411_v63, %v3414_v56  ;;  %v3432_v41 = vsel %vm3430_vm13, %v3420_v61, 2102212464  ;;  %v3435_v19 = vsel %vm3427_vm12, %v3414_v56, %v3417_v42 }
 0x2c6   : > { %vm3282_vm15 = vcmp.lt.s32.totalorder %v9169_v3, 2  ;;  %v3433_v49 = vsel %vm3429_vm11, %v3417_v42, %v3432_v41  ;;  %v3436_v0 = vsel %vm3430_vm13, %v3423_v13, 920167782  ;;  %v3439_v54 = vsel %vm3427_vm12, %v3417_v42, %v3420_v61 }
 0x2c7   : > { %v3440_v33 = vsel %vm3430_vm13, %v3426_v46, 1326507024  ;;  %vm3279_vm0 = vweird.f32 %v8964_v60  ;;  %vm6225_vm14 = vcmp.lt.s32.totalorder %v6224_v48, 0  ;;  %v3170_v50 = vsel %vm3085_vm8, %v3169_v40, %v3145_v10 }
 0x2c8   : > { %v3437_v53 = vsel %vm3429_vm11, %v3420_v61, %v3436_v0  ;;  %v3441_v52 = vsel %vm3429_vm11, %v3423_v13, %v3440_v33  ;;  %v3154_v44 = vsel %vm6225_vm14, 0, %v6224_v48  ;;  %v3434_v16 = vsel %vm3428_vm10, %v3431_v26, %v3433_v49 }
 0x2c9   : > { %v3438_v2 = vsel %vm3428_vm10, %v3435_v19, %v3437_v53  ;;  %v3442_v15 = vsel %vm3428_vm10, %v3439_v54, %v3441_v52  ;;  %v3155_v39 = vsub.s32 32, %v3154_v44  ;;  %v3156_v25 = vshll.u32 %v9180_v55, %v3154_v44 }
 0x2ca   : > { %v3159_v63 = vsub.s32 4294967266, %v3154_v44  ;;  %v3295_v56 = vshrl.u32 %v3294_v31, 23  ;;  %v9222_v51 = vmul.u32.u64.low %v9191_v57, %v3442_v15  ;;  %v9223_v18 = vmul.u32.u64.high %v9191_v57, %v3442_v15, %v9222_v51 }
 0x2cb   : > { %v9226_v10 = vmul.u32.u64.low %v9191_v57, %v3438_v2  ;;  %v9227_v28 = vmul.u32.u64.high %v9191_v57, %v3438_v2, %v9226_v10  ;;  %v3157_v42 = vshrl.u32 %v3139_v45, %v3155_v39  ;;  %v3172_v12 = vsel %vm9204_vm9, 0, %v3170_v50  ;;  %v11246_v2 = vld [vmem:[#allocation24_spill] sm:$0xff] }
 0x2cc   : > { %v3160_v61 = vadd.s32 127, %v3159_v63  ;;  %v6230_v13 = vadd.s32 4294967169, %v3295_v56  ;;  %vm3283_vm1 = vcmp.eq.s32.totalorder %v9169_v3, 0  ;;  %vm3286_vm2 = vcmp.eq.s32.totalorder %v9169_v3, 2 }
 0x2cd   : > { %v6647_v11 = vpop.eup %6646  ;;  %v3450_v55 = vmul.u32 %v9191_v57, %v3434_v16  ;;  %v3298_v30 = vand.u32 8388607, %v3291_v27  ;;  %v3158_v46 = vor.u32 %v3157_v42, %v3156_v25  ;;  %v3176_v41 = vadd.s32 3, %v3172_v12 }
 0x2ce   : > { %v6649_v40 = vpop.eup %6648  ;;  %v3287_v31 = vxor.u32 2147483648, %v6647_v11  ;;  %v3161_v48 = vshll.u32 %v3160_v61, 23  ;;  %v3301_v45 = vadd.s32 1, %v6230_v13  ;;  %vm3452_vm3 = vc.u32 %v9223_v18, %v9226_v10 }
 0x2cf   : > { %v3284_v26 = vxor.u32 2147483648, %v6649_v40  ;;  %v3453_v19 = vadd.s32 1, %v9227_v28  ;;  %v3165_v54 = vcvt.s32.f32 %v3158_v46  ;;  %v9245_v53 = vadd.f32 %v9119_v1, %v9173_v9 }
 0x2d0   : > { %v3288_v49 = vsel %vm3286_vm2, %v3287_v31, %v6649_v40  ;;  %v3162_v0 = vor.u32 4788187, %v3161_v48  ;;  %vm3302_vm4 = vcmp.gt.s32.totalorder %v3301_v45, 0  ;;  %v9251_v15 = vmul.f32 %v11246_v2, %v7025_v58 }
 0x2d1   : > { %v3285_v57 = vsel %vm3283_vm1, %v6647_v11, %v3284_v26  ;;  %v3454_v33 = vsel %vm3452_vm3, %v3453_v19, %v9227_v28  ;;  %v3303_v50 = vsel %vm3302_vm4, %v3301_v45, 0  ;;  %v3499_v56 = vand.u32 2147483647, %v9245_v53 }
 0x2d2   : > { %v3289_v52 = vsel %vm3282_vm15, %v3285_v57, %v3288_v49  ;;  %v3163_v44 = vand.u32 2147483647, %v3162_v0  ;;  %v3455_v16 = vadd.s32 %v3454_v33, %v3450_v55  ;;  %v9255_v25 = vshrl.u32 %v3303_v50, 5 }
 0x2d3   : > { %v3290_v39 = vsel %vm3279_vm0, nan, %v3289_v52  ;;  %v3305_v63 = vand.u32 31, %v3303_v50  ;;  %v9258_v9 = vand.u32 3, %v3176_v41  ;;  %v3299_v51 = vor.u32 8388608, %v3298_v30 }
 0x2d4   : > { %3943 = vperm.xlu0 %6548, %v3290_v39   ;;  %v3166_v1 = vmul.f32 %v3165_v54, %v3163_v44  ;;  %v3456_v3 = vadd.s32 536870912, %v3455_v16  ;;  %v3502_v12 = vand.u32 2139095040, %v9245_v53  ;;  %vm3323_vm5 = vcmp.lt.s32.totalorder %v9255_v25, 1 }
 0x2d5   : > { %v3306_v28 = vsub.s32 32, %v3305_v63  ;;  %v3308_v42 = vshll.u32 %v11178_v35, %v3305_v63  ;;  %v3311_v61 = vshll.u32 %v11173_v29, %v3305_v63  ;;  %v3314_v11 = vshll.u32 %v11174_v37, %v3305_v63 }
 0x2d6   : > { %v3167_v60 = vxor.u32 2147483648, %v3166_v1  ;;  %v3457_v13 = vshrl.u32 %v3456_v3, 30  ;;  %v3317_v55 = vshll.u32 %v11175_v14, %v3305_v63  ;;  %vm3397_vm6 = vcmp.lt.s32.totalorder %v9131_v34, 0 }
 0x2d7   : > { %v3309_v40 = vshrl.u32 %v11173_v29, %v3306_v28  ;;  %v3312_v31 = vshrl.u32 %v11174_v37, %v3306_v28  ;;  %v3315_v46 = vshrl.u32 %v11175_v14, %v3306_v28  ;;  %v3318_v45 = vshrl.u32 %v11176_v38, %v3306_v28 }
 0x2d8   : > { %v3168_v30 = vsel %vm3085_vm8, %v3167_v60, %v3166_v1  ;;  %v3458_v48 = vshll.u32 %v3457_v13, 30  ;;  %v3320_v26 = vshll.u32 %v11176_v38, %v3305_v63  ;;  %v3307_v19 = vshrl.u32 %v11178_v35, %v3306_v28 }
 0x2d9   : > { %v3171_v41 = vsel %vm9204_vm9, %v8918_v59, %v3168_v30  ;;  %v3310_v49 = vor.u32 %v3309_v40, %v3308_v42  ;;  %v3313_v0 = vor.u32 %v3312_v31, %v3311_v61  ;;  %v3316_v57 = vor.u32 %v3315_v46, %v3314_v11 }
 0x2da   : > { %6650 = vcosq.f32 %v3171_v41  ;;  %v9278_v54 = vsub.s32 %v3455_v16, %v3458_v48  ;;  %v3319_v33 = vor.u32 %v3318_v45, %v3317_v55  ;;  %vm9282_vm7 = vcmp.le.f32.partialorder %v3395_v47, 0.7853982 }
 0x2db   : > { %6652 = vsinq.f32 %v3171_v41  ;;  %v3321_v52 = vshrl.u32 %v11177_v62, %v3306_v28  ;;  %vm3325_vm8 = vcmp.lt.s32.totalorder %v9255_v25, 3  ;;  %v3339_v32 = vshll.u32 %v3299_v51, 8 }
 0x2dc   : > { %v3461_v44 = vsub.s32 0, %v9278_v54  ;;  %v3481_v2 = vsub.s32 4, %v3457_v13  ;;  %vm3324_vm9 = vcmp.lt.s32.totalorder %v9255_v25, 2  ;;  %vm3326_vm12 = vcmp.lt.s32.totalorder %v9255_v25, 4 }
 0x2dd   : > { %v3322_v16 = vor.u32 %v3321_v52, %v3320_v26  ;;  %v3328_v39 = vsel %vm3326_vm12, %v3316_v57, 2102212464  ;;  %v3331_v47 = vsel %vm3323_vm5, %v3310_v49, %v3313_v0  ;;  %v3332_v63 = vsel %vm3326_vm12, %v3319_v33, 920167782 }
 0x2de   : > { %v6235_v1 = vmin.u32 %v3461_v44, %v9278_v54  ;;  %v3327_v3 = vsel %vm3323_vm5, %v3307_v19, %v3310_v49  ;;  %v3333_v51 = vsel %vm3325_vm8, %v3316_v57, %v3332_v63  ;;  %v3503_v28 = vshrl.u32 %v3502_v12, 23 }
 0x2df   : > { %vm3175_vm10 = vweird.f32 %v8918_v59  ;;  %v3329_v42 = vsel %vm3325_vm8, %v3313_v0, %v3328_v39  ;;  %v3334_v61 = vsel %vm3324_vm9, %v3331_v47, %v3333_v51  ;;  %v3335_v60 = vsel %vm3323_vm5, %v3313_v0, %v3316_v57 }
 0x2e0   : > { %v3336_v11 = vsel %vm3326_vm12, %v3322_v16, 1326507024  ;;  %vm3178_vm11 = vcmp.lt.s32.totalorder %v9258_v9, 2  ;;  %vm3179_vm13 = vcmp.eq.s32.totalorder %v9258_v9, 0  ;;  %v3463_v55 = vclz %v6235_v1 }
 0x2e1   : > { %v3506_v12 = vand.u32 8388607, %v3499_v56  ;;  %v3482_v40 = vsel %vm3397_vm6, %v3481_v2, %v3457_v13  ;;  %v3337_v31 = vsel %vm3325_vm8, %v3319_v33, %v3336_v11  ;;  %v3330_v45 = vsel %vm3324_vm9, %v3327_v3, %v3329_v42  ;;  %v11249_v11 = vld [vmem:[#allocation25_spill] sm:$0xff] }
 0x2e2   : > { %v9313_v46 = vmul.u32.u64.low %v3339_v32, %v3334_v61  ;;  %v9314_v30 = vmul.u32.u64.high %v3339_v32, %v3334_v61, %v9313_v46  ;;  %v6236_v48 = vadd.s32 4294967294, %v3463_v55  ;;  %v3338_v26 = vsel %vm3324_vm9, %v3335_v60, %v3337_v31 }
 0x2e3   : > { %v6238_v41 = vadd.s32 4294967169, %v3503_v28  ;;  %vm3182_vm15 = vcmp.eq.s32.totalorder %v9258_v9, 2  ;;  %v3451_v13 = vadd.s32 %v9226_v10, %v9223_v18  ;;  %v3484_v57 = vsel %vm9282_vm7, 0, %v3482_v40 }
 0x2e4   : > { %v9324_v19 = vmul.u32.u64.low %v3339_v32, %v3338_v26  ;;  %v9325_v49 = vmul.u32.u64.high %v3339_v32, %v3338_v26, %v9324_v19  ;;  %v6651_v0 = vpop.eup %6650  ;;  %vm6237_vm0 = vcmp.lt.s32.totalorder %v6236_v48, 0  ;;  %v3507_v33 = vor.u32 8388608, %v3506_v12 }
 0x2e5   : > { %v3509_v52 = vadd.s32 1, %v6238_v41  ;;  %v6653_v44 = vpop.eup %6652  ;;  %v3183_v2 = vxor.u32 2147483648, %v6651_v0  ;;  %v3466_v25 = vsel %vm6237_vm0, 0, %v6236_v48  ;;  %v3346_v16 = vmul.u32 %v3339_v32, %v3330_v45 }
 0x2e6   : > { %v3349_v39 = vadd.s32 1, %v9314_v30  ;;  %v3180_v47 = vxor.u32 2147483648, %v6653_v44  ;;  %v3467_v63 = vsub.s32 32, %v3466_v25  ;;  %v3468_v18 = vshll.u32 %v9278_v54, %v3466_v25 }
 0x2e7   : > { %v3471_v10 = vsub.s32 4294967266, %v3466_v25  ;;  %v3184_v1 = vsel %vm3182_vm15, %v3183_v2, %v6653_v44  ;;  %v3488_v3 = vadd.s32 3, %v3484_v57  ;;  %vm3348_vm14 = vc.u32 %v9325_v49, %v9313_v46 }
 0x2e8   : > { %vm3510_vm1 = vcmp.gt.s32.totalorder %v3509_v52, 0  ;;  %v3181_v51 = vsel %vm3179_vm13, %v6651_v0, %v3180_v47  ;;  %v3469_v28 = vshrl.u32 %v3451_v13, %v3467_v63  ;;  %v3350_v42 = vsel %vm3348_vm14, %v3349_v39, %v9314_v30 }
 0x2e9   : > { %v3472_v32 = vadd.s32 127, %v3471_v10  ;;  %v3185_v61 = vsel %vm3178_vm11, %v3181_v51, %v3184_v1  ;;  %v3351_v54 = vadd.s32 %v3350_v42, %v3346_v16  ;;  %v3511_v60 = vsel %vm3510_vm1, %v3509_v52, 0 }
 0x2ea   : > { %v9342_v55 = vadd.f32 %v11249_v11, %v9251_v15  ;;  %v3186_v12 = vsel %vm3175_vm10, nan, %v3185_v61  ;;  %v3470_v40 = vor.u32 %v3469_v28, %v3468_v18  ;;  %v3513_v45 = vand.u32 31, %v3511_v60 }
 0x2eb   : > { %v3473_v31 = vshll.u32 %v3472_v32, 23  ;;  %3938 = vperm.xlu1 %6549, %v3186_v12   ;;  %v3352_v48 = vadd.s32 536870912, %v3351_v54  ;;  %v9346_v30 = vand.u32 3, %v3488_v3  ;;  %v9348_v9 = vshll.u32 %v3507_v33, 8 }
 0x2ec   : > { %v3477_v41 = vcvt.s32.f32 %v3470_v40  ;;  %v3512_v19 = vshrl.u32 %v3511_v60, 5  ;;  %v3514_v0 = vsub.s32 32, %v3513_v45  ;;  %v590_v15 = vand.u32 2139095040, %v9342_v55 }
 0x2ed   : > { %v3474_v26 = vor.u32 4788187, %v3473_v31  ;;  %v3353_v13 = vshrl.u32 %v3352_v48, 30  ;;  %v3516_v59 = vshll.u32 %v11178_v35, %v3513_v45  ;;  %v3519_v52 = vshll.u32 %v11173_v29, %v3513_v45 }
 0x2ee   : > { %v3522_v44 = vshll.u32 %v11174_v37, %v3513_v45  ;;  %v3517_v25 = vshrl.u32 %v11173_v29, %v3514_v0  ;;  %v3525_v16 = vshll.u32 %v11175_v14, %v3513_v45  ;;  %v3528_v33 = vshll.u32 %v11176_v38, %v3513_v45 }
 0x2ef   : > { %v3475_v57 = vand.u32 2147483647, %v3474_v26  ;;  %v3354_v2 = vshll.u32 %v3353_v13, 30  ;;  %vm3293_vm2 = vcmp.lt.s32.totalorder %v9176_v17, 0  ;;  %v3520_v47 = vshrl.u32 %v11174_v37, %v3514_v0 }
 0x2f0   : > { %v3523_v63 = vshrl.u32 %v11175_v14, %v3514_v0  ;;  %v3526_v18 = vshrl.u32 %v11176_v38, %v3514_v0  ;;  %v3529_v1 = vshrl.u32 %v11177_v62, %v3514_v0  ;;  %v587_v3 = vand.u32 2147483647, %v9342_v55 }
 0x2f1   : > { %v3478_v39 = vmul.f32 %v3477_v41, %v3475_v57  ;;  %v9361_v10 = vsub.s32 %v3351_v54, %v3354_v2  ;;  %v591_v51 = vshrl.u32 %v590_v15, 23  ;;  %v3518_v32 = vor.u32 %v3517_v25, %v3516_v59 }
 0x2f2   : > { %v3521_v42 = vor.u32 %v3520_v47, %v3519_v52  ;;  %vm3531_vm3 = vcmp.lt.s32.totalorder %v3512_v19, 1  ;;  %vm9367_vm4 = vcmp.le.f32.partialorder %v3291_v27, 0.7853982  ;;  %v3377_v11 = vsub.s32 4, %v3353_v13 }
 0x2f3   : > { %v3479_v28 = vxor.u32 2147483648, %v3478_v39  ;;  %v3357_v60 = vsub.s32 0, %v9361_v10  ;;  %v3524_v54 = vor.u32 %v3523_v63, %v3522_v44  ;;  %v3527_v12 = vor.u32 %v3526_v18, %v3525_v16 }
 0x2f4   : > { %v3515_v31 = vshrl.u32 %v11178_v35, %v3514_v0  ;;  %v3530_v48 = vor.u32 %v3529_v1, %v3528_v33  ;;  %vm3534_vm5 = vcmp.lt.s32.totalorder %v3512_v19, 4  ;;  %vm3533_vm8 = vcmp.lt.s32.totalorder %v3512_v19, 3 }
 0x2f5   : > { %v3480_v40 = vsel %vm3397_vm6, %v3479_v28, %v3478_v39  ;;  %v6231_v27 = vmin.u32 %v3357_v60, %v9361_v10  ;;  %v3536_v26 = vsel %vm3534_vm5, %v3524_v54, 2102212464  ;;  %vm3532_vm9 = vcmp.lt.s32.totalorder %v3512_v19, 2 }
 0x2f6   : > { %v3483_v45 = vsel %vm9282_vm7, %v9131_v34, %v3480_v40  ;;  %v3539_v41 = vsel %vm3531_vm3, %v3518_v32, %v3521_v42  ;;  %v3540_v15 = vsel %vm3534_vm5, %v3527_v12, 920167782  ;;  %v3347_v0 = vadd.s32 %v9313_v46, %v9325_v49 }
 0x2f7   : > { %6654 = vcosq.f32 %v3483_v45  ;;  %v3359_v57 = vclz %v6231_v27  ;;  %v6126_v59 = vadd.s32 4294967169, %v591_v51  ;;  %v3535_v50 = vsel %vm3531_vm3, %v3515_v31, %v3518_v32 }
 0x2f8   : > { %6656 = vsinq.f32 %v3483_v45  ;;  %v3537_v52 = vsel %vm3533_vm8, %v3521_v42, %v3536_v26  ;;  %v3541_v44 = vsel %vm3533_vm8, %v3524_v54, %v3540_v15  ;;  %v3543_v2 = vsel %vm3531_vm3, %v3521_v42, %v3524_v54 }
 0x2f9   : > { %v6232_v25 = vadd.s32 4294967294, %v3359_v57  ;;  %v3378_v16 = vsel %vm3293_vm2, %v3377_v11, %v3353_v13  ;;  %v3542_v33 = vsel %vm3532_vm9, %v3539_v41, %v3541_v44  ;;  %v3544_v39 = vsel %vm3534_vm5, %v3530_v48, 1326507024 }
 0x2fa   : > { %v3545_v46 = vsel %vm3533_vm8, %v3527_v12, %v3544_v39  ;;  %v9394_v49 = vmul.u32.u64.low %v9348_v9, %v3542_v33  ;;  %v9395_v47 = vmul.u32.u64.high %v9348_v9, %v3542_v33, %v9394_v49  ;;  %v594_v63 = vand.u32 8388607, %v587_v3 }
 0x2fb   : > { %vm3487_vm6 = vweird.f32 %v9131_v34  ;;  %vm6233_vm7 = vcmp.lt.s32.totalorder %v6232_v25, 0  ;;  %v3538_v18 = vsel %vm3532_vm9, %v3535_v50, %v3537_v52  ;;  %v3546_v13 = vsel %vm3532_vm9, %v3543_v2, %v3545_v46  ;;  %v9422_v2 = vpop.permute.xlu1 %3823  ;;  %v11252_v46 = vld [vmem:[#allocation12_spill] sm:$0xff] }
 0x2fc   : > { %v597_v1 = vadd.s32 1, %v6126_v59  ;;  %v3362_v51 = vsel %vm6233_vm7, 0, %v6232_v25  ;;  %v3380_v28 = vsel %vm9367_vm4, 0, %v3378_v16  ;;  %v3554_v12 = vmul.u32 %v9348_v9, %v3538_v18  ;;  %v9424_v25 = vpop.permute.xlu0 %3813 }
 0x2fd   : > { %v9406_v32 = vmul.u32.u64.low %v9348_v9, %v3546_v13  ;;  %v9407_v42 = vmul.u32.u64.high %v9348_v9, %v3546_v13, %v9406_v32  ;;  %v3363_v60 = vsub.s32 32, %v3362_v51  ;;  %v3364_v11 = vshll.u32 %v9361_v10, %v3362_v51 }
 0x2fe   : > { %v3367_v54 = vsub.s32 4294967266, %v3362_v51  ;;  %vm598_vm12 = vcmp.gt.s32.totalorder %v597_v1, 0  ;;  %v3557_v40 = vadd.s32 1, %v9395_v47  ;;  %v595_v19 = vor.u32 8388608, %v594_v63 }
 0x2ff   : > { %v599_v31 = vsel %vm598_vm12, %v597_v1, 0  ;;  %vm3490_vm10 = vcmp.lt.s32.totalorder %v9346_v30, 2  ;;  %v3365_v48 = vshrl.u32 %v3347_v0, %v3363_v60  ;;  %vm3491_vm11 = vcmp.eq.s32.totalorder %v9346_v30, 0 }
 0x300   : > { %v3368_v45 = vadd.s32 127, %v3367_v54  ;;  %v601_v27 = vand.u32 31, %v599_v31  ;;  %vm3494_vm13 = vcmp.eq.s32.totalorder %v9346_v30, 2  ;;  %v9415_v41 = vadd.s32 3, %v3380_v28 }
 0x301   : > { %v6655_v26 = vpop.eup %6654  ;;  %vm3556_vm15 = vc.u32 %v9407_v42, %v9394_v49  ;;  %v3366_v15 = vor.u32 %v3365_v48, %v3364_v11  ;;  %v9420_v44 = vshll.u32 %v595_v19, 8  ;;  %v9428_v63 = vrot.slane %v11252_v46, %v6984_v36  ;;  %v9444_v19 = vpop.permute.xlu0 %3833 }
 0x302   : > { %v6657_v9 = vpop.eup %6656  ;;  %v3495_v10 = vxor.u32 2147483648, %v6655_v26  ;;  %v3369_v57 = vshll.u32 %v3368_v45, 23  ;;  %v3558_v59 = vsel %vm3556_vm15, %v3557_v40, %v9395_v47  ;;  %v602_v52 = vsub.s32 32, %v601_v27  ;;  %v9446_v48 = vpop.permute.xlu1 %3828 }
 0x303   : > { %v3492_v50 = vxor.u32 2147483648, %v6657_v9  ;;  %v3559_v0 = vadd.s32 %v3558_v59, %v3554_v12  ;;  %v3373_v39 = vcvt.s32.f32 %v3366_v15  ;;  %v604_v13 = vshll.u32 %v11178_v35, %v601_v27 }
 0x304   : > { %v3496_v16 = vsel %vm3494_vm13, %v3495_v10, %v6657_v9  ;;  %v3370_v33 = vor.u32 4788187, %v3369_v57  ;;  %v607_v1 = vshll.u32 %v11173_v29, %v601_v27  ;;  %v605_v32 = vshrl.u32 %v11173_v29, %v602_v52  ;;  %v11253_v57 = vld [vmem:[#allocation23_spill] sm:$0xff] }
 0x305   : > { %v3493_v18 = vsel %vm3491_vm11, %v6655_v26, %v3492_v50  ;;  %v3560_v47 = vadd.s32 536870912, %v3559_v0  ;;  %v608_v60 = vshrl.u32 %v11174_v37, %v602_v52  ;;  %v610_v12 = vshll.u32 %v11174_v37, %v601_v27 }
 0x306   : > { %v3497_v51 = vsel %vm3490_vm10, %v3493_v18, %v3496_v16  ;;  %v3371_v28 = vand.u32 2147483647, %v3370_v33  ;;  %v611_v40 = vshrl.u32 %v11175_v14, %v602_v52  ;;  %v600_v45 = vshrl.u32 %v599_v31, 5 }
 0x307   : > { %v3498_v11 = vsel %vm3487_vm6, nan, %v3497_v51  ;;  %v9440_v54 = vshrl.u32 %v3560_v47, 30  ;;  %v613_v26 = vshll.u32 %v11175_v14, %v601_v27  ;;  %v614_v9 = vshrl.u32 %v11176_v38, %v602_v52  ;;  %v3844_v51 = vpop.permute.xlu0 %3843 }
 0x308   : > { %3953 = vperm.xlu0 %6548, %v3498_v11   ;;  %v3374_v30 = vmul.f32 %v3373_v39, %v3371_v28  ;;  %v616_v10 = vshll.u32 %v11176_v38, %v601_v27  ;;  %v354_v15 = vmul.f32 %v9428_v63, %v7025_v58  ;;  %v9456_v59 = vrot.slane %v11253_v57, %v6984_v36  ;;  %v3839_v27 = vpop.permute.xlu1 %3838 }
 0x309   : > { %v3562_v34 = vshll.u32 %v9440_v54, 30  ;;  %v603_v16 = vshrl.u32 %v11178_v35, %v602_v52  ;;  %v615_v33 = vor.u32 %v614_v9, %v613_v26  ;;  %v617_v31 = vshrl.u32 %v11177_v62, %v602_v52 }
 0x30a   : > { %v3375_v50 = vxor.u32 2147483648, %v3374_v30  ;;  %v606_v46 = vor.u32 %v605_v32, %v604_v13  ;;  %v609_v18 = vor.u32 %v608_v60, %v607_v1  ;;  %v612_v47 = vor.u32 %v611_v40, %v610_v12 }
 0x30b   : > { %v9460_v39 = vsub.s32 %v3559_v0, %v3562_v34  ;;  %v618_v28 = vor.u32 %v617_v31, %v616_v10  ;;  %vm619_vm0 = vcmp.lt.s32.totalorder %v600_v45, 1  ;;  %vm622_vm14 = vcmp.lt.s32.totalorder %v600_v45, 4  ;;  %v3854_v61 = vpop.permute.xlu0 %3853 }
 0x30c   : > { %v3376_v58 = vsel %vm3293_vm2, %v3375_v50, %v3374_v30  ;;  %vm620_vm1 = vcmp.lt.s32.totalorder %v600_v45, 2  ;;  %vm621_vm3 = vcmp.lt.s32.totalorder %v600_v45, 3  ;;  %v623_v0 = vsel %vm619_vm0, %v603_v16, %v606_v46  ;;  %v3849_v12 = vpop.permute.xlu1 %3848 }
 0x30d   : > { %v3379_v36 = vsel %vm9367_vm4, %v9176_v17, %v3376_v58  ;;  %v3565_v11 = vsub.s32 0, %v9460_v39  ;;  %v624_v52 = vsel %vm622_vm14, %v612_v47, 2102212464  ;;  %v628_v13 = vsel %vm622_vm14, %v615_v33, 920167782 }
 0x30e   : > { %6658 = vcosq.f32 %v3379_v36  ;;  %v625_v32 = vsel %vm621_vm3, %v609_v18, %v624_v52  ;;  %v627_v60 = vsel %vm619_vm0, %v606_v46, %v609_v18  ;;  %v629_v40 = vsel %vm621_vm3, %v612_v47, %v628_v13 }
 0x30f   : > { %6660 = vsinq.f32 %v3379_v36  ;;  %v6239_v1 = vmin.u32 %v3565_v11, %v9460_v39  ;;  %v631_v30 = vsel %vm619_vm0, %v609_v18, %v612_v47  ;;  %v632_v26 = vsel %vm622_vm14, %v618_v28, 1326507024  ;;  %v3864_v58 = vpop.permute.xlu0 %3863 }
 0x310   : > { %v9478_v9 = vand.u32 3, %v9415_v41  ;;  %v3585_v10 = vsub.s32 4, %v9440_v54  ;;  %v626_v57 = vsel %vm620_vm1, %v623_v0, %v625_v32  ;;  %v630_v50 = vsel %vm620_vm1, %v627_v60, %v629_v40  ;;  %v3859_v28 = vpop.permute.xlu1 %3858 }
 0x311   : > { %v3567_v34 = vclz %v6239_v1  ;;  %v633_v16 = vsel %vm621_vm3, %v615_v33, %v632_v26  ;;  %v9485_v31 = vadd.f32 %v9456_v59, %v354_v15  ;;  %vm3383_vm2 = vweird.f32 %v9176_v17 }
 0x312   : > { %v634_v18 = vsel %vm620_vm1, %v631_v30, %v633_v16  ;;  %v9490_v41 = vmul.u32.u64.low %v9420_v44, %v630_v50  ;;  %v9491_v47 = vmul.u32.u64.high %v9420_v44, %v630_v50, %v9490_v41  ;;  %vm9496_vm4 = vcmp.le.f32.partialorder %v3499_v56, 0.7853982 }
 0x313   : > { %v6240_v46 = vadd.s32 4294967294, %v3567_v34  ;;  %vm3501_vm5 = vcmp.lt.s32.totalorder %v9245_v53, 0  ;;  %v9502_v45 = vmul.u32.u64.low %v9420_v44, %v634_v18  ;;  %v9503_v15 = vmul.u32.u64.high %v9420_v44, %v634_v18, %v9502_v45 }
 0x314   : > { %vm3386_vm8 = vcmp.lt.s32.totalorder %v9478_v9, 2  ;;  %v3555_v36 = vadd.s32 %v9394_v49, %v9407_v42  ;;  %v3710_v56 = vand.u32 2139095040, %v9485_v31  ;;  %v3586_v0 = vsel %vm3501_vm5, %v3585_v10, %v9440_v54 }
 0x315   : > { %vm6241_vm9 = vcmp.lt.s32.totalorder %v6240_v46, 0  ;;  %v642_v52 = vmul.u32 %v9420_v44, %v626_v57  ;;  %vm3971_vm6 = vcmask 130048   ;;  %v645_v42 = vadd.s32 1, %v9491_v47  ;;  %v3874_v44 = vpop.permute.xlu0 %3873 }
 0x316   : > { %v3570_v11 = vsel %vm6241_vm9, 0, %v6240_v46  ;;  %3974 = vst.msk [vmem:[%s6891_s22 + $0x10] sm:$0xff] %vm3971_vm6, %v9422_v2  ;;  %3972 = vst.msk [vmem:[%s6891_s22] sm:$0xff] %vm3971_vm6, %v9424_v25  ;;  %v3869_v2 = vpop.permute.xlu1 %3868  ;;  %vm3387_vm7 = vcmp.eq.s32.totalorder %v9478_v9, 0  ;;  %vm3390_vm12 = vcmp.eq.s32.totalorder %v9478_v9, 2  ;;  %vm644_vm10 = vc.u32 %v9503_v15, %v9490_v41 }
 0x317   : > { %v3571_v13 = vsub.s32 32, %v3570_v11  ;;  %v3572_v1 = vshll.u32 %v9460_v39, %v3570_v11  ;;  %v3575_v49 = vsub.s32 4294967266, %v3570_v11  ;;  %3976 = vst.msk [vmem:[%s6891_s22 + $0x20] sm:$0xff] %vm3971_vm6, %v9444_v19  ;;  %3975 = vst.msk [vmem:[%s6891_s22 + $0x18] sm:$0xff] %vm3971_vm6, %v9446_v48  ;;  %v3711_v54 = vshrl.u32 %v3710_v56, 23 }
 0x318   : > { %3978 = vst.msk [vmem:[%s6891_s22 + $0x30] sm:$0xff] %vm3971_vm6, %v3844_v51  ;;  %3977 = vst.msk [vmem:[%s6891_s22 + $0x28] sm:$0xff] %vm3971_vm6, %v3839_v27  ;;  %v6659_v25 = vpop.eup %6658  ;;  %v646_v27 = vsel %vm644_vm10, %v645_v42, %v9491_v47  ;;  %v3588_v60 = vsel %vm9496_vm4, 0, %v3586_v0  ;;  %v3707_v34 = vand.u32 2147483647, %v9485_v31  ;;  %v353_v18 = vmul.f32 %v9428_v63, %v6996_v43 }
 0x319   : > { %3980 = vst.msk [vmem:[%s6891_s22 + $0x40] sm:$0xff] %vm3971_vm6, %v3854_v61  ;;  %3979 = vst.msk [vmem:[%s6891_s22 + $0x38] sm:$0xff] %vm3971_vm6, %v3849_v12  ;;  %v6661_v19 = vpop.eup %6660  ;;  %v3391_v48 = vxor.u32 2147483648, %v6659_v25  ;;  %v3573_v39 = vshrl.u32 %v3555_v36, %v3571_v13  ;;  %v3576_v51 = vadd.s32 127, %v3575_v49  ;;  %v647_v61 = vadd.s32 %v646_v27, %v642_v52  ;;  %v3884_v10 = vpop.permute.xlu0 %3883 }
 0x31a   : > { %3982 = vst.msk [vmem:[%s6891_s22 + $0x50] sm:$0xff] %vm3971_vm6, %v3864_v58  ;;  %3981 = vst.msk [vmem:[%s6891_s22 + $0x48] sm:$0xff] %vm3971_vm6, %v3859_v28  ;;  %v3388_v32 = vxor.u32 2147483648, %v6661_v19  ;;  %v6246_v12 = vadd.s32 4294967169, %v3711_v54  ;;  %v3879_v57 = vpop.permute.xlu1 %3878  ;;  %v3592_v36 = vadd.s32 3, %v3588_v60  ;;  %v9579_v42 = vadd.s32 %v9490_v41, %v9503_v15 }
 0x31b   : > { %3984 = vst.msk [vmem:[%s6891_s22 + $0x60] sm:$0xff] %vm3971_vm6, %v3874_v44  ;;  %3983 = vst.msk [vmem:[%s6891_s22 + $0x58] sm:$0xff] %vm3971_vm6, %v3869_v2  ;;  %v3392_v40 = vsel %vm3390_vm12, %v3391_v48, %v6661_v19  ;;  %v3574_v30 = vor.u32 %v3573_v39, %v3572_v1  ;;  %v3577_v26 = vshll.u32 %v3576_v51, 23  ;;  %v648_v16 = vadd.s32 536870912, %v647_v61 }
 0x31c   : > { %v3389_v50 = vsel %vm3387_vm7, %v6659_v25, %v3388_v32  ;;  %v3717_v46 = vadd.s32 1, %v6246_v12  ;;  %3986 = vst.msk [vmem:[%s6891_s22 + $0x70] sm:$0xff] %vm3971_vm6, %v3884_v10  ;;  %3985 = vst.msk [vmem:[%s6891_s22 + $0x68] sm:$0xff] %vm3971_vm6, %v3879_v57  ;;  %v3714_v63 = vand.u32 8388607, %v3707_v34  ;;  %v9569_v1 = vadd.f32 %v9456_v59, %v353_v18 }
 0x31d   : > { %v3393_v47 = vsel %vm3386_vm8, %v3389_v50, %v3392_v40  ;;  %v3578_v58 = vor.u32 4788187, %v3577_v26  ;;  %v3581_v28 = vcvt.s32.f32 %v3574_v30  ;;  %v9563_v56 = vshrl.u32 %v648_v16, 30  ;;  %v3894_v0 = vpop.permute.xlu0 %3893 }
 0x31e   : > { %v3394_v45 = vsel %vm3383_vm2, nan, %v3393_v47  ;;  %vm3718_vm11 = vcmp.gt.s32.totalorder %v3717_v46, 0  ;;  %v3889_v9 = vpop.permute.xlu1 %3888  ;;  %3988 = vst.msk [vmem:[%s6891_s22 + $0x80] sm:$0xff] %vm3971_vm6, %v3894_v0  ;;  %v9575_v49 = vand.u32 3, %v3592_v36  ;;  %v3715_v54 = vor.u32 8388608, %v3714_v63 }
 0x31f   : > { %3948 = vperm.xlu1 %6549, %v3394_v45   ;;  %v3579_v43 = vand.u32 2147483647, %v3578_v58  ;;  %v3719_v11 = vsel %vm3718_vm11, %v3717_v46, 0  ;;  %v650_v52 = vshll.u32 %v9563_v56, 30  ;;  %3987 = vst.msk [vmem:[%s6891_s22 + $0x78] sm:$0xff] %vm3971_vm6, %v3889_v9  ;;  %v3606_v41 = vand.u32 2139095040, %v9569_v1 }
 0x320   : > { %v3721_v13 = vand.u32 31, %v3719_v11  ;;  %v3720_v26 = vshrl.u32 %v3719_v11, 5  ;;  %vm3598_vm13 = vcmp.eq.s32.totalorder %v9575_v49, 2  ;;  %vm3595_vm15 = vcmp.eq.s32.totalorder %v9575_v49, 0 }
 0x321   : > { %v3582_v17 = vmul.f32 %v3581_v28, %v3579_v43  ;;  %v9581_v44 = vsub.s32 %v647_v61, %v650_v52  ;;  %v3904_v48 = vpop.permute.xlu0 %3903  ;;  %v9604_v28 = vshll.u32 %v3715_v54, 8  ;;  %v3607_v43 = vshrl.u32 %v3606_v41, 23 }
 0x322   : > { %v3722_v2 = vsub.s32 32, %v3721_v13  ;;  %v3724_v59 = vshll.u32 %v11178_v35, %v3721_v13  ;;  %v3727_v19 = vshll.u32 %v11173_v29, %v3721_v13  ;;  %v3899_v39 = vpop.permute.xlu1 %3898  ;;  %v3730_v32 = vshll.u32 %v11174_v37, %v3721_v13  ;;  %3990 = vst.msk [vmem:[%s6891_s22 + $0x90] sm:$0xff] %vm3971_vm6, %v3904_v48 }
 0x323   : > { %v3583_v25 = vxor.u32 2147483648, %v3582_v17  ;;  %v653_v51 = vsub.s32 0, %v9581_v44  ;;  %3989 = vst.msk [vmem:[%s6891_s22 + $0x88] sm:$0xff] %vm3971_vm6, %v3899_v39  ;;  %v3733_v12 = vshll.u32 %v11175_v14, %v3721_v13  ;;  %v3736_v45 = vshll.u32 %v11176_v38, %v3721_v13 }
 0x324   : > { %v3725_v27 = vshrl.u32 %v11173_v29, %v3722_v2  ;;  %v3728_v60 = vshrl.u32 %v11174_v37, %v3722_v2  ;;  %v3731_v61 = vshrl.u32 %v11175_v14, %v3722_v2  ;;  %v3723_v10 = vshrl.u32 %v11178_v35, %v3722_v2 }
 0x325   : > { %v3584_v15 = vsel %vm3501_vm5, %v3583_v25, %v3582_v17  ;;  %v6127_v30 = vmin.u32 %v653_v51, %v9581_v44  ;;  %v3734_v16 = vshrl.u32 %v11176_v38, %v3722_v2  ;;  %v3914_v46 = vpop.permute.xlu0 %3913  ;;  %v3737_v36 = vshrl.u32 %v11177_v62, %v3722_v2 }
 0x326   : > { %v3587_v40 = vsel %vm9496_vm4, %v9245_v53, %v3584_v15  ;;  %v3726_v57 = vor.u32 %v3725_v27, %v3724_v59  ;;  %v3729_v50 = vor.u32 %v3728_v60, %v3727_v19  ;;  %v3909_v18 = vpop.permute.xlu1 %3908  ;;  %v3732_v58 = vor.u32 %v3731_v61, %v3730_v32  ;;  %3992 = vst.msk [vmem:[%s6891_s22 + $0xa0] sm:$0xff] %vm3971_vm6, %v3914_v46 }
 0x327   : > { %6662 = vcosq.f32 %v3587_v40  ;;  %v655_v47 = vclz %v6127_v30  ;;  %3991 = vst.msk [vmem:[%s6891_s22 + $0x98] sm:$0xff] %vm3971_vm6, %v3909_v18  ;;  %v3735_v33 = vor.u32 %v3734_v16, %v3733_v12  ;;  %vm3739_vm0 = vcmp.lt.s32.totalorder %v3720_v26, 1 }
 0x328   : > { %6664 = vsinq.f32 %v3587_v40  ;;  %vm3740_vm14 = vcmp.lt.s32.totalorder %v3720_v26, 2  ;;  %vm3741_vm1 = vcmp.lt.s32.totalorder %v3720_v26, 3  ;;  %v3738_v11 = vor.u32 %v3737_v36, %v3736_v45 }
 0x329   : > { %v6128_v63 = vadd.s32 4294967294, %v655_v47  ;;  %vm3742_vm3 = vcmp.lt.s32.totalorder %v3720_v26, 4  ;;  %v3743_v0 = vsel %vm3739_vm0, %v3723_v10, %v3726_v57  ;;  %v3747_v9 = vsel %vm3739_vm0, %v3726_v57, %v3729_v50  ;;  %v3924_v52 = vpop.permute.xlu0 %3923 }
 0x32a   : > { %v3919_v17 = vpop.permute.xlu1 %3918  ;;  %vm3591_vm2 = vweird.f32 %v9245_v53  ;;  %vm589_vm4 = vcmp.lt.s32.totalorder %v9342_v55, 0  ;;  %v3744_v13 = vsel %vm3742_vm3, %v3732_v58, 2102212464  ;;  %v3748_v2 = vsel %vm3742_vm3, %v3735_v33, 920167782  ;;  %3994 = vst.msk [vmem:[%s6891_s22 + $0xb0] sm:$0xff] %vm3971_vm6, %v3924_v52 }
 0x32b   : > { %vm6129_vm5 = vcmp.lt.s32.totalorder %v6128_v63, 0  ;;  %v3751_v25 = vsel %vm3739_vm0, %v3729_v50, %v3732_v58  ;;  %3993 = vst.msk [vmem:[%s6891_s22 + $0xa8] sm:$0xff] %vm3971_vm6, %v3919_v17  ;;  %v3745_v59 = vsel %vm3741_vm1, %v3729_v50, %v3744_v13  ;;  %v3749_v19 = vsel %vm3741_vm1, %v3732_v58, %v3748_v2 }
 0x32c   : > { %v658_v54 = vsel %vm6129_vm5, 0, %v6128_v63  ;;  %v3752_v48 = vsel %vm3742_vm3, %v3738_v11, 1326507024  ;;  %v3603_v32 = vand.u32 2147483647, %v9569_v1  ;;  %v673_v41 = vsub.s32 4, %v9563_v56 }
 0x32d   : > { %v659_v39 = vsub.s32 32, %v658_v54  ;;  %v660_v51 = vshll.u32 %v9581_v44, %v658_v54  ;;  %v663_v27 = vsub.s32 4294967266, %v658_v54  ;;  %v3750_v15 = vsel %vm3740_vm14, %v3747_v9, %v3749_v19  ;;  %v3934_v12 = vpop.permute.xlu0 %3933 }
 0x32e   : > { %v3753_v60 = vsel %vm3741_vm1, %v3735_v33, %v3752_v48  ;;  %v6242_v61 = vadd.s32 4294967169, %v3607_v43  ;;  %v3746_v10 = vsel %vm3740_vm14, %v3743_v0, %v3745_v59  ;;  %3996 = vst.msk [vmem:[%s6891_s22 + $0xc0] sm:$0xff] %vm3971_vm6, %v3934_v12  ;;  %vm3594_vm8 = vcmp.lt.s32.totalorder %v9575_v49, 2 }
 0x32f   : > { %v661_v40 = vshrl.u32 %v9579_v42, %v659_v39  ;;  %v664_v30 = vadd.s32 127, %v663_v27  ;;  %v3754_v57 = vsel %vm3740_vm14, %v3751_v25, %v3753_v60  ;;  %v3762_v36 = vmul.u32 %v9604_v28, %v3746_v10 }
 0x330   : > { %v9636_v50 = vmul.u32.u64.low %v9604_v28, %v3754_v57  ;;  %v9637_v16 = vmul.u32.u64.high %v9604_v28, %v3754_v57, %v9636_v50  ;;  %v9640_v46 = vmul.u32.u64.low %v9604_v28, %v3750_v15  ;;  %v9641_v18 = vmul.u32.u64.high %v9604_v28, %v3750_v15, %v9640_v46 }
 0x331   : > { %v6663_v44 = vpop.eup %6662  ;;  %v662_v42 = vor.u32 %v661_v40, %v660_v51  ;;  %v665_v33 = vshll.u32 %v664_v30, 23  ;;  %v3613_v45 = vadd.s32 1, %v6242_v61  ;;  %v3610_v43 = vand.u32 8388607, %v3603_v32 }
 0x332   : > { %v6665_v47 = vpop.eup %6664  ;;  %v3599_v58 = vxor.u32 2147483648, %v6663_v44  ;;  %v674_v52 = vsel %vm589_vm4, %v673_v41, %v9563_v56  ;;  %vm3764_vm7 = vc.u32 %v9637_v16, %v9640_v46  ;;  %v3765_v28 = vadd.s32 1, %v9641_v18 }
 0x333   : > { %v3596_v26 = vxor.u32 2147483648, %v6665_v47  ;;  %v666_v11 = vor.u32 4788187, %v665_v33  ;;  %v669_v0 = vcvt.s32.f32 %v662_v42  ;;  %vm3614_vm9 = vcmp.gt.s32.totalorder %v3613_v45, 0 }
 0x334   : > { %v3600_v63 = vsel %vm3598_vm13, %v3599_v58, %v6665_v47  ;;  %v3615_v2 = vsel %vm3614_vm9, %v3613_v45, 0  ;;  %vm9662_vm12 = vcmp.le.f32.partialorder %v587_v3, 0.7853982  ;;  %v3766_v56 = vsel %vm3764_vm7, %v3765_v28, %v9641_v18 }
 0x335   : > { %v3597_v9 = vsel %vm3595_vm15, %v6663_v44, %v3596_v26  ;;  %v667_v13 = vand.u32 2147483647, %v666_v11  ;;  %v3617_v54 = vand.u32 31, %v3615_v2  ;;  %v676_v19 = vsel %vm9662_vm12, 0, %v674_v52 }
 0x336   : > { %v3601_v17 = vsel %vm3594_vm8, %v3597_v9, %v3600_v63  ;;  %v3767_v48 = vadd.s32 %v3766_v56, %v3762_v36  ;;  %v3611_v39 = vor.u32 8388608, %v3610_v43  ;;  %v3616_v27 = vshrl.u32 %v3615_v2, 5 }
 0x337   : > { %v3602_v25 = vsel %vm3591_vm2, nan, %v3601_v17  ;;  %v670_v59 = vmul.f32 %v669_v0, %v667_v13  ;;  %v3929_v51 = vpop.permute.xlu1 %3928  ;;  %v3618_v53 = vsub.s32 32, %v3617_v54  ;;  %v3620_v41 = vshll.u32 %v11178_v35, %v3617_v54 }
 0x338   : > { %3958 = vperm.xlu1 %6549, %v3602_v25   ;;  %v3623_v3 = vshll.u32 %v11173_v29, %v3617_v54  ;;  %3995 = vst.msk [vmem:[%s6891_s22 + $0xb8] sm:$0xff] %vm3971_vm6, %v3929_v51  ;;  %v3768_v60 = vadd.s32 536870912, %v3767_v48  ;;  %v3626_v61 = vshll.u32 %v11174_v37, %v3617_v54  ;;  %v3629_v12 = vshll.u32 %v11175_v14, %v3617_v54 }
 0x339   : > { %v671_v15 = vxor.u32 2147483648, %v670_v59  ;;  %v3621_v40 = vshrl.u32 %v11173_v29, %v3618_v53  ;;  %v3624_v30 = vshrl.u32 %v11174_v37, %v3618_v53  ;;  %v3627_v10 = vshrl.u32 %v11175_v14, %v3618_v53 }
 0x33a   : > { %v3632_v57 = vshll.u32 %v11176_v38, %v3617_v54  ;;  %v9681_v50 = vshrl.u32 %v3768_v60, 30  ;;  %v3630_v18 = vshrl.u32 %v11176_v38, %v3618_v53  ;;  %v3633_v47 = vshrl.u32 %v11177_v62, %v3618_v53 }
 0x33b   : > { %v672_v44 = vsel %vm589_vm4, %v671_v15, %v670_v59  ;;  %v680_v29 = vadd.s32 3, %v676_v19  ;;  %v3622_v42 = vor.u32 %v3621_v40, %v3620_v41  ;;  %v3625_v37 = vor.u32 %v3624_v30, %v3623_v3 }
 0x33c   : > { %v675_v58 = vsel %vm9662_vm12, %v9342_v55, %v672_v44  ;;  %v3770_v14 = vshll.u32 %v9681_v50, 30  ;;  %v3619_v33 = vshrl.u32 %v11178_v35, %v3618_v53  ;;  %v3631_v45 = vor.u32 %v3630_v18, %v3629_v12 }
 0x33d   : > { %6666 = vcosq.f32 %v675_v58  ;;  %v3628_v26 = vor.u32 %v3627_v10, %v3626_v61  ;;  %v3634_v36 = vor.u32 %v3633_v47, %v3632_v57  ;;  %vm3635_vm10 = vcmp.lt.s32.totalorder %v3616_v27, 1 }
 0x33e   : > { %6668 = vsinq.f32 %v675_v58  ;;  %v3771_v38 = vsub.s32 %v3767_v48, %v3770_v14  ;;  %vm3637_vm11 = vcmp.lt.s32.totalorder %v3616_v27, 3  ;;  %vm3638_vm13 = vcmp.lt.s32.totalorder %v3616_v27, 4 }
 0x33f   : > { %vm3636_vm15 = vcmp.lt.s32.totalorder %v3616_v27, 2  ;;  %v3640_v62 = vsel %vm3638_vm13, %v3628_v26, 2102212464  ;;  %v3643_v43 = vsel %vm3635_vm10, %v3622_v42, %v3625_v37  ;;  %v3651_v63 = vshll.u32 %v3611_v39, 8 }
 0x340   : > { %v681_v11 = vand.u32 3, %v680_v29  ;;  %v3773_v0 = vsub.s32 0, %v3771_v38  ;;  %v3644_v9 = vsel %vm3638_vm13, %v3631_v45, 920167782  ;;  %v3639_v52 = vsel %vm3635_vm10, %v3619_v33, %v3622_v42 }
 0x341   : > { %v3645_v28 = vsel %vm3637_vm11, %v3628_v26, %v3644_v9  ;;  %v3647_v17 = vsel %vm3635_vm10, %v3625_v37, %v3628_v26  ;;  %v3648_v35 = vsel %vm3638_vm13, %v3634_v36, 1326507024  ;;  %v3641_v2 = vsel %vm3637_vm11, %v3625_v37, %v3640_v62 }
 0x342   : > { %v6247_v13 = vmin.u32 %v3773_v0, %v3771_v38  ;;  %v3646_v25 = vsel %vm3636_vm15, %v3643_v43, %v3645_v28  ;;  %v3649_v49 = vsel %vm3637_vm11, %v3631_v45, %v3648_v35  ;;  %v3642_v48 = vsel %vm3636_vm15, %v3639_v52, %v3641_v2 }
 0x343   : > { %v3650_v56 = vsel %vm3636_vm15, %v3647_v17, %v3649_v49  ;;  %v9695_v54 = vmul.u32.u64.low %v3651_v63, %v3646_v25  ;;  %v9696_v59 = vmul.u32.u64.high %v3651_v63, %v3646_v25, %v9695_v54  ;;  %vm686_vm0 = vcmp.eq.s32.totalorder %v681_v11, 2 }
 0x344   : > { %v3775_v19 = vclz %v6247_v13  ;;  %v9699_v39 = vmul.u32.u64.low %v3651_v63, %v3650_v56  ;;  %v9700_v51 = vmul.u32.u64.high %v3651_v63, %v3650_v56, %v9699_v39  ;;  %vm682_vm14 = vcmp.lt.s32.totalorder %v681_v11, 2 }
 0x345   : > { %vm683_vm1 = vcmp.eq.s32.totalorder %v681_v11, 0  ;;  %v3661_v60 = vadd.s32 1, %v9696_v59  ;;  %v3763_v12 = vadd.s32 %v9640_v46, %v9637_v16  ;;  %v3658_v40 = vmul.u32 %v3651_v63, %v3642_v48 }
 0x346   : > { %v6248_v41 = vadd.s32 4294967294, %v3775_v19  ;;  %vm679_vm2 = vweird.f32 %v9342_v55  ;;  %vm3660_vm4 = vc.u32 %v9700_v51, %v9695_v54  ;;  %vm3709_vm5 = vcmp.lt.s32.totalorder %v9485_v31, 0 }
 0x347   : > { %v6667_v53 = vpop.eup %6666  ;;  %v3662_v58 = vsel %vm3660_vm4, %v3661_v60, %v9696_v59  ;;  %vm3708_vm8 = vcmp.le.f32.partialorder %v3707_v34, 0.7853982  ;;  %v3659_v56 = vadd.s32 %v9695_v54, %v9700_v51  ;;  %vm3799_vm11 = vweird.f32 %v9485_v31 }
 0x348   : > { %v6669_v3 = vpop.eup %6668  ;;  %v687_v15 = vxor.u32 2147483648, %v6667_v53  ;;  %vm6249_vm3 = vcmp.lt.s32.totalorder %v6248_v41, 0  ;;  %v3663_v46 = vadd.s32 %v3662_v58, %v3658_v40  ;;  %vm3605_vm13 = vcmp.lt.s32.totalorder %v9569_v1, 0 }
 0x349   : > { %v684_v61 = vxor.u32 2147483648, %v6669_v3  ;;  %v3778_v30 = vsel %vm6249_vm3, 0, %v6248_v41  ;;  %vm3604_vm15 = vcmp.le.f32.partialorder %v3603_v32, 0.7853982  ;;  %vm3695_vm3 = vweird.f32 %v9569_v1 }
 0x34a   : > { %v688_v27 = vsel %vm686_vm0, %v687_v15, %v6669_v3  ;;  %v3779_v57 = vsub.s32 32, %v3778_v30  ;;  %v3780_v44 = vshll.u32 %v3771_v38, %v3778_v30  ;;  %v3783_v18 = vsub.s32 4294967266, %v3778_v30 }
 0x34b   : > { %v685_v10 = vsel %vm683_vm1, %v6667_v53, %v684_v61  ;;  %v3664_v14 = vadd.s32 536870912, %v3663_v46  ;;  %v3793_v38 = vsub.s32 4, %v9681_v50 }
 0x34c   : > { %v689_v47 = vsel %vm682_vm14, %v685_v10, %v688_v27  ;;  %v3781_v42 = vshrl.u32 %v3763_v12, %v3779_v57  ;;  %v3784_v16 = vadd.s32 127, %v3783_v18 }
 0x34d   : > { %v690_v29 = vsel %vm679_vm2, nan, %v689_v47  ;;  %v3665_v26 = vshrl.u32 %v3664_v14, 30  ;;  %v3794_v9 = vsel %vm3709_vm5, %v3793_v38, %v9681_v50 }
 0x34e   : > { %3818 = vperm.xlu0 %6548, %v690_v29   ;;  %v3782_v37 = vor.u32 %v3781_v42, %v3780_v44  ;;  %v3785_v55 = vshll.u32 %v3784_v16, 23  ;;  %v3796_v13 = vsel %vm3708_vm8, 0, %v3794_v9 }
 0x34f   : > { %v3666_v62 = vshll.u32 %v3665_v26, 30  ;;  %v3800_v25 = vadd.s32 3, %v3796_v13  ;;  %v3689_v10 = vsub.s32 4, %v3665_v26 }
 0x350   : > { %v3786_v33 = vor.u32 4788187, %v3785_v55  ;;  %v3789_v45 = vcvt.s32.f32 %v3782_v37 }
 0x351   : > { %v3667_v11 = vsub.s32 %v3663_v46, %v3666_v62  ;;  %v3801_v19 = vand.u32 3, %v3800_v25  ;;  %v3690_v29 = vsel %vm3605_vm13, %v3689_v10, %v3665_v26 }
 0x352   : > { %v3787_v36 = vand.u32 2147483647, %v3786_v33  ;;  %v3692_v16 = vsel %vm3604_vm15, 0, %v3690_v29 }
 0x353   : > { %v3944_v43 = vpop.permute.xlu0 %3943  ;;  %v3669_v52 = vsub.s32 0, %v3667_v11  ;;  %vm3806_vm7 = vcmp.eq.s32.totalorder %v3801_v19, 2  ;;  %vm3803_vm12 = vcmp.eq.s32.totalorder %v3801_v19, 0  ;;  %vm3802_vm10 = vcmp.lt.s32.totalorder %v3801_v19, 2 }
 0x354   : > { %3998 = vst.msk [vmem:[%s6891_s22 + $0xd0] sm:$0xff] %vm3971_vm6, %v3944_v43  ;;  %v3790_v63 = vmul.f32 %v3789_v45, %v3787_v36  ;;  %v3696_v46 = vadd.s32 3, %v3692_v16 }
 0x355   : > { %v6243_v17 = vmin.u32 %v3669_v52, %v3667_v11 }
 0x356   : > { %v3791_v0 = vxor.u32 2147483648, %v3790_v63  ;;  %v3697_v37 = vand.u32 3, %v3696_v46 }
 0x357   : > { %v3671_v2 = vclz %v6243_v17 }
 0x358   : > { %v3792_v28 = vsel %vm3709_vm5, %v3791_v0, %v3790_v63  ;;  %vm3702_vm0 = vcmp.eq.s32.totalorder %v3697_v37, 2  ;;  %vm3699_vm14 = vcmp.eq.s32.totalorder %v3697_v37, 0  ;;  %vm3698_vm1 = vcmp.lt.s32.totalorder %v3697_v37, 2 }
 0x359   : > { %v3795_v35 = vsel %vm3708_vm8, %v9485_v31, %v3792_v28  ;;  %v6244_v49 = vadd.s32 4294967294, %v3671_v2 }
 0x35a   : > { %6670 = vcosq.f32 %v3795_v35 }
 0x35b   : > { %6672 = vsinq.f32 %v3795_v35  ;;  %vm6245_vm9 = vcmp.lt.s32.totalorder %v6244_v49, 0 }
 0x35c   : > { %v3674_v59 = vsel %vm6245_vm9, 0, %v6244_v49 }
 0x35d   : > { %v3675_v34 = vsub.s32 32, %v3674_v59  ;;  %v3676_v48 = vshll.u32 %v3667_v11, %v3674_v59  ;;  %v3679_v39 = vsub.s32 4294967266, %v3674_v59 }
 0x35f   : > { %v3677_v50 = vshrl.u32 %v3659_v56, %v3675_v34  ;;  %v3680_v53 = vadd.s32 127, %v3679_v39 }
 0x361   : > { %v3678_v3 = vor.u32 %v3677_v50, %v3676_v48  ;;  %v3681_v15 = vshll.u32 %v3680_v53, 23 }
 0x363   : > { %v3682_v40 = vor.u32 4788187, %v3681_v15  ;;  %v3685_v54 = vcvt.s32.f32 %v3678_v3 }
 0x364   : > { %v6671_v41 = vpop.eup %6670 }
 0x365   : > { %v6673_v60 = vpop.eup %6672  ;;  %v3807_v61 = vxor.u32 2147483648, %v6671_v41  ;;  %v3683_v30 = vand.u32 2147483647, %v3682_v40 }
 0x366   : > { %v3804_v12 = vxor.u32 2147483648, %v6673_v60 }
 0x367   : > { %v3808_v51 = vsel %vm3806_vm7, %v3807_v61, %v6673_v60  ;;  %v3686_v47 = vmul.f32 %v3685_v54, %v3683_v30 }
 0x368   : > { %v3805_v27 = vsel %vm3803_vm12, %v6671_v41, %v3804_v12 }
 0x369   : > { %v3809_v57 = vsel %vm3802_vm10, %v3805_v27, %v3808_v51  ;;  %v3687_v58 = vxor.u32 2147483648, %v3686_v47 }
 0x36a   : > { %v3939_v44 = vpop.permute.xlu1 %3938  ;;  %v3810_v18 = vsel %vm3799_vm11, nan, %v3809_v57 }
 0x36b   : > { %3997 = vst.msk [vmem:[%s6891_s22 + $0xc8] sm:$0xff] %vm3971_vm6, %v3939_v44  ;;  %3968 = vperm.xlu1 %6549, %v3810_v18   ;;  %v3688_v42 = vsel %vm3605_vm13, %v3687_v58, %v3686_v47 }
 0x36c   : > { %v3691_v31 = vsel %vm3604_vm15, %v9569_v1, %v3688_v42 }
 0x36d   : > { %6674 = vcosq.f32 %v3691_v31 }
 0x36e   : > { %6676 = vsinq.f32 %v3691_v31 }
 0x377   : > { %v6675_v55 = vpop.eup %6674 }
 0x378   : > { %v6677_v14 = vpop.eup %6676  ;;  %v3703_v33 = vxor.u32 2147483648, %v6675_v55 }
 0x379   : > { %v3700_v32 = vxor.u32 2147483648, %v6677_v14 }
 0x37a   : > { %v3704_v45 = vsel %vm3702_vm0, %v3703_v33, %v6677_v14 }
 0x37b   : > { %v3701_v26 = vsel %vm3699_vm14, %v6675_v55, %v3700_v32 }
 0x37c   : > { %v3705_v36 = vsel %vm3698_vm1, %v3701_v26, %v3704_v45 }
 0x37d   : > { %v3706_v38 = vsel %vm3695_vm3, nan, %v3705_v36 }
 0x37e   : > { %3963 = vperm.xlu0 %6548, %v3706_v38  }
 0x387   : > { %v3954_v62 = vpop.permute.xlu0 %3953 }
 0x388   : > { %4000 = vst.msk [vmem:[%s6891_s22 + $0xe0] sm:$0xff] %vm3971_vm6, %v3954_v62 }
 0x39e   : > { %v3949_v43 = vpop.permute.xlu1 %3948 }
 0x39f   : > { %3999 = vst.msk [vmem:[%s6891_s22 + $0xd8] sm:$0xff] %vm3971_vm6, %v3949_v43 }
 0x3b7   : > { %v3959_v63 = vpop.permute.xlu1 %3958 }
 0x3b8   : > { %4001 = vst.msk [vmem:[%s6891_s22 + $0xe8] sm:$0xff] %vm3971_vm6, %v3959_v63 }
 0x3cd   : > { %v3819_v11 = vpop.permute.xlu0 %3818 }
 0x3ce   : > { %3973 = vst.msk [vmem:[%s6891_s22 + $0x8] sm:$0xff] %vm3971_vm6, %v3819_v11 }
 0x3ea   : > { %v3969_v0 = vpop.permute.xlu1 %3968 }
 0x3eb   : > { %4003 = vst.msk [vmem:[%s6891_s22 + $0xf8] sm:$0xff] %vm3971_vm6, %v3969_v0 }
 0x3fd   : > { %v3964_v1 = vpop.permute.xlu0 %3963 }
 0x3fe   : > { %4002 = vst.msk [vmem:[%s6891_s22 + $0xf0] sm:$0xff] %vm3971_vm6, %v3964_v1 }
 0x3ff PF: > { %p6250_p6 = scmp.ne.s32.totalorder %s6758_s9, 1 }
 0x400   : > { %v6775_v9 = vmov (!%p6250_p6), 0   ;;  %v11258_v52 = vld [vmem:[#allocation4_spill] sm:$0xff] (!%p6250_p6)  ;;  %v11259_v28 = vld [vmem:[#allocation2_spill] sm:$0xff] (!%p6250_p6)  ;;  %v11260_v17 = vld [vmem:[#allocation5_spill] sm:$0xff] (!%p6250_p6) }
 0x401   : > { %4007 = sbr.rel (%p6250_p6) target bundleno = 1627 (0x65b), region = 36  ;;  %6679 = vset.pattern.permute.xlu1 (!%p6250_p6), %v6775_v9  ;;  %6678 = vset.pattern.permute.xlu0 (!%p6250_p6), %v6775_v9  ;;  %v11261_v35 = vld [vmem:[#allocation3_spill] sm:$0xff] (!%p6250_p6)  ;;  %v11262_v13 = vld [vmem:[#allocation6_spill] sm:$0xff] (!%p6250_p6)  ;;  %v11263_v2 = vld [vmem:[#allocation8_spill] sm:$0xff] (!%p6250_p6) }
 0x402   : > { %4033 = vperm.xlu1 (!%p6250_p6), %6679, %v11258_v52   ;;  %4015 = vperm.xlu0 (!%p6250_p6), %6678, %v11259_v28   ;;  %v11264_v25 = vld [vmem:[#allocation7_spill] sm:$0xff] (!%p6250_p6)  ;;  %v11265_v49 = vld [vmem:[#allocation10_spill] sm:$0xff] (!%p6250_p6)  ;;  %v11266_v56 = vld [vmem:[#allocation9_spill] sm:$0xff] (!%p6250_p6) }
 0x403   : > { %v11267_v59 = vld [vmem:[#allocation12_spill] sm:$0xff] (!%p6250_p6)  ;;  %v11272_v19 = vld [vmem:[#allocation15_spill] sm:$0xff] (!%p6250_p6)  ;;  %v11275_v48 = vld [vmem:[#allocation18_spill] sm:$0xff] (!%p6250_p6) }
 0x404   : > { %v11274_v34 = vld [vmem:[#allocation19_spill] sm:$0xff] (!%p6250_p6)  ;;  %v11276_v39 = vld [vmem:[#allocation21_spill] sm:$0xff] (!%p6250_p6)  ;;  %v11277_v50 = vld [vmem:[#allocation20_spill] sm:$0xff] (!%p6250_p6) }
 0x405   : > { %v11278_v53 = vld [vmem:[#allocation23_spill] sm:$0xff] (!%p6250_p6) }
 0x406   : > { %4042 = vperm.xlu1 (!%p6250_p6), %6679, %v11260_v17   ;;  %4024 = vperm.xlu0 (!%p6250_p6), %6678, %v11261_v35  }
 0x40a   : > { %4060 = vperm.xlu1 %6679, %v6846_v5   ;;  %4051 = vperm.xlu0 %6678, %v6841_v4   ;;  %v11268_v5 = vld [vmem:[#allocation11_spill] sm:$0xff]  ;;  %v11269_v4 = vld [vmem:[#allocation14_spill] sm:$0xff] }
 0x40e   : > { %4078 = vperm.xlu1 %6679, %v6856_v7   ;;  %4069 = vperm.xlu0 %6678, %v6851_v6   ;;  %v11270_v7 = vld [vmem:[#allocation13_spill] sm:$0xff]  ;;  %v11271_v6 = vld [vmem:[#allocation16_spill] sm:$0xff] }
 0x412   : > { %4096 = vperm.xlu1 %6679, %v11262_v13   ;;  %4087 = vperm.xlu0 %6678, %v6861_v8   ;;  %v11273_v8 = vld [vmem:[#allocation17_spill] sm:$0xff] }
 0x416   : > { %4114 = vperm.xlu1 %6679, %v11263_v2   ;;  %4105 = vperm.xlu0 %6678, %v11264_v25  }
 0x41a   : > { %4132 = vperm.xlu1 %6679, %v11265_v49   ;;  %4123 = vperm.xlu0 %6678, %v11266_v56  }
 0x41e   : > { %4150 = vperm.xlu1 %6679, %v11267_v59   ;;  %4141 = vperm.xlu0 %6678, %v11268_v5  }
 0x422   : > { %4184 = vperm.xlu1 %6679, %v11269_v4   ;;  %4175 = vperm.xlu0 %6678, %v11270_v7  }
 0x426   : > { %4202 = vperm.xlu1 %6679, %v11271_v6   ;;  %4193 = vperm.xlu0 %6678, %v11272_v19  }
 0x42a   : > { %4220 = vperm.xlu1 %6679, %v6931_v21   ;;  %4211 = vperm.xlu0 %6678, %v6926_v20   ;;  %v11279_v21 = vld [vmem:[#allocation22_spill] sm:$0xff]  ;;  %v4008_v20 = vlaneseq }
 0x42c   : > { %v4019_v15 = vshrl.u32 %v4008_v20, 7 }
 0x42e   : > { %4238 = vperm.xlu1 %6679, %v6941_v23   ;;  %4229 = vperm.xlu0 %6678, %v6936_v22   ;;  %v4009_v23 = vand.u32 127, %v4008_v20  ;;  %v9773_v12 = vsub.s32 0, %v4019_v15 }
 0x430   : > { %v4010_v3 = vcvt.s32.f32 %v4009_v23 }
 0x432   : > { %4256 = vperm.xlu1 %6679, %v11273_v8   ;;  %4247 = vperm.xlu0 %6678, %v6946_v24   ;;  %v4011_v61 = vadd.f32 1.0, %v4010_v3 }
 0x434   : > { %v9775_v51 = vmul.f32 0.39269906, %v4011_v61 }
 0x436   : > { %4274 = vperm.xlu1 %6679, %v11274_v34   ;;  %4265 = vperm.xlu0 %6678, %v11275_v48  }
 0x43a   : > { %4292 = vperm.xlu1 %6679, %v11276_v39   ;;  %4283 = vperm.xlu0 %6678, %v11277_v50  }
 0x43e   : > { %4310 = vperm.xlu1 %6679, %v11278_v53   ;;  %4301 = vperm.xlu0 %6678, %v11279_v21  }
 0x481   : > { %v9771_v41 = vpop.permute.xlu1 %4033  ;;  %v4016_v22 = vpop.permute.xlu0 %4015 }
 0x482   : > { %v4021_v28 = vrot.slane %v4016_v22, %v9773_v12 }
 0x484   : > { %v4157_v59 = vmul.f32 %v4021_v28, %v9775_v51  ;;  %v6777_v28 = vmov 2475754826  }
 0x485   : > { %v4043_v24 = vpop.permute.xlu1 %4042  ;;  %v4025_v60 = vpop.permute.xlu0 %4024 }
 0x486   : > { %v4030_v17 = vrot.slane %v4025_v60, %v9773_v12  ;;  %v4048_v6 = vrot.slane %v4043_v24, %v9773_v12 }
 0x488   : > { %v4158_v5 = vmul.f32 %v4030_v17, %v9775_v51  ;;  %v4160_v21 = vmul.f32 %v4048_v6, %v9775_v51 }
 0x489   : > { %v4061_v40 = vpop.permute.xlu1 %4060  ;;  %v4052_v54 = vpop.permute.xlu0 %4051 }
 0x48a   : > { %v4066_v27 = vrot.slane %v4061_v40, %v9773_v12  ;;  %v4057_v30 = vrot.slane %v4052_v54, %v9773_v12 }
 0x48c   : > { %v9780_v10 = vmul.f32 %v4066_v27, %v9775_v51  ;;  %v9783_v57 = vmul.f32 %v4057_v30, %v9775_v51 }
 0x48d   : > { %v4079_v44 = vpop.permute.xlu1 %4078  ;;  %v4070_v18 = vpop.permute.xlu0 %4069 }
 0x48e   : > { %v4084_v47 = vrot.slane %v4079_v44, %v9773_v12  ;;  %v4075_v58 = vrot.slane %v4070_v18, %v9773_v12 }
 0x490   : > { %v9788_v29 = vmul.f32 %v4084_v47, %v9775_v51  ;;  %v9791_v42 = vmul.f32 %v4075_v58, %v9775_v51  ;;  %v4039_v47 = vrot.slane %v9771_v41, %v9773_v12 }
 0x491   : > { %v4097_v31 = vpop.permute.xlu1 %4096  ;;  %v4088_v16 = vpop.permute.xlu0 %4087 }
 0x492   : > { %v4102_v46 = vrot.slane %v4097_v31, %v9773_v12  ;;  %v4093_v37 = vrot.slane %v4088_v16, %v9773_v12 }
 0x494   : > { %v9796_v55 = vmul.f32 %v4102_v46, %v9775_v51  ;;  %v9799_v14 = vmul.f32 %v4093_v37, %v9775_v51 }
 0x495   : > { %v4115_v33 = vpop.permute.xlu1 %4114  ;;  %v4106_v32 = vpop.permute.xlu0 %4105 }
 0x496   : > { %v4120_v45 = vrot.slane %v4115_v33, %v9773_v12  ;;  %v4111_v26 = vrot.slane %v4106_v32, %v9773_v12 }
 0x498   : > { %v9804_v36 = vmul.f32 %v4120_v45, %v9775_v51  ;;  %v9807_v38 = vmul.f32 %v4111_v26, %v9775_v51 }
 0x499   : > { %v4133_v62 = vpop.permute.xlu1 %4132  ;;  %v4124_v43 = vpop.permute.xlu0 %4123 }
 0x49a   : > { %v4138_v63 = vrot.slane %v4133_v62, %v9773_v12  ;;  %v4129_v11 = vrot.slane %v4124_v43, %v9773_v12 }
 0x49c   : > { %v9812_v0 = vmul.f32 %v4138_v63, %v9775_v51  ;;  %v9815_v1 = vmul.f32 %v4129_v11, %v9775_v51  ;;  %v6776_v63 = vmov 683565275  }
 0x49d   : > { %v4151_v9 = vpop.permute.xlu1 %4150  ;;  %v4142_v52 = vpop.permute.xlu0 %4141 }
 0x49e   : > { %v4156_v35 = vrot.slane %v4151_v9, %v9773_v12  ;;  %v4147_v13 = vrot.slane %v4142_v52, %v9773_v12 }
 0x4a0   : > { %v9822_v2 = vmul.f32 %v4156_v35, %v9775_v51  ;;  %v9825_v25 = vmul.f32 %v4147_v13, %v9775_v51  ;;  %v6778_v35 = vmov 2131351028  }
 0x4a1   : > { %v4185_v49 = vpop.permute.xlu1 %4184  ;;  %v4176_v56 = vpop.permute.xlu0 %4175 }
 0x4a2   : > { %v4190_v4 = vrot.slane %v4185_v49, %v9773_v12  ;;  %v4181_v7 = vrot.slane %v4176_v56, %v9773_v12  ;;  %v6779_v49 = vmov 2102212464  }
 0x4a4   : > { %v9832_v19 = vadd.f32 %v4190_v4, %v4158_v5  ;;  %v9834_v8 = vadd.f32 %v4181_v7, %v4157_v59  ;;  %v6780_v59 = vmov 920167782  }
 0x4a5   : > { %v4203_v34 = vpop.permute.xlu1 %4202  ;;  %v9849_v18 = vpop.permute.xlu0 %4193 }
 0x4a6   : > { %v4437_v48 = vand.u32 2147483647, %v9832_v19  ;;  %v4440_v39 = vand.u32 2139095040, %v9832_v19  ;;  %v4333_v50 = vand.u32 2147483647, %v9834_v8  ;;  %v4336_v53 = vand.u32 2139095040, %v9834_v8 }
 0x4a7   : > { %v4208_v23 = vrot.slane %v4203_v34, %v9773_v12  ;;  %v4199_v33 = vrot.slane %v9849_v18, %v9773_v12  ;;  %vm4439_vm14 = vcmp.lt.s32.totalorder %v9832_v19, 0  ;;  %vm4335_vm1 = vcmp.lt.s32.totalorder %v9834_v8, 0 }
 0x4a8   : > { %v4441_v20 = vshrl.u32 %v4440_v39, 23  ;;  %v4444_v22 = vand.u32 8388607, %v4437_v48  ;;  %v4337_v3 = vshrl.u32 %v4336_v53, 23  ;;  %v4340_v15 = vand.u32 8388607, %v4333_v50 }
 0x4a9   : > { %v9846_v60 = vadd.f32 %v4208_v23, %v4160_v21  ;;  %v6781_v53 = vmov 1326507024  }
 0x4aa   : > { %v6255_v24 = vadd.s32 4294967169, %v4441_v20  ;;  %v6251_v61 = vadd.s32 4294967169, %v4337_v3  ;;  %v4445_v54 = vor.u32 8388608, %v4444_v22  ;;  %v4341_v27 = vor.u32 8388608, %v4340_v15 }
 0x4ab   : > { %v4648_v44 = vand.u32 2139095040, %v9846_v60  ;;  %v4645_v62 = vand.u32 2147483647, %v9846_v60 }
 0x4ac   : > { %v4447_v40 = vadd.s32 1, %v6255_v24  ;;  %v4343_v30 = vadd.s32 1, %v6251_v61  ;;  %v9855_v32 = vshll.u32 %v4445_v54, 8  ;;  %v9859_v26 = vshll.u32 %v4341_v27, 8 }
 0x4ad   : > { %v4649_v31 = vshrl.u32 %v4648_v44, 23 }
 0x4ae   : > { %vm4448_vm6 = vcmp.gt.s32.totalorder %v4447_v40, 0  ;;  %vm4344_vm2 = vcmp.gt.s32.totalorder %v4343_v30, 0 }
 0x4af   : > { %v4449_v58 = vsel %vm4448_vm6, %v4447_v40, 0  ;;  %v4345_v37 = vsel %vm4344_vm2, %v4343_v30, 0  ;;  %v9863_v52 = vadd.s32 4294967169, %v4649_v31  ;;  %vm9977_vm2 = vcmp.le.f32.partialorder %v4437_v48, 0.7853982 }
 0x4b0   : > { %v4450_v16 = vshrl.u32 %v4449_v58, 5  ;;  %v4451_v46 = vand.u32 31, %v4449_v58  ;;  %v9857_v45 = vshrl.u32 %v4345_v37, 5  ;;  %v4347_v9 = vand.u32 31, %v4345_v37 }
 0x4b2   : > { %v4452_v43 = vsub.s32 32, %v4451_v46  ;;  %v4454_v11 = vshll.u32 %v6776_v63, %v4451_v46  ;;  %v4457_v17 = vshll.u32 %v6777_v28, %v4451_v46  ;;  %v4460_v13 = vshll.u32 %v6778_v35, %v4451_v46 }
 0x4b3   : > { %v4463_v56 = vshll.u32 %v6779_v49, %v4451_v46  ;;  %v4466_v5 = vshll.u32 %v6780_v59, %v4451_v46  ;;  %vm4469_vm4 = vcmp.lt.s32.totalorder %v4450_v16, 1  ;;  %vm4470_vm5 = vcmp.lt.s32.totalorder %v4450_v16, 2 }
 0x4b4   : > { %v4455_v4 = vshrl.u32 %v6777_v28, %v4452_v43  ;;  %v4458_v7 = vshrl.u32 %v6778_v35, %v4452_v43  ;;  %v4461_v6 = vshrl.u32 %v6779_v49, %v4452_v43  ;;  %v4453_v34 = vshrl.u32 %v6776_v63, %v4452_v43 }
 0x4b5   : > { %v4464_v39 = vshrl.u32 %v6780_v59, %v4452_v43  ;;  %v4467_v21 = vshrl.u32 %v6781_v53, %v4452_v43  ;;  %v4348_v3 = vsub.s32 32, %v4347_v9  ;;  %vm4471_vm8 = vcmp.lt.s32.totalorder %v4450_v16, 3 }
 0x4b6   : > { %v4456_v20 = vor.u32 %v4455_v4, %v4454_v11  ;;  %v4459_v23 = vor.u32 %v4458_v7, %v4457_v17  ;;  %v4462_v22 = vor.u32 %v4461_v6, %v4460_v13  ;;  %vm4472_vm9 = vcmp.lt.s32.totalorder %v4450_v16, 4 }
 0x4b7   : > { %v4465_v15 = vor.u32 %v4464_v39, %v4463_v56  ;;  %v4468_v24 = vor.u32 %v4467_v21, %v4466_v5  ;;  %v4350_v31 = vshll.u32 %v6776_v63, %v4347_v9  ;;  %v4351_v43 = vshrl.u32 %v6777_v28, %v4348_v3 }
 0x4b8   : > { %v4473_v61 = vsel %vm4469_vm4, %v4453_v34, %v4456_v20  ;;  %v4474_v40 = vsel %vm4472_vm9, %v4462_v22, 2102212464  ;;  %v4477_v54 = vsel %vm4469_vm4, %v4456_v20, %v4459_v23  ;;  %v4481_v27 = vsel %vm4469_vm4, %v4459_v23, %v4462_v22 }
 0x4b9   : > { %v4475_v30 = vsel %vm4471_vm8, %v4459_v23, %v4474_v40  ;;  %v4478_v44 = vsel %vm4472_vm9, %v4465_v15, 920167782  ;;  %v4482_v58 = vsel %vm4472_vm9, %v4468_v24, 1326507024  ;;  %v4353_v11 = vshll.u32 %v6777_v28, %v4347_v9 }
 0x4ba   : > { %v4479_v46 = vsel %vm4471_vm8, %v4462_v22, %v4478_v44  ;;  %v4483_v37 = vsel %vm4471_vm8, %v4465_v15, %v4482_v58  ;;  %v4476_v17 = vsel %vm4470_vm5, %v4473_v61, %v4475_v30  ;;  %v4354_v5 = vshrl.u32 %v6778_v35, %v4348_v3 }
 0x4bb   : > { %v4480_v13 = vsel %vm4470_vm5, %v4477_v54, %v4479_v46  ;;  %v4484_v56 = vsel %vm4470_vm5, %v4481_v27, %v4483_v37  ;;  %v4352_v39 = vor.u32 %v4351_v43, %v4350_v31  ;;  %v4356_v20 = vshll.u32 %v6778_v35, %v4347_v9 }
 0x4bc   : > { %v9886_v4 = vmul.u32.u64.low %v9855_v32, %v4484_v56  ;;  %v9887_v7 = vmul.u32.u64.high %v9855_v32, %v4484_v56, %v9886_v4  ;;  %v9890_v6 = vmul.u32.u64.low %v9855_v32, %v4480_v13  ;;  %v9891_v34 = vmul.u32.u64.high %v9855_v32, %v4480_v13, %v9890_v6 }
 0x4bd   : > { %v4355_v21 = vor.u32 %v4354_v5, %v4353_v11  ;;  %v4357_v23 = vshrl.u32 %v6779_v49, %v4348_v3  ;;  %v4349_v22 = vshrl.u32 %v6776_v63, %v4348_v3  ;;  %v4359_v16 = vshll.u32 %v6779_v49, %v4347_v9 }
 0x4be   : > { %v4360_v15 = vshrl.u32 %v6780_v59, %v4348_v3  ;;  %v4363_v24 = vshrl.u32 %v6781_v53, %v4348_v3  ;;  %v4492_v61 = vmul.u32 %v9855_v32, %v4476_v17  ;;  %v4362_v54 = vshll.u32 %v6780_v59, %v4347_v9 }
 0x4bf   : > { %v4358_v40 = vor.u32 %v4357_v23, %v4356_v20  ;;  %vm4365_vm7 = vcmp.lt.s32.totalorder %v9857_v45, 1  ;;  %vm4494_vm12 = vc.u32 %v9887_v7, %v9890_v6  ;;  %v4495_v27 = vadd.s32 1, %v9891_v34 }
 0x4c0   : > { %v4361_v30 = vor.u32 %v4360_v15, %v4359_v16  ;;  %vm4366_vm10 = vcmp.lt.s32.totalorder %v9857_v45, 2  ;;  %v4364_v44 = vor.u32 %v4363_v24, %v4362_v54  ;;  %vm4367_vm11 = vcmp.lt.s32.totalorder %v9857_v45, 3 }
 0x4c1   : > { %vm4368_vm13 = vcmp.lt.s32.totalorder %v9857_v45, 4  ;;  %v4373_v3 = vsel %vm4365_vm7, %v4352_v39, %v4355_v21  ;;  %v4496_v32 = vsel %vm4494_vm12, %v4495_v27, %v9891_v34  ;;  %v4377_v9 = vsel %vm4365_vm7, %v4355_v21, %v4358_v40 }
 0x4c2   : > { %v4370_v58 = vsel %vm4368_vm13, %v4358_v40, 2102212464  ;;  %v4374_v31 = vsel %vm4368_vm13, %v4361_v30, 920167782  ;;  %v4497_v46 = vadd.s32 %v4496_v32, %v4492_v61  ;;  %v4369_v37 = vsel %vm4365_vm7, %v4349_v22, %v4352_v39 }
 0x4c3   : > { %v4375_v43 = vsel %vm4367_vm11, %v4358_v40, %v4374_v31  ;;  %v4378_v11 = vsel %vm4368_vm13, %v4364_v44, 1326507024  ;;  %v4371_v17 = vsel %vm4367_vm11, %v4355_v21, %v4370_v58  ;;  %v4655_v5 = vadd.s32 1, %v9863_v52 }
 0x4c4   : > { %v4376_v13 = vsel %vm4366_vm10, %v4373_v3, %v4375_v43  ;;  %v4379_v56 = vsel %vm4367_vm11, %v4361_v30, %v4378_v11  ;;  %v4498_v4 = vadd.s32 536870912, %v4497_v46  ;;  %v4652_v21 = vand.u32 8388607, %v4645_v62 }
 0x4c5   : > { %v4380_v20 = vsel %vm4366_vm10, %v4377_v9, %v4379_v56  ;;  %v9914_v34 = vmul.u32.u64.low %v9859_v26, %v4376_v13  ;;  %v9915_v23 = vmul.u32.u64.high %v9859_v26, %v4376_v13, %v9914_v34  ;;  %vm4656_vm15 = vcmp.gt.s32.totalorder %v4655_v5, 0 }
 0x4c6   : > { %v9919_v39 = vmul.u32.u64.low %v9859_v26, %v4380_v20  ;;  %v9920_v22 = vmul.u32.u64.high %v9859_v26, %v4380_v20, %v9919_v39  ;;  %v4159_v52 = vmul.f32 %v4039_v47, %v9775_v51  ;;  %v4499_v16 = vshrl.u32 %v4498_v4, 30  ;;  %v9939_v47 = vpop.permute.xlu1 %4220 }
 0x4c7   : > { %v4372_v15 = vsel %vm4366_vm10, %v4369_v37, %v4371_v17  ;;  %v4657_v24 = vsel %vm4656_vm15, %v4655_v5, 0  ;;  %v4391_v54 = vadd.s32 1, %v9915_v23  ;;  %v4653_v41 = vor.u32 8388608, %v4652_v21 }
 0x4c8   : > { %v4659_v61 = vand.u32 31, %v4657_v24  ;;  %v4500_v40 = vshll.u32 %v4499_v16, 30  ;;  %v9934_v27 = vadd.f32 %v4199_v33, %v4159_v52  ;;  %v4388_v30 = vmul.u32 %v9859_v26, %v4372_v15 }
 0x4c9   : > { %vm4390_vm0 = vc.u32 %v9920_v22, %v9914_v34  ;;  %v4493_v18 = vadd.s32 %v9890_v6, %v9887_v7  ;;  %v4226_v32 = vrot.slane %v9939_v47, %v9773_v12  ;;  %v9951_v9 = vshll.u32 %v4653_v41, 8 }
 0x4ca   : > { %v4660_v51 = vsub.s32 32, %v4659_v61  ;;  %v9941_v45 = vsub.s32 %v4497_v46, %v4500_v40  ;;  %v4392_v44 = vsel %vm4390_vm0, %v4391_v54, %v9915_v23  ;;  %v4541_v26 = vand.u32 2147483647, %v9934_v27 }
 0x4cb   : > { %v4393_v3 = vadd.s32 %v4392_v44, %v4388_v30  ;;  %v4544_v46 = vand.u32 2139095040, %v9934_v27  ;;  %v9955_v43 = vshrl.u32 %v4657_v24, 5  ;;  %v4523_v11 = vsub.s32 4, %v4499_v16 }
 0x4cc   : > { %v4503_v33 = vsub.s32 0, %v9941_v45  ;;  %v4663_v31 = vshrl.u32 %v6777_v28, %v4660_v51  ;;  %v4666_v7 = vshrl.u32 %v6778_v35, %v4660_v51  ;;  %v4669_v6 = vshrl.u32 %v6779_v49, %v4660_v51 }
 0x4cd   : > { %v4394_v58 = vadd.s32 536870912, %v4393_v3  ;;  %v4662_v13 = vshll.u32 %v6776_v63, %v4659_v61  ;;  %v4672_v56 = vshrl.u32 %v6780_v59, %v4660_v51  ;;  %v4665_v4 = vshll.u32 %v6777_v28, %v4659_v61 }
 0x4ce   : > { %v6256_v37 = vmin.u32 %v4503_v33, %v9941_v45  ;;  %v4668_v20 = vshll.u32 %v6778_v35, %v4659_v61  ;;  %v4675_v23 = vshrl.u32 %v6781_v53, %v4660_v51  ;;  %v4671_v52 = vshll.u32 %v6779_v49, %v4659_v61 }
 0x4cf   : > { %v4395_v17 = vshrl.u32 %v4394_v58, 30  ;;  %v4664_v21 = vor.u32 %v4663_v31, %v4662_v13  ;;  %v4545_v15 = vshrl.u32 %v4544_v46, 23  ;;  %v4667_v40 = vor.u32 %v4666_v7, %v4665_v4 }
 0x4d0   : > { %v4505_v5 = vclz %v6256_v37  ;;  %v4670_v54 = vor.u32 %v4669_v6, %v4668_v20  ;;  %v4674_v30 = vshll.u32 %v6780_v59, %v4659_v61  ;;  %v9968_v41 = vsel %vm4439_vm14, %v4523_v11, %v4499_v16 }
 0x4d1   : > { %v4396_v39 = vshll.u32 %v4395_v17, 30  ;;  %v4661_v33 = vshrl.u32 %v6776_v63, %v4660_v51  ;;  %v4673_v58 = vor.u32 %v4672_v56, %v4671_v52  ;;  %v4419_v31 = vsub.s32 4, %v4395_v17 }
 0x4d2   : > { %v6257_v24 = vadd.s32 4294967294, %v4505_v5  ;;  %v4676_v37 = vor.u32 %v4675_v23, %v4674_v30  ;;  %vm4677_vm6 = vcmp.lt.s32.totalorder %v9955_v43, 1  ;;  %vm4679_vm4 = vcmp.lt.s32.totalorder %v9955_v43, 3 }
 0x4d3   : > { %v9971_v44 = vsub.s32 %v4393_v3, %v4396_v39  ;;  %vm4680_vm5 = vcmp.lt.s32.totalorder %v9955_v43, 4  ;;  %vm9986_vm8 = vcmp.le.f32.partialorder %v4333_v50, 0.7853982  ;;  %v4685_v48 = vsel %vm4677_vm6, %v4664_v21, %v4667_v40 }
 0x4d4   : > { %vm6258_vm3 = vcmp.lt.s32.totalorder %v6257_v24, 0  ;;  %v4682_v6 = vsel %vm4680_vm5, %v4670_v54, 2102212464  ;;  %v4686_v56 = vsel %vm4680_vm5, %v4673_v58, 920167782  ;;  %v4689_v5 = vsel %vm4677_vm6, %v4667_v40, %v4670_v54 }
 0x4d5   : > { %v4508_v16 = vsel %vm6258_vm3, 0, %v6257_v24  ;;  %v4399_v46 = vsub.s32 0, %v9971_v44  ;;  %v4687_v50 = vsel %vm4679_vm4, %v4670_v54, %v4686_v56  ;;  %v4690_v23 = vsel %vm4680_vm5, %v4676_v37, 1326507024 }
 0x4d6   : > { %v4509_v51 = vsub.s32 32, %v4508_v16  ;;  %v4513_v3 = vsub.s32 4294967266, %v4508_v16  ;;  %v4510_v11 = vshll.u32 %v9941_v45, %v4508_v16  ;;  %vm4678_vm9 = vcmp.lt.s32.totalorder %v9955_v43, 2 }
 0x4d7   : > { %v6252_v13 = vmin.u32 %v4399_v46, %v9971_v44  ;;  %v4681_v52 = vsel %vm4677_vm6, %v4661_v33, %v4664_v21  ;;  %v4683_v45 = vsel %vm4679_vm4, %v4667_v40, %v4682_v6  ;;  %v4688_v16 = vsel %vm4678_vm9, %v4685_v48, %v4687_v50 }
 0x4d8   : > { %v4511_v4 = vshrl.u32 %v4493_v18, %v4509_v51  ;;  %v4514_v20 = vadd.s32 127, %v4513_v3  ;;  %v4691_v18 = vsel %vm4679_vm4, %v4673_v58, %v4690_v23  ;;  %v4389_v40 = vadd.s32 %v9914_v34, %v9920_v22 }
 0x4d9   : > { %v4401_v39 = vclz %v6252_v13  ;;  %v4692_v51 = vsel %vm4678_vm9, %v4689_v5, %v4691_v18  ;;  %v10006_v54 = vmul.u32.u64.low %v9951_v9, %v4688_v16  ;;  %v10007_v37 = vmul.u32.u64.high %v9951_v9, %v4688_v16, %v10006_v54 }
 0x4da   : > { %v4512_v24 = vor.u32 %v4511_v4, %v4510_v11  ;;  %v4515_v30 = vshll.u32 %v4514_v20, 23  ;;  %v4420_v13 = vsel %vm4335_vm1, %v4419_v31, %v4395_v17  ;;  %v4684_v43 = vsel %vm4678_vm9, %v4681_v52, %v4683_v45 }
 0x4db   : > { %v6253_v46 = vadd.s32 4294967294, %v4401_v39  ;;  %v10012_v21 = vmul.u32.u64.low %v9951_v9, %v4692_v51  ;;  %v10013_v33 = vmul.u32.u64.high %v9951_v9, %v4692_v51, %v10012_v21  ;;  %v6259_v58 = vadd.s32 4294967169, %v4545_v15 }
 0x4dc   : > { %v4516_v3 = vor.u32 4788187, %v4515_v30  ;;  %v4519_v48 = vcvt.s32.f32 %v4512_v24  ;;  %v4526_v11 = vsel %vm9977_vm2, 0, %v9968_v41  ;;  %v4422_v17 = vsel %vm9986_vm8, 0, %v4420_v13  ;;  %v10027_v24 = vpop.permute.xlu0 %4211 }
 0x4dd   : > { %vm6254_vm7 = vcmp.lt.s32.totalorder %v6253_v46, 0  ;;  %v4703_v31 = vadd.s32 1, %v10007_v37  ;;  %v4700_v34 = vmul.u32 %v9951_v9, %v4684_v43  ;;  %vm4702_vm12 = vc.u32 %v10013_v33, %v10006_v54 }
 0x4de   : > { %v4517_v6 = vand.u32 2147483647, %v4516_v3  ;;  %v4404_v56 = vsel %vm6254_vm7, 0, %v6253_v46  ;;  %v4551_v22 = vadd.s32 1, %v6259_v58  ;;  %v4530_v52 = vadd.s32 3, %v4526_v11 }
 0x4df   : > { %v4405_v5 = vsub.s32 32, %v4404_v56  ;;  %v4409_v4 = vsub.s32 4294967266, %v4404_v56  ;;  %v4406_v15 = vshll.u32 %v9971_v44, %v4404_v56  ;;  %v4704_v41 = vsel %vm4702_vm12, %v4703_v31, %v10007_v37 }
 0x4e0   : > { %v4520_v20 = vmul.f32 %v4519_v48, %v4517_v6  ;;  %v4705_v45 = vadd.s32 %v4704_v41, %v4700_v34  ;;  %vm4552_vm10 = vcmp.gt.s32.totalorder %v4551_v22, 0  ;;  %v4426_v18 = vadd.s32 3, %v4422_v17 }
 0x4e1   : > { %v4407_v50 = vshrl.u32 %v4389_v40, %v4405_v5  ;;  %v4410_v23 = vadd.s32 127, %v4409_v4  ;;  %v4553_v46 = vsel %vm4552_vm10, %v4551_v22, 0  ;;  %v4548_v44 = vand.u32 8388607, %v4541_v26 }
 0x4e2   : > { %v4521_v39 = vxor.u32 2147483648, %v4520_v20  ;;  %v4706_v51 = vadd.s32 536870912, %v4705_v45  ;;  %v4555_v3 = vand.u32 31, %v4553_v46  ;;  %v4217_v21 = vrot.slane %v10027_v24, %v9773_v12 }
 0x4e3   : > { %v4408_v30 = vor.u32 %v4407_v50, %v4406_v15  ;;  %v4411_v16 = vshll.u32 %v4410_v23, 23  ;;  %v10038_v40 = vand.u32 3, %v4530_v52  ;;  %vm4647_vm11 = vcmp.lt.s32.totalorder %v9846_v60, 0 }
 0x4e4   : > { %v4522_v9 = vsel %vm4439_vm14, %v4521_v39, %v4520_v20  ;;  %v4707_v43 = vshrl.u32 %v4706_v51, 30  ;;  %v4556_v58 = vsub.s32 32, %v4555_v3  ;;  %v10041_v11 = vand.u32 3, %v4426_v18 }
 0x4e5   : > { %v4525_v37 = vsel %vm9977_vm2, %v9832_v19, %v4522_v9  ;;  %v4412_v13 = vor.u32 4788187, %v4411_v16  ;;  %v4415_v48 = vcvt.s32.f32 %v4408_v30  ;;  %v4549_v5 = vor.u32 8388608, %v4548_v44 }
 0x4e6   : > { %6680 = vcosq.f32 %v4525_v37  ;;  %v4708_v56 = vshll.u32 %v4707_v43, 30  ;;  %v4559_v61 = vshrl.u32 %v6777_v28, %v4556_v58  ;;  %v10048_v4 = vadd.f32 %v4226_v32, %v9780_v10 }
 0x4e7   : > { %6682 = vsinq.f32 %v4525_v37  ;;  %v4413_v6 = vand.u32 2147483647, %v4412_v13  ;;  %v10051_v31 = vadd.s32 %v10006_v54, %v10013_v33  ;;  %v4562_v20 = vshrl.u32 %v6778_v35, %v4556_v58 }
 0x4e8   : > { %v4565_v34 = vshrl.u32 %v6779_v49, %v4556_v58  ;;  %vm4536_vm13 = vcmp.eq.s32.totalorder %v10038_v40, 2  ;;  %v10056_v22 = vsub.s32 %v4705_v45, %v4708_v56  ;;  %v10058_v15 = vshrl.u32 %v4553_v46, 5 }
 0x4e9   : > { %v4416_v17 = vmul.f32 %v4415_v48, %v4413_v6  ;;  %v4558_v50 = vshll.u32 %v6776_v63, %v4555_v3  ;;  %v4568_v47 = vshrl.u32 %v6780_v59, %v4556_v58  ;;  %vm4533_vm15 = vcmp.eq.s32.totalorder %v10038_v40, 0 }
 0x4ea   : > { %v4731_v32 = vsub.s32 4, %v4707_v43  ;;  %v4561_v54 = vshll.u32 %v6777_v28, %v4555_v3  ;;  %v4564_v33 = vshll.u32 %v6778_v35, %v4555_v3  ;;  %vm5997_vm0 = vcmask 130048  }
 0x4eb   : > { %v4417_v10 = vxor.u32 2147483648, %v4416_v17  ;;  %vm4532_vm14 = vcmp.lt.s32.totalorder %v10038_v40, 2  ;;  %v4711_v23 = vsub.s32 0, %v10056_v22  ;;  %v4560_v41 = vor.u32 %v4559_v61, %v4558_v50 }
 0x4ec   : > { %v4567_v39 = vshll.u32 %v6779_v49, %v4555_v3  ;;  %v10068_v52 = vshll.u32 %v4549_v5, 8  ;;  %vm4529_vm3 = vweird.f32 %v9832_v19  ;;  %v4563_v30 = vor.u32 %v4562_v20, %v4561_v54 }
 0x4ed   : > { %v4418_v45 = vsel %vm4335_vm1, %v4417_v10, %v4416_v17  ;;  %v4566_v16 = vor.u32 %v4565_v34, %v4564_v33  ;;  %v4571_v18 = vshrl.u32 %v6781_v53, %v4556_v58  ;;  %v6264_v9 = vmin.u32 %v4711_v23, %v10056_v22 }
 0x4ee   : > { %v4421_v46 = vsel %vm9986_vm8, %v9834_v8, %v4418_v45  ;;  %v4569_v51 = vor.u32 %v4568_v47, %v4567_v39  ;;  %v4570_v44 = vshll.u32 %v6780_v59, %v4555_v3  ;;  %v4732_v37 = vsel %vm4647_vm11, %v4731_v32, %v4707_v43 }
 0x4ef   : > { %6684 = vcosq.f32 %v4421_v46  ;;  %v4557_v13 = vshrl.u32 %v6776_v63, %v4556_v58  ;;  %vm4573_vm1 = vcmp.lt.s32.totalorder %v10058_v15, 1  ;;  %vm10085_vm6 = vcmp.le.f32.partialorder %v4645_v62, 0.7853982 }
 0x4f0   : > { %v6681_v6 = vpop.eup %6680  ;;  %6686 = vsinq.f32 %v4421_v46  ;;  %v4713_v48 = vclz %v6264_v9  ;;  %v4572_v56 = vor.u32 %v4571_v18, %v4570_v44  ;;  %vm4574_vm2 = vcmp.lt.s32.totalorder %v10058_v15, 2 }
 0x4f1   : > { %v6683_v3 = vpop.eup %6682  ;;  %v4537_v5 = vxor.u32 2147483648, %v6681_v6  ;;  %vm4575_vm4 = vcmp.lt.s32.totalorder %v10058_v15, 3  ;;  %vm4576_vm5 = vcmp.lt.s32.totalorder %v10058_v15, 4  ;;  %v4581_v43 = vsel %vm4573_vm1, %v4560_v41, %v4563_v30 }
 0x4f2   : > { %v4534_v58 = vxor.u32 2147483648, %v6683_v3  ;;  %v6265_v61 = vadd.s32 4294967294, %v4713_v48  ;;  %v4578_v17 = vsel %vm4576_vm5, %v4566_v16, 2102212464  ;;  %v4582_v62 = vsel %vm4576_vm5, %v4569_v51, 920167782 }
 0x4f3   : > { %v4538_v20 = vsel %vm4536_vm13, %v4537_v5, %v6683_v3  ;;  %v4577_v34 = vsel %vm4573_vm1, %v4557_v13, %v4560_v41  ;;  %v4583_v50 = vsel %vm4575_vm4, %v4566_v16, %v4582_v62  ;;  %v4585_v47 = vsel %vm4573_vm1, %v4563_v30, %v4566_v16 }
 0x4f4   : > { %v4535_v10 = vsel %vm4533_vm15, %v6681_v6, %v4534_v58  ;;  %vm6266_vm8 = vcmp.lt.s32.totalorder %v6265_v61, 0  ;;  %v4584_v32 = vsel %vm4574_vm2, %v4581_v43, %v4583_v50  ;;  %v4586_v54 = vsel %vm4576_vm5, %v4572_v56, 1326507024 }
 0x4f5   : > { %v4539_v33 = vsel %vm4532_vm14, %v4535_v10, %v4538_v20  ;;  %v4716_v23 = vsel %vm6266_vm8, 0, %v6265_v61  ;;  %v4579_v41 = vsel %vm4575_vm4, %v4563_v30, %v4578_v17  ;;  %v4587_v39 = vsel %vm4575_vm4, %v4569_v51, %v4586_v54 }
 0x4f6   : > { %v4540_v45 = vsel %vm4529_vm3, nan, %v4539_v33  ;;  %vm4425_vm9 = vweird.f32 %v9834_v8  ;;  %v4717_v16 = vsub.s32 32, %v4716_v23  ;;  %v4718_v18 = vshll.u32 %v10056_v22, %v4716_v23 }
 0x4f7   : > { %v4721_v46 = vsub.s32 4294967266, %v4716_v23  ;;  %6000 = vst.msk [vmem:[%s6891_s22 + $0x10] sm:$0xff] %vm5997_vm0, %v4540_v45  ;;  %6001 = vst.msk [vmem:[%s6891_s22 + $0x18] sm:$0xff] %vm5997_vm0, %v4540_v45  ;;  %v4588_v40 = vsel %vm4574_vm2, %v4585_v47, %v4587_v39  ;;  %v10123_v30 = vmul.u32.u64.low %v10068_v52, %v4584_v32  ;;  %v10124_v9 = vmul.u32.u64.high %v10068_v52, %v4584_v32, %v10123_v30 }
 0x4f8   : > { %v4856_v19 = vand.u32 2139095040, %v10048_v4  ;;  %v4719_v51 = vshrl.u32 %v10051_v31, %v4717_v16  ;;  %v10130_v22 = vmul.u32.u64.low %v10068_v52, %v4588_v40  ;;  %v10131_v13 = vmul.u32.u64.high %v10068_v52, %v4588_v40, %v10130_v22 }
 0x4f9   : > { %v4722_v44 = vadd.s32 127, %v4721_v46  ;;  %v6685_v6 = vpop.eup %6684  ;;  %vm4428_vm7 = vcmp.lt.s32.totalorder %v10041_v11, 2  ;;  %vm4432_vm12 = vcmp.eq.s32.totalorder %v10041_v11, 2  ;;  %v4734_v48 = vsel %vm10085_vm6, 0, %v4732_v37 }
 0x4fa   : > { %v4857_v56 = vshrl.u32 %v4856_v19, 23  ;;  %v6687_v3 = vpop.eup %6686  ;;  %v4433_v5 = vxor.u32 2147483648, %v6685_v6  ;;  %v4720_v43 = vor.u32 %v4719_v51, %v4718_v18  ;;  %v4580_v31 = vsel %vm4574_vm2, %v4577_v34, %v4579_v41 }
 0x4fb   : > { %v4723_v58 = vshll.u32 %v4722_v44, 23  ;;  %v4430_v61 = vxor.u32 2147483648, %v6687_v3  ;;  %v4599_v17 = vadd.s32 1, %v10124_v9  ;;  %v4853_v62 = vand.u32 2147483647, %v10048_v4 }
 0x4fc   : > { %v6271_v20 = vadd.s32 4294967169, %v4857_v56  ;;  %vm4429_vm10 = vcmp.eq.s32.totalorder %v10041_v11, 0  ;;  %v4434_v50 = vsel %vm4432_vm12, %v4433_v5, %v6687_v3  ;;  %v4738_v47 = vadd.s32 3, %v4734_v48 }
 0x4fd   : > { %v4724_v37 = vor.u32 4788187, %v4723_v58  ;;  %v4431_v10 = vsel %vm4429_vm10, %v6685_v6, %v4430_v61  ;;  %v4596_v32 = vmul.u32 %v10068_v52, %v4580_v31  ;;  %vm4598_vm13 = vc.u32 %v10131_v13, %v10123_v30 }
 0x4fe   : > { %v4863_v15 = vadd.s32 1, %v6271_v20  ;;  %v4435_v34 = vsel %vm4428_vm7, %v4431_v10, %v4434_v50  ;;  %v4727_v33 = vcvt.s32.f32 %v4720_v43  ;;  %v4600_v23 = vsel %vm4598_vm13, %v4599_v17, %v10124_v9 }
 0x4ff   : > { %v4725_v54 = vand.u32 2147483647, %v4724_v37  ;;  %v4436_v41 = vsel %vm4425_vm9, nan, %v4435_v34  ;;  %v4601_v39 = vadd.s32 %v4600_v23, %v4596_v32  ;;  %v4860_v45 = vand.u32 8388607, %v4853_v62 }
 0x500   : > { %vm4864_vm15 = vcmp.gt.s32.totalorder %v4863_v15, 0  ;;  %5998 = vst.msk [vmem:[%s6891_s22] sm:$0xff] %vm5997_vm0, %v4436_v41  ;;  %5999 = vst.msk [vmem:[%s6891_s22 + $0x8] sm:$0xff] %vm5997_vm0, %v4436_v41  ;;  %v10160_v11 = vadd.f32 %v4217_v21, %v9783_v57  ;;  %v10162_v40 = vand.u32 3, %v4738_v47  ;;  %v4597_v32 = vadd.s32 %v10123_v30, %v10131_v13 }
 0x501   : > { %v4728_v52 = vmul.f32 %v4727_v33, %v4725_v54  ;;  %v4865_v16 = vsel %vm4864_vm15, %v4863_v15, 0  ;;  %v4602_v18 = vadd.s32 536870912, %v4601_v39  ;;  %v4861_v19 = vor.u32 8388608, %v4860_v45 }
 0x502   : > { %v4867_v8 = vand.u32 31, %v4865_v16  ;;  %v10168_v22 = vshrl.u32 %v4865_v16, 5  ;;  %v4752_v24 = vand.u32 2139095040, %v10160_v11  ;;  %v4749_v34 = vand.u32 2147483647, %v10160_v11 }
 0x503   : > { %v4729_v46 = vxor.u32 2147483648, %v4728_v52  ;;  %v10164_v9 = vshrl.u32 %v4602_v18, 30  ;;  %v10191_v15 = vshll.u32 %v4861_v19, 8  ;;  %vm4741_vm14 = vcmp.eq.s32.totalorder %v10162_v40, 0 }
 0x504   : > { %v4868_v51 = vsub.s32 32, %v4867_v8  ;;  %v4870_v6 = vshll.u32 %v6776_v63, %v4867_v8  ;;  %v4873_v48 = vshll.u32 %v6777_v28, %v4867_v8  ;;  %v4876_v56 = vshll.u32 %v6778_v35, %v4867_v8 }
 0x505   : > { %v4730_v44 = vsel %vm4647_vm11, %v4729_v46, %v4728_v52  ;;  %v4604_v21 = vshll.u32 %v10164_v9, 30  ;;  %v4879_v31 = vshll.u32 %v6779_v49, %v4867_v8  ;;  %v4882_v20 = vshll.u32 %v6780_v59, %v4867_v8 }
 0x506   : > { %v4733_v57 = vsel %vm10085_vm6, %v9846_v60, %v4730_v44  ;;  %v4871_v3 = vshrl.u32 %v6777_v28, %v4868_v51  ;;  %v4874_v5 = vshrl.u32 %v6778_v35, %v4868_v51  ;;  %v4877_v43 = vshrl.u32 %v6779_v49, %v4868_v51 }
 0x507   : > { %6688 = vcosq.f32 %v4733_v57  ;;  %v10181_v58 = vsub.s32 %v4601_v39, %v4604_v21  ;;  %v4880_v7 = vshrl.u32 %v6780_v59, %v4868_v51  ;;  %v4883_v10 = vshrl.u32 %v6781_v53, %v4868_v51 }
 0x508   : > { %6690 = vsinq.f32 %v4733_v57  ;;  %v4872_v61 = vor.u32 %v4871_v3, %v4870_v6  ;;  %v4875_v17 = vor.u32 %v4874_v5, %v4873_v48  ;;  %v4878_v37 = vor.u32 %v4877_v43, %v4876_v56 }
 0x509   : > { %v4607_v50 = vsub.s32 0, %v10181_v58  ;;  %v4881_v47 = vor.u32 %v4880_v7, %v4879_v31  ;;  %vm4744_vm11 = vcmp.eq.s32.totalorder %v10162_v40, 2  ;;  %v4753_v54 = vshrl.u32 %v4752_v24, 23 }
 0x50a   : > { %vm4543_vm3 = vcmp.lt.s32.totalorder %v9934_v27, 0  ;;  %v4884_v23 = vor.u32 %v4883_v10, %v4882_v20  ;;  %vm4885_vm1 = vcmp.lt.s32.totalorder %v10168_v22, 1  ;;  %vm4888_vm6 = vcmp.lt.s32.totalorder %v10168_v22, 4 }
 0x50b   : > { %v6260_v33 = vmin.u32 %v4607_v50, %v10181_v58  ;;  %vm4740_vm2 = vcmp.lt.s32.totalorder %v10162_v40, 2  ;;  %v4627_v30 = vsub.s32 4, %v10164_v9  ;;  %v4869_v13 = vshrl.u32 %v6776_v63, %v4868_v51 }
 0x50c   : > { %v4893_v41 = vsel %vm4885_vm1, %v4872_v61, %v4875_v17  ;;  %v4894_v39 = vsel %vm4888_vm6, %v4881_v47, 920167782  ;;  %vm4737_vm4 = vweird.f32 %v9846_v60  ;;  %vm4887_vm5 = vcmp.lt.s32.totalorder %v10168_v22, 3 }
 0x50d   : > { %v4609_v45 = vclz %v6260_v33  ;;  %v4890_v52 = vsel %vm4888_vm6, %v4878_v37, 2102212464  ;;  %v4897_v16 = vsel %vm4885_vm1, %v4875_v17, %v4878_v37  ;;  %vm4886_vm8 = vcmp.lt.s32.totalorder %v10168_v22, 2 }
 0x50e   : > { %v4895_v18 = vsel %vm4887_vm5, %v4878_v37, %v4894_v39  ;;  %v4898_v8 = vsel %vm4888_vm6, %v4884_v23, 1326507024  ;;  %v6267_v46 = vadd.s32 4294967169, %v4753_v54  ;;  %v4889_v51 = vsel %vm4885_vm1, %v4869_v13, %v4872_v61 }
 0x50f   : > { %v6261_v19 = vadd.s32 4294967294, %v4609_v45  ;;  %v4896_v44 = vsel %vm4886_vm8, %v4893_v41, %v4895_v18  ;;  %v4899_v6 = vsel %vm4887_vm5, %v4881_v47, %v4898_v8  ;;  %v4891_v57 = vsel %vm4887_vm5, %v4875_v17, %v4890_v52 }
 0x510   : > { %v4900_v21 = vsel %vm4886_vm8, %v4897_v16, %v4899_v6  ;;  %v10216_v48 = vmul.u32.u64.low %v10191_v15, %v4896_v44  ;;  %v10217_v56 = vmul.u32.u64.high %v10191_v15, %v4896_v44, %v10216_v48  ;;  %v10226_v17 = vand.u32 8388607, %v4749_v34 }
 0x511   : > { %v6689_v24 = vpop.eup %6688  ;;  %vm6262_vm9 = vcmp.lt.s32.totalorder %v6261_v19, 0  ;;  %v10221_v43 = vmul.u32.u64.low %v10191_v15, %v4900_v21  ;;  %v10222_v31 = vmul.u32.u64.high %v10191_v15, %v4900_v21, %v10221_v43  ;;  %v4759_v20 = vadd.s32 1, %v6267_v46 }
 0x512   : > { %v6691_v3 = vpop.eup %6690  ;;  %v4745_v5 = vxor.u32 2147483648, %v6689_v24  ;;  %v4612_v61 = vsel %vm6262_vm9, 0, %v6261_v19  ;;  %v4892_v10 = vsel %vm4886_vm8, %v4889_v51, %v4891_v57  ;;  %v4628_v33 = vsel %vm4543_vm3, %v4627_v30, %v10164_v9  ;;  %v4239_v9 = vpop.permute.xlu1 %4238 }
 0x513   : > { %v4742_v7 = vxor.u32 2147483648, %v6691_v3  ;;  %v4613_v37 = vsub.s32 32, %v4612_v61  ;;  %v4617_v47 = vsub.s32 4294967266, %v4612_v61  ;;  %v4911_v23 = vadd.s32 1, %v10217_v56 }
 0x514   : > { %v4746_v50 = vsel %vm4744_vm11, %v4745_v5, %v6691_v3  ;;  %vm4760_vm7 = vcmp.gt.s32.totalorder %v4759_v20, 0  ;;  %v4614_v41 = vshll.u32 %v10181_v58, %v4612_v61  ;;  %v4908_v52 = vmul.u32 %v10191_v15, %v4892_v10  ;;  %v10264_v3 = vpop.permute.xlu0 %4229 }
 0x515   : > { %v4743_v54 = vsel %vm4741_vm14, %v6689_v24, %v4742_v7  ;;  %v4615_v39 = vshrl.u32 %v4597_v32, %v4613_v37  ;;  %v4618_v45 = vadd.s32 127, %v4617_v47  ;;  %vm4910_vm12 = vc.u32 %v10222_v31, %v10216_v48 }
 0x516   : > { %v4747_v13 = vsel %vm4740_vm2, %v4743_v54, %v4746_v50  ;;  %v4761_v16 = vsel %vm4760_vm7, %v4759_v20, 0  ;;  %v4912_v58 = vsel %vm4910_vm12, %v4911_v23, %v10217_v56  ;;  %vm10253_vm10 = vcmp.le.f32.partialorder %v4541_v26, 0.7853982 }
 0x517   : > { %v4748_v22 = vsel %vm4737_vm4, nan, %v4747_v13  ;;  %v4616_v40 = vor.u32 %v4615_v39, %v4614_v41  ;;  %v4619_v30 = vshll.u32 %v4618_v45, 23  ;;  %v4913_v32 = vadd.s32 %v4912_v58, %v4908_v52 }
 0x518   : > { %6004 = vst.msk [vmem:[%s6891_s22 + $0x30] sm:$0xff] %vm5997_vm0, %v4748_v22  ;;  %6005 = vst.msk [vmem:[%s6891_s22 + $0x38] sm:$0xff] %vm5997_vm0, %v4748_v22  ;;  %v4763_v15 = vand.u32 31, %v4761_v16  ;;  %v4630_v8 = vsel %vm10253_vm10, 0, %v4628_v33  ;;  %v4757_v46 = vor.u32 8388608, %v10226_v17  ;;  %v4244_v19 = vrot.slane %v4239_v9, %v9773_v12 }
 0x519   : > { %v4620_v18 = vor.u32 4788187, %v4619_v30  ;;  %v4623_v51 = vcvt.s32.f32 %v4616_v40  ;;  %v4914_v44 = vadd.s32 536870912, %v4913_v32  ;;  %v4762_v6 = vshrl.u32 %v4761_v16, 5 }
 0x51a   : > { %v4764_v24 = vsub.s32 32, %v4763_v15  ;;  %v4766_v26 = vshll.u32 %v6776_v63, %v4763_v15  ;;  %v4769_v21 = vshll.u32 %v6777_v28, %v4763_v15  ;;  %v4772_v56 = vshll.u32 %v6778_v35, %v4763_v15 }
 0x51b   : > { %v4621_v57 = vand.u32 2147483647, %v4620_v18  ;;  %v4915_v5 = vshrl.u32 %v4914_v44, 30  ;;  %v4775_v61 = vshll.u32 %v6779_v49, %v4763_v15  ;;  %v4778_v54 = vshll.u32 %v6780_v59, %v4763_v15 }
 0x51c   : > { %v4767_v43 = vshrl.u32 %v6777_v28, %v4764_v24  ;;  %v4770_v7 = vshrl.u32 %v6778_v35, %v4764_v24  ;;  %v4773_v20 = vshrl.u32 %v6779_v49, %v4764_v24  ;;  %v4776_v50 = vshrl.u32 %v6780_v59, %v4764_v24 }
 0x51d   : > { %v4624_v17 = vmul.f32 %v4623_v51, %v4621_v57  ;;  %v4779_v37 = vshrl.u32 %v6781_v53, %v4764_v24  ;;  %v4916_v47 = vshll.u32 %v4915_v5, 30  ;;  %v4235_v33 = vrot.slane %v10264_v3, %v9773_v12 }
 0x51e   : > { %v4768_v10 = vor.u32 %v4767_v43, %v4766_v26  ;;  %vm4855_vm13 = vcmp.lt.s32.totalorder %v10048_v4, 0  ;;  %v4771_v13 = vor.u32 %v4770_v7, %v4769_v21  ;;  %v4774_v41 = vor.u32 %v4773_v20, %v4772_v56 }
 0x51f   : > { %v4625_v23 = vxor.u32 2147483648, %v4624_v17  ;;  %v4777_v39 = vor.u32 %v4776_v50, %v4775_v61  ;;  %v4634_v45 = vadd.s32 3, %v4630_v8  ;;  %v10276_v22 = vsub.s32 %v4913_v32, %v4916_v47 }
 0x520   : > { %vm4781_vm15 = vcmp.lt.s32.totalorder %v4762_v6, 1  ;;  %v10279_v52 = vadd.f32 %v4244_v19, %v9788_v29  ;;  %v4765_v9 = vshrl.u32 %v6776_v63, %v4764_v24  ;;  %v4780_v40 = vor.u32 %v4779_v37, %v4778_v54 }
 0x521   : > { %v4626_v16 = vsel %vm4543_vm3, %v4625_v23, %v4624_v17  ;;  %vm4782_vm11 = vcmp.lt.s32.totalorder %v4762_v6, 2  ;;  %v4919_v58 = vsub.s32 0, %v10276_v22  ;;  %vm4783_vm14 = vcmp.lt.s32.totalorder %v4762_v6, 3 }
 0x522   : > { %v4629_v30 = vsel %vm10253_vm10, %v9934_v27, %v4626_v16  ;;  %vm4784_vm1 = vcmp.lt.s32.totalorder %v4762_v6, 4  ;;  %vm10290_vm6 = vcmp.le.f32.partialorder %v4853_v62, 0.7853982  ;;  %v4789_v15 = vsel %vm4781_vm15, %v4768_v10, %v4771_v13 }
 0x523   : > { %6692 = vcosq.f32 %v4629_v30  ;;  %v4786_v32 = vsel %vm4784_vm1, %v4774_v41, 2102212464  ;;  %v4790_v18 = vsel %vm4784_vm1, %v4777_v39, 920167782  ;;  %v6272_v8 = vmin.u32 %v4919_v58, %v10276_v22 }
 0x524   : > { %6694 = vsinq.f32 %v4629_v30  ;;  %v4939_v60 = vsub.s32 4, %v4915_v5  ;;  %v4791_v19 = vsel %vm4783_vm14, %v4774_v41, %v4790_v18  ;;  %v4793_v44 = vsel %vm4781_vm15, %v4771_v13, %v4774_v41 }
 0x525   : > { %v4792_v51 = vsel %vm4782_vm11, %v4789_v15, %v4791_v19  ;;  %v4794_v24 = vsel %vm4784_vm1, %v4780_v40, 1326507024  ;;  %v4797_v57 = vshll.u32 %v4757_v46, 8  ;;  %v4635_v62 = vand.u32 3, %v4634_v45 }
 0x526   : > { %v4921_v26 = vclz %v6272_v8  ;;  %v4785_v21 = vsel %vm4781_vm15, %v4765_v9, %v4768_v10  ;;  %v4787_v56 = vsel %vm4783_vm14, %v4771_v13, %v4786_v32  ;;  %v4795_v43 = vsel %vm4783_vm14, %v4777_v39, %v4794_v24 }
 0x527   : > { %v10302_v7 = vmul.u32.u64.low %v4797_v57, %v4792_v51  ;;  %v10303_v61 = vmul.u32.u64.high %v4797_v57, %v4792_v51, %v10302_v7  ;;  %v5064_v17 = vand.u32 2139095040, %v10279_v52  ;;  %v4940_v50 = vsel %vm4855_vm13, %v4939_v60, %v4915_v5 }
 0x528   : > { %v6273_v20 = vadd.s32 4294967294, %v4921_v26  ;;  %v4796_v46 = vsel %vm4782_vm11, %v4793_v44, %v4795_v43  ;;  %v5061_v37 = vand.u32 2147483647, %v10279_v52  ;;  %v4788_v47 = vsel %vm4782_vm11, %v4785_v21, %v4787_v56 }
 0x529   : > { %v10312_v10 = vmul.u32.u64.low %v4797_v57, %v4796_v46  ;;  %v10313_v54 = vmul.u32.u64.high %v4797_v57, %v4796_v46, %v10312_v10  ;;  %v5065_v23 = vshrl.u32 %v5064_v17, 23  ;;  %vm4636_vm3 = vcmp.lt.s32.totalorder %v4635_v62, 2 }
 0x52a   : > { %vm4637_vm2 = vcmp.eq.s32.totalorder %v4635_v62, 0  ;;  %vm4640_vm4 = vcmp.eq.s32.totalorder %v4635_v62, 2  ;;  %vm6274_vm5 = vcmp.lt.s32.totalorder %v6273_v20, 0  ;;  %v4909_v13 = vadd.s32 %v10216_v48, %v10222_v31 }
 0x52b   : > { %v4924_v41 = vsel %vm6274_vm5, 0, %v6273_v20  ;;  %v4807_v5 = vadd.s32 1, %v10303_v61  ;;  %v6279_v39 = vadd.s32 4294967169, %v5065_v23  ;;  %v4942_v6 = vsel %vm10290_vm6, 0, %v4940_v50 }
 0x52c   : > { %v4925_v45 = vsub.s32 32, %v4924_v41  ;;  %v4929_v16 = vsub.s32 4294967266, %v4924_v41  ;;  %v4804_v9 = vmul.u32 %v4797_v57, %v4788_v47  ;;  %v4926_v30 = vshll.u32 %v10276_v22, %v4924_v41 }
 0x52d   : > { %v6693_v40 = vpop.eup %6692  ;;  %vm4806_vm8 = vc.u32 %v10313_v54, %v10302_v7  ;;  %v5068_v58 = vand.u32 8388607, %v5061_v37  ;;  %v5071_v48 = vadd.s32 1, %v6279_v39  ;;  %v4946_v19 = vadd.s32 3, %v4942_v6 }
 0x52e   : > { %v6695_v31 = vpop.eup %6694  ;;  %v4641_v32 = vxor.u32 2147483648, %v6693_v40  ;;  %v4927_v15 = vshrl.u32 %v4909_v13, %v4925_v45  ;;  %v4930_v18 = vadd.s32 127, %v4929_v16  ;;  %v4808_v8 = vsel %vm4806_vm8, %v4807_v5, %v10303_v61 }
 0x52f   : > { %v4638_v60 = vxor.u32 2147483648, %v6695_v31  ;;  %v4809_v51 = vadd.s32 %v4808_v8, %v4804_v9  ;;  %vm5072_vm9 = vcmp.gt.s32.totalorder %v5071_v48, 0  ;;  %v5069_v56 = vor.u32 8388608, %v5068_v58 }
 0x530   : > { %v4642_v22 = vsel %vm4640_vm4, %v4641_v32, %v6695_v31  ;;  %v4928_v44 = vor.u32 %v4927_v15, %v4926_v30  ;;  %v4931_v24 = vshll.u32 %v4930_v18, 23  ;;  %v5073_v57 = vsel %vm5072_vm9, %v5071_v48, 0 }
 0x531   : > { %v4639_v26 = vsel %vm4637_vm2, %v6693_v40, %v4638_v60  ;;  %v4810_v21 = vadd.s32 536870912, %v4809_v51  ;;  %v5075_v43 = vand.u32 31, %v5073_v57  ;;  %vm4633_vm7 = vweird.f32 %v9934_v27 }
 0x532   : > { %v4643_v61 = vsel %vm4636_vm3, %v4639_v26, %v4642_v22  ;;  %v4932_v17 = vor.u32 4788187, %v4931_v24  ;;  %v4935_v10 = vcvt.s32.f32 %v4928_v44  ;;  %v10334_v23 = vand.u32 3, %v4946_v19 }
 0x533   : > { %v4644_v20 = vsel %vm4633_vm7, nan, %v4643_v61  ;;  %v4811_v50 = vshrl.u32 %v4810_v21, 30  ;;  %v5076_v46 = vsub.s32 32, %v5075_v43  ;;  %v10340_v13 = vadd.f32 %v4235_v33, %v9791_v42 }
 0x534   : > { %6002 = vst.msk [vmem:[%s6891_s22 + $0x20] sm:$0xff] %vm5997_vm0, %v4644_v20  ;;  %6003 = vst.msk [vmem:[%s6891_s22 + $0x28] sm:$0xff] %vm5997_vm0, %v4644_v20  ;;  %v4933_v47 = vand.u32 2147483647, %v4932_v17  ;;  %v5078_v62 = vshll.u32 %v6776_v63, %v5075_v43  ;;  %v10344_v5 = vshll.u32 %v5069_v56, 8  ;;  %v4805_v9 = vadd.s32 %v10302_v7, %v10313_v54 }
 0x535   : > { %v4812_v27 = vshll.u32 %v4811_v50, 30  ;;  %v5079_v41 = vshrl.u32 %v6777_v28, %v5076_v46  ;;  %v5082_v45 = vshrl.u32 %v6778_v35, %v5076_v46  ;;  %v5085_v16 = vshrl.u32 %v6779_v49, %v5076_v46 }
 0x536   : > { %v4936_v39 = vmul.f32 %v4935_v10, %v4933_v47  ;;  %v5088_v6 = vshrl.u32 %v6780_v59, %v5076_v46  ;;  %v5074_v42 = vshrl.u32 %v5073_v57, 5  ;;  %v5081_v33 = vshll.u32 %v6777_v28, %v5075_v43 }
 0x537   : > { %v10351_v3 = vsub.s32 %v4809_v51, %v4812_v27  ;;  %v5080_v30 = vor.u32 %v5079_v41, %v5078_v62  ;;  %v5084_v58 = vshll.u32 %v6778_v35, %v5075_v43  ;;  %v5087_v48 = vshll.u32 %v6779_v49, %v5075_v43 }
 0x538   : > { %v4937_v40 = vxor.u32 2147483648, %v4936_v39  ;;  %vm4751_vm12 = vcmp.lt.s32.totalorder %v10160_v11, 0  ;;  %v5083_v32 = vor.u32 %v5082_v45, %v5081_v33  ;;  %v5090_v15 = vshll.u32 %v6780_v59, %v5075_v43 }
 0x539   : > { %v4815_v31 = vsub.s32 0, %v10351_v3  ;;  %v5091_v7 = vshrl.u32 %v6781_v53, %v5076_v46  ;;  %v5086_v18 = vor.u32 %v5085_v16, %v5084_v58  ;;  %v5089_v8 = vor.u32 %v5088_v6, %v5087_v48 }
 0x53a   : > { %v4938_v54 = vsel %vm4855_vm13, %v4937_v40, %v4936_v39  ;;  %v4960_v60 = vand.u32 2139095040, %v10340_v13  ;;  %v4835_v22 = vsub.s32 4, %v4811_v50  ;;  %v5077_v24 = vshrl.u32 %v6776_v63, %v5076_v46 }
 0x53b   : > { %v4941_v19 = vsel %vm10290_vm6, %v10048_v4, %v4938_v54  ;;  %v6268_v51 = vmin.u32 %v4815_v31, %v10351_v3  ;;  %v5092_v44 = vor.u32 %v5091_v7, %v5090_v15  ;;  %vm5093_vm10 = vcmp.lt.s32.totalorder %v5074_v42, 1 }
 0x53c   : > { %6696 = vcosq.f32 %v4941_v19  ;;  %vm5094_vm15 = vcmp.lt.s32.totalorder %v5074_v42, 2  ;;  %vm5096_vm13 = vcmp.lt.s32.totalorder %v5074_v42, 4  ;;  %v5101_v26 = vsel %vm5093_vm10, %v5080_v30, %v5083_v32 }
 0x53d   : > { %6698 = vsinq.f32 %v4941_v19  ;;  %v4817_v57 = vclz %v6268_v51  ;;  %vm5095_vm11 = vcmp.lt.s32.totalorder %v5074_v42, 3  ;;  %v5098_v21 = vsel %vm5096_vm13, %v5086_v18, 2102212464  ;;  %v4257_v51 = vpop.permute.xlu1 %4256 }
 0x53e   : > { %v5102_v56 = vsel %vm5096_vm13, %v5089_v8, 920167782  ;;  %v5105_v43 = vsel %vm5093_vm10, %v5083_v32, %v5086_v18  ;;  %v5097_v29 = vsel %vm5093_vm10, %v5077_v24, %v5080_v30  ;;  %v5106_v20 = vsel %vm5096_vm13, %v5092_v44, 1326507024 }
 0x53f   : > { %v6269_v61 = vadd.s32 4294967294, %v4817_v57  ;;  %v5103_v17 = vsel %vm5095_vm11, %v5086_v18, %v5102_v56  ;;  %v5099_v47 = vsel %vm5095_vm11, %v5083_v32, %v5098_v21  ;;  %v5107_v27 = vsel %vm5095_vm11, %v5089_v8, %v5106_v20 }
 0x540   : > { %v5104_v10 = vsel %vm5094_vm15, %v5101_v26, %v5103_v17  ;;  %v4961_v62 = vshrl.u32 %v4960_v60, 23  ;;  %v5108_v46 = vsel %vm5094_vm15, %v5105_v43, %v5107_v27  ;;  %v4836_v16 = vsel %vm4751_vm12, %v4835_v22, %v4811_v50  ;;  %v10403_v17 = vpop.permute.xlu0 %4247 }
 0x541   : > { %vm6270_vm14 = vcmp.lt.s32.totalorder %v6269_v61, 0  ;;  %v10371_v41 = vmul.u32.u64.low %v10344_v5, %v5104_v10  ;;  %v10372_v39 = vmul.u32.u64.high %v10344_v5, %v5104_v10, %v10371_v41  ;;  %v5100_v58 = vsel %vm5094_vm15, %v5097_v29, %v5099_v47 }
 0x542   : > { %v4820_v45 = vsel %vm6270_vm14, 0, %v6269_v61  ;;  %v10378_v6 = vmul.u32.u64.low %v10344_v5, %v5108_v46  ;;  %v10379_v33 = vmul.u32.u64.high %v10344_v5, %v5108_v46, %v10378_v6  ;;  %v6275_v48 = vadd.s32 4294967169, %v4961_v62 }
 0x543   : > { %v4821_v40 = vsub.s32 32, %v4820_v45  ;;  %v4825_v30 = vsub.s32 4294967266, %v4820_v45  ;;  %vm4948_vm1 = vcmp.lt.s32.totalorder %v10334_v23, 2  ;;  %vm4949_vm6 = vcmp.eq.s32.totalorder %v10334_v23, 0 }
 0x544   : > { %vm10386_vm3 = vcmp.le.f32.partialorder %v4749_v34, 0.7853982  ;;  %v4822_v50 = vshll.u32 %v10351_v3, %v4820_v45  ;;  %v5119_v7 = vadd.s32 1, %v10372_v39  ;;  %v4967_v54 = vadd.s32 1, %v6275_v48 }
 0x545   : > { %v4823_v32 = vshrl.u32 %v4805_v9, %v4821_v40  ;;  %v4826_v15 = vadd.s32 127, %v4825_v30  ;;  %vm4952_vm2 = vcmp.eq.s32.totalorder %v10334_v23, 2  ;;  %v4838_v18 = vsel %vm10386_vm3, 0, %v4836_v16 }
 0x546   : > { %v6697_v42 = vpop.eup %6696  ;;  %v5116_v8 = vmul.u32 %v10344_v5, %v5100_v58  ;;  %vm5118_vm4 = vc.u32 %v10379_v33, %v10371_v41  ;;  %v4957_v24 = vand.u32 2147483647, %v10340_v13  ;;  %vm4968_vm5 = vcmp.gt.s32.totalorder %v4967_v54, 0 }
 0x547   : > { %v6699_v34 = vpop.eup %6698  ;;  %v4953_v60 = vxor.u32 2147483648, %v6697_v42  ;;  %v4824_v19 = vor.u32 %v4823_v32, %v4822_v50  ;;  %v4827_v3 = vshll.u32 %v4826_v15, 23  ;;  %v5120_v9 = vsel %vm5118_vm4, %v5119_v7, %v10372_v39 }
 0x548   : > { %v4950_v22 = vxor.u32 2147483648, %v6699_v34  ;;  %v5121_v44 = vadd.s32 %v5120_v9, %v5116_v8  ;;  %v4842_v21 = vadd.s32 3, %v4838_v18  ;;  %v4969_v5 = vsel %vm4968_vm5, %v4967_v54, 0 }
 0x549   : > { %v4954_v57 = vsel %vm4952_vm2, %v4953_v60, %v6699_v34  ;;  %v4828_v26 = vor.u32 4788187, %v4827_v3  ;;  %v4971_v61 = vand.u32 31, %v4969_v5  ;;  %v4262_v29 = vrot.slane %v4257_v51, %v9773_v12 }
 0x54a   : > { %v4951_v56 = vsel %vm4949_vm6, %v6697_v42, %v4950_v22  ;;  %v5122_v43 = vadd.s32 536870912, %v5121_v44  ;;  %vm4945_vm8 = vweird.f32 %v10048_v4  ;;  %v4831_v10 = vcvt.s32.f32 %v4824_v19 }
 0x54b   : > { %v4955_v20 = vsel %vm4948_vm1, %v4951_v56, %v4954_v57  ;;  %v4829_v47 = vand.u32 2147483647, %v4828_v26  ;;  %v4964_v46 = vand.u32 8388607, %v4957_v24  ;;  %v4972_v39 = vsub.s32 32, %v4971_v61 }
 0x54c   : > { %v4956_v27 = vsel %vm4945_vm8, nan, %v4955_v20  ;;  %v5123_v62 = vshrl.u32 %v5122_v43, 30  ;;  %v10414_v16 = vand.u32 3, %v4842_v21  ;;  %v4253_v4 = vrot.slane %v10403_v17, %v9773_v12 }
 0x54d   : > { %6008 = vst.msk [vmem:[%s6891_s22 + $0x50] sm:$0xff] %vm5997_vm0, %v4956_v27  ;;  %6009 = vst.msk [vmem:[%s6891_s22 + $0x58] sm:$0xff] %vm5997_vm0, %v4956_v27  ;;  %v4832_v45 = vmul.f32 %v4831_v10, %v4829_v47  ;;  %v4974_v6 = vshll.u32 %v6776_v63, %v4971_v61  ;;  %v4975_v40 = vshrl.u32 %v6777_v28, %v4972_v39  ;;  %v4965_v7 = vor.u32 8388608, %v4964_v46 }
 0x54e   : > { %v5124_v23 = vshll.u32 %v5123_v62, 30  ;;  %v10421_v30 = vadd.f32 %v4262_v29, %v9796_v55  ;;  %v4978_v48 = vshrl.u32 %v6778_v35, %v4972_v39  ;;  %v4981_v50 = vshrl.u32 %v6779_v49, %v4972_v39 }
 0x54f   : > { %v4833_v58 = vxor.u32 2147483648, %v4832_v45  ;;  %v4984_v32 = vshrl.u32 %v6780_v59, %v4972_v39  ;;  %v4970_v54 = vshrl.u32 %v4969_v5, 5  ;;  %v4977_v42 = vshll.u32 %v6777_v28, %v4971_v61 }
 0x550   : > { %v10426_v15 = vsub.s32 %v5121_v44, %v5124_v23  ;;  %vm5063_vm9 = vcmp.lt.s32.totalorder %v10279_v52, 0  ;;  %v4976_v55 = vor.u32 %v4975_v40, %v4974_v6  ;;  %v4980_v8 = vshll.u32 %v6778_v35, %v4971_v61 }
 0x551   : > { %v4834_v18 = vsel %vm4751_vm12, %v4833_v58, %v4832_v45  ;;  %v4983_v34 = vshll.u32 %v6779_v49, %v4971_v61  ;;  %v4979_v3 = vor.u32 %v4978_v48, %v4977_v42  ;;  %v4986_v9 = vshll.u32 %v6780_v59, %v4971_v61 }
 0x552   : > { %v4837_v60 = vsel %vm10386_vm3, %v10160_v11, %v4834_v18  ;;  %v5127_v19 = vsub.s32 0, %v10426_v15  ;;  %v4982_v51 = vor.u32 %v4981_v50, %v4980_v8  ;;  %v4987_v44 = vshrl.u32 %v6781_v53, %v4972_v39 }
 0x553   : > { %6700 = vcosq.f32 %v4837_v60  ;;  %v4985_v22 = vor.u32 %v4984_v32, %v4983_v34  ;;  %vm10442_vm7 = vcmp.le.f32.partialorder %v5061_v37, 0.7853982  ;;  %v5147_v26 = vsub.s32 4, %v5123_v62 }
 0x554   : > { %6702 = vsinq.f32 %v4837_v60  ;;  %v6280_v31 = vmin.u32 %v5127_v19, %v10426_v15  ;;  %v5005_v21 = vshll.u32 %v4965_v7, 8  ;;  %v4973_v5 = vshrl.u32 %v6776_v63, %v4972_v39 }
 0x555   : > { %v4988_v56 = vor.u32 %v4987_v44, %v4986_v9  ;;  %vm4989_vm12 = vcmp.lt.s32.totalorder %v4970_v54, 1  ;;  %vm4990_vm10 = vcmp.lt.s32.totalorder %v4970_v54, 2  ;;  %vm4991_vm15 = vcmp.lt.s32.totalorder %v4970_v54, 3 }
 0x556   : > { %v5129_v43 = vclz %v6280_v31  ;;  %vm4992_vm13 = vcmp.lt.s32.totalorder %v4970_v54, 4  ;;  %v4997_v61 = vsel %vm4989_vm12, %v4976_v55, %v4979_v3  ;;  %v5001_v47 = vsel %vm4989_vm12, %v4979_v3, %v4982_v51 }
 0x557   : > { %v4994_v29 = vsel %vm4992_vm13, %v4982_v51, 2102212464  ;;  %v4998_v20 = vsel %vm4992_vm13, %v4985_v22, 920167782  ;;  %v5002_v37 = vsel %vm4992_vm13, %v4988_v56, 1326507024  ;;  %v4993_v27 = vsel %vm4989_vm12, %v4973_v5, %v4976_v55 }
 0x558   : > { %vm4845_vm11 = vcmp.eq.s32.totalorder %v10414_v16, 0  ;;  %v6281_v10 = vadd.s32 4294967294, %v5129_v43  ;;  %v4999_v46 = vsel %vm4991_vm15, %v4982_v51, %v4998_v20  ;;  %v5003_v45 = vsel %vm4991_vm15, %v4985_v22, %v5002_v37 }
 0x559   : > { %v4995_v23 = vsel %vm4991_vm15, %v4979_v3, %v4994_v29  ;;  %v5000_v39 = vsel %vm4990_vm10, %v4997_v61, %v4999_v46  ;;  %v5004_v6 = vsel %vm4990_vm10, %v5001_v47, %v5003_v45  ;;  %v5272_v40 = vand.u32 2139095040, %v10421_v30 }
 0x55a   : > { %vm6282_vm14 = vcmp.lt.s32.totalorder %v6281_v10, 0  ;;  %v5148_v58 = vsel %vm5063_vm9, %v5147_v26, %v5123_v62  ;;  %v10454_v48 = vmul.u32.u64.low %v5005_v21, %v5004_v6  ;;  %v10455_v50 = vmul.u32.u64.high %v5005_v21, %v5004_v6, %v10454_v48 }
 0x55b   : > { %v5132_v32 = vsel %vm6282_vm14, 0, %v6281_v10  ;;  %v10457_v7 = vmul.u32.u64.low %v5005_v21, %v5000_v39  ;;  %v10458_v42 = vmul.u32.u64.high %v5005_v21, %v5000_v39, %v10457_v7  ;;  %v5273_v18 = vshrl.u32 %v5272_v40, 23 }
 0x55c   : > { %v5117_v55 = vadd.s32 %v10371_v41, %v10379_v33  ;;  %v5133_v8 = vsub.s32 32, %v5132_v32  ;;  %v5137_v34 = vsub.s32 4294967266, %v5132_v32  ;;  %v4996_v60 = vsel %vm4990_vm10, %v4993_v27, %v4995_v23 }
 0x55d   : > { %v6701_v19 = vpop.eup %6700  ;;  %vm4848_vm1 = vcmp.eq.s32.totalorder %v10414_v16, 2  ;;  %v5150_v62 = vsel %vm10442_vm7, 0, %v5148_v58  ;;  %v5269_v3 = vand.u32 2147483647, %v10421_v30  ;;  %v6287_v9 = vadd.s32 4294967169, %v5273_v18 }
 0x55e   : > { %v6703_v51 = vpop.eup %6702  ;;  %v4849_v22 = vxor.u32 2147483648, %v6701_v19  ;;  %v5134_v44 = vshll.u32 %v10426_v15, %v5132_v32  ;;  %v5135_v31 = vshrl.u32 %v5117_v55, %v5133_v8  ;;  %v5138_v26 = vadd.s32 127, %v5137_v34 }
 0x55f   : > { %v4846_v41 = vxor.u32 2147483648, %v6703_v51  ;;  %v5012_v33 = vmul.u32 %v5005_v21, %v4996_v60  ;;  %vm5014_vm6 = vc.u32 %v10455_v50, %v10457_v7  ;;  %v5015_v54 = vadd.s32 1, %v10458_v42 }
 0x560   : > { %v4850_v5 = vsel %vm4848_vm1, %v4849_v22, %v6703_v51  ;;  %v5136_v56 = vor.u32 %v5135_v31, %v5134_v44  ;;  %v5139_v43 = vshll.u32 %v5138_v26, 23  ;;  %v5279_v61 = vadd.s32 1, %v6287_v9 }
 0x561   : > { %vm4841_vm3 = vweird.f32 %v10160_v11  ;;  %vm4844_vm2 = vcmp.lt.s32.totalorder %v10414_v16, 2  ;;  %v4847_v15 = vsel %vm4845_vm11, %v6701_v19, %v4846_v41  ;;  %v5016_v21 = vsel %vm5014_vm6, %v5015_v54, %v10458_v42 }
 0x562   : > { %v4851_v29 = vsel %vm4844_vm2, %v4847_v15, %v4850_v5  ;;  %v5140_v20 = vor.u32 4788187, %v5139_v43  ;;  %v5017_v47 = vadd.s32 %v5016_v21, %v5012_v33  ;;  %v10481_v37 = vadd.f32 %v4253_v4, %v9799_v14 }
 0x563   : > { %v4852_v10 = vsel %vm4841_vm3, nan, %v4851_v29  ;;  %v5154_v27 = vadd.s32 3, %v5150_v62  ;;  %v5276_v11 = vand.u32 8388607, %v5269_v3  ;;  %vm5280_vm4 = vcmp.gt.s32.totalorder %v5279_v61, 0 }
 0x564   : > { %6006 = vst.msk [vmem:[%s6891_s22 + $0x40] sm:$0xff] %vm5997_vm0, %v4852_v10  ;;  %6007 = vst.msk [vmem:[%s6891_s22 + $0x48] sm:$0xff] %vm5997_vm0, %v4852_v10  ;;  %v5141_v16 = vand.u32 2147483647, %v5140_v20  ;;  %v5143_v46 = vcvt.s32.f32 %v5136_v56  ;;  %v5018_v45 = vadd.s32 536870912, %v5017_v47  ;;  %v5281_v23 = vsel %vm5280_vm4, %v5279_v61, 0 }
 0x565   : > { %v5283_v39 = vand.u32 31, %v5281_v23  ;;  %vm4959_vm5 = vcmp.lt.s32.totalorder %v10340_v13, 0  ;;  %v10490_v17 = vand.u32 3, %v5154_v27  ;;  %v5277_v4 = vor.u32 8388608, %v5276_v11 }
 0x566   : > { %v5144_v6 = vmul.f32 %v5143_v46, %v5141_v16  ;;  %v5019_v14 = vshrl.u32 %v5018_v45, 30  ;;  %v5168_v58 = vand.u32 2139095040, %v10481_v37  ;;  %v5282_v42 = vshrl.u32 %v5281_v23, 5 }
 0x567   : > { %v5284_v40 = vsub.s32 32, %v5283_v39  ;;  %v5286_v18 = vshll.u32 %v6776_v63, %v5283_v39  ;;  %v5289_v8 = vshll.u32 %v6777_v28, %v5283_v39  ;;  %v5292_v9 = vshll.u32 %v6778_v35, %v5283_v39 }
 0x568   : > { %v5145_v48 = vxor.u32 2147483648, %v5144_v6  ;;  %v5020_v32 = vshll.u32 %v5019_v14, 30  ;;  %v5043_v44 = vsub.s32 4, %v5019_v14  ;;  %v5295_v26 = vshll.u32 %v6779_v49, %v5283_v39 }
 0x569   : > { %v5287_v55 = vshrl.u32 %v6777_v28, %v5284_v40  ;;  %v5290_v34 = vshrl.u32 %v6778_v35, %v5284_v40  ;;  %v5293_v60 = vshrl.u32 %v6779_v49, %v5284_v40  ;;  %v5296_v51 = vshrl.u32 %v6780_v59, %v5284_v40 }
 0x56a   : > { %v5146_v19 = vsel %vm5063_vm9, %v5145_v48, %v5144_v6  ;;  %v10500_v62 = vsub.s32 %v5017_v47, %v5020_v32  ;;  %v5298_v56 = vshll.u32 %v6780_v59, %v5283_v39  ;;  %v5299_v43 = vshrl.u32 %v6781_v53, %v5284_v40 }
 0x56b   : > { %v5149_v22 = vsel %vm10442_vm7, %v10279_v52, %v5146_v19  ;;  %v5288_v31 = vor.u32 %v5287_v55, %v5286_v18  ;;  %v5291_v33 = vor.u32 %v5290_v34, %v5289_v8  ;;  %v5294_v54 = vor.u32 %v5293_v60, %v5292_v9 }
 0x56c   : > { %6704 = vcosq.f32 %v5149_v22  ;;  %v5023_v41 = vsub.s32 0, %v10500_v62  ;;  %v5297_v5 = vor.u32 %v5296_v51, %v5295_v26  ;;  %vm10513_vm8 = vcmp.le.f32.partialorder %v4957_v24, 0.7853982 }
 0x56d   : > { %6706 = vsinq.f32 %v5149_v22  ;;  %v5317_v15 = vshll.u32 %v5277_v4, 8  ;;  %v5165_v21 = vand.u32 2147483647, %v10481_v37  ;;  %v5169_v29 = vshrl.u32 %v5168_v58, 23 }
 0x56e   : > { %v6276_v61 = vmin.u32 %v5023_v41, %v10500_v62  ;;  %v5044_v20 = vsel %vm4959_vm5, %v5043_v44, %v5019_v14  ;;  %v5285_v47 = vshrl.u32 %v6776_v63, %v5284_v40  ;;  %v5300_v10 = vor.u32 %v5299_v43, %v5298_v56 }
 0x56f   : > { %vm5301_vm9 = vcmp.lt.s32.totalorder %v5282_v42, 1  ;;  %vm5160_vm7 = vcmp.eq.s32.totalorder %v10490_v17, 2  ;;  %vm5302_vm12 = vcmp.lt.s32.totalorder %v5282_v42, 2  ;;  %vm5303_vm10 = vcmp.lt.s32.totalorder %v5282_v42, 3 }
 0x570   : > { %v5025_v27 = vclz %v6276_v61  ;;  %vm5304_vm15 = vcmp.lt.s32.totalorder %v5282_v42, 4  ;;  %vm5157_vm13 = vcmp.eq.s32.totalorder %v10490_v17, 0  ;;  %v5309_v11 = vsel %vm5301_vm9, %v5288_v31, %v5291_v33 }
 0x571   : > { %v5306_v24 = vsel %vm5304_vm15, %v5294_v54, 2102212464  ;;  %v5310_v16 = vsel %vm5304_vm15, %v5297_v5, 920167782  ;;  %v5313_v46 = vsel %vm5301_vm9, %v5291_v33, %v5294_v54  ;;  %vm5156_vm11 = vcmp.lt.s32.totalorder %v10490_v17, 2 }
 0x572   : > { %v6277_v45 = vadd.s32 4294967294, %v5025_v27  ;;  %v5305_v23 = vsel %vm5301_vm9, %v5285_v47, %v5288_v31  ;;  %v5311_v39 = vsel %vm5303_vm10, %v5294_v54, %v5310_v16  ;;  %v5314_v6 = vsel %vm5304_vm15, %v5300_v10, 1326507024 }
 0x573   : > { %vm5153_vm14 = vweird.f32 %v10279_v52  ;;  %v5307_v14 = vsel %vm5303_vm10, %v5291_v33, %v5306_v24  ;;  %v5312_v4 = vsel %vm5302_vm12, %v5309_v11, %v5311_v39  ;;  %v5315_v40 = vsel %vm5303_vm10, %v5297_v5, %v5314_v6 }
 0x574   : > { %v6283_v58 = vadd.s32 4294967169, %v5169_v29  ;;  %vm6278_vm1 = vcmp.lt.s32.totalorder %v6277_v45, 0  ;;  %v5316_v48 = vsel %vm5302_vm12, %v5313_v46, %v5315_v40  ;;  %v5013_v55 = vadd.s32 %v10457_v7, %v10455_v50 }
 0x575   : > { %v10528_v32 = vmul.u32.u64.low %v5317_v15, %v5312_v4  ;;  %v10529_v18 = vmul.u32.u64.high %v5317_v15, %v5312_v4, %v10528_v32  ;;  %v5028_v8 = vsel %vm6278_vm1, 0, %v6277_v45  ;;  %v5308_v22 = vsel %vm5302_vm12, %v5305_v23, %v5307_v14  ;;  %v10555_v45 = vpop.permute.xlu0 %4265 }
 0x576   : > { %v10534_v34 = vmul.u32.u64.low %v5317_v15, %v5316_v48  ;;  %v10535_v60 = vmul.u32.u64.high %v5317_v15, %v5316_v48, %v10534_v34  ;;  %v6705_v19 = vpop.eup %6704  ;;  %v5029_v9 = vsub.s32 32, %v5028_v8  ;;  %v5033_v51 = vsub.s32 4294967266, %v5028_v8 }
 0x577   : > { %v5175_v44 = vadd.s32 1, %v6283_v58  ;;  %v6707_v31 = vpop.eup %6706  ;;  %v5161_v26 = vxor.u32 2147483648, %v6705_v19  ;;  %v5030_v41 = vshll.u32 %v10500_v62, %v5028_v8  ;;  %v5046_v33 = vsel %vm10513_vm8, 0, %v5044_v20 }
 0x578   : > { %v5172_v50 = vand.u32 8388607, %v5165_v21  ;;  %v5158_v7 = vxor.u32 2147483648, %v6707_v31  ;;  %v5031_v54 = vshrl.u32 %v5013_v55, %v5029_v9  ;;  %v5034_v5 = vadd.s32 127, %v5033_v51 }
 0x579   : > { %v5327_v56 = vadd.s32 1, %v10529_v18  ;;  %v5162_v42 = vsel %vm5160_vm7, %v5161_v26, %v6707_v31  ;;  %v5324_v43 = vmul.u32 %v5317_v15, %v5308_v22  ;;  %vm5326_vm6 = vc.u32 %v10535_v60, %v10528_v32  ;;  %v4275_v15 = vpop.permute.xlu1 %4274 }
 0x57a   : > { %vm5176_vm3 = vcmp.gt.s32.totalorder %v5175_v44, 0  ;;  %v5159_v62 = vsel %vm5157_vm13, %v6705_v19, %v5158_v7  ;;  %v5032_v61 = vor.u32 %v5031_v54, %v5030_v41  ;;  %v5035_v29 = vshll.u32 %v5034_v5, 23 }
 0x57b   : > { %v5328_v20 = vsel %vm5326_vm6, %v5327_v56, %v10529_v18  ;;  %v5163_v47 = vsel %vm5156_vm11, %v5159_v62, %v5162_v42  ;;  %v5050_v10 = vadd.s32 3, %v5046_v33  ;;  %v5177_v24 = vsel %vm5176_vm3, %v5175_v44, 0 }
 0x57c   : > { %v5329_v27 = vadd.s32 %v5328_v20, %v5324_v43  ;;  %v5164_v11 = vsel %vm5153_vm14, nan, %v5163_v47  ;;  %v5036_v16 = vor.u32 4788187, %v5035_v29  ;;  %v5173_v46 = vor.u32 8388608, %v5172_v50 }
 0x57d   : > { %6012 = vst.msk [vmem:[%s6891_s22 + $0x70] sm:$0xff] %vm5997_vm0, %v5164_v11  ;;  %6013 = vst.msk [vmem:[%s6891_s22 + $0x78] sm:$0xff] %vm5997_vm0, %v5164_v11  ;;  %v5179_v39 = vand.u32 31, %v5177_v24  ;;  %v5039_v17 = vcvt.s32.f32 %v5032_v61  ;;  %v4280_v14 = vrot.slane %v4275_v15, %v9773_v12  ;;  %v10562_v4 = vand.u32 3, %v5050_v10 }
 0x57e   : > { %v5330_v23 = vadd.s32 536870912, %v5329_v27  ;;  %v5037_v6 = vand.u32 2147483647, %v5036_v16  ;;  %v4271_v52 = vrot.slane %v10555_v45, %v9773_v12  ;;  %vm5271_vm2 = vcmp.lt.s32.totalorder %v10421_v30, 0 }
 0x57f   : > { %v5180_v58 = vsub.s32 32, %v5179_v39  ;;  %v10567_v18 = vshrl.u32 %v5177_v24, 5  ;;  %v5182_v55 = vshll.u32 %v6776_v63, %v5179_v39  ;;  %v10570_v8 = vshll.u32 %v5173_v46, 8 }
 0x580   : > { %v5331_v40 = vshrl.u32 %v5330_v23, 30  ;;  %v5040_v48 = vmul.f32 %v5039_v17, %v5037_v6  ;;  %v5185_v9 = vshll.u32 %v6777_v28, %v5179_v39  ;;  %v5188_v51 = vshll.u32 %v6778_v35, %v5179_v39 }
 0x581   : > { %v5183_v19 = vshrl.u32 %v6777_v28, %v5180_v58  ;;  %v5186_v44 = vshrl.u32 %v6778_v35, %v5180_v58  ;;  %v5189_v31 = vshrl.u32 %v6779_v49, %v5180_v58  ;;  %v5192_v26 = vshrl.u32 %v6780_v59, %v5180_v58 }
 0x582   : > { %v5332_v34 = vshll.u32 %v5331_v40, 30  ;;  %v5041_v22 = vxor.u32 2147483648, %v5040_v48  ;;  %v5191_v33 = vshll.u32 %v6779_v49, %v5179_v39  ;;  %v5194_v50 = vshll.u32 %v6780_v59, %v5179_v39 }
 0x583   : > { %v5195_v7 = vshrl.u32 %v6781_v53, %v5180_v58  ;;  %vm10587_vm4 = vcmp.le.f32.partialorder %v5269_v3, 0.7853982  ;;  %v5184_v56 = vor.u32 %v5183_v19, %v5182_v55  ;;  %v5187_v42 = vor.u32 %v5186_v44, %v5185_v9 }
 0x584   : > { %v10578_v41 = vsub.s32 %v5329_v27, %v5332_v34  ;;  %v5042_v54 = vsel %vm4959_vm5, %v5041_v22, %v5040_v48  ;;  %v5190_v43 = vor.u32 %v5189_v31, %v5188_v51  ;;  %v5355_v29 = vsub.s32 4, %v5331_v40 }
 0x585   : > { %v5045_v62 = vsel %vm10513_vm8, %v10340_v13, %v5042_v54  ;;  %v5193_v20 = vor.u32 %v5192_v26, %v5191_v33  ;;  %v5196_v47 = vor.u32 %v5195_v7, %v5194_v50  ;;  %vm5197_vm5 = vcmp.lt.s32.totalorder %v10567_v18, 1 }
 0x586   : > { %v5335_v61 = vsub.s32 0, %v10578_v41  ;;  %6708 = vcosq.f32 %v5045_v62  ;;  %v10597_v3 = vadd.f32 %v4280_v14, %v9804_v36  ;;  %vm5198_vm9 = vcmp.lt.s32.totalorder %v10567_v18, 2 }
 0x587   : > { %6710 = vsinq.f32 %v5045_v62  ;;  %vm5200_vm7 = vcmp.lt.s32.totalorder %v10567_v18, 4  ;;  %v5181_v57 = vshrl.u32 %v6776_v63, %v5180_v58  ;;  %v5205_v24 = vsel %vm5197_vm5, %v5184_v56, %v5187_v42 }
 0x588   : > { %v6288_v10 = vmin.u32 %v5335_v61, %v10578_v41  ;;  %v5202_v27 = vsel %vm5200_vm7, %v5190_v43, 2102212464  ;;  %v5206_v15 = vsel %vm5200_vm7, %v5193_v20, 920167782  ;;  %v5356_v16 = vsel %vm5271_vm2, %v5355_v29, %v5331_v40 }
 0x589   : > { %vm5199_vm8 = vcmp.lt.s32.totalorder %v10567_v18, 3  ;;  %v5209_v36 = vsel %vm5197_vm5, %v5187_v42, %v5190_v43  ;;  %v5201_v46 = vsel %vm5197_vm5, %v5181_v57, %v5184_v56  ;;  %v5210_v39 = vsel %vm5200_vm7, %v5196_v47, 1326507024 }
 0x58a   : > { %v5337_v11 = vclz %v6288_v10  ;;  %v5207_v23 = vsel %vm5199_vm8, %v5190_v43, %v5206_v15  ;;  %v5480_v6 = vand.u32 2139095040, %v10597_v3  ;;  %vm5053_vm12 = vcmp.eq.s32.totalorder %v10562_v4, 0 }
 0x58b   : > { %v5203_v14 = vsel %vm5199_vm8, %v5187_v42, %v5202_v27  ;;  %v5208_v58 = vsel %vm5198_vm9, %v5205_v24, %v5207_v23  ;;  %v5211_v48 = vsel %vm5199_vm8, %v5193_v20, %v5210_v39  ;;  %vm5052_vm10 = vcmp.lt.s32.totalorder %v10562_v4, 2 }
 0x58c   : > { %v6289_v17 = vadd.s32 4294967294, %v5337_v11  ;;  %v5212_v40 = vsel %vm5198_vm9, %v5209_v36, %v5211_v48  ;;  %v10614_v55 = vmul.u32.u64.low %v10570_v8, %v5208_v58  ;;  %v10615_v34 = vmul.u32.u64.high %v10570_v8, %v5208_v58, %v10614_v55 }
 0x58d   : > { %v5481_v19 = vshrl.u32 %v5480_v6, 23  ;;  %v5358_v9 = vsel %vm10587_vm4, 0, %v5356_v16  ;;  %v10621_v51 = vmul.u32.u64.low %v10570_v8, %v5212_v40  ;;  %v10622_v22 = vmul.u32.u64.high %v10570_v8, %v5212_v40, %v10621_v51 }
 0x58e   : > { %vm6290_vm15 = vcmp.lt.s32.totalorder %v6289_v17, 0  ;;  %vm5056_vm13 = vcmp.eq.s32.totalorder %v10562_v4, 2  ;;  %v10629_v26 = vadd.f32 %v4271_v52, %v9807_v38  ;;  %v5325_v33 = vadd.s32 %v10528_v32, %v10535_v60 }
 0x58f   : > { %v5340_v44 = vsel %vm6290_vm15, 0, %v6289_v17  ;;  %v6295_v31 = vadd.s32 4294967169, %v5481_v19  ;;  %v5204_v54 = vsel %vm5198_vm9, %v5201_v46, %v5203_v14  ;;  %v5362_v42 = vadd.s32 3, %v5358_v9 }
 0x590   : > { %v5341_v50 = vsub.s32 32, %v5340_v44  ;;  %v5345_v7 = vsub.s32 4294967266, %v5340_v44  ;;  %v6709_v56 = vpop.eup %6708  ;;  %v5223_v43 = vadd.s32 1, %v10615_v34  ;;  %v5477_v62 = vand.u32 2147483647, %v10597_v3 }
 0x591   : > { %v5487_v61 = vadd.s32 1, %v6295_v31  ;;  %v6711_v29 = vpop.eup %6710  ;;  %v5057_v20 = vxor.u32 2147483648, %v6709_v56  ;;  %v5342_v38 = vshll.u32 %v10578_v41, %v5340_v44  ;;  %v5220_v32 = vmul.u32 %v10570_v8, %v5204_v54 }
 0x592   : > { %v5343_v45 = vshrl.u32 %v5325_v33, %v5341_v50  ;;  %v5346_v52 = vadd.s32 127, %v5345_v7  ;;  %v5054_v47 = vxor.u32 2147483648, %v6711_v29  ;;  %vm5222_vm11 = vc.u32 %v10622_v22, %v10614_v55 }
 0x593   : > { %vm5488_vm14 = vcmp.gt.s32.totalorder %v5487_v61, 0  ;;  %v5058_v60 = vsel %vm5056_vm13, %v5057_v20, %v6711_v29  ;;  %v5224_v57 = vsel %vm5222_vm11, %v5223_v43, %v10615_v34  ;;  %v5484_v8 = vand.u32 8388607, %v5477_v62 }
 0x594   : > { %v5344_v18 = vor.u32 %v5343_v45, %v5342_v38  ;;  %v5347_v10 = vshll.u32 %v5346_v52, 23  ;;  %v5055_v41 = vsel %vm5053_vm12, %v6709_v56, %v5054_v47  ;;  %v5225_v27 = vadd.s32 %v5224_v57, %v5220_v32 }
 0x595   : > { %v5489_v24 = vsel %vm5488_vm14, %v5487_v61, 0  ;;  %vm5049_vm1 = vweird.f32 %v10340_v13  ;;  %v5059_v15 = vsel %vm5052_vm10, %v5055_v41, %v5058_v60  ;;  %v5376_v16 = vand.u32 2139095040, %v10629_v26 }
 0x596   : > { %v5348_v11 = vor.u32 4788187, %v5347_v10  ;;  %v5060_v36 = vsel %vm5049_vm1, nan, %v5059_v15  ;;  %v5226_v46 = vadd.s32 536870912, %v5225_v27  ;;  %v5491_v23 = vand.u32 31, %v5489_v24 }
 0x597   : > { %6010 = vst.msk [vmem:[%s6891_s22 + $0x60] sm:$0xff] %vm5997_vm0, %v5060_v36  ;;  %6011 = vst.msk [vmem:[%s6891_s22 + $0x68] sm:$0xff] %vm5997_vm0, %v5060_v36  ;;  %v5351_v6 = vcvt.s32.f32 %v5344_v18  ;;  %v10656_v17 = vand.u32 3, %v5362_v42  ;;  %v5485_v58 = vor.u32 8388608, %v5484_v8  ;;  %v5490_v4 = vshrl.u32 %v5489_v24, 5 }
 0x598   : > { %v5349_v39 = vand.u32 2147483647, %v5348_v11  ;;  %v5227_v14 = vshrl.u32 %v5226_v46, 30  ;;  %v5492_v13 = vsub.s32 32, %v5491_v23  ;;  %v5494_v40 = vshll.u32 %v6776_v63, %v5491_v23 }
 0x599   : > { %v5377_v34 = vshrl.u32 %v5376_v16, 23  ;;  %v5497_v51 = vshll.u32 %v6777_v28, %v5491_v23  ;;  %v5500_v44 = vshll.u32 %v6778_v35, %v5491_v23  ;;  %vm5167_vm6 = vcmp.lt.s32.totalorder %v10481_v37, 0 }
 0x59a   : > { %v5352_v48 = vmul.f32 %v5351_v6, %v5349_v39  ;;  %v5228_v19 = vshll.u32 %v5227_v14, 30  ;;  %v5495_v9 = vshrl.u32 %v6777_v28, %v5492_v13  ;;  %v5498_v33 = vshrl.u32 %v6778_v35, %v5492_v13 }
 0x59b   : > { %v5501_v50 = vshrl.u32 %v6779_v49, %v5492_v13  ;;  %v5504_v7 = vshrl.u32 %v6780_v59, %v5492_v13  ;;  %v5503_v56 = vshll.u32 %v6779_v49, %v5491_v23  ;;  %v5506_v42 = vshll.u32 %v6780_v59, %v5491_v23 }
 0x59c   : > { %v5353_v31 = vxor.u32 2147483648, %v5352_v48  ;;  %v10666_v54 = vsub.s32 %v5225_v27, %v5228_v19  ;;  %v5507_v43 = vshrl.u32 %v6781_v53, %v5492_v13  ;;  %v5496_v29 = vor.u32 %v5495_v9, %v5494_v40 }
 0x59d   : > { %v5499_v20 = vor.u32 %v5498_v33, %v5497_v51  ;;  %v5502_v38 = vor.u32 %v5501_v50, %v5500_v44  ;;  %v5505_v47 = vor.u32 %v5504_v7, %v5503_v56  ;;  %vm5509_vm3 = vcmp.lt.s32.totalorder %v5490_v4, 1 }
 0x59e   : > { %v5354_v61 = vsel %vm5271_vm2, %v5353_v31, %v5352_v48  ;;  %v5231_v52 = vsub.s32 0, %v10666_v54  ;;  %v5251_v32 = vsub.s32 4, %v5227_v14  ;;  %v5508_v60 = vor.u32 %v5507_v43, %v5506_v42 }
 0x59f   : > { %v5357_v45 = vsel %vm10587_vm4, %v10421_v30, %v5354_v61  ;;  %vm5512_vm5 = vcmp.lt.s32.totalorder %v5490_v4, 4  ;;  %vm10679_vm9 = vcmp.le.f32.partialorder %v5165_v21, 0.7853982  ;;  %v5493_v5 = vshrl.u32 %v6776_v63, %v5492_v13 }
 0x5a0   : > { %6712 = vcosq.f32 %v5357_v45  ;;  %v6284_v10 = vmin.u32 %v5231_v52, %v10666_v54  ;;  %v5514_v57 = vsel %vm5512_vm5, %v5502_v38, 2102212464  ;;  %vm5511_vm2 = vcmp.lt.s32.totalorder %v5490_v4, 3 }
 0x5a1   : > { %6714 = vsinq.f32 %v5357_v45  ;;  %v5517_v41 = vsel %vm5509_vm3, %v5496_v29, %v5499_v20  ;;  %v5518_v27 = vsel %vm5512_vm5, %v5505_v47, 920167782  ;;  %v5525_v8 = vshll.u32 %v5485_v58, 8 }
 0x5a2   : > { %v5233_v24 = vclz %v6284_v10  ;;  %v5513_v15 = vsel %vm5509_vm3, %v5493_v5, %v5496_v29  ;;  %v5515_v11 = vsel %vm5511_vm2, %v5499_v20, %v5514_v57  ;;  %v5521_v21 = vsel %vm5509_vm3, %v5499_v20, %v5502_v38 }
 0x5a3   : > { %vm5510_vm4 = vcmp.lt.s32.totalorder %v5490_v4, 2  ;;  %v5519_v16 = vsel %vm5511_vm2, %v5502_v38, %v5518_v27  ;;  %v5522_v36 = vsel %vm5512_vm5, %v5508_v60, 1326507024  ;;  %v6291_v46 = vadd.s32 4294967169, %v5377_v34 }
 0x5a4   : > { %v6285_v23 = vadd.s32 4294967294, %v5233_v24  ;;  %v5252_v39 = vsel %vm5167_vm6, %v5251_v32, %v5227_v14  ;;  %v5520_v6 = vsel %vm5510_vm4, %v5517_v41, %v5519_v16  ;;  %v5523_v13 = vsel %vm5511_vm2, %v5505_v47, %v5522_v36  ;;  %v4293_v41 = vpop.permute.xlu1 %4292 }
 0x5a5   : > { %v5516_v48 = vsel %vm5510_vm4, %v5513_v15, %v5515_v11  ;;  %v5524_v40 = vsel %vm5510_vm4, %v5521_v21, %v5523_v13  ;;  %v10693_v58 = vmul.u32.u64.low %v5525_v8, %v5520_v6  ;;  %v10694_v19 = vmul.u32.u64.high %v5525_v8, %v5520_v6, %v10693_v58 }
 0x5a6   : > { %vm6286_vm7 = vcmp.lt.s32.totalorder %v6285_v23, 0  ;;  %v10697_v9 = vmul.u32.u64.low %v5525_v8, %v5524_v40  ;;  %v10698_v51 = vmul.u32.u64.high %v5525_v8, %v5524_v40, %v10697_v9  ;;  %v5383_v44 = vadd.s32 1, %v6291_v46 }
 0x5a7   : > { %vm5365_vm8 = vcmp.eq.s32.totalorder %v10656_v17, 0  ;;  %vm5368_vm12 = vcmp.eq.s32.totalorder %v10656_v17, 2  ;;  %v5236_v4 = vsel %vm6286_vm7, 0, %v6285_v23  ;;  %v5373_v14 = vand.u32 2147483647, %v10629_v26 }
 0x5a8   : > { %v5221_v34 = vadd.s32 %v10614_v55, %v10622_v22  ;;  %v5237_v31 = vsub.s32 32, %v5236_v4  ;;  %v5241_v33 = vsub.s32 4294967266, %v5236_v4  ;;  %vm5384_vm10 = vcmp.gt.s32.totalorder %v5383_v44, 0 }
 0x5a9   : > { %v5254_v7 = vsel %vm10679_vm9, 0, %v5252_v39  ;;  %v5532_v56 = vmul.u32 %v5525_v8, %v5516_v48  ;;  %v5535_v42 = vadd.s32 1, %v10694_v19  ;;  %v5385_v43 = vsel %vm5384_vm10, %v5383_v44, 0 }
 0x5aa   : > { %v6713_v50 = vpop.eup %6712  ;;  %v5238_v20 = vshll.u32 %v10666_v54, %v5236_v4  ;;  %v5239_v38 = vshrl.u32 %v5221_v34, %v5237_v31  ;;  %v5242_v45 = vadd.s32 127, %v5241_v33  ;;  %vm5534_vm15 = vc.u32 %v10698_v51, %v10693_v58 }
 0x5ab   : > { %v6715_v61 = vpop.eup %6714  ;;  %v5369_v29 = vxor.u32 2147483648, %v6713_v50  ;;  %v5380_v55 = vand.u32 8388607, %v5373_v14  ;;  %v5387_v22 = vand.u32 31, %v5385_v43  ;;  %v5536_v10 = vsel %vm5534_vm15, %v5535_v42, %v10694_v19 }
 0x5ac   : > { %v5366_v52 = vxor.u32 2147483648, %v6715_v61  ;;  %v5240_v32 = vor.u32 %v5239_v38, %v5238_v20  ;;  %v5243_v60 = vshll.u32 %v5242_v45, 23  ;;  %vm5364_vm13 = vcmp.lt.s32.totalorder %v10656_v17, 2 }
 0x5ad   : > { %v5370_v47 = vsel %vm5368_vm12, %v5369_v29, %v6715_v61  ;;  %v5537_v5 = vadd.s32 %v5536_v10, %v5532_v56  ;;  %v5388_v57 = vsub.s32 32, %v5387_v22  ;;  %vm5361_vm11 = vweird.f32 %v10421_v30 }
 0x5ae   : > { %v5367_v54 = vsel %vm5365_vm8, %v6713_v50, %v5366_v52  ;;  %v5244_v8 = vor.u32 4788187, %v5243_v60  ;;  %v5258_v24 = vadd.s32 3, %v5254_v7  ;;  %v5381_v21 = vor.u32 8388608, %v5380_v55 }
 0x5af   : > { %v5371_v27 = vsel %vm5364_vm13, %v5367_v54, %v5370_v47  ;;  %v5538_v11 = vadd.s32 536870912, %v5537_v5  ;;  %v5391_v16 = vshrl.u32 %v6777_v28, %v5388_v57  ;;  %v5247_v17 = vcvt.s32.f32 %v5240_v32 }
 0x5b0   : > { %v5372_v15 = vsel %vm5361_vm11, nan, %v5371_v27  ;;  %v5245_v36 = vand.u32 2147483647, %v5244_v8  ;;  %v5394_v46 = vshrl.u32 %v6778_v35, %v5388_v57  ;;  %v4298_v23 = vrot.slane %v4293_v41, %v9773_v12 }
 0x5b1   : > { %6016 = vst.msk [vmem:[%s6891_s22 + $0x90] sm:$0xff] %vm5997_vm0, %v5372_v15  ;;  %6017 = vst.msk [vmem:[%s6891_s22 + $0x98] sm:$0xff] %vm5997_vm0, %v5372_v15  ;;  %v5539_v39 = vshrl.u32 %v5538_v11, 30  ;;  %v5390_v30 = vshll.u32 %v6776_v63, %v5387_v22  ;;  %v5397_v6 = vshrl.u32 %v6779_v49, %v5388_v57  ;;  %v5400_v13 = vshrl.u32 %v6780_v59, %v5388_v57 }
 0x5b2   : > { %v5248_v48 = vmul.f32 %v5247_v17, %v5245_v36  ;;  %v5386_v40 = vshrl.u32 %v5385_v43, 5  ;;  %v5393_v19 = vshll.u32 %v6777_v28, %v5387_v22  ;;  %v5399_v9 = vshll.u32 %v6779_v49, %v5387_v22 }
 0x5b3   : > { %v5540_v44 = vshll.u32 %v5539_v39, 30  ;;  %v5392_v4 = vor.u32 %v5391_v16, %v5390_v30  ;;  %v5396_v34 = vshll.u32 %v6778_v35, %v5387_v22  ;;  %v5403_v31 = vshrl.u32 %v6781_v53, %v5388_v57 }
 0x5b4   : > { %v5249_v33 = vxor.u32 2147483648, %v5248_v48  ;;  %v5395_v50 = vor.u32 %v5394_v46, %v5393_v19  ;;  %v5401_v7 = vor.u32 %v5400_v13, %v5399_v9  ;;  %v5402_v56 = vshll.u32 %v6780_v59, %v5387_v22 }
 0x5b5   : > { %v10735_v42 = vsub.s32 %v5537_v5, %v5540_v44  ;;  %v5398_v61 = vor.u32 %v5397_v6, %v5396_v34  ;;  %v5421_v29 = vshll.u32 %v5381_v21, 8  ;;  %v10738_v43 = vadd.f32 %v4298_v23, %v9812_v0 }
 0x5b6   : > { %v5250_v20 = vsel %vm5167_vm6, %v5249_v33, %v5248_v48  ;;  %v5389_v38 = vshrl.u32 %v6776_v63, %v5388_v57  ;;  %v5404_v45 = vor.u32 %v5403_v31, %v5402_v56  ;;  %vm5405_vm14 = vcmp.lt.s32.totalorder %v5386_v40, 1 }
 0x5b7   : > { %v5253_v52 = vsel %vm10679_vm9, %v10481_v37, %v5250_v20  ;;  %v5543_v55 = vsub.s32 0, %v10735_v42  ;;  %vm5406_vm1 = vcmp.lt.s32.totalorder %v5386_v40, 2  ;;  %vm5408_vm3 = vcmp.lt.s32.totalorder %v5386_v40, 4 }
 0x5b8   : > { %6716 = vcosq.f32 %v5253_v52  ;;  %vm5407_vm5 = vcmp.lt.s32.totalorder %v5386_v40, 3  ;;  %v5413_v0 = vsel %vm5405_vm14, %v5392_v4, %v5395_v50  ;;  %v5414_v22 = vsel %vm5408_vm3, %v5401_v7, 920167782 }
 0x5b9   : > { %6718 = vsinq.f32 %v5253_v52  ;;  %v6296_v47 = vmin.u32 %v5543_v55, %v10735_v42  ;;  %v5410_v32 = vsel %vm5408_vm3, %v5398_v61, 2102212464  ;;  %v5415_v60 = vsel %vm5407_vm5, %v5398_v61, %v5414_v22 }
 0x5ba   : > { %v5563_v10 = vsub.s32 4, %v5539_v39  ;;  %v5416_v54 = vsel %vm5406_vm1, %v5413_v0, %v5415_v60  ;;  %v5417_v18 = vsel %vm5405_vm14, %v5395_v50, %v5398_v61  ;;  %v5418_v5 = vsel %vm5408_vm3, %v5404_v45, 1326507024 }
 0x5bb   : > { %v5259_v57 = vand.u32 3, %v5258_v24  ;;  %v5545_v41 = vclz %v6296_v47  ;;  %v5409_v27 = vsel %vm5405_vm14, %v5389_v38, %v5392_v4  ;;  %v5411_v8 = vsel %vm5407_vm5, %v5395_v50, %v5410_v32 }
 0x5bc   : > { %v5419_v15 = vsel %vm5407_vm5, %v5401_v7, %v5418_v5  ;;  %v10752_v11 = vmul.u32.u64.low %v5421_v29, %v5416_v54  ;;  %v10753_v21 = vmul.u32.u64.high %v5421_v29, %v5416_v54, %v10752_v11  ;;  %vm5479_vm6 = vcmp.lt.s32.totalorder %v10597_v3, 0 }
 0x5bd   : > { %v6297_v16 = vadd.s32 4294967294, %v5545_v41  ;;  %v5420_v36 = vsel %vm5406_vm1, %v5417_v18, %v5419_v15  ;;  %v5688_v17 = vand.u32 2139095040, %v10738_v43  ;;  %v5564_v46 = vsel %vm5479_vm6, %v5563_v10, %v5539_v39 }
 0x5be   : > { %v10760_v23 = vmul.u32.u64.low %v5421_v29, %v5420_v36  ;;  %v10761_v24 = vmul.u32.u64.high %v5421_v29, %v5420_v36, %v10760_v23  ;;  %vm5257_vm9 = vweird.f32 %v10481_v37  ;;  %vm10766_vm2 = vcmp.le.f32.partialorder %v5477_v62, 0.7853982 }
 0x5bf   : > { %vm6298_vm4 = vcmp.lt.s32.totalorder %v6297_v16, 0  ;;  %v5412_v6 = vsel %vm5406_vm1, %v5409_v27, %v5411_v8  ;;  %v5689_v13 = vshrl.u32 %v5688_v17, 23  ;;  %vm5260_vm7 = vcmp.lt.s32.totalorder %v5259_v57, 2 }
 0x5c0   : > { %v5533_v48 = vadd.s32 %v10693_v58, %v10698_v51  ;;  %v5548_v39 = vsel %vm6298_vm4, 0, %v6297_v16  ;;  %v5431_v19 = vadd.s32 1, %v10753_v21  ;;  %v5566_v4 = vsel %vm10766_vm2, 0, %v5564_v46 }
 0x5c1   : > { %v5549_v9 = vsub.s32 32, %v5548_v39  ;;  %v5553_v44 = vsub.s32 4294967266, %v5548_v39  ;;  %v6303_v62 = vadd.s32 4294967169, %v5689_v13  ;;  %v5550_v31 = vshll.u32 %v10735_v42, %v5548_v39 }
 0x5c2   : > { %v6717_v34 = vpop.eup %6716  ;;  %v5428_v33 = vmul.u32 %v5421_v29, %v5412_v6  ;;  %vm5430_vm8 = vc.u32 %v10761_v24, %v10752_v11  ;;  %v5685_v40 = vand.u32 2147483647, %v10738_v43  ;;  %vm5264_vm12 = vcmp.eq.s32.totalorder %v5259_v57, 2  ;;  %v4284_v29 = vpop.permute.xlu0 %4283 }
 0x5c3   : > { %v6719_v50 = vpop.eup %6718  ;;  %v5265_v7 = vxor.u32 2147483648, %v6717_v34  ;;  %v5551_v58 = vshrl.u32 %v5533_v48, %v5549_v9  ;;  %v5554_v51 = vadd.s32 127, %v5553_v44  ;;  %v5432_v56 = vsel %vm5430_vm8, %v5431_v19, %v10753_v21 }
 0x5c4   : > { %v5262_v61 = vxor.u32 2147483648, %v6719_v50  ;;  %v5433_v20 = vadd.s32 %v5432_v56, %v5428_v33  ;;  %v5695_v38 = vadd.s32 1, %v6303_v62  ;;  %vm5261_vm10 = vcmp.eq.s32.totalorder %v5259_v57, 0 }
 0x5c5   : > { %v5266_v45 = vsel %vm5264_vm12, %v5265_v7, %v6719_v50  ;;  %v5552_v52 = vor.u32 %v5551_v58, %v5550_v31  ;;  %v5555_v42 = vshll.u32 %v5554_v51, 23  ;;  %v5570_v0 = vadd.s32 3, %v5566_v4 }
 0x5c6   : > { %v5263_v55 = vsel %vm5261_vm10, %v6717_v34, %v5262_v61  ;;  %v5434_v22 = vadd.s32 536870912, %v5433_v20  ;;  %vm5696_vm15 = vcmp.gt.s32.totalorder %v5695_v38, 0  ;;  %v5692_v60 = vand.u32 8388607, %v5685_v40 }
 0x5c7   : > { %v5267_v47 = vsel %vm5260_vm7, %v5263_v55, %v5266_v45  ;;  %v5556_v32 = vor.u32 4788187, %v5555_v42  ;;  %v5697_v10 = vsel %vm5696_vm15, %v5695_v38, 0  ;;  %v4289_v41 = vrot.slane %v4284_v29, %v9773_v12 }
 0x5c8   : > { %v5268_v54 = vsel %vm5257_vm9, nan, %v5267_v47  ;;  %v5435_v18 = vshrl.u32 %v5434_v22, 30  ;;  %v5699_v5 = vand.u32 31, %v5697_v10  ;;  %v5559_v8 = vcvt.s32.f32 %v5552_v52 }
 0x5c9   : > { %6014 = vst.msk [vmem:[%s6891_s22 + $0x80] sm:$0xff] %vm5997_vm0, %v5268_v54  ;;  %6015 = vst.msk [vmem:[%s6891_s22 + $0x88] sm:$0xff] %vm5997_vm0, %v5268_v54  ;;  %v5557_v27 = vand.u32 2147483647, %v5556_v32  ;;  %vm5375_vm13 = vcmp.lt.s32.totalorder %v10629_v26, 0  ;;  %v10791_v16 = vand.u32 3, %v5570_v0  ;;  %v5429_v37 = vadd.s32 %v10752_v11, %v10761_v24 }
 0x5ca   : > { %v5436_v57 = vshll.u32 %v5435_v18, 30  ;;  %v5700_v15 = vsub.s32 32, %v5699_v5  ;;  %v5693_v36 = vor.u32 8388608, %v5692_v60  ;;  %v10796_v46 = vshrl.u32 %v5697_v10, 5 }
 0x5cb   : > { %v5560_v21 = vmul.f32 %v5559_v8, %v5557_v27  ;;  %v10800_v6 = vadd.f32 %v4289_v41, %v9815_v1  ;;  %v5702_v48 = vshll.u32 %v6776_v63, %v5699_v5  ;;  %v5705_v11 = vshll.u32 %v6777_v28, %v5699_v5 }
 0x5cc   : > { %v10794_v17 = vsub.s32 %v5433_v20, %v5436_v57  ;;  %v5703_v23 = vshrl.u32 %v6777_v28, %v5700_v15  ;;  %v5706_v39 = vshrl.u32 %v6778_v35, %v5700_v15  ;;  %v5709_v19 = vshrl.u32 %v6779_v49, %v5700_v15 }
 0x5cd   : > { %v5561_v13 = vxor.u32 2147483648, %v5560_v21  ;;  %v5708_v24 = vshll.u32 %v6778_v35, %v5699_v5  ;;  %v5712_v44 = vshrl.u32 %v6780_v59, %v5700_v15  ;;  %v5459_v1 = vsub.s32 4, %v5435_v18 }
 0x5ce   : > { %v5439_v9 = vsub.s32 0, %v10794_v17  ;;  %v5704_v62 = vor.u32 %v5703_v23, %v5702_v48  ;;  %v5711_v34 = vshll.u32 %v6779_v49, %v5699_v5  ;;  %v5707_v50 = vor.u32 %v5706_v39, %v5705_v11 }
 0x5cf   : > { %v5562_v4 = vsel %vm5479_vm6, %v5561_v13, %v5560_v21  ;;  %v5710_v7 = vor.u32 %v5709_v19, %v5708_v24  ;;  %v5714_v51 = vshll.u32 %v6780_v59, %v5699_v5  ;;  %v5715_v56 = vshrl.u32 %v6781_v53, %v5700_v15 }
 0x5d0   : > { %v5565_v31 = vsel %vm10766_vm2, %v10597_v3, %v5562_v4  ;;  %v6292_v33 = vmin.u32 %v5439_v9, %v10794_v17  ;;  %v5713_v58 = vor.u32 %v5712_v44, %v5711_v34  ;;  %vm10820_vm11 = vcmp.le.f32.partialorder %v5373_v14, 0.7853982 }
 0x5d1   : > { %6720 = vcosq.f32 %v5565_v31  ;;  %v10824_v30 = vshll.u32 %v5693_v36, 8  ;;  %v5584_v38 = vand.u32 2139095040, %v10800_v6  ;;  %v5460_v45 = vsel %vm5375_vm13, %v5459_v1, %v5435_v18 }
 0x5d2   : > { %6722 = vsinq.f32 %v5565_v31  ;;  %v5441_v20 = vclz %v6292_v33  ;;  %v5701_v52 = vshrl.u32 %v6776_v63, %v5700_v15  ;;  %v5716_v42 = vor.u32 %v5715_v56, %v5714_v51 }
 0x5d3   : > { %vm5717_vm14 = vcmp.lt.s32.totalorder %v10796_v46, 1  ;;  %vm5719_vm1 = vcmp.lt.s32.totalorder %v10796_v46, 3  ;;  %vm5720_vm3 = vcmp.lt.s32.totalorder %v10796_v46, 4  ;;  %vm5718_vm6 = vcmp.lt.s32.totalorder %v10796_v46, 2 }
 0x5d4   : > { %v6293_v29 = vadd.s32 4294967294, %v5441_v20  ;;  %v5725_v14 = vsel %vm5717_vm14, %v5704_v62, %v5707_v50  ;;  %v5722_v55 = vsel %vm5720_vm3, %v5710_v7, 2102212464  ;;  %v5726_v0 = vsel %vm5720_vm3, %v5713_v58, 920167782  ;;  %v4311_v20 = vpop.permute.xlu1 %4310 }
 0x5d5   : > { %v5729_v22 = vsel %vm5717_vm14, %v5707_v50, %v5710_v7  ;;  %v5730_v47 = vsel %vm5720_vm3, %v5716_v42, 1326507024  ;;  %v5727_v32 = vsel %vm5719_vm1, %v5710_v7, %v5726_v0  ;;  %vm5572_vm9 = vcmp.lt.s32.totalorder %v10791_v16, 2 }
 0x5d6   : > { %vm6294_vm5 = vcmp.lt.s32.totalorder %v6293_v29, 0  ;;  %v5731_v60 = vsel %vm5719_vm1, %v5713_v58, %v5730_v47  ;;  %v5721_v54 = vsel %vm5717_vm14, %v5701_v52, %v5704_v62  ;;  %v5728_v18 = vsel %vm5718_vm6, %v5725_v14, %v5727_v32 }
 0x5d7   : > { %v5444_v10 = vsel %vm6294_vm5, 0, %v6293_v29  ;;  %v5732_v5 = vsel %vm5718_vm6, %v5729_v22, %v5731_v60  ;;  %vm5569_vm2 = vweird.f32 %v10597_v3  ;;  %v5723_v8 = vsel %vm5719_vm1, %v5707_v50, %v5722_v55 }
 0x5d8   : > { %v5445_v41 = vsub.s32 32, %v5444_v10  ;;  %v5449_v27 = vsub.s32 4294967266, %v5444_v10  ;;  %v5585_v57 = vshrl.u32 %v5584_v38, 23  ;;  %v5446_v13 = vshll.u32 %v10794_v17, %v5444_v10 }
 0x5d9   : > { %v10847_v15 = vmul.u32.u64.low %v10824_v30, %v5732_v5  ;;  %v10848_v21 = vmul.u32.u64.high %v10824_v30, %v5732_v5, %v10847_v15  ;;  %v10851_v36 = vmul.u32.u64.low %v10824_v30, %v5728_v18  ;;  %v10852_v23 = vmul.u32.u64.high %v10824_v30, %v5728_v18, %v10851_v36 }
 0x5da   : > { %v5447_v48 = vshrl.u32 %v5429_v37, %v5445_v41  ;;  %v5450_v39 = vadd.s32 127, %v5449_v27  ;;  %v6299_v19 = vadd.s32 4294967169, %v5585_v57  ;;  %vm5573_vm4 = vcmp.eq.s32.totalorder %v10791_v16, 0 }
 0x5db   : > { %v6721_v9 = vpop.eup %6720  ;;  %vm5576_vm7 = vcmp.eq.s32.totalorder %v10791_v16, 2  ;;  %v5462_v11 = vsel %vm10820_vm11, 0, %v5460_v45  ;;  %v5724_v24 = vsel %vm5718_vm6, %v5721_v54, %v5723_v8  ;;  %vm5742_vm8 = vc.u32 %v10848_v21, %v10851_v36 }
 0x5dc   : > { %v6723_v44 = vpop.eup %6722  ;;  %v5577_v4 = vxor.u32 2147483648, %v6721_v9  ;;  %v5448_v1 = vor.u32 %v5447_v48, %v5446_v13  ;;  %v5451_v62 = vshll.u32 %v5450_v39, 23  ;;  %v5591_v34 = vadd.s32 1, %v6299_v19 }
 0x5dd   : > { %v5574_v17 = vxor.u32 2147483648, %v6723_v44  ;;  %v5743_v37 = vadd.s32 1, %v10852_v23  ;;  %v5581_v31 = vand.u32 2147483647, %v10800_v6  ;;  %v5740_v46 = vmul.u32 %v10824_v30, %v5724_v24 }
 0x5de   : > { %v5578_v33 = vsel %vm5576_vm7, %v5577_v4, %v6723_v44  ;;  %v5452_v50 = vor.u32 4788187, %v5451_v62  ;;  %vm5592_vm12 = vcmp.gt.s32.totalorder %v5591_v34, 0  ;;  %v5466_v58 = vadd.s32 3, %v5462_v11 }
 0x5df   : > { %v5575_v7 = vsel %vm5573_vm4, %v6721_v9, %v5574_v17  ;;  %v5744_v51 = vsel %vm5742_vm8, %v5743_v37, %v10852_v23  ;;  %v5593_v56 = vsel %vm5592_vm12, %v5591_v34, 0  ;;  %v5455_v52 = vcvt.s32.f32 %v5448_v1 }
 0x5e0   : > { %v5579_v38 = vsel %vm5572_vm9, %v5575_v7, %v5578_v33  ;;  %v5453_v45 = vand.u32 2147483647, %v5452_v50  ;;  %v5745_v42 = vadd.s32 %v5744_v51, %v5740_v46  ;;  %v5595_v14 = vand.u32 31, %v5593_v56 }
 0x5e1   : > { %v5580_v29 = vsel %vm5569_vm2, nan, %v5579_v38  ;;  %v4316_v0 = vrot.slane %v4311_v20, %v9773_v12  ;;  %v10879_v22 = vand.u32 3, %v5466_v58  ;;  %v5588_v16 = vand.u32 8388607, %v5581_v31 }
 0x5e2   : > { %6020 = vst.msk [vmem:[%s6891_s22 + $0xb0] sm:$0xff] %vm5997_vm0, %v5580_v29  ;;  %6021 = vst.msk [vmem:[%s6891_s22 + $0xb8] sm:$0xff] %vm5997_vm0, %v5580_v29  ;;  %v5456_v30 = vmul.f32 %v5455_v52, %v5453_v45  ;;  %v5746_v55 = vadd.s32 536870912, %v5745_v42  ;;  %v5594_v47 = vshrl.u32 %v5593_v56, 5  ;;  %v5596_v32 = vsub.s32 32, %v5595_v14  ;;  %v4302_v52 = vpop.permute.xlu0 %4301 }
 0x5e3   : > { %v5598_v3 = vshll.u32 %v6776_v63, %v5595_v14  ;;  %v5601_v54 = vshll.u32 %v6777_v28, %v5595_v14  ;;  %v5604_v41 = vshll.u32 %v6778_v35, %v5595_v14  ;;  %v5607_v15 = vshll.u32 %v6779_v49, %v5595_v14 }
 0x5e4   : > { %v5457_v60 = vxor.u32 2147483648, %v5456_v30  ;;  %v10883_v10 = vshrl.u32 %v5746_v55, 30  ;;  %v5599_v18 = vshrl.u32 %v6777_v28, %v5596_v32  ;;  %v5602_v5 = vshrl.u32 %v6778_v35, %v5596_v32 }
 0x5e5   : > { %v5605_v27 = vshrl.u32 %v6779_v49, %v5596_v32  ;;  %v5608_v23 = vshrl.u32 %v6780_v59, %v5596_v32  ;;  %v5589_v11 = vor.u32 8388608, %v5588_v16  ;;  %v5610_v44 = vshll.u32 %v6780_v59, %v5595_v14 }
 0x5e6   : > { %v5458_v8 = vsel %vm5375_vm13, %v5457_v60, %v5456_v30  ;;  %v5748_v57 = vshll.u32 %v10883_v10, 30  ;;  %v5600_v48 = vor.u32 %v5599_v18, %v5598_v3  ;;  %v5603_v39 = vor.u32 %v5602_v5, %v5601_v54 }
 0x5e7   : > { %v5461_v13 = vsel %vm10820_vm11, %v10629_v26, %v5458_v8  ;;  %v5606_v19 = vor.u32 %v5605_v27, %v5604_v41  ;;  %v5609_v24 = vor.u32 %v5608_v23, %v5607_v15  ;;  %v5611_v4 = vshrl.u32 %v6781_v53, %v5596_v32 }
 0x5e8   : > { %6724 = vcosq.f32 %v5461_v13  ;;  %v10899_v9 = vsub.s32 %v5745_v42, %v5748_v57  ;;  %v10904_v1 = vadd.f32 %v4316_v0, %v9822_v2  ;;  %vm5687_vm10 = vcmp.lt.s32.totalorder %v10738_v43, 0 }
 0x5e9   : > { %6726 = vsinq.f32 %v5461_v13  ;;  %vm5613_vm15 = vcmp.lt.s32.totalorder %v5594_v47, 1  ;;  %vm5615_vm13 = vcmp.lt.s32.totalorder %v5594_v47, 3  ;;  %vm5616_vm11 = vcmp.lt.s32.totalorder %v5594_v47, 4 }
 0x5ea   : > { %v5751_v61 = vsub.s32 0, %v10899_v9  ;;  %v5612_v62 = vor.u32 %v5611_v4, %v5610_v44  ;;  %v5618_v34 = vsel %vm5616_vm11, %v5606_v19, 2102212464  ;;  %v5621_v17 = vsel %vm5613_vm15, %v5600_v48, %v5603_v39 }
 0x5eb   : > { %v5622_v37 = vsel %vm5616_vm11, %v5609_v24, 920167782  ;;  %v5597_v50 = vshrl.u32 %v6776_v63, %v5596_v32  ;;  %vm5614_vm14 = vcmp.lt.s32.totalorder %v5594_v47, 2  ;;  %v5625_v7 = vsel %vm5613_vm15, %v5603_v39, %v5606_v19 }
 0x5ec   : > { %v6304_v33 = vmin.u32 %v5751_v61, %v10899_v9  ;;  %v5623_v2 = vsel %vm5615_vm13, %v5606_v19, %v5622_v37  ;;  %v5626_v58 = vsel %vm5616_vm11, %v5612_v62, 1326507024  ;;  %v5629_v51 = vshll.u32 %v5589_v11, 8 }
 0x5ed   : > { %v5624_v46 = vsel %vm5614_vm14, %v5621_v17, %v5623_v2  ;;  %vm5468_vm1 = vcmp.lt.s32.totalorder %v10879_v22, 2  ;;  %vm5469_vm3 = vcmp.eq.s32.totalorder %v10879_v22, 0  ;;  %vm10918_vm5 = vcmp.le.f32.partialorder %v5685_v40, 0.7853982 }
 0x5ee   : > { %v5753_v20 = vclz %v6304_v33  ;;  %v5617_v38 = vsel %vm5613_vm15, %v5597_v50, %v5600_v48  ;;  %v5619_v45 = vsel %vm5615_vm13, %v5603_v39, %v5618_v34  ;;  %vm5465_vm6 = vweird.f32 %v10629_v26 }
 0x5ef   : > { %v5771_v42 = vsub.s32 4, %v10883_v10  ;;  %v5627_v29 = vsel %vm5615_vm13, %v5609_v24, %v5626_v58  ;;  %v10927_v14 = vmul.u32.u64.low %v5629_v51, %v5624_v46  ;;  %v10928_v30 = vmul.u32.u64.high %v5629_v51, %v5624_v46, %v10927_v14 }
 0x5f0   : > { %vm5472_vm9 = vcmp.eq.s32.totalorder %v10879_v22, 2  ;;  %v6305_v40 = vadd.s32 4294967294, %v5753_v20  ;;  %v5628_v55 = vsel %vm5614_vm14, %v5625_v7, %v5627_v29  ;;  %v5896_v0 = vand.u32 2139095040, %v10904_v1 }
 0x5f1   : > { %v5620_v16 = vsel %vm5614_vm14, %v5617_v38, %v5619_v45  ;;  %v10935_v32 = vmul.u32.u64.low %v5629_v51, %v5628_v55  ;;  %v10936_v60 = vmul.u32.u64.high %v5629_v51, %v5628_v55, %v10935_v32  ;;  %v4307_v3 = vrot.slane %v4302_v52, %v9773_v12 }
 0x5f2   : > { %v6725_v54 = vpop.eup %6724  ;;  %v5741_v18 = vadd.s32 %v10851_v36, %v10848_v21  ;;  %vm6306_vm2 = vcmp.lt.s32.totalorder %v6305_v40, 0  ;;  %v5893_v5 = vand.u32 2147483647, %v10904_v1  ;;  %v5897_v41 = vshrl.u32 %v5896_v0, 23 }
 0x5f3   : > { %v6727_v27 = vpop.eup %6726  ;;  %v5473_v8 = vxor.u32 2147483648, %v6725_v54  ;;  %v5756_v57 = vsel %vm6306_vm2, 0, %v6305_v40  ;;  %v5772_v47 = vsel %vm5687_vm10, %v5771_v42, %v10883_v10  ;;  %v5639_v15 = vadd.s32 1, %v10928_v30 }
 0x5f4   : > { %v5470_v23 = vxor.u32 2147483648, %v6727_v27  ;;  %v5757_v13 = vsub.s32 32, %v5756_v57  ;;  %v5761_v12 = vsub.s32 4294967266, %v5756_v57  ;;  %v5636_v48 = vmul.u32 %v5629_v51, %v5620_v16 }
 0x5f5   : > { %v5474_v21 = vsel %vm5472_vm9, %v5473_v8, %v6727_v27  ;;  %v5758_v36 = vshll.u32 %v10899_v9, %v5756_v57  ;;  %vm5638_vm4 = vc.u32 %v10936_v60, %v10927_v14  ;;  %v6311_v39 = vadd.s32 4294967169, %v5897_v41 }
 0x5f6   : > { %v5471_v10 = vsel %vm5469_vm3, %v6725_v54, %v5470_v23  ;;  %v5759_v19 = vshrl.u32 %v5741_v18, %v5757_v13  ;;  %v5762_v11 = vadd.s32 127, %v5761_v12  ;;  %v5640_v24 = vsel %vm5638_vm4, %v5639_v15, %v10928_v30 }
 0x5f7   : > { %v5475_v44 = vsel %vm5468_vm1, %v5471_v10, %v5474_v21  ;;  %v5774_v4 = vsel %vm10918_vm5, 0, %v5772_v47  ;;  %v5641_v61 = vadd.s32 %v5640_v24, %v5636_v48  ;;  %v5903_v62 = vadd.s32 1, %v6311_v39 }
 0x5f8   : > { %v5476_v9 = vsel %vm5465_vm6, nan, %v5475_v44  ;;  %v5760_v34 = vor.u32 %v5759_v19, %v5758_v36  ;;  %v5763_v17 = vshll.u32 %v5762_v11, 23  ;;  %v5778_v50 = vadd.s32 3, %v5774_v4 }
 0x5f9   : > { %6018 = vst.msk [vmem:[%s6891_s22 + $0xa0] sm:$0xff] %vm5997_vm0, %v5476_v9  ;;  %6019 = vst.msk [vmem:[%s6891_s22 + $0xa8] sm:$0xff] %vm5997_vm0, %v5476_v9  ;;  %v5642_v37 = vadd.s32 536870912, %v5641_v61  ;;  %vm5904_vm7 = vcmp.gt.s32.totalorder %v5903_v62, 0  ;;  %v5900_v46 = vand.u32 8388607, %v5893_v5  ;;  %v10969_v26 = vadd.f32 %v4307_v3, %v9825_v25 }
 0x5fa   : > { %v5764_v33 = vor.u32 4788187, %v5763_v17  ;;  %v5905_v22 = vsel %vm5904_vm7, %v5903_v62, 0  ;;  %v5767_v51 = vcvt.s32.f32 %v5760_v34  ;;  %v10972_v52 = vand.u32 3, %v5778_v50 }
 0x5fb   : > { %v10964_v2 = vshrl.u32 %v5642_v37, 30  ;;  %v5907_v7 = vand.u32 31, %v5905_v22  ;;  %v5901_v29 = vor.u32 8388608, %v5900_v46  ;;  %v5792_v40 = vand.u32 2139095040, %v10969_v26 }
 0x5fc   : > { %v5765_v58 = vand.u32 2147483647, %v5764_v33  ;;  %v5906_v27 = vshrl.u32 %v5905_v22, 5  ;;  %v5637_v36 = vadd.s32 %v10927_v14, %v10936_v60  ;;  %vm5583_vm15 = vcmp.lt.s32.totalorder %v10800_v6, 0 }
 0x5fd   : > { %v5644_v20 = vshll.u32 %v10964_v2, 30  ;;  %v5908_v38 = vsub.s32 32, %v5907_v7  ;;  %v5910_v0 = vshll.u32 %v6776_v63, %v5907_v7  ;;  %v5913_v3 = vshll.u32 %v6777_v28, %v5907_v7 }
 0x5fe   : > { %v5768_v45 = vmul.f32 %v5767_v51, %v5765_v58  ;;  %v5916_v54 = vshll.u32 %v6778_v35, %v5907_v7  ;;  %v5919_v57 = vshll.u32 %v6779_v49, %v5907_v7  ;;  %v5922_v48 = vshll.u32 %v6780_v59, %v5907_v7 }
 0x5ff   : > { %v10974_v42 = vsub.s32 %v5641_v61, %v5644_v20  ;;  %v5911_v30 = vshrl.u32 %v6777_v28, %v5908_v38  ;;  %v5914_v25 = vshrl.u32 %v6778_v35, %v5908_v38  ;;  %v5917_v16 = vshrl.u32 %v6779_v49, %v5908_v38 }
 0x600   : > { %v5769_v55 = vxor.u32 2147483648, %v5768_v45  ;;  %v5920_v18 = vshrl.u32 %v6780_v59, %v5908_v38  ;;  %v5923_v21 = vshrl.u32 %v6781_v53, %v5908_v38  ;;  %v5941_v10 = vshll.u32 %v5901_v29, 8 }
 0x601   : > { %v5647_v32 = vsub.s32 0, %v10974_v42  ;;  %v5912_v8 = vor.u32 %v5911_v30, %v5910_v0  ;;  %v5915_v23 = vor.u32 %v5914_v25, %v5913_v3  ;;  %v5918_v13 = vor.u32 %v5917_v16, %v5916_v54 }
 0x602   : > { %v5770_v41 = vsel %vm5687_vm10, %v5769_v55, %v5768_v45  ;;  %v5921_v12 = vor.u32 %v5920_v18, %v5919_v57  ;;  %v5909_v19 = vshrl.u32 %v6776_v63, %v5908_v38  ;;  %v5924_v56 = vor.u32 %v5923_v21, %v5922_v48 }
 0x603   : > { %v5773_v47 = vsel %vm10918_vm5, %v10738_v43, %v5770_v41  ;;  %v6300_v15 = vmin.u32 %v5647_v32, %v10974_v42  ;;  %vm5925_vm8 = vcmp.lt.s32.totalorder %v5906_v27, 1  ;;  %v5793_v11 = vshrl.u32 %v5792_v40, 23 }
 0x604   : > { %6728 = vcosq.f32 %v5773_v47  ;;  %vm5927_vm12 = vcmp.lt.s32.totalorder %v5906_v27, 3  ;;  %vm5928_vm10 = vcmp.lt.s32.totalorder %v5906_v27, 4  ;;  %v5933_v44 = vsel %vm5925_vm8, %v5912_v8, %v5915_v23 }
 0x605   : > { %6730 = vsinq.f32 %v5773_v47  ;;  %v5649_v39 = vclz %v6300_v15  ;;  %v5930_v4 = vsel %vm5928_vm10, %v5918_v13, 2102212464  ;;  %v5934_v61 = vsel %vm5928_vm10, %v5921_v12, 920167782 }
 0x606   : > { %v5937_v62 = vsel %vm5925_vm8, %v5915_v23, %v5918_v13  ;;  %v5938_v9 = vsel %vm5928_vm10, %v5924_v56, 1326507024  ;;  %vm5926_vm11 = vcmp.lt.s32.totalorder %v5906_v27, 2  ;;  %v5935_v14 = vsel %vm5927_vm12, %v5918_v13, %v5934_v61 }
 0x607   : > { %v6301_v24 = vadd.s32 4294967294, %v5649_v39  ;;  %v5939_v60 = vsel %vm5927_vm12, %v5921_v12, %v5938_v9  ;;  %vm5780_vm14 = vcmp.lt.s32.totalorder %v10972_v52, 2  ;;  %v5929_v17 = vsel %vm5925_vm8, %v5909_v19, %v5912_v8 }
 0x608   : > { %v5936_v37 = vsel %vm5926_vm11, %v5933_v44, %v5935_v14  ;;  %v5940_v33 = vsel %vm5926_vm11, %v5937_v62, %v5939_v60  ;;  %vm5777_vm1 = vweird.f32 %v10738_v43  ;;  %v5931_v46 = vsel %vm5927_vm12, %v5915_v23, %v5930_v4 }
 0x609   : > { %vm6302_vm13 = vcmp.lt.s32.totalorder %v6301_v24, 0  ;;  %v6307_v7 = vadd.s32 4294967169, %v5793_v11  ;;  %v11008_v58 = vmul.u32.u64.low %v5941_v10, %v5940_v33  ;;  %v11009_v51 = vmul.u32.u64.high %v5941_v10, %v5940_v33, %v11008_v58 }
 0x60a   : > { %v5652_v34 = vsel %vm6302_vm13, 0, %v6301_v24  ;;  %v11011_v20 = vmul.u32.u64.low %v5941_v10, %v5936_v37  ;;  %v11012_v38 = vmul.u32.u64.high %v5941_v10, %v5936_v37, %v11011_v20  ;;  %vm5781_vm3 = vcmp.eq.s32.totalorder %v10972_v52, 0 }
 0x60b   : > { %v5653_v50 = vsub.s32 32, %v5652_v34  ;;  %v5657_v22 = vsub.s32 4294967266, %v5652_v34  ;;  %v5654_v45 = vshll.u32 %v10974_v42, %v5652_v34  ;;  %v5799_v40 = vadd.s32 1, %v6307_v7 }
 0x60c   : > { %vm5784_vm5 = vcmp.eq.s32.totalorder %v10972_v52, 2  ;;  %v5667_v0 = vsub.s32 4, %v10964_v2  ;;  %v5932_v25 = vsel %vm5926_vm11, %v5929_v17, %v5931_v46  ;;  %vm5950_vm9 = vc.u32 %v11009_v51, %v11011_v20 }
 0x60d   : > { %v5655_v29 = vshrl.u32 %v5637_v36, %v5653_v50  ;;  %v5658_v30 = vadd.s32 127, %v5657_v22  ;;  %vm5800_vm6 = vcmp.gt.s32.totalorder %v5799_v40, 0  ;;  %v5951_v42 = vadd.s32 1, %v11012_v38 }
 0x60e   : > { %v6729_v55 = vpop.eup %6728  ;;  %v5789_v41 = vand.u32 2147483647, %v10969_v26  ;;  %v5948_v47 = vmul.u32 %v5941_v10, %v5932_v25  ;;  %v5801_v27 = vsel %vm5800_vm6, %v5799_v40, 0  ;;  %v5668_v23 = vsel %vm5583_vm15, %v5667_v0, %v10964_v2 }
 0x60f   : > { %v6731_v16 = vpop.eup %6730  ;;  %v5785_v32 = vxor.u32 2147483648, %v6729_v55  ;;  %v5656_v3 = vor.u32 %v5655_v29, %v5654_v45  ;;  %v5659_v54 = vshll.u32 %v5658_v30, 23  ;;  %v5952_v13 = vsel %vm5950_vm9, %v5951_v42, %v11012_v38 }
 0x610   : > { %v5782_v18 = vxor.u32 2147483648, %v6731_v16  ;;  %v5803_v12 = vand.u32 31, %v5801_v27  ;;  %v5953_v39 = vadd.s32 %v5952_v13, %v5948_v47  ;;  %vm11036_vm2 = vcmp.le.f32.partialorder %v5581_v31, 0.7853982 }
 0x611   : > { %v5786_v8 = vsel %vm5784_vm5, %v5785_v32, %v6731_v16  ;;  %v5660_v57 = vor.u32 4788187, %v5659_v54  ;;  %v5663_v36 = vcvt.s32.f32 %v5656_v3  ;;  %v5796_v2 = vand.u32 8388607, %v5789_v41 }
 0x612   : > { %v5783_v15 = vsel %vm5781_vm3, %v6729_v55, %v5782_v18  ;;  %v5804_v56 = vsub.s32 32, %v5803_v12  ;;  %v5670_v11 = vsel %vm11036_vm2, 0, %v5668_v23  ;;  %v5954_v43 = vadd.s32 536870912, %v5953_v39 }
 0x613   : > { %v5787_v48 = vsel %vm5780_vm14, %v5783_v15, %v5786_v8  ;;  %v5661_v21 = vand.u32 2147483647, %v5660_v57  ;;  %v5802_v24 = vshrl.u32 %v5801_v27, 5  ;;  %v5806_v44 = vshll.u32 %v6776_v63, %v5803_v12 }
 0x614   : > { %v5788_v10 = vsel %vm5777_vm1, nan, %v5787_v48  ;;  %v5807_v31 = vshrl.u32 %v6777_v28, %v5804_v56  ;;  %v5809_v4 = vshll.u32 %v6777_v28, %v5803_v12  ;;  %v5810_v61 = vshrl.u32 %v6778_v35, %v5804_v56 }
 0x615   : > { %6024 = vst.msk [vmem:[%s6891_s22 + $0xd0] sm:$0xff] %vm5997_vm0, %v5788_v10  ;;  %6025 = vst.msk [vmem:[%s6891_s22 + $0xd8] sm:$0xff] %vm5997_vm0, %v5788_v10  ;;  %v5664_v52 = vmul.f32 %v5663_v36, %v5661_v21  ;;  %v11052_v9 = vshrl.u32 %v5954_v43, 30  ;;  %v5813_v14 = vshrl.u32 %v6779_v49, %v5804_v56  ;;  %v5816_v60 = vshrl.u32 %v6780_v59, %v5804_v56 }
 0x616   : > { %v5812_v34 = vshll.u32 %v6778_v35, %v5803_v12  ;;  %v5815_v17 = vshll.u32 %v6779_v49, %v5803_v12  ;;  %v5818_v37 = vshll.u32 %v6780_v59, %v5803_v12  ;;  %v5819_v33 = vshrl.u32 %v6781_v53, %v5804_v56 }
 0x617   : > { %v5665_v62 = vxor.u32 2147483648, %v5664_v52  ;;  %v5956_v50 = vshll.u32 %v11052_v9, 30  ;;  %v5808_v22 = vor.u32 %v5807_v31, %v5806_v44  ;;  %v5811_v46 = vor.u32 %v5810_v61, %v5809_v4 }
 0x618   : > { %v5817_v58 = vor.u32 %v5816_v60, %v5815_v17  ;;  %v5820_v38 = vor.u32 %v5819_v33, %v5818_v37  ;;  %v5814_v49 = vor.u32 %v5813_v14, %v5812_v34  ;;  %v5674_v59 = vadd.s32 3, %v5670_v11 }
 0x619   : > { %v5666_v28 = vsel %vm5583_vm15, %v5665_v62, %v5664_v52  ;;  %v5957_v35 = vsub.s32 %v5953_v39, %v5956_v50  ;;  %v5797_v45 = vor.u32 8388608, %v5796_v2  ;;  %vm5821_vm4 = vcmp.lt.s32.totalorder %v5802_v24, 1 }
 0x61a   : > { %v5669_v7 = vsel %vm11036_vm2, %v10800_v6, %v5666_v28  ;;  %v5805_v29 = vshrl.u32 %v6776_v63, %v5804_v56  ;;  %vm5824_vm7 = vcmp.lt.s32.totalorder %v5802_v24, 4  ;;  %v5829_v30 = vsel %vm5821_vm4, %v5808_v22, %v5811_v46 }
 0x61b   : > { %6732 = vcosq.f32 %v5669_v7  ;;  %v5959_v53 = vsub.s32 0, %v5957_v35  ;;  %vm5822_vm8 = vcmp.lt.s32.totalorder %v5802_v24, 2  ;;  %vm5823_vm12 = vcmp.lt.s32.totalorder %v5802_v24, 3 }
 0x61c   : > { %6734 = vsinq.f32 %v5669_v7  ;;  %v5830_v40 = vsel %vm5824_vm7, %v5817_v58, 920167782  ;;  %v5834_v55 = vsel %vm5824_vm7, %v5820_v38, 1326507024  ;;  %v5826_v25 = vsel %vm5824_vm7, %v5814_v49, 2102212464 }
 0x61d   : > { %v6312_v0 = vmin.u32 %v5959_v53, %v5957_v35  ;;  %v5831_v16 = vsel %vm5823_vm12, %v5814_v49, %v5830_v40  ;;  %v5833_v32 = vsel %vm5821_vm4, %v5811_v46, %v5814_v49  ;;  %v5835_v54 = vsel %vm5823_vm12, %v5817_v58, %v5834_v55 }
 0x61e   : > { %v5832_v3 = vsel %vm5822_vm8, %v5829_v30, %v5831_v16  ;;  %v5837_v18 = vshll.u32 %v5797_v45, 8  ;;  %v5675_v42 = vand.u32 3, %v5674_v59  ;;  %v5825_v63 = vsel %vm5821_vm4, %v5805_v29, %v5808_v22 }
 0x61f   : > { %v5961_v8 = vclz %v6312_v0  ;;  %v5827_v57 = vsel %vm5823_vm12, %v5811_v46, %v5826_v25  ;;  %v5836_v47 = vsel %vm5822_vm8, %v5833_v32, %v5835_v54  ;;  %v5949_v56 = vadd.s32 %v11011_v20, %v11009_v51 }
 0x620   : > { %v11072_v27 = vmul.u32.u64.low %v5837_v18, %v5832_v3  ;;  %v11073_v15 = vmul.u32.u64.high %v5837_v18, %v5832_v3, %v11072_v27  ;;  %v11075_v13 = vmul.u32.u64.low %v5837_v18, %v5836_v47  ;;  %v11076_v12 = vmul.u32.u64.high %v5837_v18, %v5836_v47, %v11075_v13 }
 0x621   : > { %v6313_v23 = vadd.s32 4294967294, %v5961_v8  ;;  %vm5676_vm10 = vcmp.lt.s32.totalorder %v5675_v42, 2  ;;  %vm5677_vm15 = vcmp.eq.s32.totalorder %v5675_v42, 0  ;;  %v5828_v21 = vsel %vm5822_vm8, %v5825_v63, %v5827_v57 }
 0x622   : > { %vm5680_vm11 = vcmp.eq.s32.totalorder %v5675_v42, 2  ;;  %v5847_v19 = vadd.s32 1, %v11073_v15  ;;  %v5844_v31 = vmul.u32 %v5837_v18, %v5828_v21  ;;  %vm5846_vm14 = vc.u32 %v11076_v12, %v11072_v27 }
 0x623   : > { %vm6314_vm13 = vcmp.lt.s32.totalorder %v6313_v23, 0  ;;  %vm5673_vm1 = vweird.f32 %v10800_v6  ;;  %v5979_v7 = vsub.s32 4, %v11052_v9  ;;  %vm5895_vm3 = vcmp.lt.s32.totalorder %v10904_v1, 0 }
 0x624   : > { %v5964_v10 = vsel %vm6314_vm13, 0, %v6313_v23  ;;  %v5848_v62 = vsel %vm5846_vm14, %v5847_v19, %v11073_v15  ;;  %vm5894_vm5 = vcmp.le.f32.partialorder %v5893_v5, 0.7853982  ;;  %v5845_v0 = vadd.s32 %v11072_v27, %v11076_v12 }
 0x625   : > { %v6733_v48 = vpop.eup %6732  ;;  %v5965_v52 = vsub.s32 32, %v5964_v10  ;;  %v5969_v11 = vsub.s32 4294967266, %v5964_v10  ;;  %v5966_v44 = vshll.u32 %v5957_v35, %v5964_v10  ;;  %v5849_v51 = vadd.s32 %v5848_v62, %v5844_v31 }
 0x626   : > { %v6735_v36 = vpop.eup %6734  ;;  %v5681_v39 = vxor.u32 2147483648, %v6733_v48  ;;  %v5980_v49 = vsel %vm5895_vm3, %v5979_v7, %v11052_v9  ;;  %vm5985_vm7 = vweird.f32 %v10904_v1  ;;  %vm5791_vm8 = vcmp.lt.s32.totalorder %v10969_v26, 0 }
 0x627   : > { %v5678_v2 = vxor.u32 2147483648, %v6735_v36  ;;  %v5967_v4 = vshrl.u32 %v5949_v56, %v5965_v52  ;;  %v5970_v61 = vadd.s32 127, %v5969_v11  ;;  %v5850_v17 = vadd.s32 536870912, %v5849_v51 }
 0x628   : > { %v5682_v43 = vsel %vm5680_vm11, %v5681_v39, %v6735_v36  ;;  %v5982_v53 = vsel %vm5894_vm5, 0, %v5980_v49  ;;  %vm5790_vm12 = vcmp.le.f32.partialorder %v5789_v41, 0.7853982  ;;  %vm5881_vm11 = vweird.f32 %v10969_v26 }
 0x629   : > { %v5679_v24 = vsel %vm5677_vm15, %v6733_v48, %v5678_v2  ;;  %v5968_v60 = vor.u32 %v5967_v4, %v5966_v44  ;;  %v5971_v34 = vshll.u32 %v5970_v61, 23  ;;  %v5851_v33 = vshrl.u32 %v5850_v17, 30 }
 0x62a   : > { %v5683_v14 = vsel %vm5676_vm10, %v5679_v24, %v5682_v43  ;;  %v5986_v40 = vadd.s32 3, %v5982_v53 }
 0x62b   : > { %v5684_v20 = vsel %vm5673_vm1, nan, %v5683_v14  ;;  %v5972_v37 = vor.u32 4788187, %v5971_v34  ;;  %v5975_v50 = vcvt.s32.f32 %v5968_v60  ;;  %v5852_v22 = vshll.u32 %v5851_v33, 30 }
 0x62c   : > { %6022 = vst.msk [vmem:[%s6891_s22 + $0xc0] sm:$0xff] %vm5997_vm0, %v5684_v20  ;;  %6023 = vst.msk [vmem:[%s6891_s22 + $0xc8] sm:$0xff] %vm5997_vm0, %v5684_v20  ;;  %v5987_v32 = vand.u32 3, %v5986_v40  ;;  %v5875_v36 = vsub.s32 4, %v5851_v33 }
 0x62d   : > { %v5973_v28 = vand.u32 2147483647, %v5972_v37  ;;  %v5853_v6 = vsub.s32 %v5849_v51, %v5852_v22 }
 0x62e   : > { %vm5992_vm9 = vcmp.eq.s32.totalorder %v5987_v32, 2  ;;  %vm5989_vm2 = vcmp.eq.s32.totalorder %v5987_v32, 0  ;;  %vm5988_vm4 = vcmp.lt.s32.totalorder %v5987_v32, 2  ;;  %v5876_v19 = vsel %vm5791_vm8, %v5875_v36, %v5851_v33 }
 0x62f   : > { %v5976_v46 = vmul.f32 %v5975_v50, %v5973_v28  ;;  %v5855_v38 = vsub.s32 0, %v5853_v6  ;;  %v5878_v2 = vsel %vm5790_vm12, 0, %v5876_v19 }
 0x630   : > { %v5882_v56 = vadd.s32 3, %v5878_v2 }
 0x631   : > { %v5977_v58 = vxor.u32 2147483648, %v5976_v46  ;;  %v6308_v45 = vmin.u32 %v5855_v38, %v5853_v6 }
 0x632   : > { %v5883_v52 = vand.u32 3, %v5882_v56 }
 0x633   : > { %v5978_v35 = vsel %vm5895_vm3, %v5977_v58, %v5976_v46  ;;  %v5857_v29 = vclz %v6308_v45 }
 0x634   : > { %v5981_v59 = vsel %vm5894_vm5, %v10904_v1, %v5978_v35  ;;  %vm5888_vm10 = vcmp.eq.s32.totalorder %v5883_v52, 2  ;;  %vm5885_vm15 = vcmp.eq.s32.totalorder %v5883_v52, 0  ;;  %vm5884_vm13 = vcmp.lt.s32.totalorder %v5883_v52, 2 }
 0x635   : > { %6736 = vcosq.f32 %v5981_v59  ;;  %v6309_v30 = vadd.s32 4294967294, %v5857_v29 }
 0x636   : > { %6738 = vsinq.f32 %v5981_v59 }
 0x637   : > { %vm6310_vm6 = vcmp.lt.s32.totalorder %v6309_v30, 0 }
 0x638   : > { %v5860_v55 = vsel %vm6310_vm6, 0, %v6309_v30 }
 0x639   : > { %v5861_v25 = vsub.s32 32, %v5860_v55  ;;  %v5865_v16 = vsub.s32 4294967266, %v5860_v55  ;;  %v5862_v5 = vshll.u32 %v5853_v6, %v5860_v55 }
 0x63b   : > { %v5863_v3 = vshrl.u32 %v5845_v0, %v5861_v25  ;;  %v5866_v54 = vadd.s32 127, %v5865_v16 }
 0x63d   : > { %v5864_v8 = vor.u32 %v5863_v3, %v5862_v5  ;;  %v5867_v63 = vshll.u32 %v5866_v54, 23 }
 0x63f   : > { %v6737_v9 = vpop.eup %6736  ;;  %v5868_v15 = vor.u32 4788187, %v5867_v63  ;;  %v5871_v12 = vcvt.s32.f32 %v5864_v8 }
 0x640   : > { %v6739_v18 = vpop.eup %6738  ;;  %v5993_v42 = vxor.u32 2147483648, %v6737_v9 }
 0x641   : > { %v5990_v57 = vxor.u32 2147483648, %v6739_v18  ;;  %v5869_v13 = vand.u32 2147483647, %v5868_v15 }
 0x642   : > { %v5994_v47 = vsel %vm5992_vm9, %v5993_v42, %v6739_v18 }
 0x643   : > { %v5991_v27 = vsel %vm5989_vm2, %v6737_v9, %v5990_v57  ;;  %v5872_v21 = vmul.f32 %v5871_v12, %v5869_v13 }
 0x644   : > { %v5995_v23 = vsel %vm5988_vm4, %v5991_v27, %v5994_v47 }
 0x645   : > { %v5996_v48 = vsel %vm5985_vm7, nan, %v5995_v23  ;;  %v5873_v39 = vxor.u32 2147483648, %v5872_v21 }
 0x646   : > { %6028 = vst.msk [vmem:[%s6891_s22 + $0xf0] sm:$0xff] %vm5997_vm0, %v5996_v48  ;;  %6029 = vst.msk [vmem:[%s6891_s22 + $0xf8] sm:$0xff] %vm5997_vm0, %v5996_v48 }
 0x647   : > { %v5874_v10 = vsel %vm5791_vm8, %v5873_v39, %v5872_v21 }
 0x648   : > { %v5877_v1 = vsel %vm5790_vm12, %v10969_v26, %v5874_v10 }
 0x649   : > { %6740 = vcosq.f32 %v5877_v1 }
 0x64a   : > { %6742 = vsinq.f32 %v5877_v1 }
 0x653   : > { %v6741_v11 = vpop.eup %6740 }
 0x654   : > { %v6743_v43 = vpop.eup %6742  ;;  %v5889_v44 = vxor.u32 2147483648, %v6741_v11 }
 0x655   : > { %v5886_v31 = vxor.u32 2147483648, %v6743_v43 }
 0x656   : > { %v5890_v24 = vsel %vm5888_vm10, %v5889_v44, %v6743_v43 }
 0x657   : > { %v5887_v41 = vsel %vm5885_vm15, %v6741_v11, %v5886_v31 }
 0x658   : > { %v5891_v4 = vsel %vm5884_vm13, %v5887_v41, %v5890_v24 }
 0x659   : > { %v5892_v61 = vsel %vm5881_vm11, nan, %v5891_v4 }
 0x65a   : > { %6026 = vst.msk [vmem:[%s6891_s22 + $0xe0] sm:$0xff] %vm5997_vm0, %v5892_v61  ;;  %6027 = vst.msk [vmem:[%s6891_s22 + $0xe8] sm:$0xff] %vm5997_vm0, %v5892_v61 }
 0x65b PF: > { %s12_s11 = sadd.s32 1, %s6766_s11   ;;  %s11308_s9 = smov %s6762_s10 }
 0x65c   : > { %p9_p7 = scmp.ge.s32.totalorder %s12_s11, 4   ;;  %s11309_s10 = smov %s11311_s12 }
 0x65e   :  { %11 = sbr.rel (!%p9_p7) target bundleno = 2 (0x2), region = 69 }

</bundles_post_ra>
